<compile_context>
chip_gen: v5e
topology: v5e:2x2
jax: 0.10.0
libtpu: 0.0.40
codegen_flags: <defaults>
</compile_context>

<pallas_src>
import numpy as np
import jax
import jax.numpy as jnp
from jax import lax
from jax.experimental import pallas as pl
from jax.experimental.pallas import tpu as pltpu

BN_EPS = 1e-5
BN_SCALE = float(1.0 / np.sqrt(1.0 + BN_EPS))   # eval-mode BN(affine=False), fresh stats

# vertical tap offsets (in the 4-row-padded input frame) used by the fused stage-1 matmul
V1_OFFSETS = (0, 2, 3, 4, 5, 6, 8)
# vertical tap indices (dy + 2) of the sepconv stage-2 convs
V2_OFFSETS = (0, 1, 2, 3, 4)


# --------------------------------------------------------------------------------------
# Pallas kernel: single invocation, both edges unrolled, two MXU matmuls total.
# --------------------------------------------------------------------------------------
def _make_node_kernel(E, N, H, W, C):
    Wc = W * C
    NH = N * H
    S1 = 2 * E * Wc          # width of the concatenated sepconv "mid" block (stage-2 input)
    NEG = -1e30              # python float -> immediate, NOT a captured jnp constant

    def kernel(scales_ref,                  # SMEM (E, 3): alpha*BN for max/avg, alpha for skip
               x_ref,                       # VMEM (E, N, H+8, Wc) zero-padded activations
               inv_ref,                     # VMEM (NH, Wc) avg-pool inverse-count map
               w1_ref,                      # VMEM (E*7*Wc, (2E+1)*Wc) bf16 fused stage-1 weights
               w2_ref,                      # VMEM (5*2E*Wc, Wc)       bf16 fused stage-2 weights
               out_ref,                     # VMEM (NH, Wc) output
               pad2_ref):                   # VMEM (N, H+16, S1) aligned stage-2 staging buffer

        # ---- stage 1: one fused im2col matmul on the MXU -----------------------------
        # LHS lane blocks: [edge0 taps v0..v6 | edge1 taps v0..v6], each tap a (NH, Wc) slab.
        slabs = []
        for e in range(E):
            for v in V1_OFFSETS:
                s = jnp.maximum(x_ref[e, :, v:v + H, :], 0.0)       # ReLU; pad rows stay 0
                slabs.append(s.reshape(NH, Wc).astype(jnp.bfloat16))
        lhs1 = jnp.concatenate(slabs, axis=1)                        # (NH, E*7*Wc) bf16
        st1 = jnp.dot(lhs1, w1_ref[...], preferred_element_type=jnp.float32)
        # st1 columns: [sep3_e0 | sep5_e0 | sep3_e1 | sep5_e1 | alpha-weighted dilconv sum]

        acc = st1[:, S1:S1 + Wc]                                     # dilconv3x3 + dilconv5x5

        # ---- stage 2: all sepconv second halves as one matmul -------------------------
        # Tile-aligned staging: interior at rows 8..8+H-1 (full-tile store), halos zeroed.
        pad2_ref[:, 0:8, :] = jnp.zeros((N, 8, S1), jnp.float32)
        pad2_ref[:, 8 + H:16 + H, :] = jnp.zeros((N, 8, S1), jnp.float32)
        pad2_ref[:, 8:8 + H, :] = jnp.maximum(st1[:, 0:S1], 0.0).reshape(N, H, S1)
        slabs2 = [pad2_ref[:, 6 + vi:6 + vi + H, :].reshape(NH, S1).astype(jnp.bfloat16)
                  for vi in V2_OFFSETS]
        lhs2 = jnp.concatenate(slabs2, axis=1)                       # (NH, 5*S1) bf16
        acc = acc + jnp.dot(lhs2, w2_ref[...], preferred_element_type=jnp.float32)

        # ---- pooling / skip path (VPU + XLU), kept in f32 ------------------------------
        lane = lax.broadcasted_iota(jnp.int32, (NH, Wc), 1)
        hloc = lax.broadcasted_iota(jnp.int32, (NH, Wc), 0) % H      # row within image
        lok = lane >= C                       # column w-1 exists
        rok = lane < (W - 1) * C              # column w+1 exists
        inv = inv_ref[...]
        left = lambda t: pltpu.roll(t, shift=C, axis=1)              # value of column w-1
        right = lambda t: pltpu.roll(t, shift=Wc - C, axis=1)        # value of column w+1

        for e in range(E):
            up = x_ref[e, :, 3:3 + H, :].reshape(NH, Wc)
            md = x_ref[e, :, 4:4 + H, :].reshape(NH, Wc)
            dn = x_ref[e, :, 5:5 + H, :].reshape(NH, Wc)

            # skip connect (stride 1 -> identity)
            acc = acc + md * scales_ref[e, 2]

            # max pool 3x3, pad 1 (-inf padding) + BN
            vm = jnp.maximum(md, jnp.where(hloc == 0, NEG, up))
            vm = jnp.maximum(vm, jnp.where(hloc == H - 1, NEG, dn))
            hm = jnp.maximum(vm, jnp.where(lok, left(vm), NEG))
            hm = jnp.maximum(hm, jnp.where(rok, right(vm), NEG))
            acc = acc + hm * scales_ref[e, 0]

            # avg pool 3x3, pad 1, count_include_pad=False + BN
            vs = up + md + dn
            hs = vs + jnp.where(lok, left(vs), 0.0) + jnp.where(rok, right(vs), 0.0)
            acc = acc + hs * inv * scales_ref[e, 1]

        # DropPath(p=0) == identity; InputChoice sums the chosen (= both) edges.
        out_ref[...] = acc

    return kernel


# --------------------------------------------------------------------------------------
# Host-side construction of per-edge fused dw∘pw block matrices (BN scale / alpha folded).
# --------------------------------------------------------------------------------------
def _build_edge_matrices(raw_e, alpha_e, C, W):
    Wc = W * C

    def tap_block(dw, pw, ky, kx, scale):
        dwv = np.asarray(dw)[:, 0, ky, kx]          # (C,)  indexed by ci
        pwm = np.asarray(pw)[:, :, 0, 0]            # (co, ci)
        return (dwv[:, None] * pwm.T * scale).astype(np.float32)   # (ci, co)

    # stage 1: sep3-dw1/pw1, sep5-dw1/pw1, dil3, dil5  -> output column blocks 0..3
    m1 = np.zeros((len(V1_OFFSETS), Wc, 4 * Wc), np.float32)
    stage1 = [
        (raw_e['s3'][0], raw_e['s3'][1], 3, 1, 1, 0, BN_SCALE),
        (raw_e['s5'][0], raw_e['s5'][1], 5, 1, 2, 1, BN_SCALE),
        (raw_e['d3'][0], raw_e['d3'][1], 3, 2, 2, 2, BN_SCALE * float(alpha_e[5])),
        (raw_e['d5'][0], raw_e['d5'][1], 5, 2, 4, 3, BN_SCALE * float(alpha_e[6])),
    ]
    for dw, pw, k, d, p, blk, scale in stage1:
        for ky in range(k):
            vi = V1_OFFSETS.index(4 + ky * d - p)
            for kx in range(k):
                blkw = tap_block(dw, pw, ky, kx, scale)
                for w in range(W):
                    wp = w + kx * d - p
                    if 0 <= wp < W:                 # out-of-range taps = zero padding
                        m1[vi, wp * C:(wp + 1) * C,
                           blk * Wc + w * C: blk * Wc + (w + 1) * C] += blkw

    # stage 2: sep3-dw2/pw2 (input block 0), sep5-dw2/pw2 (input block 1); alphas folded.
    m2 = np.zeros((len(V2_OFFSETS), 2 * Wc, Wc), np.float32)
    stage2 = [
        (raw_e['s3'][2], raw_e['s3'][3], 3, 1, 1, 0, BN_SCALE * float(alpha_e[3])),
        (raw_e['s5'][2], raw_e['s5'][3], 5, 1, 2, 1, BN_SCALE * float(alpha_e[4])),
    ]
    for dw, pw, k, d, p, blk, scale in stage2:
        for ky in range(k):
            vi = 2 + ky * d - p
            for kx in range(k):
                blkw = tap_block(dw, pw, ky, kx, scale)
                for w in range(W):
                    wp = w + kx * d - p
                    if 0 <= wp < W:
                        m2[vi, blk * Wc + wp * C: blk * Wc + (wp + 1) * C,
                           w * C:(w + 1) * C] += blkw
    return m1, m2


def _build_fused_matrices(raw, alphas, E, C, W):
    """Assemble the per-edge matrices into the two fused (K-concat) matmul weights."""
    Wc = W * C
    K1, N1 = E * len(V1_OFFSETS) * Wc, (2 * E + 1) * Wc
    K2 = len(V2_OFFSETS) * 2 * E * Wc
    w1 = np.zeros((K1, N1), np.float32)
    w2 = np.zeros((K2, Wc), np.float32)
    for e in range(E):
        m1, m2 = _build_edge_matrices(raw[e], alphas[e], C, W)
        for vi in range(len(V1_OFFSETS)):
            r0 = (e * len(V1_OFFSETS) + vi) * Wc
            # sepconv mids stay per-edge (relu in between); dilconv outputs sum over edges.
            w1[r0:r0 + Wc, 2 * e * Wc:(2 * e + 2) * Wc] = m1[vi][:, 0:2 * Wc]
            w1[r0:r0 + Wc, 2 * E * Wc:] = (m1[vi][:, 2 * Wc:3 * Wc]
                                           + m1[vi][:, 3 * Wc:4 * Wc])
        for vi in range(len(V2_OFFSETS)):
            for op in range(2):                      # 0 = sep3 stage-2, 1 = sep5 stage-2
                b = 2 * e + op
                r0 = (vi * 2 * E + b) * Wc
                w2[r0:r0 + Wc, :] = m2[vi][op * Wc:(op + 1) * Wc, :]
    return w1, w2


# --------------------------------------------------------------------------------------
# Wrapper: layout plumbing, parameter packing, memory spaces.
# --------------------------------------------------------------------------------------
def darts_node_forward(prev_nodes_nchw, params):
    E = len(prev_nodes_nchw)
    N, C, H, W = prev_nodes_nchw[0].shape
    Wc, Hp, NH = W * C, H + 8, N * H
    S1 = 2 * E * Wc

    # NCHW -> lane-dense (N, H, W*C), then zero-pad 4 rows top/bottom -> (N, Hp, Wc)
    def to_lane(x):
        x = jnp.transpose(x, (0, 2, 3, 1)).reshape(N, H, Wc)
        return jnp.pad(x, ((0, 0), (4, 4), (0, 0)))

    x_lane = jnp.stack([to_lane(p) for p in prev_nodes_nchw], 0)          # (E, N, Hp, Wc)

    alphas = np.asarray(params['alphas'], dtype=np.float32)               # (E, 7)
    scales = jnp.asarray(np.stack([alphas[:, 0] * BN_SCALE,
                                   alphas[:, 1] * BN_SCALE,
                                   alphas[:, 2]], axis=1).astype(np.float32))  # (E, 3)

    w1_np, w2_np = _build_fused_matrices(params['raw'], alphas, E, C, W)
    w1 = jnp.asarray(w1_np, dtype=jnp.bfloat16)                           # (E*7*Wc, (2E+1)*Wc)
    w2 = jnp.asarray(w2_np, dtype=jnp.bfloat16)                           # (5*2E*Wc, Wc)

    # avg-pool divisor map (count_include_pad=False, 3x3, stride 1, pad 1), lane-dense
    cnt = np.zeros((H, W), np.float32)
    for i in range(H):
        for j in range(W):
            cnt[i, j] = ((min(i + 1, H - 1) - max(i - 1, 0) + 1)
                         * (min(j + 1, W - 1) - max(j - 1, 0) + 1))
    invmap = jnp.asarray(np.tile(np.repeat(1.0 / cnt, C, axis=1), (N, 1)).astype(np.float32))

    kernel = _make_node_kernel(E, N, H, W, C)

    K1, N1 = E * len(V1_OFFSETS) * Wc, (2 * E + 1) * Wc
    K2 = len(V2_OFFSETS) * S1
    cost = pl.CostEstimate(
        flops=2 * NH * K1 * N1 + 2 * NH * K2 * Wc + 30 * E * NH * Wc,
        transcendentals=0,
        bytes_accessed=int((x_lane.size + invmap.size + scales.size + NH * Wc) * 4
                           + (w1.size + w2.size) * 2))

    out_flat = pl.pallas_call(
        kernel,
        out_shape=jax.ShapeDtypeStruct((NH, Wc), jnp.float32),
        in_specs=[
            pl.BlockSpec(memory_space=pltpu.MemorySpace.SMEM),   # (E, 3) pool/skip scales
            pl.BlockSpec(memory_space=pltpu.MemorySpace.VMEM),   # padded activations
            pl.BlockSpec(memory_space=pltpu.MemorySpace.VMEM),   # avg-pool divisor map
            pl.BlockSpec(memory_space=pltpu.MemorySpace.VMEM),   # fused stage-1 weights (bf16)
            pl.BlockSpec(memory_space=pltpu.MemorySpace.VMEM),   # fused stage-2 weights (bf16)
        ],
        out_specs=pl.BlockSpec(memory_space=pltpu.MemorySpace.VMEM),
        scratch_shapes=[pltpu.VMEM((N, H + 16, S1), jnp.float32)],
        compiler_params=pltpu.CompilerParams(vmem_limit_bytes=32 * 1024 * 1024),
        cost_estimate=cost,
    )(scales, x_lane, invmap, w1, w2)

    return jnp.transpose(out_flat.reshape(N, H, W, C), (0, 3, 1, 2))      # back to NCHW


# --------------------------------------------------------------------------------------
# Deterministic synthetic parameters + pure-JAX reference for validation.
# --------------------------------------------------------------------------------------
def init_params(key, E, C):
    keys = iter(jax.random.split(key, 13 * E))

    def nrm(shape, scale):
        return scale * jax.random.normal(next(keys), shape, jnp.float32)

    raw, alphas = [], []
    for _ in range(E):
        raw.append({
            's3': (nrm((C, 1, 3, 3), 0.3), nrm((C, C, 1, 1), 0.3),
                   nrm((C, 1, 3, 3), 0.3), nrm((C, C, 1, 1), 0.3)),
            's5': (nrm((C, 1, 5, 5), 0.2), nrm((C, C, 1, 1), 0.3),
                   nrm((C, 1, 5, 5), 0.2), nrm((C, C, 1, 1), 0.3)),
            'd3': (nrm((C, 1, 3, 3), 0.3), nrm((C, C, 1, 1), 0.3)),
            'd5': (nrm((C, 1, 5, 5), 0.2), nrm((C, C, 1, 1), 0.3)),
        })
        alphas.append(nrm((7,), 1e-3))
    return {'alphas': jax.nn.softmax(jnp.stack(alphas, 0), axis=-1), 'raw': raw}


def ref_forward(prev_nodes_nchw, params):
    HIGH = lax.Precision.HIGHEST

    def relu(y): return jnp.maximum(y, 0.0)
    def bn(y): return y * BN_SCALE

    def dwconv(y, w, dil):
        k = w.shape[-1]
        pad = dil * (k - 1) // 2
        rhs = jnp.transpose(w, (2, 3, 1, 0))
        return lax.conv_general_dilated(y, rhs, (1, 1), [(pad, pad), (pad, pad)],
                                        rhs_dilation=(dil, dil),
                                        dimension_numbers=('NHWC', 'HWIO', 'NHWC'),
                                        feature_group_count=y.shape[-1], precision=HIGH)

    def pwconv(y, w):
        rhs = jnp.transpose(w, (2, 3, 1, 0))
        return lax.conv_general_dilated(y, rhs, (1, 1), 'VALID',
                                        dimension_numbers=('NHWC', 'HWIO', 'NHWC'),
                                        precision=HIGH)

    def dilconv(y, dw, pw, dil): return bn(pwconv(dwconv(relu(y), dw, dil), pw))
    def sepconv(y, dw1, pw1, dw2, pw2): return dilconv(dilconv(y, dw1, pw1, 1), dw2, pw2, 1)

    def maxpool(y):
        return bn(lax.reduce_window(y, -jnp.inf, lax.max, (1, 3, 3, 1), (1, 1, 1, 1),
                                    [(0, 0), (1, 1), (1, 1), (0, 0)]))

    def avgpool(y):
        s = lax.reduce_window(y, 0.0, lax.add, (1, 3, 3, 1), (1, 1, 1, 1),
                              [(0, 0), (1, 1), (1, 1), (0, 0)])
        c = lax.reduce_window(jnp.ones_like(y), 0.0, lax.add, (1, 3, 3, 1), (1, 1, 1, 1),
                              [(0, 0), (1, 1), (1, 1), (0, 0)])
        return bn(s / c)

    alphas = params['alphas']
    out = 0.0
    for e, p in enumerate(prev_nodes_nchw):
        x = jnp.transpose(p, (0, 2, 3, 1))
        w = params['raw'][e]
        ops = [maxpool(x), avgpool(x), x,
               sepconv(x, *w['s3']), sepconv(x, *w['s5']),
               dilconv(x, w['d3'][0], w['d3'][1], 2),
               dilconv(x, w['d5'][0], w['d5'][1], 2)]
        out = out + sum(alphas[e, k] * ops[k] for k in range(7))
    return jnp.transpose(out, (0, 3, 1, 2))


if __name__ == "__main__":
    E, N, C, H, W = 2, 2, 8, 16, 16            # W*C = 128 -> exactly lane-dense
    key = jax.random.PRNGKey(0)
    k_in, k_par = jax.random.split(key)
    prev_nodes = [jax.random.normal(k, (N, C, H, W), jnp.float32)
                  for k in jax.random.split(k_in, E)]
    params = init_params(k_par, E, C)

    out = darts_node_forward(prev_nodes, params)
    out = jax.block_until_ready(out)

    ref = jax.block_until_ready(ref_forward(prev_nodes, params))
    assert out.shape == (N, C, H, W)
    np.testing.assert_allclose(np.asarray(out), np.asarray(ref), rtol=2e-2, atol=2e-2)

    print("KERNEL_OK")
</pallas_src>

<mosaic_0001>
module attributes {stable_mosaic.version = 11 : i64} {
  func.func @kernel(%arg0: memref<2x3xf32, #tpu.memory_space<smem>>, %arg1: memref<2x2x24x128xf32, #tpu.memory_space<vmem>>, %arg2: memref<32x128xf32, #tpu.memory_space<vmem>>, %arg3: memref<1792x640xbf16, #tpu.memory_space<vmem>>, %arg4: memref<2560x128xbf16, #tpu.memory_space<vmem>>, %arg5: memref<32x128xf32, #tpu.memory_space<vmem>>, %arg6: memref<2x32x512xf32, #tpu.memory_space<vmem>>) attributes {dimension_semantics = [], scalar_prefetch = 0 : i64, scratch_operands = 1 : i64, tpu.core_type = #tpu.core_type<tc>} {
    %c0 = arith.constant 0 : index
    %c0_0 = arith.constant 0 : index
    %c0_1 = arith.constant 0 : index
    %c0_2 = arith.constant 0 : index
    %0 = vector.load %arg1[%c0, %c0_0, %c0_1, %c0_2] : memref<2x2x24x128xf32, #tpu.memory_space<vmem>>, vector<1x2x16x128xf32>
    %1 = vector.shape_cast %0 : vector<1x2x16x128xf32> to vector<2x16x128xf32>
    %cst = arith.constant 0.000000e+00 : f32
    %2 = vector.broadcast %cst : f32 to vector<2x16x128xf32>
    %3 = arith.maximumf %1, %2 : vector<2x16x128xf32>
    %4 = vector.shape_cast %3 : vector<2x16x128xf32> to vector<32x128xf32>
    %5 = arith.truncf %4 : vector<32x128xf32> to vector<32x128xbf16>
    %c0_3 = arith.constant 0 : index
    %c0_4 = arith.constant 0 : index
    %c2 = arith.constant 2 : index
    %c0_5 = arith.constant 0 : index
    %6 = vector.load %arg1[%c0_3, %c0_4, %c2, %c0_5] : memref<2x2x24x128xf32, #tpu.memory_space<vmem>>, vector<1x2x16x128xf32>
    %7 = vector.shape_cast %6 : vector<1x2x16x128xf32> to vector<2x16x128xf32>
    %cst_6 = arith.constant 0.000000e+00 : f32
    %8 = vector.broadcast %cst_6 : f32 to vector<2x16x128xf32>
    %9 = arith.maximumf %7, %8 : vector<2x16x128xf32>
    %10 = vector.shape_cast %9 : vector<2x16x128xf32> to vector<32x128xf32>
    %11 = arith.truncf %10 : vector<32x128xf32> to vector<32x128xbf16>
    %c0_7 = arith.constant 0 : index
    %c0_8 = arith.constant 0 : index
    %c3 = arith.constant 3 : index
    %c0_9 = arith.constant 0 : index
    %12 = vector.load %arg1[%c0_7, %c0_8, %c3, %c0_9] : memref<2x2x24x128xf32, #tpu.memory_space<vmem>>, vector<1x2x16x128xf32>
    %13 = vector.shape_cast %12 : vector<1x2x16x128xf32> to vector<2x16x128xf32>
    %cst_10 = arith.constant 0.000000e+00 : f32
    %14 = vector.broadcast %cst_10 : f32 to vector<2x16x128xf32>
    %15 = arith.maximumf %13, %14 : vector<2x16x128xf32>
    %16 = vector.shape_cast %15 : vector<2x16x128xf32> to vector<32x128xf32>
    %17 = arith.truncf %16 : vector<32x128xf32> to vector<32x128xbf16>
    %c0_11 = arith.constant 0 : index
    %c0_12 = arith.constant 0 : index
    %c4 = arith.constant 4 : index
    %c0_13 = arith.constant 0 : index
    %18 = vector.load %arg1[%c0_11, %c0_12, %c4, %c0_13] : memref<2x2x24x128xf32, #tpu.memory_space<vmem>>, vector<1x2x16x128xf32>
    %19 = vector.shape_cast %18 : vector<1x2x16x128xf32> to vector<2x16x128xf32>
    %cst_14 = arith.constant 0.000000e+00 : f32
    %20 = vector.broadcast %cst_14 : f32 to vector<2x16x128xf32>
    %21 = arith.maximumf %19, %20 : vector<2x16x128xf32>
    %22 = vector.shape_cast %21 : vector<2x16x128xf32> to vector<32x128xf32>
    %23 = arith.truncf %22 : vector<32x128xf32> to vector<32x128xbf16>
    %c0_15 = arith.constant 0 : index
    %c0_16 = arith.constant 0 : index
    %c5 = arith.constant 5 : index
    %c0_17 = arith.constant 0 : index
    %24 = vector.load %arg1[%c0_15, %c0_16, %c5, %c0_17] : memref<2x2x24x128xf32, #tpu.memory_space<vmem>>, vector<1x2x16x128xf32>
    %25 = vector.shape_cast %24 : vector<1x2x16x128xf32> to vector<2x16x128xf32>
    %cst_18 = arith.constant 0.000000e+00 : f32
    %26 = vector.broadcast %cst_18 : f32 to vector<2x16x128xf32>
    %27 = arith.maximumf %25, %26 : vector<2x16x128xf32>
    %28 = vector.shape_cast %27 : vector<2x16x128xf32> to vector<32x128xf32>
    %29 = arith.truncf %28 : vector<32x128xf32> to vector<32x128xbf16>
    %c0_19 = arith.constant 0 : index
    %c0_20 = arith.constant 0 : index
    %c6 = arith.constant 6 : index
    %c0_21 = arith.constant 0 : index
    %30 = vector.load %arg1[%c0_19, %c0_20, %c6, %c0_21] : memref<2x2x24x128xf32, #tpu.memory_space<vmem>>, vector<1x2x16x128xf32>
    %31 = vector.shape_cast %30 : vector<1x2x16x128xf32> to vector<2x16x128xf32>
    %cst_22 = arith.constant 0.000000e+00 : f32
    %32 = vector.broadcast %cst_22 : f32 to vector<2x16x128xf32>
    %33 = arith.maximumf %31, %32 : vector<2x16x128xf32>
    %34 = vector.shape_cast %33 : vector<2x16x128xf32> to vector<32x128xf32>
    %35 = arith.truncf %34 : vector<32x128xf32> to vector<32x128xbf16>
    %c0_23 = arith.constant 0 : index
    %c0_24 = arith.constant 0 : index
    %c8 = arith.constant 8 : index
    %c0_25 = arith.constant 0 : index
    %36 = vector.load %arg1[%c0_23, %c0_24, %c8, %c0_25] : memref<2x2x24x128xf32, #tpu.memory_space<vmem>>, vector<1x2x16x128xf32>
    %37 = vector.shape_cast %36 : vector<1x2x16x128xf32> to vector<2x16x128xf32>
    %cst_26 = arith.constant 0.000000e+00 : f32
    %38 = vector.broadcast %cst_26 : f32 to vector<2x16x128xf32>
    %39 = arith.maximumf %37, %38 : vector<2x16x128xf32>
    %40 = vector.shape_cast %39 : vector<2x16x128xf32> to vector<32x128xf32>
    %41 = arith.truncf %40 : vector<32x128xf32> to vector<32x128xbf16>
    %c1 = arith.constant 1 : index
    %c0_27 = arith.constant 0 : index
    %c0_28 = arith.constant 0 : index
    %c0_29 = arith.constant 0 : index
    %42 = vector.load %arg1[%c1, %c0_27, %c0_28, %c0_29] : memref<2x2x24x128xf32, #tpu.memory_space<vmem>>, vector<1x2x16x128xf32>
    %43 = vector.shape_cast %42 : vector<1x2x16x128xf32> to vector<2x16x128xf32>
    %cst_30 = arith.constant 0.000000e+00 : f32
    %44 = vector.broadcast %cst_30 : f32 to vector<2x16x128xf32>
    %45 = arith.maximumf %43, %44 : vector<2x16x128xf32>
    %46 = vector.shape_cast %45 : vector<2x16x128xf32> to vector<32x128xf32>
    %47 = arith.truncf %46 : vector<32x128xf32> to vector<32x128xbf16>
    %c1_31 = arith.constant 1 : index
    %c0_32 = arith.constant 0 : index
    %c2_33 = arith.constant 2 : index
    %c0_34 = arith.constant 0 : index
    %48 = vector.load %arg1[%c1_31, %c0_32, %c2_33, %c0_34] : memref<2x2x24x128xf32, #tpu.memory_space<vmem>>, vector<1x2x16x128xf32>
    %49 = vector.shape_cast %48 : vector<1x2x16x128xf32> to vector<2x16x128xf32>
    %cst_35 = arith.constant 0.000000e+00 : f32
    %50 = vector.broadcast %cst_35 : f32 to vector<2x16x128xf32>
    %51 = arith.maximumf %49, %50 : vector<2x16x128xf32>
    %52 = vector.shape_cast %51 : vector<2x16x128xf32> to vector<32x128xf32>
    %53 = arith.truncf %52 : vector<32x128xf32> to vector<32x128xbf16>
    %c1_36 = arith.constant 1 : index
    %c0_37 = arith.constant 0 : index
    %c3_38 = arith.constant 3 : index
    %c0_39 = arith.constant 0 : index
    %54 = vector.load %arg1[%c1_36, %c0_37, %c3_38, %c0_39] : memref<2x2x24x128xf32, #tpu.memory_space<vmem>>, vector<1x2x16x128xf32>
    %55 = vector.shape_cast %54 : vector<1x2x16x128xf32> to vector<2x16x128xf32>
    %cst_40 = arith.constant 0.000000e+00 : f32
    %56 = vector.broadcast %cst_40 : f32 to vector<2x16x128xf32>
    %57 = arith.maximumf %55, %56 : vector<2x16x128xf32>
    %58 = vector.shape_cast %57 : vector<2x16x128xf32> to vector<32x128xf32>
    %59 = arith.truncf %58 : vector<32x128xf32> to vector<32x128xbf16>
    %c1_41 = arith.constant 1 : index
    %c0_42 = arith.constant 0 : index
    %c4_43 = arith.constant 4 : index
    %c0_44 = arith.constant 0 : index
    %60 = vector.load %arg1[%c1_41, %c0_42, %c4_43, %c0_44] : memref<2x2x24x128xf32, #tpu.memory_space<vmem>>, vector<1x2x16x128xf32>
    %61 = vector.shape_cast %60 : vector<1x2x16x128xf32> to vector<2x16x128xf32>
    %cst_45 = arith.constant 0.000000e+00 : f32
    %62 = vector.broadcast %cst_45 : f32 to vector<2x16x128xf32>
    %63 = arith.maximumf %61, %62 : vector<2x16x128xf32>
    %64 = vector.shape_cast %63 : vector<2x16x128xf32> to vector<32x128xf32>
    %65 = arith.truncf %64 : vector<32x128xf32> to vector<32x128xbf16>
    %c1_46 = arith.constant 1 : index
    %c0_47 = arith.constant 0 : index
    %c5_48 = arith.constant 5 : index
    %c0_49 = arith.constant 0 : index
    %66 = vector.load %arg1[%c1_46, %c0_47, %c5_48, %c0_49] : memref<2x2x24x128xf32, #tpu.memory_space<vmem>>, vector<1x2x16x128xf32>
    %67 = vector.shape_cast %66 : vector<1x2x16x128xf32> to vector<2x16x128xf32>
    %cst_50 = arith.constant 0.000000e+00 : f32
    %68 = vector.broadcast %cst_50 : f32 to vector<2x16x128xf32>
    %69 = arith.maximumf %67, %68 : vector<2x16x128xf32>
    %70 = vector.shape_cast %69 : vector<2x16x128xf32> to vector<32x128xf32>
    %71 = arith.truncf %70 : vector<32x128xf32> to vector<32x128xbf16>
    %c1_51 = arith.constant 1 : index
    %c0_52 = arith.constant 0 : index
    %c6_53 = arith.constant 6 : index
    %c0_54 = arith.constant 0 : index
    %72 = vector.load %arg1[%c1_51, %c0_52, %c6_53, %c0_54] : memref<2x2x24x128xf32, #tpu.memory_space<vmem>>, vector<1x2x16x128xf32>
    %73 = vector.shape_cast %72 : vector<1x2x16x128xf32> to vector<2x16x128xf32>
    %cst_55 = arith.constant 0.000000e+00 : f32
    %74 = vector.broadcast %cst_55 : f32 to vector<2x16x128xf32>
    %75 = arith.maximumf %73, %74 : vector<2x16x128xf32>
    %76 = vector.shape_cast %75 : vector<2x16x128xf32> to vector<32x128xf32>
    %77 = arith.truncf %76 : vector<32x128xf32> to vector<32x128xbf16>
    %c1_56 = arith.constant 1 : index
    %c0_57 = arith.constant 0 : index
    %c8_58 = arith.constant 8 : index
    %c0_59 = arith.constant 0 : index
    %78 = vector.load %arg1[%c1_56, %c0_57, %c8_58, %c0_59] : memref<2x2x24x128xf32, #tpu.memory_space<vmem>>, vector<1x2x16x128xf32>
    %79 = vector.shape_cast %78 : vector<1x2x16x128xf32> to vector<2x16x128xf32>
    %cst_60 = arith.constant 0.000000e+00 : f32
    %80 = vector.broadcast %cst_60 : f32 to vector<2x16x128xf32>
    %81 = arith.maximumf %79, %80 : vector<2x16x128xf32>
    %82 = vector.shape_cast %81 : vector<2x16x128xf32> to vector<32x128xf32>
    %83 = arith.truncf %82 : vector<32x128xf32> to vector<32x128xbf16>
    %84 = tpu.concatenate %5, %11, %17, %23, %29, %35, %41, %47, %53, %59, %65, %71, %77, %83 in 1 : vector<32x128xbf16>, vector<32x128xbf16>, vector<32x128xbf16>, vector<32x128xbf16>, vector<32x128xbf16>, vector<32x128xbf16>, vector<32x128xbf16>, vector<32x128xbf16>, vector<32x128xbf16>, vector<32x128xbf16>, vector<32x128xbf16>, vector<32x128xbf16>, vector<32x128xbf16>, vector<32x128xbf16> -> vector<32x1792xbf16>
    %c0_61 = arith.constant 0 : index
    %c0_62 = arith.constant 0 : index
    %85 = vector.load %arg3[%c0_61, %c0_62] : memref<1792x640xbf16, #tpu.memory_space<vmem>>, vector<1792x640xbf16>
    %cst_63 = arith.constant dense<0.000000e+00> : vector<32x640xf32>
    %86 = tpu.matmul %84, %85, %cst_63 {dimension_numbers = #tpu.dot_dimension_numbers<[1], [0], [0], [1], [0, 0, 1, 1], [], []>} : vector<32x1792xbf16>, vector<1792x640xbf16>, vector<32x640xf32> -> vector<32x640xf32>
    %87 = vector.extract_strided_slice %86 {offsets = [0, 512], sizes = [32, 128], strides = [1, 1]} : vector<32x640xf32> to vector<32x128xf32>
    %cst_64 = arith.constant 0.000000e+00 : f32
    %88 = vector.broadcast %cst_64 : f32 to vector<2x8x512xf32>
    %c0_65 = arith.constant 0 : index
    %c0_66 = arith.constant 0 : index
    %c0_67 = arith.constant 0 : index
    %89 = vector.load %arg6[%c0_65, %c0_66, %c0_67] : memref<2x32x512xf32, #tpu.memory_space<vmem>>, vector<2x8x512xf32>
    tpu.vector_store %arg6[%c0_65, %c0_66, %c0_67], %88 {strides = array<i32>} : memref<2x32x512xf32, #tpu.memory_space<vmem>>, vector<2x8x512xf32>,
    %cst_68 = arith.constant 0.000000e+00 : f32
    %90 = vector.broadcast %cst_68 : f32 to vector<2x8x512xf32>
    %c0_69 = arith.constant 0 : index
    %c24 = arith.constant 24 : index
    %c0_70 = arith.constant 0 : index
    %91 = vector.load %arg6[%c0_69, %c24, %c0_70] : memref<2x32x512xf32, #tpu.memory_space<vmem>>, vector<2x8x512xf32>
    tpu.vector_store %arg6[%c0_69, %c24, %c0_70], %90 {strides = array<i32>} : memref<2x32x512xf32, #tpu.memory_space<vmem>>, vector<2x8x512xf32>,
    %92 = vector.extract_strided_slice %86 {offsets = [0, 0], sizes = [32, 512], strides = [1, 1]} : vector<32x640xf32> to vector<32x512xf32>
    %cst_71 = arith.constant 0.000000e+00 : f32
    %93 = vector.broadcast %cst_71 : f32 to vector<32x512xf32>
    %94 = arith.maximumf %92, %93 : vector<32x512xf32>
    %95 = vector.shape_cast %94 : vector<32x512xf32> to vector<2x16x512xf32>
    %c0_72 = arith.constant 0 : index
    %c8_73 = arith.constant 8 : index
    %c0_74 = arith.constant 0 : index
    %96 = vector.load %arg6[%c0_72, %c8_73, %c0_74] : memref<2x32x512xf32, #tpu.memory_space<vmem>>, vector<2x16x512xf32>
    tpu.vector_store %arg6[%c0_72, %c8_73, %c0_74], %95 {strides = array<i32>} : memref<2x32x512xf32, #tpu.memory_space<vmem>>, vector<2x16x512xf32>,
    %c0_75 = arith.constant 0 : index
    %c6_76 = arith.constant 6 : index
    %c0_77 = arith.constant 0 : index
    %97 = vector.load %arg6[%c0_75, %c6_76, %c0_77] : memref<2x32x512xf32, #tpu.memory_space<vmem>>, vector<2x16x512xf32>
    %98 = vector.shape_cast %97 : vector<2x16x512xf32> to vector<32x512xf32>
    %99 = arith.truncf %98 : vector<32x512xf32> to vector<32x512xbf16>
    %c0_78 = arith.constant 0 : index
    %c7 = arith.constant 7 : index
    %c0_79 = arith.constant 0 : index
    %100 = vector.load %arg6[%c0_78, %c7, %c0_79] : memref<2x32x512xf32, #tpu.memory_space<vmem>>, vector<2x16x512xf32>
    %101 = vector.shape_cast %100 : vector<2x16x512xf32> to vector<32x512xf32>
    %102 = arith.truncf %101 : vector<32x512xf32> to vector<32x512xbf16>
    %c0_80 = arith.constant 0 : index
    %c8_81 = arith.constant 8 : index
    %c0_82 = arith.constant 0 : index
    %103 = vector.load %arg6[%c0_80, %c8_81, %c0_82] : memref<2x32x512xf32, #tpu.memory_space<vmem>>, vector<2x16x512xf32>
    %104 = vector.shape_cast %103 : vector<2x16x512xf32> to vector<32x512xf32>
    %105 = arith.truncf %104 : vector<32x512xf32> to vector<32x512xbf16>
    %c0_83 = arith.constant 0 : index
    %c9 = arith.constant 9 : index
    %c0_84 = arith.constant 0 : index
    %106 = vector.load %arg6[%c0_83, %c9, %c0_84] : memref<2x32x512xf32, #tpu.memory_space<vmem>>, vector<2x16x512xf32>
    %107 = vector.shape_cast %106 : vector<2x16x512xf32> to vector<32x512xf32>
    %108 = arith.truncf %107 : vector<32x512xf32> to vector<32x512xbf16>
    %c0_85 = arith.constant 0 : index
    %c10 = arith.constant 10 : index
    %c0_86 = arith.constant 0 : index
    %109 = vector.load %arg6[%c0_85, %c10, %c0_86] : memref<2x32x512xf32, #tpu.memory_space<vmem>>, vector<2x16x512xf32>
    %110 = vector.shape_cast %109 : vector<2x16x512xf32> to vector<32x512xf32>
    %111 = arith.truncf %110 : vector<32x512xf32> to vector<32x512xbf16>
    %112 = tpu.concatenate %99, %102, %105, %108, %111 in 1 : vector<32x512xbf16>, vector<32x512xbf16>, vector<32x512xbf16>, vector<32x512xbf16>, vector<32x512xbf16> -> vector<32x2560xbf16>
    %c0_87 = arith.constant 0 : index
    %c0_88 = arith.constant 0 : index
    %113 = vector.load %arg4[%c0_87, %c0_88] : memref<2560x128xbf16, #tpu.memory_space<vmem>>, vector<2560x128xbf16>
    %cst_89 = arith.constant dense<0.000000e+00> : vector<32x128xf32>
    %114 = tpu.matmul %112, %113, %cst_89 {dimension_numbers = #tpu.dot_dimension_numbers<[1], [0], [0], [1], [0, 0, 1, 1], [], []>} : vector<32x2560xbf16>, vector<2560x128xbf16>, vector<32x128xf32> -> vector<32x128xf32>
    %115 = arith.addf %87, %114 : vector<32x128xf32>
    %116 = tpu.iota {dimensions = array<i32: 1>} : vector<32x128xi32>
    %117 = tpu.iota {dimensions = array<i32: 0>} : vector<32x128xi32>
    %c16_i32 = arith.constant 16 : i32
    %c0_i32 = arith.constant 0 : i32
    %118 = arith.cmpi eq, %c16_i32, %c0_i32 : i32
    %c1_i32 = arith.constant 1 : i32
    %119 = arith.select %118, %c1_i32, %c16_i32 : i32
    %120 = vector.broadcast %119 : i32 to vector<32x128xi32>
    %121 = arith.remsi %117, %120 : vector<32x128xi32>
    %c0_i32_90 = arith.constant 0 : i32
    %122 = vector.broadcast %c0_i32_90 : i32 to vector<32x128xi32>
    %123 = arith.cmpi ne, %121, %122 : vector<32x128xi32>
    %c0_i32_91 = arith.constant 0 : i32
    %124 = vector.broadcast %c0_i32_91 : i32 to vector<32x128xi32>
    %125 = arith.cmpi slt, %121, %124 : vector<32x128xi32>
    %c0_i32_92 = arith.constant 0 : i32
    %126 = arith.cmpi slt, %119, %c0_i32_92 : i32
    %127 = vector.broadcast %126 : i1 to vector<32x128xi1>
    %128 = vector.broadcast %127 : vector<32x128xi1> to vector<32x128xi1>
    %129 = arith.xori %125, %128 : vector<32x128xi1>
    %130 = arith.andi %129, %123 : vector<32x128xi1>
    %131 = vector.broadcast %119 : i32 to vector<32x128xi32>
    %132 = arith.addi %121, %131 : vector<32x128xi32>
    %133 = arith.select %130, %132, %121 : vector<32x128xi1>, vector<32x128xi32>
    %c8_i32 = arith.constant 8 : i32
    %134 = vector.broadcast %c8_i32 : i32 to vector<32x128xi32>
    %135 = arith.cmpi sge, %116, %134 : vector<32x128xi32>
    %c120_i32 = arith.constant 120 : i32
    %136 = vector.broadcast %c120_i32 : i32 to vector<32x128xi32>
    %137 = arith.cmpi slt, %116, %136 : vector<32x128xi32>
    %c0_93 = arith.constant 0 : index
    %c0_94 = arith.constant 0 : index
    %138 = vector.load %arg2[%c0_93, %c0_94] : memref<32x128xf32, #tpu.memory_space<vmem>>, vector<32x128xf32>
    %c0_95 = arith.constant 0 : index
    %c0_96 = arith.constant 0 : index
    %c3_97 = arith.constant 3 : index
    %c0_98 = arith.constant 0 : index
    %139 = vector.load %arg1[%c0_95, %c0_96, %c3_97, %c0_98] : memref<2x2x24x128xf32, #tpu.memory_space<vmem>>, vector<1x2x16x128xf32>
    %140 = vector.shape_cast %139 : vector<1x2x16x128xf32> to vector<2x16x128xf32>
    %141 = vector.shape_cast %140 : vector<2x16x128xf32> to vector<32x128xf32>
    %c0_99 = arith.constant 0 : index
    %c0_100 = arith.constant 0 : index
    %c4_101 = arith.constant 4 : index
    %c0_102 = arith.constant 0 : index
    %142 = vector.load %arg1[%c0_99, %c0_100, %c4_101, %c0_102] : memref<2x2x24x128xf32, #tpu.memory_space<vmem>>, vector<1x2x16x128xf32>
    %143 = vector.shape_cast %142 : vector<1x2x16x128xf32> to vector<2x16x128xf32>
    %144 = vector.shape_cast %143 : vector<2x16x128xf32> to vector<32x128xf32>
    %c0_103 = arith.constant 0 : index
    %c0_104 = arith.constant 0 : index
    %c5_105 = arith.constant 5 : index
    %c0_106 = arith.constant 0 : index
    %145 = vector.load %arg1[%c0_103, %c0_104, %c5_105, %c0_106] : memref<2x2x24x128xf32, #tpu.memory_space<vmem>>, vector<1x2x16x128xf32>
    %146 = vector.shape_cast %145 : vector<1x2x16x128xf32> to vector<2x16x128xf32>
    %147 = vector.shape_cast %146 : vector<2x16x128xf32> to vector<32x128xf32>
    %c0_107 = arith.constant 0 : index
    %c2_108 = arith.constant 2 : index
    %148 = memref.load %arg0[%c0_107, %c2_108] : memref<2x3xf32, #tpu.memory_space<smem>>
    %149 = vector.broadcast %148 : f32 to vector<32x128xf32>
    %150 = arith.mulf %144, %149 : vector<32x128xf32>
    %151 = arith.addf %115, %150 : vector<32x128xf32>
    %c0_i32_109 = arith.constant 0 : i32
    %152 = vector.broadcast %c0_i32_109 : i32 to vector<32x128xi32>
    %153 = arith.cmpi eq, %133, %152 : vector<32x128xi32>
    %cst_110 = arith.constant -1.000000e+30 : f32
    %154 = vector.broadcast %cst_110 : f32 to vector<32x128xf32>
    %155 = arith.select %153, %154, %141 : vector<32x128xi1>, vector<32x128xf32>
    %156 = arith.maximumf %144, %155 : vector<32x128xf32>
    %c15_i32 = arith.constant 15 : i32
    %157 = vector.broadcast %c15_i32 : i32 to vector<32x128xi32>
    %158 = arith.cmpi eq, %133, %157 : vector<32x128xi32>
    %cst_111 = arith.constant -1.000000e+30 : f32
    %159 = vector.broadcast %cst_111 : f32 to vector<32x128xf32>
    %160 = arith.select %158, %159, %147 : vector<32x128xi1>, vector<32x128xf32>
    %161 = arith.maximumf %156, %160 : vector<32x128xf32>
    %c8_i32_112 = arith.constant 8 : i32
    %162 = tpu.dynamic_rotate %161 by %c8_i32_112 dim 1 : vector<32x128xf32>, i32 -> vector<32x128xf32>
    %cst_113 = arith.constant -1.000000e+30 : f32
    %163 = vector.broadcast %cst_113 : f32 to vector<32x128xf32>
    %164 = arith.select %135, %162, %163 : vector<32x128xi1>, vector<32x128xf32>
    %165 = arith.maximumf %161, %164 : vector<32x128xf32>
    %c120_i32_114 = arith.constant 120 : i32
    %166 = tpu.dynamic_rotate %161 by %c120_i32_114 dim 1 : vector<32x128xf32>, i32 -> vector<32x128xf32>
    %cst_115 = arith.constant -1.000000e+30 : f32
    %167 = vector.broadcast %cst_115 : f32 to vector<32x128xf32>
    %168 = arith.select %137, %166, %167 : vector<32x128xi1>, vector<32x128xf32>
    %169 = arith.maximumf %165, %168 : vector<32x128xf32>
    %c0_116 = arith.constant 0 : index
    %c0_117 = arith.constant 0 : index
    %170 = memref.load %arg0[%c0_116, %c0_117] : memref<2x3xf32, #tpu.memory_space<smem>>
    %171 = vector.broadcast %170 : f32 to vector<32x128xf32>
    %172 = arith.mulf %169, %171 : vector<32x128xf32>
    %173 = arith.addf %151, %172 : vector<32x128xf32>
    %174 = arith.addf %141, %144 : vector<32x128xf32>
    %175 = arith.addf %174, %147 : vector<32x128xf32>
    %c8_i32_118 = arith.constant 8 : i32
    %176 = tpu.dynamic_rotate %175 by %c8_i32_118 dim 1 : vector<32x128xf32>, i32 -> vector<32x128xf32>
    %cst_119 = arith.constant 0.000000e+00 : f32
    %177 = vector.broadcast %cst_119 : f32 to vector<32x128xf32>
    %178 = arith.select %135, %176, %177 : vector<32x128xi1>, vector<32x128xf32>
    %179 = arith.addf %175, %178 : vector<32x128xf32>
    %c120_i32_120 = arith.constant 120 : i32
    %180 = tpu.dynamic_rotate %175 by %c120_i32_120 dim 1 : vector<32x128xf32>, i32 -> vector<32x128xf32>
    %cst_121 = arith.constant 0.000000e+00 : f32
    %181 = vector.broadcast %cst_121 : f32 to vector<32x128xf32>
    %182 = arith.select %137, %180, %181 : vector<32x128xi1>, vector<32x128xf32>
    %183 = arith.addf %179, %182 : vector<32x128xf32>
    %184 = arith.mulf %183, %138 : vector<32x128xf32>
    %c0_122 = arith.constant 0 : index
    %c1_123 = arith.constant 1 : index
    %185 = memref.load %arg0[%c0_122, %c1_123] : memref<2x3xf32, #tpu.memory_space<smem>>
    %186 = vector.broadcast %185 : f32 to vector<32x128xf32>
    %187 = arith.mulf %184, %186 : vector<32x128xf32>
    %188 = arith.addf %173, %187 : vector<32x128xf32>
    %c1_124 = arith.constant 1 : index
    %c0_125 = arith.constant 0 : index
    %c3_126 = arith.constant 3 : index
    %c0_127 = arith.constant 0 : index
    %189 = vector.load %arg1[%c1_124, %c0_125, %c3_126, %c0_127] : memref<2x2x24x128xf32, #tpu.memory_space<vmem>>, vector<1x2x16x128xf32>
    %190 = vector.shape_cast %189 : vector<1x2x16x128xf32> to vector<2x16x128xf32>
    %191 = vector.shape_cast %190 : vector<2x16x128xf32> to vector<32x128xf32>
    %c1_128 = arith.constant 1 : index
    %c0_129 = arith.constant 0 : index
    %c4_130 = arith.constant 4 : index
    %c0_131 = arith.constant 0 : index
    %192 = vector.load %arg1[%c1_128, %c0_129, %c4_130, %c0_131] : memref<2x2x24x128xf32, #tpu.memory_space<vmem>>, vector<1x2x16x128xf32>
    %193 = vector.shape_cast %192 : vector<1x2x16x128xf32> to vector<2x16x128xf32>
    %194 = vector.shape_cast %193 : vector<2x16x128xf32> to vector<32x128xf32>
    %c1_132 = arith.constant 1 : index
    %c0_133 = arith.constant 0 : index
    %c5_134 = arith.constant 5 : index
    %c0_135 = arith.constant 0 : index
    %195 = vector.load %arg1[%c1_132, %c0_133, %c5_134, %c0_135] : memref<2x2x24x128xf32, #tpu.memory_space<vmem>>, vector<1x2x16x128xf32>
    %196 = vector.shape_cast %195 : vector<1x2x16x128xf32> to vector<2x16x128xf32>
    %197 = vector.shape_cast %196 : vector<2x16x128xf32> to vector<32x128xf32>
    %c1_136 = arith.constant 1 : index
    %c2_137 = arith.constant 2 : index
    %198 = memref.load %arg0[%c1_136, %c2_137] : memref<2x3xf32, #tpu.memory_space<smem>>
    %199 = vector.broadcast %198 : f32 to vector<32x128xf32>
    %200 = arith.mulf %194, %199 : vector<32x128xf32>
    %201 = arith.addf %188, %200 : vector<32x128xf32>
    %c0_i32_138 = arith.constant 0 : i32
    %202 = vector.broadcast %c0_i32_138 : i32 to vector<32x128xi32>
    %203 = arith.cmpi eq, %133, %202 : vector<32x128xi32>
    %cst_139 = arith.constant -1.000000e+30 : f32
    %204 = vector.broadcast %cst_139 : f32 to vector<32x128xf32>
    %205 = arith.select %203, %204, %191 : vector<32x128xi1>, vector<32x128xf32>
    %206 = arith.maximumf %194, %205 : vector<32x128xf32>
    %c15_i32_140 = arith.constant 15 : i32
    %207 = vector.broadcast %c15_i32_140 : i32 to vector<32x128xi32>
    %208 = arith.cmpi eq, %133, %207 : vector<32x128xi32>
    %cst_141 = arith.constant -1.000000e+30 : f32
    %209 = vector.broadcast %cst_141 : f32 to vector<32x128xf32>
    %210 = arith.select %208, %209, %197 : vector<32x128xi1>, vector<32x128xf32>
    %211 = arith.maximumf %206, %210 : vector<32x128xf32>
    %c8_i32_142 = arith.constant 8 : i32
    %212 = tpu.dynamic_rotate %211 by %c8_i32_142 dim 1 : vector<32x128xf32>, i32 -> vector<32x128xf32>
    %cst_143 = arith.constant -1.000000e+30 : f32
    %213 = vector.broadcast %cst_143 : f32 to vector<32x128xf32>
    %214 = arith.select %135, %212, %213 : vector<32x128xi1>, vector<32x128xf32>
    %215 = arith.maximumf %211, %214 : vector<32x128xf32>
    %c120_i32_144 = arith.constant 120 : i32
    %216 = tpu.dynamic_rotate %211 by %c120_i32_144 dim 1 : vector<32x128xf32>, i32 -> vector<32x128xf32>
    %cst_145 = arith.constant -1.000000e+30 : f32
    %217 = vector.broadcast %cst_145 : f32 to vector<32x128xf32>
    %218 = arith.select %137, %216, %217 : vector<32x128xi1>, vector<32x128xf32>
    %219 = arith.maximumf %215, %218 : vector<32x128xf32>
    %c1_146 = arith.constant 1 : index
    %c0_147 = arith.constant 0 : index
    %220 = memref.load %arg0[%c1_146, %c0_147] : memref<2x3xf32, #tpu.memory_space<smem>>
    %221 = vector.broadcast %220 : f32 to vector<32x128xf32>
    %222 = arith.mulf %219, %221 : vector<32x128xf32>
    %223 = arith.addf %201, %222 : vector<32x128xf32>
    %224 = arith.addf %191, %194 : vector<32x128xf32>
    %225 = arith.addf %224, %197 : vector<32x128xf32>
    %c8_i32_148 = arith.constant 8 : i32
    %226 = tpu.dynamic_rotate %225 by %c8_i32_148 dim 1 : vector<32x128xf32>, i32 -> vector<32x128xf32>
    %cst_149 = arith.constant 0.000000e+00 : f32
    %227 = vector.broadcast %cst_149 : f32 to vector<32x128xf32>
    %228 = arith.select %135, %226, %227 : vector<32x128xi1>, vector<32x128xf32>
    %229 = arith.addf %225, %228 : vector<32x128xf32>
    %c120_i32_150 = arith.constant 120 : i32
    %230 = tpu.dynamic_rotate %225 by %c120_i32_150 dim 1 : vector<32x128xf32>, i32 -> vector<32x128xf32>
    %cst_151 = arith.constant 0.000000e+00 : f32
    %231 = vector.broadcast %cst_151 : f32 to vector<32x128xf32>
    %232 = arith.select %137, %230, %231 : vector<32x128xi1>, vector<32x128xf32>
    %233 = arith.addf %229, %232 : vector<32x128xf32>
    %234 = arith.mulf %233, %138 : vector<32x128xf32>
    %c1_152 = arith.constant 1 : index
    %c1_153 = arith.constant 1 : index
    %235 = memref.load %arg0[%c1_152, %c1_153] : memref<2x3xf32, #tpu.memory_space<smem>>
    %236 = vector.broadcast %235 : f32 to vector<32x128xf32>
    %237 = arith.mulf %234, %236 : vector<32x128xf32>
    %238 = arith.addf %223, %237 : vector<32x128xf32>
    %c0_154 = arith.constant 0 : index
    %c0_155 = arith.constant 0 : index
    %239 = vector.load %arg5[%c0_154, %c0_155] : memref<32x128xf32, #tpu.memory_space<vmem>>, vector<32x128xf32>
    tpu.vector_store %arg5[%c0_154, %c0_155], %238 {strides = array<i32>} : memref<32x128xf32, #tpu.memory_space<vmem>>, vector<32x128xf32>,
    return
  }
}

</mosaic_0001>

<bundles_post_ra>
// kernel: tpu_custom_call.1
= control target key start
LH: loop header
LB: loop body
LE: loop exit
PB: predicated region body
PF: predicated region fallthrough
CT: control target
= control target key end

     0   :  { %10 = vsyncpa [#allocation6], 0  ;;  %s13360_s0 = inlined_call_operand.hbm [shape: f32[2,3], index: 0, kind: input, shape index: {}]   ;;  %s13361_s1 = inlined_call_operand.hbm [shape: f32[2,2,24,128], index: 1, kind: input, shape index: {}]   ;;  %s13362_s2 = inlined_call_operand.hbm [shape: f32[32,128], index: 2, kind: input, shape index: {}]   ;;  %s13363_s3 = inlined_call_operand.hbm [shape: bf16[1792,640], index: 3, kind: input, shape index: {}]   ;;  %s13364_s4 = inlined_call_operand.hbm [shape: bf16[2560,128], index: 4, kind: input, shape index: {}]   ;;  %s13365_s5 = inlined_call_operand.hbm [shape: f32[32,128], index: 5, kind: output, shape index: {}]  }
   0x1   :  { %11 = vsyncpa [#allocation4], 0 }
   0x2   :  { %12 = vsyncpa [#allocation9], 0 }
   0x3   :  { %13 = vsyncpa [#allocation12], 0 }
   0x4   :  { %14 = vsyncpa [#allocation5], 0  ;;  %s41_s20 = sshll.u32 %s13362_s2, 4  ;;  %s11820_s21 = smov [#allocation8]   ;;  %s42_s20 = int_to_ptr.hbm [resolvable:$true] %s41_s20 }
   0x5   :  { %s43_s22 = sshll.u32 %s11820_s21, 4  ;;  %s20_s25 = sshll.u32 %s13360_s0, 4  ;;  %s44_s22 = int_to_ptr.vmem [resolvable:$true] %s43_s22  ;;  %s21_s25 = int_to_ptr.hbm [resolvable:$true] %s20_s25 }
   0x6   :  { %s11821_s26 = smov 128   ;;  %s11822_s27 = smov 8  }
   0x7   :  { %49 = dma.hbm_to_vmem [thread:$0]  %s42_s20, 512, %s44_s22, [#allocation9], %s11821_s26, %s11821_s26, %s11822_s27  }
   0x8   :  { %s11823_s28 = smov [#allocation3]   ;;  %s28_s2 = sshll.u32 %s13361_s1, 4  ;;  %s29_s2 = int_to_ptr.hbm [resolvable:$true] %s28_s2 }
   0x9   :  { %23 = dma.hbm_to_smem %s21_s25, 32, %s11823_s28, [#allocation6]  }
   0xa   :  { %s11824_s6 = smov [#allocation7]   ;;  %s54_s0 = sshll.u32 %s13363_s3, 4  ;;  %s55_s0 = int_to_ptr.hbm [resolvable:$true] %s54_s0 }
   0xb   :  { %s30_s7 = sshll.u32 %s11824_s6, 4  ;;  %s11825_s10 = smov [#allocation10]   ;;  %s31_s7 = int_to_ptr.vmem [resolvable:$true] %s30_s7 }
   0xc   :  { %36 = dma.hbm_to_vmem [thread:$0]  %s29_s2, 1536, %s31_s7, [#allocation4], %s11821_s26, %s11821_s26, %s11822_s27  }
   0xd   :  { %s56_s11 = sshll.u32 %s11825_s10, 4  ;;  %s11826_s12 = smov 320   ;;  %s57_s11 = int_to_ptr.vmem [resolvable:$true] %s56_s11 }
   0xe   :  { %s11827_s13 = smov 20   ;;  %s67_s15 = sshll.u32 %s13364_s4, 4  ;;  %s68_s15 = int_to_ptr.hbm [resolvable:$true] %s67_s15 }
   0xf   :  { %62 = dma.hbm_to_vmem [thread:$0]  %s55_s0, 71680, %s57_s11, [#allocation9], %s11826_s12, %s11826_s12, %s11827_s13  }
  0x10   :  { %s11828_s16 = smov [#allocation11]   ;;  %s11829_s3 = smov 64  }
  0x11   :  { %s69_s17 = sshll.u32 %s11828_s16, 4  ;;  %s11830_s18 = smov 4   ;;  %s70_s17 = int_to_ptr.vmem [resolvable:$true] %s69_s17 }
  0x12   :  { %75 = dma.hbm_to_vmem [thread:$0]  %s68_s15, 20480, %s70_s17, [#allocation12], %s11829_s3, %s11829_s3, %s11830_s18  }
  0x13   :  { %11810 = dma.done.wait [#allocation6], 32  }
  0x14   :  { %11811 = vsyncadd [#allocation6], 4294967264 }
  0x15   :  { %11812 = dma.done.wait [#allocation4], 1536  }
  0x16   :  { %11813 = vsyncadd [#allocation4], 4294965760 }
  0x17   :  { %11814 = dma.done.wait [#allocation9], 72192  }
  0x18   :  { %11815 = vsyncadd [#allocation9], 4294895104 }
  0x19   :  { %11816 = dma.done.wait [#allocation12], 20480  }
  0x1a   :  { %11817 = vsyncadd [#allocation12], 4294946816 }
  0x1b   :  { %96 = sfence }
  0x1c   :  { %v8181_v0 = vld [vmem:[#allocation10 + $0x118] sm:$0xf]  ;;  %v10961_v1 = vld [vmem:[#allocation10 + $0x128] sm:$0xf0]  ;;  %v8161_v11 = vld [vmem:[#allocation10 + $0xf0] sm:$0xf] }
  0x1d   :  { %v8341_v2 = vld [vmem:[#allocation10 + $0x258] sm:$0xf]  ;;  %v8182_v3 = vor.u32 %v10961_v1, %v8181_v0  ;;  %v11001_v4 = vld [vmem:[#allocation10 + $0x268] sm:$0xf0]  ;;  %v10956_v13 = vld [vmem:[#allocation10 + $0x100] sm:$0xf0] }
  0x1e   :  { %v8501_v5 = vld [vmem:[#allocation10 + $0x398] sm:$0xf]  ;;  %v11041_v6 = vld [vmem:[#allocation10 + $0x3a8] sm:$0xf0]  ;;  %v8342_v7 = vor.u32 %v11001_v4, %v8341_v2  ;;  %v8321_v14 = vld [vmem:[#allocation10 + $0x230] sm:$0xf]  ;;  %v8162_v16 = vor.u32 %v10956_v13, %v8161_v11 }
  0x1f   :  { %v8502_v8 = vor.u32 %v11041_v6, %v8501_v5  ;;  %v8661_v9 = vld [vmem:[#allocation10 + $0x4d8] sm:$0xf]  ;;  %v11081_v10 = vld [vmem:[#allocation10 + $0x4e8] sm:$0xf0]  ;;  %3998 = vmatpush.bf16.msra.mxu0 %v8182_v3  ;;  %v10996_v15 = vld [vmem:[#allocation10 + $0x240] sm:$0xf0] }
  0x20   :  { %v8662_v12 = vor.u32 %v11081_v10, %v8661_v9  ;;  %4017 = vmatpush.bf16.msra.mxu1 %v8342_v7  ;;  %v8322_v17 = vor.u32 %v10996_v15, %v8321_v14  ;;  %v8481_v18 = vld [vmem:[#allocation10 + $0x370] sm:$0xf]  ;;  %v11036_v19 = vld [vmem:[#allocation10 + $0x380] sm:$0xf0]  ;;  %v8141_v23 = vld [vmem:[#allocation10 + $0xc8] sm:$0xf] }
  0x21   :  { %4036 = vmatpush.bf16.msra.mxu2 %v8502_v8  ;;  %v8641_v20 = vld [vmem:[#allocation10 + $0x4b0] sm:$0xf]  ;;  %v8482_v21 = vor.u32 %v11036_v19, %v8481_v18  ;;  %v11076_v22 = vld [vmem:[#allocation10 + $0x4c0] sm:$0xf0]  ;;  %v10951_v24 = vld [vmem:[#allocation10 + $0xd8] sm:$0xf0] }
  0x22   :  { %4055 = vmatpush.bf16.msra.mxu3 %v8662_v12  ;;  %v8642_v25 = vor.u32 %v11076_v22, %v8641_v20  ;;  %v8301_v26 = vld [vmem:[#allocation10 + $0x208] sm:$0xf]  ;;  %v10991_v27 = vld [vmem:[#allocation10 + $0x218] sm:$0xf0]  ;;  %v8142_v29 = vor.u32 %v10951_v24, %v8141_v23  ;;  %v8121_v35 = vld [vmem:[#allocation10 + $0xa0] sm:$0xf] }
  0x23   :  { %v8461_v28 = vld [vmem:[#allocation10 + $0x348] sm:$0xf]  ;;  %3999 = vmatpush.bf16.msra.mxu0 %v8162_v16  ;;  %v11031_v30 = vld [vmem:[#allocation10 + $0x358] sm:$0xf0]  ;;  %v8302_v33 = vor.u32 %v10991_v27, %v8301_v26  ;;  %v10946_v36 = vld [vmem:[#allocation10 + $0xb0] sm:$0xf0] }
  0x24   :  { %v8621_v31 = vld [vmem:[#allocation10 + $0x488] sm:$0xf]  ;;  %v11071_v32 = vld [vmem:[#allocation10 + $0x498] sm:$0xf0]  ;;  %4018 = vmatpush.bf16.msra.mxu1 %v8322_v17  ;;  %v8462_v34 = vor.u32 %v11031_v30, %v8461_v28  ;;  %v8281_v37 = vld [vmem:[#allocation10 + $0x1e0] sm:$0xf]  ;;  %v8122_v44 = vor.u32 %v10946_v36, %v8121_v35 }
  0x25   :  { %4037 = vmatpush.bf16.msra.mxu2 %v8482_v21  ;;  %v8622_v38 = vor.u32 %v11071_v32, %v8621_v31  ;;  %v10986_v39 = vld [vmem:[#allocation10 + $0x1f0] sm:$0xf0]  ;;  %v8441_v40 = vld [vmem:[#allocation10 + $0x320] sm:$0xf]  ;;  %v8101_v47 = vld [vmem:[#allocation10 + $0x78] sm:$0xf] }
  0x26   :  { %4056 = vmatpush.bf16.msra.mxu3 %v8642_v25  ;;  %v11026_v41 = vld [vmem:[#allocation10 + $0x330] sm:$0xf0]  ;;  %v8601_v42 = vld [vmem:[#allocation10 + $0x460] sm:$0xf]  ;;  %v8282_v45 = vor.u32 %v10986_v39, %v8281_v37  ;;  %v10941_v48 = vld [vmem:[#allocation10 + $0x88] sm:$0xf0] }
  0x27   :  { %v11066_v43 = vld [vmem:[#allocation10 + $0x470] sm:$0xf0]  ;;  %4000 = vmatpush.bf16.msra.mxu0 %v8142_v29  ;;  %v8442_v46 = vor.u32 %v11026_v41, %v8441_v40  ;;  %v8261_v49 = vld [vmem:[#allocation10 + $0x1b8] sm:$0xf]  ;;  %v10981_v51 = vld [vmem:[#allocation10 + $0x1c8] sm:$0xf0]  ;;  %v8102_v57 = vor.u32 %v10941_v48, %v8101_v47 }
  0x28   :  { %4019 = vmatpush.bf16.msra.mxu1 %v8302_v33  ;;  %v8602_v50 = vor.u32 %v11066_v43, %v8601_v42  ;;  %v8421_v52 = vld [vmem:[#allocation10 + $0x2f8] sm:$0xf]  ;;  %v11021_v53 = vld [vmem:[#allocation10 + $0x308] sm:$0xf0]  ;;  %v8081_v56 = vld [vmem:[#allocation10 + $0x50] sm:$0xf]  ;;  %v8262_v61 = vor.u32 %v10981_v51, %v8261_v49 }
  0x29   :  { %4038 = vmatpush.bf16.msra.mxu2 %v8462_v34  ;;  %v8581_v54 = vld [vmem:[#allocation10 + $0x438] sm:$0xf]  ;;  %v11061_v55 = vld [vmem:[#allocation10 + $0x448] sm:$0xf0]  ;;  %v10936_v58 = vld [vmem:[#allocation10 + $0x60] sm:$0xf0]  ;;  %v8422_v62 = vor.u32 %v11021_v53, %v8421_v52 }
  0x2a   :  { %4057 = vmatpush.bf16.msra.mxu3 %v8622_v38  ;;  %v8241_v59 = vld [vmem:[#allocation10 + $0x190] sm:$0xf]  ;;  %v10976_v60 = vld [vmem:[#allocation10 + $0x1a0] sm:$0xf0]  ;;  %v8582_v2 = vor.u32 %v11061_v55, %v8581_v54  ;;  %v8061_v4 = vld [vmem:[#allocation10 + $0x28] sm:$0xf]  ;;  %v8082_v9 = vor.u32 %v10936_v58, %v8081_v56 }
  0x2b   :  { %4001 = vmatpush.bf16.msra.mxu0 %v8122_v44  ;;  %v8401_v63 = vld [vmem:[#allocation10 + $0x2d0] sm:$0xf]  ;;  %v11016_v0 = vld [vmem:[#allocation10 + $0x2e0] sm:$0xf0]  ;;  %v10931_v5 = vld [vmem:[#allocation10 + $0x38] sm:$0xf0]  ;;  %v8242_v13 = vor.u32 %v10976_v60, %v8241_v59 }
  0x2c   :  { %4020 = vmatpush.bf16.msra.mxu1 %v8282_v45  ;;  %v8561_v1 = vld [vmem:[#allocation10 + $0x410] sm:$0xf]  ;;  %v11056_v3 = vld [vmem:[#allocation10 + $0x420] sm:$0xf0]  ;;  %v11885_v6 = vld [vmem:[#allocation10 + $0x168] sm:$0xf]  ;;  %v8402_v14 = vor.u32 %v11016_v0, %v8401_v63  ;;  %v8062_v18 = vor.u32 %v10931_v5, %v8061_v4 }
  0x2d   :  { %4039 = vmatpush.bf16.msra.mxu2 %v8442_v46  ;;  %v11887_v7 = vld [vmem:[#allocation10 + $0x178] sm:$0xf0]  ;;  %v11889_v8 = vld [vmem:[#allocation10 + $0x2a8] sm:$0xf]  ;;  %v11895_v15 = vld [vmem:[#allocation10] sm:$0xf]  ;;  %v8562_v17 = vor.u32 %v11056_v3, %v8561_v1 }
  0x2e   :  { %4058 = vmatpush.bf16.msra.mxu3 %v8602_v50  ;;  %v11011_v10 = vld [vmem:[#allocation10 + $0x2b8] sm:$0xf0]  ;;  %v11891_v11 = vld [vmem:[#allocation10 + $0x3e8] sm:$0xf]  ;;  %v11897_v16 = vld [vmem:[#allocation10 + $0x10] sm:$0xf0]  ;;  %v8222_v19 = vor.u32 %v11887_v7, %v11885_v6 }
  0x2f   :  { %4002 = vmatpush.bf16.msra.mxu0 %v8102_v57  ;;  %v11893_v12 = vld [vmem:[#allocation10 + $0x3f8] sm:$0xf0]  ;;  %v97_v20 = vld [vmem:[#allocation7] sm:$0xff]  ;;  %v98_v21 = vld [vmem:[#allocation7 + $0x8] sm:$0xff]  ;;  %v8382_v22 = vor.u32 %v11011_v10, %v11889_v8  ;;  %v8042_v29 = vor.u32 %v11897_v16, %v11895_v15  ;;  %vm5424_vm0 = vcmask 1041408   ;;  %vm5521_vm1 = vcmask 1040384  }
  0x30   :  { %4021 = vmatpush.bf16.msra.mxu1 %v8262_v61  ;;  %v8542_v23 = vor.u32 %v11893_v12, %v11891_v11  ;;  %v101_v24 = vmax.f32 %v97_v20, 0.0  ;;  %v102_v25 = vmax.f32 %v98_v21, 0.0  ;;  %v109_v26 = vld [vmem:[#allocation7 + $0x2] sm:$0xff]  ;;  %v110_v27 = vld [vmem:[#allocation7 + $0xa] sm:$0xff]  ;;  %v10966_v37 = vld [vmem:[#allocation10 + $0x150] sm:$0xf0] }
  0x31   :  { %4040 = vmatpush.bf16.msra.mxu2 %v8422_v62  ;;  %v121_v28 = vld [vmem:[#allocation7 + $0x3] sm:$0xff]  ;;  %v113_v31 = vmax.f32 %v109_v26, 0.0  ;;  %v114_v32 = vmax.f32 %v110_v27, 0.0  ;;  %v122_v33 = vld [vmem:[#allocation7 + $0xb] sm:$0xff]  ;;  %v11006_v43 = vld [vmem:[#allocation10 + $0x290] sm:$0xf0] }
  0x32   :  { %4059 = vmatpush.bf16.msra.mxu3 %v8582_v2  ;;  %v8201_v30 = vld [vmem:[#allocation10 + $0x140] sm:$0xf]  ;;  %v125_v34 = vmax.f32 %v121_v28, 0.0  ;;  %v133_v35 = vld [vmem:[#allocation7 + $0x4] sm:$0xff]  ;;  %v134_v36 = vld [vmem:[#allocation7 + $0xc] sm:$0xff]  ;;  %v105_v39 = vpack.c.bf16 %v101_v24, %v101_v24  ;;  %v11906_v40 = vpack.c.bf16 %v102_v25, %v102_v25  ;;  %v126_v41 = vmax.f32 %v122_v33, 0.0 }
  0x33   :  { %4003 = vmatpush.bf16.msra.mxu0 %v8082_v9  ;;  %v8361_v38 = vld [vmem:[#allocation10 + $0x280] sm:$0xf]  ;;  %v137_v42 = vmax.f32 %v133_v35, 0.0  ;;  %v117_v45 = vpack.c.bf16 %v113_v31, %v113_v31  ;;  %v118_v46 = vpack.c.bf16 %v114_v32, %v114_v32  ;;  %v138_v48 = vmax.f32 %v134_v36, 0.0  ;;  %v11046_v49 = vld [vmem:[#allocation10 + $0x3d0] sm:$0xf0] }
  0x34   :  { %4022 = vmatpush.bf16.msra.mxu1 %v8242_v13  ;;  %v8521_v44 = vld [vmem:[#allocation10 + $0x3c0] sm:$0xf]  ;;  %v129_v47 = vpack.c.bf16 %v125_v34, %v125_v34  ;;  %v258_v50 = vunpack.c.l.b16 %v105_v39  ;;  %v259_v51 = vunpack.c.l.b16 %v11906_v40  ;;  %v130_v52 = vpack.c.bf16 %v126_v41, %v126_v41  ;;  %v9141_v54 = vld [vmem:[#allocation10 + $0x898] sm:$0xf]  ;;  %v11201_v55 = vld [vmem:[#allocation10 + $0x8a8] sm:$0xf0] }
  0x35   :  { %4041 = vmatpush.bf16.msra.mxu2 %v8402_v14  ;;  %v141_v53 = vpack.c.bf16 %v137_v42, %v137_v42  ;;  %v270_v56 = vunpack.c.l.b16 %v117_v45  ;;  %v271_v57 = vunpack.c.l.b16 %v118_v46  ;;  %v142_v59 = vpack.c.bf16 %v138_v48, %v138_v48  ;;  %v8981_v60 = vld [vmem:[#allocation10 + $0x758] sm:$0xf]  ;;  %v11161_v61 = vld [vmem:[#allocation10 + $0x768] sm:$0xf0]  ;;  %v9121_v11 = vld [vmem:[#allocation10 + $0x870] sm:$0xf] }
  0x36   :  { %4060 = vmatpush.bf16.msra.mxu3 %v8562_v17  ;;  %v282_v58 = vunpack.c.l.b16 %v129_v47  ;;  %v8202_v62 = vor.u32 %v10966_v37, %v8201_v30  ;;  %v8362_v63 = vor.u32 %v11006_v43, %v8361_v38  ;;  %v283_v0 = vunpack.c.l.b16 %v130_v52  ;;  %v8821_v5 = vld [vmem:[#allocation10 + $0x618] sm:$0xf]  ;;  %v11121_v6 = vld [vmem:[#allocation10 + $0x628] sm:$0xf0]  ;;  %v11196_v12 = vld [vmem:[#allocation10 + $0x880] sm:$0xf0] }
  0x37   :  { %4004 = vmatpush.bf16.msra.mxu0 %v8062_v18  ;;  %v294_v1 = vunpack.c.l.b16 %v141_v53  ;;  %v8522_v2 = vor.u32 %v11046_v49, %v8521_v44  ;;  %v295_v3 = vunpack.c.l.b16 %v142_v59  ;;  %v9142_v4 = vor.u32 %v11201_v55, %v9141_v54  ;;  %v9301_v7 = vld [vmem:[#allocation10 + $0x9d8] sm:$0xf]  ;;  %v11241_v10 = vld [vmem:[#allocation10 + $0x9e8] sm:$0xf0]  ;;  %v8961_v15 = vld [vmem:[#allocation10 + $0x730] sm:$0xf] }
  0x38   :  { %4023 = vmatpush.bf16.msra.mxu1 %v8222_v19  ;;  %v11911_v8 = vpack.c.b16 %v259_v51, %v258_v50  ;;  %v8982_v9 = vor.u32 %v11161_v61, %v8981_v60  ;;  %v11913_v13 = vpack.c.b16 %v271_v57, %v270_v56  ;;  %v11915_v14 = vpack.c.b16 %v283_v0, %v282_v58  ;;  %v11156_v16 = vld [vmem:[#allocation10 + $0x740] sm:$0xf0]  ;;  %v99_v17 = vld [vmem:[#allocation7 + $0x18] sm:$0xff]  ;;  %v8801_v20 = vld [vmem:[#allocation10 + $0x5f0] sm:$0xf]  ;;  %s11832_s4 = smov 120  }
  0x39   :  { %4042 = vmatpush.bf16.msra.mxu2 %v8382_v22  ;;  %v11917_v18 = vpack.c.b16 %v295_v3, %v294_v1  ;;  %v8822_v19 = vor.u32 %v11121_v6, %v8821_v5  ;;  %v11116_v21 = vld [vmem:[#allocation10 + $0x600] sm:$0xf0]  ;;  %v9281_v22 = vld [vmem:[#allocation10 + $0x9b0] sm:$0xf]  ;;  %v9122_v24 = vor.u32 %v11196_v12, %v9121_v11  ;;  %v9101_v26 = vld [vmem:[#allocation10 + $0x848] sm:$0xf]  ;;  %v8962_v28 = vor.u32 %v11156_v16, %v8961_v15 }
  0x3a   :  { %4061 = vmatpush.bf16.msra.mxu3 %v8542_v23  ;;  %v9302_v23 = vor.u32 %v11241_v10, %v9301_v7  ;;  %v11236_v25 = vld [vmem:[#allocation10 + $0x9c0] sm:$0xf0]  ;;  %v11191_v27 = vld [vmem:[#allocation10 + $0x858] sm:$0xf0]  ;;  %v8802_v31 = vor.u32 %v11116_v21, %v8801_v20  ;;  %v8781_v32 = vld [vmem:[#allocation10 + $0x5c8] sm:$0xf] }
  0x3b   :  { %4005 = vmatpush.bf16.msra.mxu0 %v8042_v29  ;;  %v8941_v29 = vld [vmem:[#allocation10 + $0x708] sm:$0xf]  ;;  %v11151_v30 = vld [vmem:[#allocation10 + $0x718] sm:$0xf0]  ;;  %v100_v34 = vld [vmem:[#allocation7 + $0x20] sm:$0xff]  ;;  %v103_v35 = vmax.f32 %v99_v17, 0.0  ;;  %v9282_v37 = vor.u32 %v11236_v25, %v9281_v22  ;;  %v9102_v38 = vor.u32 %v11191_v27, %v9101_v26 }
  0x3c   :  { %4024 = vmatpush.bf16.msra.mxu1 %v8202_v62  ;;  %v11111_v33 = vld [vmem:[#allocation10 + $0x5d8] sm:$0xf0]  ;;  %v9261_v39 = vld [vmem:[#allocation10 + $0x988] sm:$0xf]  ;;  %v104_v42 = vmax.f32 %v100_v34, 0.0  ;;  %v8942_v47 = vor.u32 %v11151_v30, %v8941_v29  ;;  %v179_v40 = vld [vmem:[#allocation7 + $0x50] sm:$0xff] }
  0x3d   :  { %4043 = vmatpush.bf16.msra.mxu2 %v8362_v63  ;;  %v111_v36 = vld [vmem:[#allocation7 + $0x1a] sm:$0xff]  ;;  %v112_v43 = vld [vmem:[#allocation7 + $0x22] sm:$0xff]  ;;  %v11186_v55 = vld [vmem:[#allocation10 + $0x830] sm:$0xf0]  ;;  %v107_v56 = vpack.c.bf16 %v103_v35, %v103_v35  ;;  %vm5650_vm5 = vcmask 1046528   ;;  %vm5747_vm7 = vcmask 1045504  }
  0x3e   :  { %4062 = vmatpush.bf16.msra.mxu3 %v8522_v2  ;;  %4006 = vmatmul.bf16.vlgmr.msra.gmra.mxu0 %v11911_v8  ;;  %v11231_v41 = vld [vmem:[#allocation10 + $0x998] sm:$0xf0]  ;;  %v115_v44 = vmax.f32 %v111_v36, 0.0  ;;  %v124_v46 = vld [vmem:[#allocation7 + $0x23] sm:$0xff]  ;;  %v116_v48 = vmax.f32 %v112_v43, 0.0  ;;  %v11923_v57 = vpack.c.bf16 %v104_v42, %v104_v42  ;;  %v8782_v2 = vor.u32 %v11111_v33, %v8781_v32  ;;  %s10921_s19 = sld [smem:[#allocation3 + $0x82]] }
  0x3f   :  { %4025 = vmatmul.bf16.vlgmr.msra.gmra.mxu1 %v11913_v13  ;;  %4074 = vmatpush.bf16.msrb.mxu0 %v8822_v19  ;;  %v123_v45 = vld [vmem:[#allocation7 + $0x1b] sm:$0xff]  ;;  %v128_v50 = vmax.f32 %v124_v46, 0.0  ;;  %v136_v53 = vld [vmem:[#allocation7 + $0x24] sm:$0xff]  ;;  %v11146_v61 = vld [vmem:[#allocation10 + $0x6f0] sm:$0xf0]  ;;  %v9262_v5 = vor.u32 %v11231_v41, %v9261_v39  ;;  %v260_v15 = vunpack.c.l.b16 %v107_v56  ;;  %s13145_s20 = sld [smem:[#allocation3]] }
  0x40   :  { %4093 = vmatpush.bf16.msrb.mxu1 %v8982_v9  ;;  %4044 = vmatmul.bf16.vlgmr.msra.gmra.mxu2 %v11915_v14  ;;  %v127_v49 = vmax.f32 %v123_v45, 0.0  ;;  %v135_v52 = vld [vmem:[#allocation7 + $0x1c] sm:$0xff]  ;;  %v140_v59 = vmax.f32 %v136_v53, 0.0  ;;  %v119_v62 = vpack.c.bf16 %v115_v44, %v115_v44  ;;  %v120_v63 = vpack.c.bf16 %v116_v48, %v116_v48  ;;  %v11106_v9 = vld [vmem:[#allocation10 + $0x5b0] sm:$0xf0]  ;;  %v145_v34 = vld [vmem:[#allocation7 + $0x5] sm:$0xff] }
  0x41   :  { %4112 = vmatpush.bf16.msrb.mxu2 %v9142_v4  ;;  %4063 = vmatmul.bf16.vlgmr.msra.gmra.mxu3 %v11917_v18  ;;  %v9081_v54 = vld [vmem:[#allocation10 + $0x820] sm:$0xf]  ;;  %v139_v58 = vmax.f32 %v135_v52, 0.0  ;;  %v132_v1 = vpack.c.bf16 %v128_v50, %v128_v50  ;;  %v11226_v12 = vld [vmem:[#allocation10 + $0x970] sm:$0xf0]  ;;  %v261_v16 = vunpack.c.l.b16 %v11923_v57  ;;  %s13154_s21 = sld [smem:[#allocation3 + $0x1]] }
  0x42   :  { %4131 = vmatpush.bf16.msrb.mxu3 %v9302_v23  ;;  %v8921_v60 = vld [vmem:[#allocation10 + $0x6e0] sm:$0xf]  ;;  %v131_v0 = vpack.c.bf16 %v127_v49, %v127_v49  ;;  %v144_v4 = vpack.c.bf16 %v140_v59, %v140_v59  ;;  %v9082_v6 = vor.u32 %v11186_v55, %v9081_v54  ;;  %v9061_v17 = vld [vmem:[#allocation10 + $0x7f8] sm:$0xf]  ;;  %v11181_v19 = vld [vmem:[#allocation10 + $0x808] sm:$0xf0]  ;;  %v272_v20 = vunpack.c.l.b16 %v119_v62 }
  0x43   :  { %4075 = vmatpush.bf16.msrb.mxu0 %v8802_v31  ;;  %v143_v3 = vpack.c.bf16 %v139_v58, %v139_v58  ;;  %v8761_v7 = vld [vmem:[#allocation10 + $0x5a0] sm:$0xf]  ;;  %v8922_v11 = vor.u32 %v11146_v61, %v8921_v60  ;;  %v273_v21 = vunpack.c.l.b16 %v120_v63  ;;  %v285_v23 = vunpack.c.l.b16 %v132_v1  ;;  %v11141_v25 = vld [vmem:[#allocation10 + $0x6c8] sm:$0xf0]  ;;  %v8741_v31 = vld [vmem:[#allocation10 + $0x578] sm:$0xf] }
  0x44   :  { %4094 = vmatpush.bf16.msrb.mxu1 %v8962_v28  ;;  %v9241_v10 = vld [vmem:[#allocation10 + $0x960] sm:$0xf]  ;;  %v284_v22 = vunpack.c.l.b16 %v131_v0  ;;  %v8762_v26 = vor.u32 %v11106_v9, %v8761_v7  ;;  %v297_v28 = vunpack.c.l.b16 %v144_v4  ;;  %v9062_v30 = vor.u32 %v11181_v19, %v9061_v17  ;;  %v11101_v32 = vld [vmem:[#allocation10 + $0x588] sm:$0xf0]  ;;  %v9221_v33 = vld [vmem:[#allocation10 + $0x938] sm:$0xf] }
  0x45   :  { %4113 = vmatpush.bf16.msrb.mxu2 %v9122_v24  ;;  %v8901_v24 = vld [vmem:[#allocation10 + $0x6b8] sm:$0xf]  ;;  %v296_v27 = vunpack.c.l.b16 %v143_v3  ;;  %v9242_v29 = vor.u32 %v11226_v12, %v9241_v10  ;;  %v11928_v35 = vpack.c.b16 %v261_v16, %v260_v15  ;;  %v11176_v39 = vld [vmem:[#allocation10 + $0x7e0] sm:$0xf0]  ;;  %v11930_v41 = vpack.c.b16 %v273_v21, %v272_v20  ;;  %v8721_v43 = vld [vmem:[#allocation10 + $0x550] sm:$0xf] }
  0x46   :  { %4132 = vmatpush.bf16.msrb.mxu3 %v9282_v37  ;;  %v8902_v36 = vor.u32 %v11141_v25, %v8901_v24  ;;  %v11221_v37 = vld [vmem:[#allocation10 + $0x948] sm:$0xf0]  ;;  %v11932_v42 = vpack.c.b16 %v285_v23, %v284_v22  ;;  %v11096_v44 = vld [vmem:[#allocation10 + $0x560] sm:$0xf0]  ;;  %v8881_v45 = vld [vmem:[#allocation10 + $0x690] sm:$0xf]  ;;  %v8742_v48 = vor.u32 %v11101_v32, %v8741_v31 }
  0x47   :  { %4076 = vmatpush.bf16.msrb.mxu0 %v8782_v2  ;;  %v11136_v46 = vld [vmem:[#allocation10 + $0x6a0] sm:$0xf0]  ;;  %v9201_v49 = vld [vmem:[#allocation10 + $0x910] sm:$0xf]  ;;  %v9021_v52 = vld [vmem:[#allocation10 + $0x7a8] sm:$0xf]  ;;  %v9222_v54 = vor.u32 %v11221_v37, %v9221_v33 }
  0x48   :  { %4095 = vmatpush.bf16.msrb.mxu1 %v8942_v47  ;;  %v11934_v47 = vpack.c.b16 %v297_v28, %v296_v27  ;;  %v11216_v50 = vld [vmem:[#allocation10 + $0x920] sm:$0xf0]  ;;  %v11171_v53 = vld [vmem:[#allocation10 + $0x7b8] sm:$0xf0]  ;;  %v8861_v56 = vld [vmem:[#allocation10 + $0x668] sm:$0xf]  ;;  %v8882_v61 = vor.u32 %v11136_v46, %v8881_v45 }
  0x49   :  { %4114 = vmatpush.bf16.msrb.mxu2 %v9102_v38  ;;  %v9041_v38 = vld [vmem:[#allocation10 + $0x7d0] sm:$0xf]  ;;  %v157_v59 = vld [vmem:[#allocation7 + $0x6] sm:$0xff]  ;;  %v149_v62 = vmax.f32 %v145_v34, 0.0  ;;  %v177_v1 = vld [vmem:[#allocation7 + $0x38] sm:$0xff]  ;;  %v9202_v12 = vor.u32 %v11216_v50, %v9201_v49  ;;  %v9022_v15 = vor.u32 %v11171_v53, %v9021_v52  ;;  %s13185_s22 = sld [smem:[#allocation3 + $0x2]] }
  0x4a   :  { %4133 = vmatpush.bf16.msrb.mxu3 %v9262_v5  ;;  %v9042_v55 = vor.u32 %v11176_v39, %v9041_v38  ;;  %v146_v58 = vld [vmem:[#allocation7 + $0xd] sm:$0xff]  ;;  %v11131_v2 = vld [vmem:[#allocation10 + $0x678] sm:$0xf0]  ;;  %v161_v4 = vmax.f32 %v157_v59, 0.0  ;;  %v8701_v7 = vld [vmem:[#allocation10 + $0x528] sm:$0xf] }
  0x4b   :  { %4077 = vmatpush.bf16.msrb.mxu0 %v8762_v26  ;;  %v158_v60 = vld [vmem:[#allocation7 + $0xe] sm:$0xff]  ;;  %v150_v3 = vmax.f32 %v146_v58, 0.0  ;;  %v11091_v17 = vld [vmem:[#allocation10 + $0x538] sm:$0xf0]  ;;  %v9181_v19 = vld [vmem:[#allocation10 + $0x8e8] sm:$0xf]  ;;  %v8862_v21 = vor.u32 %v11131_v2, %v8861_v56  ;;  %v153_v25 = vpack.c.bf16 %v149_v62, %v149_v62 }
  0x4c   :  { %4096 = vmatpush.bf16.msrb.mxu1 %v8922_v11  ;;  %v169_v63 = vld [vmem:[#allocation7 + $0x10] sm:$0xff]  ;;  %v162_v5 = vmax.f32 %v158_v60, 0.0  ;;  %v181_v11 = vmax.f32 %v177_v1, 0.0  ;;  %v11211_v20 = vld [vmem:[#allocation10 + $0x8f8] sm:$0xf0]  ;;  %v165_v28 = vpack.c.bf16 %v161_v4, %v161_v4  ;;  %v8702_v32 = vor.u32 %v11091_v17, %v8701_v7  ;;  %s13197_s23 = sld [smem:[#allocation3 + $0x80]] }
  0x4d   :  { %4115 = vmatpush.bf16.msrb.mxu2 %v9082_v6  ;;  %v176_v0 = vld [vmem:[#allocation7 + $0x30] sm:$0xff]  ;;  %v8722_v6 = vor.u32 %v11096_v44, %v8721_v43  ;;  %v171_v9 = vmax.f32 %v169_v63, 0.0  ;;  %v9001_v22 = vld [vmem:[#allocation10 + $0x780] sm:$0xf]  ;;  %v154_v27 = vpack.c.bf16 %v150_v3, %v150_v3  ;;  %v11361_v31 = vld [vmem:[#allocation10 + $0xda8] sm:$0xf0]  ;;  %v9182_v43 = vor.u32 %v11211_v20, %v9181_v19 }
  0x4e   :  { %4134 = vmatpush.bf16.msrb.mxu3 %v9242_v29  ;;  %4011 = vmatmul.bf16.gmra.mxu0 %v11928_v35  ;;  %v180_v10 = vmax.f32 %v176_v0, 0.0  ;;  %v11166_v23 = vld [vmem:[#allocation10 + $0x790] sm:$0xf0]  ;;  %v8841_v24 = vld [vmem:[#allocation10 + $0x640] sm:$0xf]  ;;  %v166_v29 = vpack.c.bf16 %v162_v5, %v162_v5  ;;  %v11940_v37 = vpack.c.bf16 %v181_v11, %v181_v11  ;;  %v306_v50 = vunpack.c.l.b16 %v153_v25  ;;  %s13270_s24 = sld [smem:[#allocation3 + $0x81]] }
  0x4f   :  { %4030 = vmatmul.bf16.gmra.mxu1 %v11930_v41  ;;  %4078 = vmatpush.bf16.msrb.mxu0 %v8742_v48  ;;  %v11126_v26 = vld [vmem:[#allocation10 + $0x650] sm:$0xf0]  ;;  %v8681_v33 = vld [vmem:[#allocation10 + $0x500] sm:$0xf]  ;;  %v173_v34 = vpack.c.bf16 %v171_v9, %v171_v9  ;;  %v9621_v38 = vld [vmem:[#allocation10 + $0xc58] sm:$0xf]  ;;  %v9002_v44 = vor.u32 %v11166_v23, %v9001_v22  ;;  %v307_v56 = vunpack.c.l.b16 %v154_v27  ;;  %v318_v58 = vunpack.c.l.b16 %v165_v28 }
  0x50   :  { %4097 = vmatpush.bf16.msrb.mxu1 %v8902_v36  ;;  %4049 = vmatmul.bf16.gmra.mxu2 %v11932_v42  ;;  %v184_v36 = vpack.c.bf16 %v180_v10, %v180_v10  ;;  %v11321_v39 = vld [vmem:[#allocation10 + $0xc68] sm:$0xf0]  ;;  %v11086_v45 = vld [vmem:[#allocation10 + $0x510] sm:$0xf0]  ;;  %v9161_v46 = vld [vmem:[#allocation10 + $0x8c0] sm:$0xf]  ;;  %v8842_v49 = vor.u32 %v11126_v26, %v8841_v24  ;;  %v319_v59 = vunpack.c.l.b16 %v166_v29  ;;  %v339_v3 = vunpack.c.l.b16 %v11940_v37 }
  0x51   :  { %4116 = vmatpush.bf16.msrb.mxu2 %v9062_v30  ;;  %4068 = vmatmul.bf16.gmra.mxu3 %v11934_v47  ;;  %v9781_v30 = vld [vmem:[#allocation10 + $0xd98] sm:$0xf]  ;;  %v11206_v48 = vld [vmem:[#allocation10 + $0x8d0] sm:$0xf0]  ;;  %v9622_v60 = vor.u32 %v11321_v39, %v9621_v38  ;;  %v9761_v62 = vld [vmem:[#allocation10 + $0xd70] sm:$0xf]  ;;  %v8682_v0 = vor.u32 %v11086_v45, %v8681_v33  ;;  %v328_v1 = vunpack.c.l.b16 %v173_v34  ;;  %v11943_v19 = vpack.c.b16 %v307_v56, %v306_v50 }
  0x52   :  { %4135 = vmatpush.bf16.msrb.mxu3 %v9222_v54  ;;  %v9782_v52 = vor.u32 %v11361_v31, %v9781_v30  ;;  %v9461_v53 = vld [vmem:[#allocation10 + $0xb18] sm:$0xf]  ;;  %v11281_v54 = vld [vmem:[#allocation10 + $0xb28] sm:$0xf0]  ;;  %v11356_v63 = vld [vmem:[#allocation10 + $0xd80] sm:$0xf0]  ;;  %v338_v2 = vunpack.c.l.b16 %v184_v36  ;;  %v9162_v4 = vor.u32 %v11206_v48, %v9161_v46  ;;  %v11945_v20 = vpack.c.b16 %v319_v59, %v318_v58 }
  0x53   :  { %4079 = vmatpush.bf16.msrb.mxu0 %v8722_v6  ;;  %v9462_v5 = vor.u32 %v11281_v54, %v9461_v53  ;;  %v9441_v6 = vld [vmem:[#allocation10 + $0xaf0] sm:$0xf]  ;;  %v11276_v7 = vld [vmem:[#allocation10 + $0xb00] sm:$0xf0]  ;;  %v9762_v10 = vor.u32 %v11356_v63, %v9761_v62  ;;  %13422 = vst [vmem:[#allocation19_spill] sm:$0xff] %v11943_v19  ;;  %v11949_v24 = vpack.c.b16 %v328_v1, %v259_v51  ;;  %v170_v36 = vld [vmem:[#allocation7 + $0x28] sm:$0xff] }
  0x54   :  { %4098 = vmatpush.bf16.msrb.mxu1 %v8882_v61  ;;  %v11401_v61 = vld [vmem:[#allocation10 + $0xee8] sm:$0xf0]  ;;  %v9601_v11 = vld [vmem:[#allocation10 + $0xc30] sm:$0xf]  ;;  %v147_v17 = vld [vmem:[#allocation7 + $0x1d] sm:$0xff]  ;;  %13423 = vst [vmem:[#allocation20_spill] sm:$0xff] %v11945_v20  ;;  %v11953_v25 = vpack.c.b16 %v339_v3, %v338_v2  ;;  %v9442_v33 = vor.u32 %v11276_v7, %v9441_v6 }
  0x55   :  { %4117 = vmatpush.bf16.msrb.mxu2 %v9042_v55  ;;  %v9941_v55 = vld [vmem:[#allocation10 + $0xed8] sm:$0xf]  ;;  %v9741_v22 = vld [vmem:[#allocation10 + $0xd48] sm:$0xf]  ;;  %v11351_v23 = vld [vmem:[#allocation10 + $0xd58] sm:$0xf0] }
  0x56   :  { %4136 = vmatpush.bf16.msrb.mxu3 %v9202_v12  ;;  %v9942_v9 = vor.u32 %v11401_v61, %v9941_v55  ;;  %v11316_v12 = vld [vmem:[#allocation10 + $0xc40] sm:$0xf0]  ;;  %13424 = vst [vmem:[#allocation21_spill] sm:$0xff] %v11949_v24  ;;  %v9421_v26 = vld [vmem:[#allocation10 + $0xac8] sm:$0xf]  ;;  %v9742_v39 = vor.u32 %v11351_v23, %v9741_v22  ;;  %v151_v48 = vmax.f32 %v147_v17, 0.0 }
  0x57   :  { %4080 = vmatpush.bf16.msrb.mxu0 %v8702_v32  ;;  %13425 = vst [vmem:[#allocation22_spill] sm:$0xff] %v11953_v25  ;;  %v11271_v27 = vld [vmem:[#allocation10 + $0xad8] sm:$0xf0]  ;;  %v9581_v28 = vld [vmem:[#allocation10 + $0xc08] sm:$0xf]  ;;  %v9602_v34 = vor.u32 %v11316_v12, %v9601_v11  ;;  %v172_v53 = vmax.f32 %v170_v36, 0.0 }
  0x58   :  { %4099 = vmatpush.bf16.msrb.mxu1 %v8862_v21  ;;  %v11396_v21 = vld [vmem:[#allocation10 + $0xec0] sm:$0xf0]  ;;  %v11311_v29 = vld [vmem:[#allocation10 + $0xc18] sm:$0xf0]  ;;  %v178_v38 = vld [vmem:[#allocation7 + $0x48] sm:$0xff]  ;;  %v183_v55 = vmax.f32 %v179_v40, 0.0  ;;  %v9422_v56 = vor.u32 %v11271_v27, %v9421_v26 }
  0x59   :  { %4118 = vmatpush.bf16.msrb.mxu2 %v9022_v15  ;;  %v9921_v15 = vld [vmem:[#allocation10 + $0xeb0] sm:$0xf]  ;;  %v148_v30 = vld [vmem:[#allocation7 + $0x25] sm:$0xff]  ;;  %v9721_v45 = vld [vmem:[#allocation10 + $0xd20] sm:$0xf]  ;;  %v182_v54 = vmax.f32 %v178_v38, 0.0  ;;  %v9582_v58 = vor.u32 %v11311_v29, %v9581_v28  ;;  %v174_v11 = vpack.c.bf16 %v172_v53, %v172_v53 }
  0x5a   :  { %4137 = vmatpush.bf16.msrb.mxu3 %v9182_v43  ;;  %v159_v31 = vld [vmem:[#allocation7 + $0x1e] sm:$0xff]  ;;  %v160_v32 = vld [vmem:[#allocation7 + $0x26] sm:$0xff]  ;;  %v9922_v51 = vor.u32 %v11396_v21, %v9921_v15  ;;  %v11346_v46 = vld [vmem:[#allocation10 + $0xd30] sm:$0xf0]  ;;  %v11959_v15 = vpack.c.bf16 %v183_v55, %v183_v55  ;;  %s11833_s25 = smov [#allocation13]   ;;  %s8023_s2 = sshll.u32 %s13365_s5, 4  ;;  %s8024_s2 = int_to_ptr.hbm [resolvable:$true] %s8023_s2 }
  0x5b   :  { %4081 = vmatpush.bf16.msrb.mxu0 %v8682_v0  ;;  %v9901_v43 = vld [vmem:[#allocation10 + $0xe88] sm:$0xf]  ;;  %v163_v50 = vmax.f32 %v159_v31, 0.0  ;;  %v9401_v59 = vld [vmem:[#allocation10 + $0xaa0] sm:$0xf]  ;;  %v9722_v62 = vor.u32 %v11346_v46, %v9721_v45  ;;  %v186_v12 = vpack.c.bf16 %v182_v54, %v182_v54  ;;  %v11962_v53 = vld [vmem:[#allocation7 + $0x32] sm:$0xff] }
  0x5c   :  { %4100 = vmatpush.bf16.msrb.mxu1 %v8842_v49  ;;  %v152_v49 = vmax.f32 %v148_v30, 0.0  ;;  %v9561_v63 = vld [vmem:[#allocation10 + $0xbe0] sm:$0xf]  ;;  %v11306_v0 = vld [vmem:[#allocation10 + $0xbf0] sm:$0xf0]  ;;  %s8021_s28 = sshll.u32 %s11833_s25, 4  ;;  %s8022_s28 = int_to_ptr.vmem [resolvable:$true] %s8021_s28 }
  0x5d   :  { %4119 = vmatpush.bf16.msrb.mxu2 %v9002_v44  ;;  %v11391_v44 = vld [vmem:[#allocation10 + $0xe98] sm:$0xf0]  ;;  %v9881_v1 = vld [vmem:[#allocation10 + $0xe60] sm:$0xf]  ;;  %v11386_v2 = vld [vmem:[#allocation10 + $0xe70] sm:$0xf0]  ;;  %v167_v6 = vpack.c.bf16 %v163_v50, %v163_v50  ;;  %v9562_v21 = vor.u32 %v11306_v0, %v9561_v63 }
  0x5e   :  { %4138 = vmatpush.bf16.msrb.mxu3 %v9162_v4  ;;  %4082 = vmatmul.bf16.vlgmr.msrb.gmra.mxu0 %v11943_v19  ;;  %v9902_v61 = vor.u32 %v11391_v44, %v9901_v43  ;;  %v155_v4 = vpack.c.bf16 %v151_v48, %v151_v48  ;;  %v9381_v22 = vld [vmem:[#allocation10 + $0xa78] sm:$0xf]  ;;  %v11261_v23 = vld [vmem:[#allocation10 + $0xa88] sm:$0xf0]  ;;  %v9882_v26 = vor.u32 %v11386_v2, %v9881_v1  ;;  %v9681_v38 = vld [vmem:[#allocation10 + $0xcd0] sm:$0xf]  ;;  %v341_v43 = vunpack.c.l.b16 %v11959_v15 }
  0x5f   :  { %4150 = vmatpush.bf16.msra.mxu0 %v9462_v5  ;;  %4101 = vmatmul.bf16.vlgmr.msrb.gmra.mxu1 %v11945_v20  ;;  %v156_v5 = vpack.c.bf16 %v152_v49, %v152_v49  ;;  %v9541_v28 = vld [vmem:[#allocation10 + $0xbb8] sm:$0xf]  ;;  %v11301_v29 = vld [vmem:[#allocation10 + $0xbc8] sm:$0xf0]  ;;  %v11336_v40 = vld [vmem:[#allocation10 + $0xce0] sm:$0xf0]  ;;  %v9382_v46 = vor.u32 %v11261_v23, %v9381_v22 }
  0x60   :  { %4169 = vmatpush.bf16.msra.mxu1 %v9622_v60  ;;  %4120 = vmatmul.bf16.vlgmr.msrb.gmra.mxu2 %v11949_v24  ;;  %v11266_v60 = vld [vmem:[#allocation10 + $0xab0] sm:$0xf0]  ;;  %v9861_v30 = vld [vmem:[#allocation10 + $0xe38] sm:$0xf]  ;;  %v308_v31 = vunpack.c.l.b16 %v155_v4  ;;  %v11381_v36 = vld [vmem:[#allocation10 + $0xe48] sm:$0xf0]  ;;  %v9542_v48 = vor.u32 %v11301_v29, %v9541_v28  ;;  %v9682_v55 = vor.u32 %v11336_v40, %v9681_v38 }
  0x61   :  { %4188 = vmatpush.bf16.msra.mxu2 %v9782_v52  ;;  %v164_v52 = vmax.f32 %v160_v32, 0.0  ;;  %4139 = vmatmul.bf16.vlgmr.msrb.gmra.mxu3 %v11953_v25  ;;  %v9402_v17 = vor.u32 %v11266_v60, %v9401_v59  ;;  %v309_v32 = vunpack.c.l.b16 %v156_v5  ;;  %v9361_v44 = vld [vmem:[#allocation10 + $0xa50] sm:$0xf]  ;;  %v11256_v45 = vld [vmem:[#allocation10 + $0xa60] sm:$0xf0]  ;;  %v9862_v54 = vor.u32 %v11381_v36, %v9861_v30  ;;  %v189_v0 = vld [vmem:[#allocation7 + $0x3a] sm:$0xff] }
  0x62   :  { %4207 = vmatpush.bf16.msra.mxu3 %v9942_v9  ;;  %v9701_v9 = vld [vmem:[#allocation10 + $0xcf8] sm:$0xf]  ;;  %v9521_v49 = vld [vmem:[#allocation10 + $0xb90] sm:$0xf]  ;;  %v11296_v50 = vld [vmem:[#allocation10 + $0xba0] sm:$0xf0] }
  0x63   :  { %4151 = vmatpush.bf16.msra.mxu0 %v9442_v33  ;;  %v168_v7 = vpack.c.bf16 %v164_v52, %v164_v52  ;;  %v320_v33 = vunpack.c.l.b16 %v167_v6  ;;  %v9841_v52 = vld [vmem:[#allocation10 + $0xe10] sm:$0xf]  ;;  %v11331_v59 = vld [vmem:[#allocation10 + $0xcb8] sm:$0xf0]  ;;  %v11964_v60 = vpack.c.b16 %v309_v32, %v308_v31  ;;  %v11980_v5 = vld [vmem:[#allocation10 + $0xb68] sm:$0xf]  ;;  %v9522_v57 = vor.u32 %v11296_v50, %v9521_v49 }
  0x64   :  { %4170 = vmatpush.bf16.msra.mxu1 %v9602_v34  ;;  %v11970_v63 = vld [vmem:[#allocation10 + $0xa38] sm:$0xf0]  ;;  %v200_v1 = vld [vmem:[#allocation7 + $0x33] sm:$0xff]  ;;  %v192_v28 = vmax.f32 %v11962_v53, 0.0  ;;  %v193_v29 = vmax.f32 %v189_v0, 0.0 }
  0x65   :  { %4189 = vmatpush.bf16.msra.mxu2 %v9762_v10  ;;  %v11341_v10 = vld [vmem:[#allocation10 + $0xd08] sm:$0xf0]  ;;  %v321_v34 = vunpack.c.l.b16 %v168_v7  ;;  %13426 = vst [vmem:[#allocation23_spill] sm:$0xff] %v11964_v60  ;;  %v11291_v6 = vld [vmem:[#allocation10 + $0xb78] sm:$0xf0]  ;;  %v204_v30 = vmax.f32 %v200_v1, 0.0 }
  0x66   :  { %4208 = vmatpush.bf16.msra.mxu3 %v9922_v51  ;;  %v9702_v27 = vor.u32 %v11341_v10, %v9701_v9  ;;  %v329_v51 = vunpack.c.l.b16 %v174_v11  ;;  %v11982_v7 = vld [vmem:[#allocation10 + $0xde8] sm:$0xf]  ;;  %v11984_v9 = vld [vmem:[#allocation10 + $0xdf8] sm:$0xf0]  ;;  %v212_v11 = vld [vmem:[#allocation7 + $0x34] sm:$0xff] }
  0x67   :  { %4152 = vmatpush.bf16.msra.mxu0 %v9422_v56  ;;  %v11376_v56 = vld [vmem:[#allocation10 + $0xe20] sm:$0xf0]  ;;  %v201_v10 = vld [vmem:[#allocation7 + $0x3b] sm:$0xff]  ;;  %v216_v32 = vmax.f32 %v212_v11, 0.0  ;;  %v11286_v50 = vld [vmem:[#allocation10 + $0xb50] sm:$0xf0] }
  0x68   :  { %4171 = vmatpush.bf16.msra.mxu1 %v9582_v58  ;;  %v9661_v58 = vld [vmem:[#allocation10 + $0xca8] sm:$0xf]  ;;  %v11974_v2 = vpack.c.b16 %v329_v51, %v261_v16  ;;  %v9842_v16 = vor.u32 %v11376_v56, %v9841_v52  ;;  %v224_v22 = vld [vmem:[#allocation7 + $0x35] sm:$0xff]  ;;  %v225_v23 = vld [vmem:[#allocation7 + $0x3d] sm:$0xff]  ;;  %v205_v31 = vmax.f32 %v201_v10, 0.0  ;;  %v208_v56 = vpack.c.bf16 %v204_v30, %v204_v30 }
  0x69   :  { %4190 = vmatpush.bf16.msra.mxu2 %v9742_v39  ;;  %v340_v39 = vunpack.c.l.b16 %v186_v12  ;;  %v213_v12 = vld [vmem:[#allocation7 + $0x3c] sm:$0xff]  ;;  %v228_v36 = vmax.f32 %v224_v22, 0.0  ;;  %v229_v38 = vmax.f32 %v225_v23, 0.0  ;;  %v8183_v51 = vld [vmem:[#allocation10 + $0x12c] sm:$0xf0] }
  0x6a   :  { %4209 = vmatpush.bf16.msra.mxu3 %v9902_v61  ;;  %v11966_v61 = vpack.c.b16 %v321_v34, %v320_v33  ;;  %13428 = vst [vmem:[#allocation25_spill] sm:$0xff] %v11974_v2  ;;  %v217_v33 = vmax.f32 %v213_v12, 0.0  ;;  %v10959_v40 = vld [vmem:[#allocation10 + $0x11c] sm:$0xf]  ;;  %v9481_v49 = vld [vmem:[#allocation10 + $0xb40] sm:$0xf] }
  0x6b   :  { %4153 = vmatpush.bf16.msra.mxu0 %v9402_v17  ;;  %v11978_v4 = vpack.c.b16 %v341_v43, %v340_v39  ;;  %v9362_v17 = vor.u32 %v11256_v45, %v9361_v44  ;;  %v9502_v39 = vor.u32 %v11291_v6, %v11980_v5  ;;  %v9822_v44 = vor.u32 %v11984_v9, %v11982_v7  ;;  %v9801_v52 = vld [vmem:[#allocation10 + $0xdc0] sm:$0xf]  ;;  %v11366_v53 = vld [vmem:[#allocation10 + $0xdd0] sm:$0xf0]  ;;  %v11441_v0 = vld [vmem:[#allocation10 + $0x1028] sm:$0xf0] }
  0x6c   :  { %4172 = vmatpush.bf16.msra.mxu1 %v9562_v21  ;;  %13427 = vst [vmem:[#allocation24_spill] sm:$0xff] %v11966_v61  ;;  %v9641_v21 = vld [vmem:[#allocation10 + $0xc80] sm:$0xf]  ;;  %v10261_v1 = vld [vmem:[#allocation10 + $0x1158] sm:$0xf]  ;;  %v221_v5 = vpack.c.bf16 %v217_v33, %v217_v33  ;;  %v232_v6 = vpack.c.bf16 %v228_v36, %v228_v36  ;;  %v233_v7 = vpack.c.bf16 %v229_v38, %v229_v38 }
  0x6d   :  { %4191 = vmatpush.bf16.msra.mxu2 %v9722_v62  ;;  %v11968_v62 = vld [vmem:[#allocation10 + $0xa28] sm:$0xf]  ;;  %13429 = vst [vmem:[#allocation26_spill] sm:$0xff] %v11978_v4  ;;  %v11481_v9 = vld [vmem:[#allocation10 + $0x1168] sm:$0xf0] }
  0x6e   :  { %4210 = vmatpush.bf16.msra.mxu3 %v9882_v26  ;;  %v9662_v26 = vor.u32 %v11331_v59, %v9661_v58  ;;  %4087 = vmatmul.bf16.gmra.mxu0 %v11964_v60  ;;  %v9342_v34 = vor.u32 %v11970_v63, %v11968_v62  ;;  %v209_v58 = vpack.c.bf16 %v205_v31, %v205_v31  ;;  %v10101_v63 = vld [vmem:[#allocation10 + $0x1018] sm:$0xf]  ;;  %v10999_v10 = vld [vmem:[#allocation10 + $0x25c] sm:$0xf]  ;;  %v8343_v11 = vld [vmem:[#allocation10 + $0x26c] sm:$0xf0]  ;;  %v386_v36 = vunpack.c.l.b16 %v232_v6 }
  0x6f   :  { %4154 = vmatpush.bf16.msra.mxu0 %v9382_v46  ;;  %4106 = vmatmul.bf16.gmra.mxu1 %v11966_v61  ;;  %v9321_v46 = vld [vmem:[#allocation10 + $0xa00] sm:$0xf]  ;;  %v220_v59 = vpack.c.bf16 %v216_v32, %v216_v32  ;;  %v8186_v62 = vor.u32 %v10959_v40, %v8183_v51  ;;  %v10262_v30 = vor.u32 %v11481_v9, %v10261_v1  ;;  %v10081_v32 = vld [vmem:[#allocation10 + $0xff0] sm:$0xf]  ;;  %v11436_v33 = vld [vmem:[#allocation10 + $0x1000] sm:$0xf0]  ;;  %v387_v38 = vunpack.c.l.b16 %v233_v7 }
  0x70   :  { %4173 = vmatpush.bf16.msra.mxu1 %v9542_v48  ;;  %4125 = vmatmul.bf16.gmra.mxu2 %v11974_v2  ;;  %v11246_v48 = vld [vmem:[#allocation10 + $0xa10] sm:$0xf0]  ;;  %v8346_v31 = vor.u32 %v10999_v10, %v8343_v11  ;;  %v10241_v51 = vld [vmem:[#allocation10 + $0x1130] sm:$0xf]  ;;  %v8303_v1 = vld [vmem:[#allocation10 + $0x21c] sm:$0xf0] }
  0x71   :  { %4192 = vmatpush.bf16.msra.mxu2 %v9702_v27  ;;  %v11326_v27 = vld [vmem:[#allocation10 + $0xc90] sm:$0xf0]  ;;  %4144 = vmatmul.bf16.gmra.mxu3 %v11978_v4  ;;  %v9322_v12 = vor.u32 %v11246_v48, %v9321_v46  ;;  %v8323_v46 = vld [vmem:[#allocation10 + $0x244] sm:$0xf0]  ;;  %v10949_v48 = vld [vmem:[#allocation10 + $0xcc] sm:$0xf] }
  0x72   :  { %4211 = vmatpush.bf16.msra.mxu3 %v9862_v54  ;;  %v9642_v45 = vor.u32 %v11326_v27, %v9641_v21  ;;  %v196_v54 = vpack.c.bf16 %v192_v28, %v192_v28  ;;  %v8163_v21 = vld [vmem:[#allocation10 + $0x104] sm:$0xf0]  ;;  %v10102_v27 = vor.u32 %v11441_v0, %v10101_v63  ;;  %v363_v28 = vunpack.c.l.b16 %v209_v58  ;;  %v11471_v63 = vld [vmem:[#allocation10 + $0x1118] sm:$0xf0]  ;;  %v10989_v0 = vld [vmem:[#allocation10 + $0x20c] sm:$0xf] }
  0x73   :  { %4155 = vmatpush.bf16.msra.mxu0 %v9362_v17  ;;  %v9482_v17 = vor.u32 %v11286_v50, %v9481_v49  ;;  %v8143_v49 = vld [vmem:[#allocation10 + $0xdc] sm:$0xf0]  ;;  %v190_v50 = vld [vmem:[#allocation7 + $0x4a] sm:$0xff]  ;;  %v203_v6 = vld [vmem:[#allocation7 + $0x53] sm:$0xff] }
  0x74   :  { %4174 = vmatpush.bf16.msra.mxu1 %v9522_v57  ;;  %v9802_v57 = vor.u32 %v11366_v53, %v9801_v52  ;;  %v350_v22 = vunpack.c.l.b16 %v196_v54  ;;  %v10061_v54 = vld [vmem:[#allocation10 + $0xfc8] sm:$0xf]  ;;  %v214_v7 = vld [vmem:[#allocation7 + $0x4c] sm:$0xff]  ;;  %v215_v11 = vld [vmem:[#allocation7 + $0x54] sm:$0xff] }
  0x75   :  { %4193 = vmatpush.bf16.msra.mxu2 %v9682_v55  ;;  %v197_v55 = vpack.c.bf16 %v193_v29, %v193_v29  ;;  %v374_v29 = vunpack.c.l.b16 %v220_v59  ;;  %v12002_v59 = vpack.c.b16 %v387_v38, %v386_v36  ;;  %v8306_v38 = vor.u32 %v10989_v0, %v8303_v1  ;;  %v11124_v15 = vld [vmem:[#allocation10 + $0x644] sm:$0xf] }
  0x76   :  { %4212 = vmatpush.bf16.msra.mxu3 %v9842_v16  ;;  %v10954_v16 = vld [vmem:[#allocation10 + $0xf4] sm:$0xf] }
  0x77   :  { %4156 = vmatpush.bf16.msra.mxu0 %v9342_v34  ;;  %v351_v23 = vunpack.c.l.b16 %v197_v55  ;;  %v375_v34 = vunpack.c.l.b16 %v221_v5  ;;  %v8166_v40 = vor.u32 %v10954_v16, %v8163_v21  ;;  %v11431_v55 = vld [vmem:[#allocation10 + $0xfd8] sm:$0xf0]  ;;  %13433 = vst [vmem:[#allocation30_spill] sm:$0xff] %v12002_v59  ;;  %v202_v5 = vld [vmem:[#allocation7 + $0x4b] sm:$0xff]  ;;  %v10944_v21 = vld [vmem:[#allocation10 + $0xa4] sm:$0xf] }
  0x78   :  { %4175 = vmatpush.bf16.msra.mxu1 %v9502_v39  ;;  %v11476_v39 = vld [vmem:[#allocation10 + $0x1140] sm:$0xf0]  ;;  %v10062_v16 = vor.u32 %v11431_v55, %v10061_v54 }
  0x79   :  { %4194 = vmatpush.bf16.msra.mxu2 %v9662_v26  ;;  %v362_v26 = vunpack.c.l.b16 %v208_v56  ;;  %v11996_v52 = vpack.c.b16 %v351_v23, %v350_v22  ;;  %v191_v56 = vld [vmem:[#allocation7 + $0x52] sm:$0xff]  ;;  %v12000_v58 = vpack.c.b16 %v375_v34, %v374_v29  ;;  %v10242_v9 = vor.u32 %v11476_v39, %v10241_v51  ;;  %v10041_v23 = vld [vmem:[#allocation10 + $0xfa0] sm:$0xf] }
  0x7a   :  { %4213 = vmatpush.bf16.msra.mxu3 %v9822_v44  ;;  %v10994_v44 = vld [vmem:[#allocation10 + $0x234] sm:$0xf]  ;;  %v8123_v22 = vld [vmem:[#allocation10 + $0xb4] sm:$0xf0]  ;;  %v206_v29 = vmax.f32 %v202_v5, 0.0 }
  0x7b   :  { %4157 = vmatpush.bf16.msra.mxu0 %v9322_v12  ;;  %13430 = vst [vmem:[#allocation27_spill] sm:$0xff] %v11996_v52  ;;  %v11998_v53 = vpack.c.b16 %v363_v28, %v362_v26  ;;  %v8326_v10 = vor.u32 %v10994_v44, %v8323_v46  ;;  %v226_v12 = vld [vmem:[#allocation7 + $0x4d] sm:$0xff]  ;;  %v195_v28 = vmax.f32 %v191_v56, 0.0  ;;  %v8126_v39 = vor.u32 %v10944_v21, %v8123_v22  ;;  %v8283_v46 = vld [vmem:[#allocation10 + $0x1f4] sm:$0xf0] }
  0x7c   :  { %4176 = vmatpush.bf16.msra.mxu1 %v9482_v17  ;;  %13432 = vst [vmem:[#allocation29_spill] sm:$0xff] %v12000_v58  ;;  %v227_v17 = vld [vmem:[#allocation7 + $0x55] sm:$0xff]  ;;  %v210_v54 = vpack.c.bf16 %v206_v29, %v206_v29  ;;  %v8103_v56 = vld [vmem:[#allocation10 + $0x8c] sm:$0xf0] }
  0x7d   :  { %4195 = vmatpush.bf16.msra.mxu2 %v9642_v45  ;;  %v10082_v45 = vor.u32 %v11436_v33, %v10081_v32  ;;  %13431 = vst [vmem:[#allocation28_spill] sm:$0xff] %v11998_v53  ;;  %v11426_v26 = vld [vmem:[#allocation10 + $0xfb0] sm:$0xf0]  ;;  %v219_v32 = vmax.f32 %v215_v11, 0.0  ;;  %v230_v33 = vmax.f32 %v226_v12, 0.0  ;;  %v231_v34 = vmax.f32 %v227_v17, 0.0 }
  0x7e   :  { %4214 = vmatpush.bf16.msra.mxu3 %v9802_v57  ;;  %v8146_v57 = vor.u32 %v10949_v48, %v8143_v49  ;;  %4158 = vmatmul.bf16.vlgmr.msra.gmra.mxu0 %v11996_v52  ;;  %v11466_v51 = vld [vmem:[#allocation10 + $0x10f0] sm:$0xf0]  ;;  %v10042_v44 = vor.u32 %v11426_v26, %v10041_v23  ;;  %v10939_v48 = vld [vmem:[#allocation10 + $0x7c] sm:$0xf]  ;;  %v10021_v5 = vld [vmem:[#allocation10 + $0xf78] sm:$0xf]  ;;  %v364_v26 = vunpack.c.l.b16 %v210_v54 }
  0x7f   :  { %4226 = vmatpush.bf16.msrb.mxu0 %v10102_v27  ;;  %4177 = vmatmul.bf16.vlgmr.msra.gmra.mxu1 %v11998_v53  ;;  %v194_v27 = vmax.f32 %v190_v50, 0.0  ;;  %v199_v50 = vpack.c.bf16 %v195_v28, %v195_v28  ;;  %v11461_v11 = vld [vmem:[#allocation10 + $0x10c8] sm:$0xf0]  ;;  %v8106_v12 = vor.u32 %v10939_v48, %v8103_v56  ;;  %v10934_v21 = vld [vmem:[#allocation10 + $0x54] sm:$0xf] }
  0x80   :  { %4245 = vmatpush.bf16.msrb.mxu1 %v10262_v30  ;;  %v207_v30 = vmax.f32 %v203_v6, 0.0  ;;  %4196 = vmatmul.bf16.vlgmr.msra.gmra.mxu2 %v12000_v58  ;;  %v11421_v6 = vld [vmem:[#allocation10 + $0xf88] sm:$0xf0]  ;;  %v8083_v28 = vld [vmem:[#allocation10 + $0x64] sm:$0xf0] }
  0x81   :  { %4264 = vmatpush.bf16.msrb.mxu2 %v8186_v62  ;;  %v10221_v62 = vld [vmem:[#allocation10 + $0x1108] sm:$0xf]  ;;  %4215 = vmatmul.bf16.vlgmr.msra.gmra.mxu3 %v12002_v59  ;;  %v198_v49 = vpack.c.bf16 %v194_v27, %v194_v27  ;;  %v10022_v17 = vor.u32 %v11421_v6, %v10021_v5  ;;  %v353_v23 = vunpack.c.l.b16 %v199_v50  ;;  %v10001_v29 = vld [vmem:[#allocation10 + $0xf50] sm:$0xf]  ;;  %v11411_v5 = vld [vmem:[#allocation10 + $0xf38] sm:$0xf0] }
  0x82   :  { %4283 = vmatpush.bf16.msrb.mxu3 %v8346_v31  ;;  %v218_v31 = vmax.f32 %v214_v7, 0.0  ;;  %v10222_v36 = vor.u32 %v11471_v63, %v10221_v62  ;;  %v211_v55 = vpack.c.bf16 %v207_v30, %v207_v30  ;;  %v234_v62 = vpack.c.bf16 %v230_v33, %v230_v33  ;;  %v11416_v30 = vld [vmem:[#allocation10 + $0xf60] sm:$0xf0]  ;;  %v8243_v48 = vld [vmem:[#allocation10 + $0x1a4] sm:$0xf0] }
  0x83   :  { %4227 = vmatpush.bf16.msrb.mxu0 %v10082_v45  ;;  %v10984_v45 = vld [vmem:[#allocation10 + $0x1e4] sm:$0xf]  ;;  %v235_v63 = vpack.c.bf16 %v231_v34, %v231_v34  ;;  %v352_v22 = vunpack.c.l.b16 %v198_v49  ;;  %v10929_v49 = vld [vmem:[#allocation10 + $0x2c] sm:$0xf]  ;;  %v9981_v56 = vld [vmem:[#allocation10 + $0xf28] sm:$0xf] }
  0x84   :  { %4246 = vmatpush.bf16.msrb.mxu1 %v10242_v9  ;;  %v222_v7 = vpack.c.bf16 %v218_v31, %v218_v31  ;;  %v223_v9 = vpack.c.bf16 %v219_v32, %v219_v32  ;;  %v8286_v1 = vor.u32 %v10984_v45, %v8283_v46  ;;  %v365_v27 = vunpack.c.l.b16 %v211_v55  ;;  %v10974_v46 = vld [vmem:[#allocation10 + $0x194] sm:$0xf]  ;;  %v8063_v55 = vld [vmem:[#allocation10 + $0x3c] sm:$0xf0] }
  0x85   :  { %4265 = vmatpush.bf16.msrb.mxu2 %v8166_v40  ;;  %v10201_v40 = vld [vmem:[#allocation10 + $0x10e0] sm:$0xf]  ;;  %v388_v33 = vunpack.c.l.b16 %v234_v62  ;;  %v389_v34 = vunpack.c.l.b16 %v235_v63  ;;  %v10002_v45 = vor.u32 %v11416_v30, %v10001_v29  ;;  %v12008_v50 = vpack.c.b16 %v353_v23, %v352_v22  ;;  %v11451_v62 = vld [vmem:[#allocation10 + $0x1078] sm:$0xf0]  ;;  %v8823_v30 = vld [vmem:[#allocation10 + $0x62c] sm:$0xf0] }
  0x86   :  { %4284 = vmatpush.bf16.msrb.mxu3 %v8326_v10  ;;  %v10202_v0 = vor.u32 %v11466_v51, %v10201_v40  ;;  %v10181_v10 = vld [vmem:[#allocation10 + $0x10b8] sm:$0xf]  ;;  %v376_v31 = vunpack.c.l.b16 %v222_v7  ;;  %v377_v32 = vunpack.c.l.b16 %v223_v9  ;;  %v10161_v40 = vld [vmem:[#allocation10 + $0x1090] sm:$0xf]  ;;  %v11456_v51 = vld [vmem:[#allocation10 + $0x10a0] sm:$0xf0]  ;;  %v12010_v54 = vpack.c.b16 %v365_v27, %v364_v26 }
  0x87   :  { %4228 = vmatpush.bf16.msrb.mxu0 %v10062_v16  ;;  %v8263_v16 = vld [vmem:[#allocation10 + $0x1cc] sm:$0xf0]  ;;  %13434 = vst [vmem:[#allocation31_spill] sm:$0xff] %v12008_v50  ;;  %v12014_v7 = vpack.c.b16 %v389_v34, %v388_v33  ;;  %v10141_v9 = vld [vmem:[#allocation10 + $0x1068] sm:$0xf]  ;;  %v237_v63 = vld [vmem:[#allocation7 + $0x3e] sm:$0xff] }
  0x88   :  { %4247 = vmatpush.bf16.msrb.mxu1 %v10222_v36  ;;  %v10182_v36 = vor.u32 %v11461_v11, %v10181_v10  ;;  %13435 = vst [vmem:[#allocation32_spill] sm:$0xff] %v12010_v54  ;;  %v12012_v6 = vpack.c.b16 %v377_v32, %v376_v31  ;;  %v8246_v10 = vor.u32 %v10974_v46, %v8243_v48  ;;  %v10969_v11 = vld [vmem:[#allocation10 + $0x16c] sm:$0xf]  ;;  %v9961_v22 = vld [vmem:[#allocation10 + $0xf00] sm:$0xf]  ;;  %v241_v27 = vmax.f32 %v237_v63, 0.0 }
  0x89   :  { %4266 = vmatpush.bf16.msrb.mxu2 %v8146_v57  ;;  %v10979_v57 = vld [vmem:[#allocation10 + $0x1bc] sm:$0xf]  ;;  %13437 = vst [vmem:[#allocation34_spill] sm:$0xff] %v12014_v7  ;;  %v11406_v26 = vld [vmem:[#allocation10 + $0xf10] sm:$0xf0]  ;;  %v10142_v33 = vor.u32 %v11451_v62, %v10141_v9 }
  0x8a   :  { %4285 = vmatpush.bf16.msrb.mxu3 %v8306_v38  ;;  %v8266_v38 = vor.u32 %v10979_v57, %v8263_v16  ;;  %13436 = vst [vmem:[#allocation33_spill] sm:$0xff] %v12012_v6  ;;  %v8066_v57 = vor.u32 %v10929_v49, %v8063_v55  ;;  %v9982_v16 = vor.u32 %v11411_v5, %v9981_v56  ;;  %v11119_v29 = vld [vmem:[#allocation10 + $0x61c] sm:$0xf]  ;;  %v8503_v32 = vld [vmem:[#allocation10 + $0x3ac] sm:$0xf0] }
  0x8b   :  { %4229 = vmatpush.bf16.msrb.mxu0 %v10042_v44  ;;  %v8086_v44 = vor.u32 %v10934_v21, %v8083_v28  ;;  %v8043_v21 = vld [vmem:[#allocation10 + $0x14] sm:$0xf0]  ;;  %v11039_v31 = vld [vmem:[#allocation10 + $0x39c] sm:$0xf]  ;;  %v8663_v48 = vld [vmem:[#allocation10 + $0x4ec] sm:$0xf0]  ;;  %v245_v49 = vpack.c.bf16 %v241_v27, %v241_v27  ;;  %v8826_v56 = vor.u32 %v11119_v29, %v8823_v30 }
  0x8c   :  { %4248 = vmatpush.bf16.msrb.mxu1 %v10202_v0  ;;  %v248_v0 = vld [vmem:[#allocation7 + $0x40] sm:$0xff]  ;;  %v11079_v46 = vld [vmem:[#allocation10 + $0x4dc] sm:$0xf]  ;;  %v8506_v5 = vor.u32 %v11039_v31, %v8503_v32  ;;  %v8803_v9 = vld [vmem:[#allocation10 + $0x604] sm:$0xf0] }
  0x8d   :  { %4267 = vmatpush.bf16.msrb.mxu2 %v8126_v39  ;;  %v236_v39 = vld [vmem:[#allocation7 + $0x36] sm:$0xff]  ;;  %v250_v28 = vmax.f32 %v248_v0, 0.0  ;;  %v8983_v0 = vld [vmem:[#allocation10 + $0x76c] sm:$0xf0]  ;;  %v8963_v30 = vld [vmem:[#allocation10 + $0x744] sm:$0xf0] }
  0x8e   :  { %4286 = vmatpush.bf16.msrb.mxu3 %v8286_v1  ;;  %v10162_v1 = vor.u32 %v11456_v51, %v10161_v40  ;;  %v240_v23 = vmax.f32 %v236_v39, 0.0  ;;  %4163 = vmatmul.bf16.gmra.mxu0 %v12008_v50  ;;  %v10964_v40 = vld [vmem:[#allocation10 + $0x144] sm:$0xf]  ;;  %v9962_v39 = vor.u32 %v11406_v26, %v9961_v22  ;;  %v11159_v63 = vld [vmem:[#allocation10 + $0x75c] sm:$0xf]  ;;  %v399_v22 = vunpack.c.l.b16 %v245_v49  ;;  %v238_v49 = vld [vmem:[#allocation7 + $0x4e] sm:$0xff] }
  0x8f   :  { %4230 = vmatpush.bf16.msrb.mxu0 %v10022_v17  ;;  %v10924_v17 = vld [vmem:[#allocation10 + $0x4] sm:$0xf]  ;;  %4182 = vmatmul.bf16.gmra.mxu1 %v12010_v54  ;;  %v252_v55 = vpack.c.bf16 %v250_v28, %v250_v28  ;;  %v11034_v62 = vld [vmem:[#allocation10 + $0x374] sm:$0xf]  ;;  %v8643_v28 = vld [vmem:[#allocation10 + $0x4c4] sm:$0xf0] }
  0x90   :  { %4249 = vmatpush.bf16.msrb.mxu1 %v10182_v36  ;;  %4201 = vmatmul.bf16.gmra.mxu2 %v12012_v6  ;;  %v10121_v36 = vld [vmem:[#allocation10 + $0x1040] sm:$0xf]  ;;  %v8046_v51 = vor.u32 %v10924_v17, %v8043_v21  ;;  %v11074_v21 = vld [vmem:[#allocation10 + $0x4b4] sm:$0xf]  ;;  %v11109_v31 = vld [vmem:[#allocation10 + $0x5cc] sm:$0xf] }
  0x91   :  { %4268 = vmatpush.bf16.msrb.mxu2 %v8106_v12  ;;  %v8223_v12 = vld [vmem:[#allocation10 + $0x17c] sm:$0xf0]  ;;  %4220 = vmatmul.bf16.gmra.mxu3 %v12014_v7  ;;  %v11154_v29 = vld [vmem:[#allocation10 + $0x734] sm:$0xf] }
  0x92   :  { %4287 = vmatpush.bf16.msrb.mxu3 %v8266_v38  ;;  %v8226_v34 = vor.u32 %v10969_v11, %v8223_v12  ;;  %v11446_v38 = vld [vmem:[#allocation10 + $0x1050] sm:$0xf0]  ;;  %v8783_v32 = vld [vmem:[#allocation10 + $0x5dc] sm:$0xf0] }
  0x93   :  { %4231 = vmatpush.bf16.msrb.mxu0 %v10002_v45  ;;  %v244_v45 = vpack.c.bf16 %v240_v23, %v240_v23  ;;  %v10122_v11 = vor.u32 %v11446_v38, %v10121_v36  ;;  %v408_v23 = vunpack.c.l.b16 %v252_v55  ;;  %v11029_v36 = vld [vmem:[#allocation10 + $0x34c] sm:$0xf]  ;;  %v8463_v38 = vld [vmem:[#allocation10 + $0x35c] sm:$0xf0]  ;;  %v239_v55 = vld [vmem:[#allocation7 + $0x56] sm:$0xff] }
  0x94   :  { %4250 = vmatpush.bf16.msrb.mxu1 %v10162_v1  ;;  %v11114_v1 = vld [vmem:[#allocation10 + $0x5f4] sm:$0xf] }
  0x95   :  { %4269 = vmatpush.bf16.msrb.mxu2 %v8086_v44  ;;  %v8203_v44 = vld [vmem:[#allocation10 + $0x154] sm:$0xf0]  ;;  %v398_v17 = vunpack.c.l.b16 %v244_v45  ;;  %v8806_v26 = vor.u32 %v11114_v1, %v8803_v9  ;;  %v11149_v45 = vld [vmem:[#allocation10 + $0x70c] sm:$0xf]  ;;  %v11024_v1 = vld [vmem:[#allocation10 + $0x324] sm:$0xf] }
  0x96   :  { %4288 = vmatpush.bf16.msrb.mxu3 %v8246_v10  ;;  %v8483_v10 = vld [vmem:[#allocation10 + $0x384] sm:$0xf0]  ;;  %v8206_v12 = vor.u32 %v10964_v40, %v8203_v44  ;;  %v11069_v40 = vld [vmem:[#allocation10 + $0x48c] sm:$0xf]  ;;  %v8623_v44 = vld [vmem:[#allocation10 + $0x49c] sm:$0xf0] }
  0x97   :  { %4232 = vmatpush.bf16.msrb.mxu0 %v9982_v16  ;;  %v8986_v16 = vor.u32 %v11159_v63, %v8983_v0  ;;  %v8486_v27 = vor.u32 %v11034_v62, %v8483_v10  ;;  %v8466_v63 = vor.u32 %v11029_v36, %v8463_v38  ;;  %v8763_v0 = vld [vmem:[#allocation10 + $0x5b4] sm:$0xf0]  ;;  %v8626_v62 = vor.u32 %v11069_v40, %v8623_v44  ;;  %v8583_v36 = vld [vmem:[#allocation10 + $0x44c] sm:$0xf0]  ;;  %v11139_v38 = vld [vmem:[#allocation10 + $0x6bc] sm:$0xf] }
  0x98   :  { %4251 = vmatpush.bf16.msrb.mxu1 %v10142_v33  ;;  %v8646_v33 = vor.u32 %v11074_v21, %v8643_v28  ;;  %v8443_v9 = vld [vmem:[#allocation10 + $0x334] sm:$0xf0]  ;;  %v8903_v40 = vld [vmem:[#allocation10 + $0x6cc] sm:$0xf0] }
  0x99   :  { %4270 = vmatpush.bf16.msrb.mxu2 %v8066_v57  ;;  %v8666_v57 = vor.u32 %v11079_v46, %v8663_v48  ;;  %v8943_v46 = vld [vmem:[#allocation10 + $0x71c] sm:$0xf0]  ;;  %v11104_v48 = vld [vmem:[#allocation10 + $0x5a4] sm:$0xf]  ;;  %v8603_v10 = vld [vmem:[#allocation10 + $0x474] sm:$0xf0] }
  0x9a   :  { %4289 = vmatpush.bf16.msrb.mxu3 %v8226_v34  ;;  %v8966_v34 = vor.u32 %v11154_v29, %v8963_v30  ;;  %v8946_v37 = vor.u32 %v11149_v45, %v8943_v46  ;;  %v8766_v21 = vor.u32 %v11104_v48, %v8763_v0  ;;  %v11019_v29 = vld [vmem:[#allocation10 + $0x2fc] sm:$0xf]  ;;  %v8423_v30 = vld [vmem:[#allocation10 + $0x30c] sm:$0xf0]  ;;  %v11094_v46 = vld [vmem:[#allocation10 + $0x554] sm:$0xf] }
  0x9b   :  { %4233 = vmatpush.bf16.msrb.mxu0 %v9962_v39  ;;  %v12024_v39 = vpack.c.b16 %v408_v23, %v339_v3  ;;  %v11064_v3 = vld [vmem:[#allocation10 + $0x464] sm:$0xf]  ;;  %v11099_v23 = vld [vmem:[#allocation10 + $0x57c] sm:$0xf]  ;;  %v8426_v45 = vor.u32 %v11019_v29, %v8423_v30  ;;  %v8723_v48 = vld [vmem:[#allocation10 + $0x564] sm:$0xf0] }
  0x9c   :  { %4252 = vmatpush.bf16.msrb.mxu1 %v10122_v11  ;;  %v11144_v11 = vld [vmem:[#allocation10 + $0x6e4] sm:$0xf]  ;;  %v11129_v29 = vld [vmem:[#allocation10 + $0x66c] sm:$0xf]  ;;  %v8863_v30 = vld [vmem:[#allocation10 + $0x67c] sm:$0xf0] }
  0x9d   :  { %4271 = vmatpush.bf16.msrb.mxu2 %v8046_v51  ;;  %v12020_v51 = vpack.c.b16 %v399_v22, %v398_v17  ;;  %13439 = vst [vmem:[#allocation36_spill] sm:$0xff] %v12024_v39  ;;  %v242_v17 = vmax.f32 %v238_v49, 0.0  ;;  %v8446_v22 = vor.u32 %v11024_v1, %v8443_v9 }
  0x9e   :  { %4290 = vmatpush.bf16.msrb.mxu3 %v8206_v12  ;;  %v8923_v12 = vld [vmem:[#allocation10 + $0x6f4] sm:$0xf0] }
  0x9f   :  { %4302 = vmatpush.bf16.msra.mxu0 %v8506_v5  ;;  %13438 = vst [vmem:[#allocation35_spill] sm:$0xff] %v12020_v51  ;;  %v8786_v5 = vor.u32 %v11109_v31, %v8783_v32  ;;  %4253 = vmatmul.bf16.vlgmr.msrb.gmra.mxu1 %v12024_v39  ;;  %v8926_v28 = vor.u32 %v11144_v11, %v8923_v12  ;;  %v11059_v31 = vld [vmem:[#allocation10 + $0x43c] sm:$0xf]  ;;  %v11089_v12 = vld [vmem:[#allocation10 + $0x52c] sm:$0xf] }
  0xa0   :  { %4321 = vmatpush.bf16.msra.mxu1 %v8666_v57  ;;  %4234 = vmatmul.bf16.vlgmr.msrb.gmra.mxu0 %v12020_v51  ;;  %v243_v57 = vmax.f32 %v239_v55, 0.0  ;;  %v246_v32 = vpack.c.bf16 %v242_v17, %v242_v17  ;;  %v8586_v49 = vor.u32 %v11059_v31, %v8583_v36  ;;  %v8906_v55 = vor.u32 %v11139_v38, %v8903_v40  ;;  %v8703_v17 = vld [vmem:[#allocation10 + $0x53c] sm:$0xf0]  ;;  %v11084_v31 = vld [vmem:[#allocation10 + $0x504] sm:$0xf] }
  0xa1   :  { %4340 = vmatpush.bf16.msra.mxu2 %v8826_v56  ;;  %v249_v56 = vld [vmem:[#allocation7 + $0x58] sm:$0xff]  ;;  %4291 = vmatmul.bf16.vlgmr.msrb.gmra.mxu3 %v11913_v13  ;;  %v11004_v36 = vld [vmem:[#allocation10 + $0x284] sm:$0xf] }
  0xa2   :  { %4359 = vmatpush.bf16.msra.mxu3 %v8986_v16  ;;  %v251_v16 = vmax.f32 %v249_v56, 0.0  ;;  %4272 = vmatmul.bf16.vlgmr.msrb.gmra.mxu2 %v11911_v8  ;;  %v11014_v56 = vld [vmem:[#allocation10 + $0x2d4] sm:$0xf]  ;;  %v400_v0 = vunpack.c.l.b16 %v246_v32  ;;  %v8706_v32 = vor.u32 %v11089_v12, %v8703_v17  ;;  %v8363_v38 = vld [vmem:[#allocation10 + $0x294] sm:$0xf0] }
  0xa3   :  { %4303 = vmatpush.bf16.msra.mxu0 %v8486_v27  ;;  %v8606_v27 = vor.u32 %v11064_v3, %v8603_v10  ;;  %v8883_v3 = vld [vmem:[#allocation10 + $0x6a4] sm:$0xf0]  ;;  %v8726_v10 = vor.u32 %v11094_v46, %v8723_v48  ;;  %v8523_v46 = vld [vmem:[#allocation10 + $0x3d4] sm:$0xf0]  ;;  %v11279_v48 = vld [vmem:[#allocation10 + $0xb1c] sm:$0xf] }
  0xa4   :  { %4322 = vmatpush.bf16.msra.mxu1 %v8646_v33  ;;  %v247_v33 = vpack.c.bf16 %v243_v57, %v243_v57  ;;  %v11274_v12 = vld [vmem:[#allocation10 + $0xaf4] sm:$0xf]  ;;  %v9443_v17 = vld [vmem:[#allocation10 + $0xb04] sm:$0xf0] }
  0xa5   :  { %4341 = vmatpush.bf16.msra.mxu2 %v8806_v26  ;;  %v8743_v26 = vld [vmem:[#allocation10 + $0x58c] sm:$0xf0] }
  0xa6   :  { %4360 = vmatpush.bf16.msra.mxu3 %v8966_v34  ;;  %v253_v34 = vpack.c.bf16 %v251_v16, %v251_v16  ;;  %v8746_v44 = vor.u32 %v11099_v23, %v8743_v26  ;;  %v401_v1 = vunpack.c.l.b16 %v247_v33  ;;  %v11049_v23 = vld [vmem:[#allocation10 + $0x3ec] sm:$0xf] }
  0xa7   :  { %4304 = vmatpush.bf16.msra.mxu0 %v8466_v63  ;;  %v11054_v63 = vld [vmem:[#allocation10 + $0x414] sm:$0xf] }
  0xa8   :  { %4323 = vmatpush.bf16.msra.mxu1 %v8626_v62  ;;  %v409_v9 = vunpack.c.l.b16 %v253_v34  ;;  %v8563_v62 = vld [vmem:[#allocation10 + $0x424] sm:$0xf0]  ;;  %v12030_v26 = vpack.c.b16 %v401_v1, %v400_v0  ;;  %v8683_v34 = vld [vmem:[#allocation10 + $0x514] sm:$0xf0]  ;;  %v8366_v0 = vor.u32 %v11004_v36, %v8363_v38  ;;  %v9303_v1 = vld [vmem:[#allocation10 + $0x9ec] sm:$0xf0] }
  0xa9   :  { %4342 = vmatpush.bf16.msra.mxu2 %v8786_v5  ;;  %v8403_v5 = vld [vmem:[#allocation10 + $0x2e4] sm:$0xf0]  ;;  %v8566_v57 = vor.u32 %v11054_v63, %v8563_v62  ;;  %v8686_v63 = vor.u32 %v11084_v31, %v8683_v34  ;;  %v9623_v62 = vld [vmem:[#allocation10 + $0xc6c] sm:$0xf0]  ;;  %v9446_v31 = vor.u32 %v11274_v12, %v9443_v17  ;;  %v11269_v36 = vld [vmem:[#allocation10 + $0xacc] sm:$0xf] }
  0xaa   :  { %4361 = vmatpush.bf16.msra.mxu3 %v8946_v37  ;;  %v11134_v37 = vld [vmem:[#allocation10 + $0x694] sm:$0xf]  ;;  %v8406_v11 = vor.u32 %v11014_v56, %v8403_v5  ;;  %13440 = vst [vmem:[#allocation37_spill] sm:$0xff] %v12030_v26  ;;  %v9143_v56 = vld [vmem:[#allocation10 + $0x8ac] sm:$0xf0] }
  0xab   :  { %4305 = vmatpush.bf16.msra.mxu0 %v8446_v22  ;;  %v8886_v16 = vor.u32 %v11134_v37, %v8883_v3  ;;  %v8383_v22 = vld [vmem:[#allocation10 + $0x2bc] sm:$0xf0]  ;;  %v11239_v5 = vld [vmem:[#allocation10 + $0x9dc] sm:$0xf]  ;;  %v9563_v12 = vld [vmem:[#allocation10 + $0xbf4] sm:$0xf0] }
  0xac   :  { %4324 = vmatpush.bf16.msra.mxu1 %v8606_v27  ;;  %v12034_v27 = vpack.c.b16 %v409_v9, %v341_v43  ;;  %v8843_v43 = vld [vmem:[#allocation10 + $0x654] sm:$0xf0]  ;;  %v11319_v9 = vld [vmem:[#allocation10 + $0xc5c] sm:$0xf]  ;;  %v9423_v38 = vld [vmem:[#allocation10 + $0xadc] sm:$0xf0] }
  0xad   :  { %4343 = vmatpush.bf16.msra.mxu2 %v8766_v21  ;;  %v11009_v21 = vld [vmem:[#allocation10 + $0x2ac] sm:$0xf]  ;;  %v8846_v3 = vor.u32 %v11124_v15, %v8843_v43  ;;  %v9263_v15 = vld [vmem:[#allocation10 + $0x99c] sm:$0xf0] }
  0xae   :  { %4362 = vmatpush.bf16.msra.mxu3 %v8926_v28  ;;  %13441 = vst [vmem:[#allocation38_spill] sm:$0xff] %v12034_v27  ;;  %v8543_v28 = vld [vmem:[#allocation10 + $0x3fc] sm:$0xf0]  ;;  %v8386_v33 = vor.u32 %v11009_v21, %v8383_v22  ;;  %v11194_v21 = vld [vmem:[#allocation10 + $0x874] sm:$0xf] }
  0xaf   :  { %4306 = vmatpush.bf16.msra.mxu0 %v8426_v45  ;;  %v8546_v40 = vor.u32 %v11049_v23, %v8543_v28  ;;  %v11044_v45 = vld [vmem:[#allocation10 + $0x3c4] sm:$0xf]  ;;  %4258 = vmatmul.bf16.gmra.mxu1 %v12034_v27  ;;  %v9123_v22 = vld [vmem:[#allocation10 + $0x884] sm:$0xf0]  ;;  %v11234_v23 = vld [vmem:[#allocation10 + $0x9b4] sm:$0xf] }
  0xb0   :  { %4325 = vmatpush.bf16.msra.mxu1 %v8586_v49  ;;  %4239 = vmatmul.bf16.gmra.mxu0 %v12030_v26  ;;  %v9463_v49 = vld [vmem:[#allocation10 + $0xb2c] sm:$0xf0]  ;;  %v8526_v37 = vor.u32 %v11044_v45, %v8523_v46  ;;  %v9283_v28 = vld [vmem:[#allocation10 + $0x9c4] sm:$0xf0]  ;;  %v11229_v45 = vld [vmem:[#allocation10 + $0x98c] sm:$0xf] }
  0xb1   :  { %4344 = vmatpush.bf16.msra.mxu2 %v8746_v44  ;;  %v8866_v44 = vor.u32 %v11129_v29, %v8863_v30  ;;  %4296 = vmatmul.bf16.gmra.mxu3 %v11930_v41  ;;  %v11314_v29 = vld [vmem:[#allocation10 + $0xc34] sm:$0xf]  ;;  %v9603_v30 = vld [vmem:[#allocation10 + $0xc44] sm:$0xf0]  ;;  %v11309_v43 = vld [vmem:[#allocation10 + $0xc0c] sm:$0xf] }
  0xb2   :  { %4363 = vmatpush.bf16.msra.mxu3 %v8906_v55  ;;  %4277 = vmatmul.bf16.gmra.mxu2 %v11928_v35  ;;  %v11199_v55 = vld [vmem:[#allocation10 + $0x89c] sm:$0xf]  ;;  %v9606_v34 = vor.u32 %v11314_v29, %v9603_v30  ;;  %v9063_v30 = vld [vmem:[#allocation10 + $0x80c] sm:$0xf0] }
  0xb3   :  { %4307 = vmatpush.bf16.msra.mxu0 %v8406_v11  ;;  %v9146_v11 = vor.u32 %v11199_v55, %v9143_v56  ;;  %v9426_v56 = vor.u32 %v11269_v36, %v9423_v38  ;;  %v11179_v29 = vld [vmem:[#allocation10 + $0x7fc] sm:$0xf]  ;;  %v9223_v36 = vld [vmem:[#allocation10 + $0x94c] sm:$0xf0] }
  0xb4   :  { %4326 = vmatpush.bf16.msra.mxu1 %v8566_v57  ;;  %v9306_v57 = vor.u32 %v11239_v5, %v9303_v1  ;;  %v9266_v1 = vor.u32 %v11229_v45, %v9263_v15  ;;  %v11299_v38 = vld [vmem:[#allocation10 + $0xbbc] sm:$0xf] }
  0xb5   :  { %4345 = vmatpush.bf16.msra.mxu2 %v8726_v10  ;;  %v9466_v10 = vor.u32 %v11279_v48, %v9463_v49  ;;  %v9583_v48 = vld [vmem:[#allocation10 + $0xc1c] sm:$0xf0] }
  0xb6   :  { %4364 = vmatpush.bf16.msra.mxu3 %v8886_v16  ;;  %v9626_v16 = vor.u32 %v11319_v9, %v9623_v62  ;;  %v9586_v9 = vor.u32 %v11309_v43, %v9583_v48  ;;  %v11184_v62 = vld [vmem:[#allocation10 + $0x824] sm:$0xf]  ;;  %v9066_v43 = vor.u32 %v11179_v29, %v9063_v30  ;;  %v11254_v48 = vld [vmem:[#allocation10 + $0xa54] sm:$0xf]  ;;  %v9183_v30 = vld [vmem:[#allocation10 + $0x8fc] sm:$0xf0] }
  0xb7   :  { %4308 = vmatpush.bf16.msra.mxu0 %v8386_v33  ;;  %v9286_v33 = vor.u32 %v11234_v23, %v9283_v28 }
  0xb8   :  { %4327 = vmatpush.bf16.msra.mxu1 %v8546_v40  ;;  %v11189_v40 = vld [vmem:[#allocation10 + $0x84c] sm:$0xf] }
  0xb9   :  { %4346 = vmatpush.bf16.msra.mxu2 %v8706_v32  ;;  %v9126_v32 = vor.u32 %v11194_v21, %v9123_v22  ;;  %v9383_v21 = vld [vmem:[#allocation10 + $0xa8c] sm:$0xf0] }
  0xba   :  { %4365 = vmatpush.bf16.msra.mxu3 %v8866_v44  ;;  %v9103_v44 = vld [vmem:[#allocation10 + $0x85c] sm:$0xf0] }
  0xbb   :  { %4309 = vmatpush.bf16.msra.mxu0 %v8366_v0  ;;  %v4007_v46 = vpop.f32.mrf.mxu0  ;;  %v9106_v5 = vor.u32 %v11189_v40, %v9103_v44  ;;  %v9403_v0 = vld [vmem:[#allocation10 + $0xab4] sm:$0xf0]  ;;  %v9543_v40 = vld [vmem:[#allocation10 + $0xbcc] sm:$0xf0] }
  0xbc   :  { %4328 = vmatpush.bf16.msra.mxu1 %v8526_v37  ;;  %v4026_v49 = vpop.f32.mrf.mxu1  ;;  %v9083_v37 = vld [vmem:[#allocation10 + $0x834] sm:$0xf0] }
  0xbd   :  { %4347 = vmatpush.bf16.msra.mxu2 %v8686_v63  ;;  %v4027_v55 = vadd.f32 %v4026_v49, %v4007_v46  ;;  %v11264_v63 = vld [vmem:[#allocation10 + $0xaa4] sm:$0xf]  ;;  %v9363_v49 = vld [vmem:[#allocation10 + $0xa64] sm:$0xf0] }
  0xbe   :  { %4366 = vmatpush.bf16.msra.mxu3 %v8846_v3  ;;  %v11224_v3 = vld [vmem:[#allocation10 + $0x964] sm:$0xf]  ;;  %v9406_v17 = vor.u32 %v11264_v63, %v9403_v0  ;;  %v9043_v63 = vld [vmem:[#allocation10 + $0x7e4] sm:$0xf0]  ;;  %v11214_v0 = vld [vmem:[#allocation10 + $0x914] sm:$0xf] }
  0xbf   :  { %4378 = vmatpush.bf16.msrb.mxu0 %v9146_v11  ;;  %4329 = vmatmul.bf16.vlgmr.msra.gmra.mxu1 %v11917_v18  ;;  %v11304_v11 = vld [vmem:[#allocation10 + $0xbe4] sm:$0xf] }
  0xc0   :  { %4397 = vmatpush.bf16.msrb.mxu1 %v9306_v57  ;;  %4310 = vmatmul.bf16.vlgmr.msra.gmra.mxu0 %v11915_v14  ;;  %v9086_v57 = vor.u32 %v11184_v62, %v9083_v37  ;;  %v9566_v28 = vor.u32 %v11304_v11, %v9563_v12  ;;  %v9523_v62 = vld [vmem:[#allocation10 + $0xba4] sm:$0xf0]  ;;  %v9366_v37 = vor.u32 %v11254_v48, %v9363_v49  ;;  %v9343_v11 = vld [vmem:[#allocation10 + $0xa3c] sm:$0xf0]  ;;  %v9003_v48 = vld [vmem:[#allocation10 + $0x794] sm:$0xf0] }
  0xc1   :  { %4416 = vmatpush.bf16.msrb.mxu2 %v9466_v10  ;;  %v9243_v10 = vld [vmem:[#allocation10 + $0x974] sm:$0xf0]  ;;  %4367 = vmatmul.bf16.vlgmr.msra.gmra.mxu3 %v11945_v20 }
  0xc2   :  { %4435 = vmatpush.bf16.msrb.mxu3 %v9626_v16  ;;  %4348 = vmatmul.bf16.vlgmr.msra.gmra.mxu2 %v11943_v19  ;;  %v11259_v16 = vld [vmem:[#allocation10 + $0xa7c] sm:$0xf]  ;;  %v9246_v23 = vor.u32 %v11224_v3, %v9243_v10  ;;  %v11249_v10 = vld [vmem:[#allocation10 + $0xa2c] sm:$0xf]  ;;  %v8569_v20 = vld [vmem:[#allocation10 + $0x418] sm:$0xf] }
  0xc3   :  { %4379 = vmatpush.bf16.msrb.mxu0 %v9126_v32  ;;  %v4045_v22 = vpop.f32.mrf.mxu2  ;;  %v9386_v45 = vor.u32 %v11259_v16, %v9383_v21  ;;  %v11169_v16 = vld [vmem:[#allocation10 + $0x7ac] sm:$0xf]  ;;  %v9023_v21 = vld [vmem:[#allocation10 + $0x7bc] sm:$0xf0] }
  0xc4   :  { %4398 = vmatpush.bf16.msrb.mxu1 %v9286_v33  ;;  %v4046_v32 = vadd.f32 %v4045_v22, %v4027_v55  ;;  %v4064_v33 = vpop.f32.mrf.mxu3  ;;  %v4028_v44 = vpop.f32.mrf.mxu1  ;;  %v11174_v55 = vld [vmem:[#allocation10 + $0x7d4] sm:$0xf]  ;;  %v11209_v22 = vld [vmem:[#allocation10 + $0x8ec] sm:$0xf] }
  0xc5   :  { %4417 = vmatpush.bf16.msrb.mxu2 %v9446_v31  ;;  %v11219_v31 = vld [vmem:[#allocation10 + $0x93c] sm:$0xf]  ;;  %v9046_v3 = vor.u32 %v11174_v55, %v9043_v63  ;;  %v11284_v55 = vld [vmem:[#allocation10 + $0xb44] sm:$0xf]  ;;  %v9483_v63 = vld [vmem:[#allocation10 + $0xb54] sm:$0xf0] }
  0xc6   :  { %4436 = vmatpush.bf16.msrb.mxu3 %v9606_v34  ;;  %v4009_v34 = vpop.f32.mrf.mxu0  ;;  %v12044_v46 = vadd.f32 %v4064_v33, %v4046_v32  ;;  %v9503_v32 = vld [vmem:[#allocation10 + $0xb7c] sm:$0xf0]  ;;  %v11057_v19 = vld [vmem:[#allocation10 + $0x428] sm:$0xf0] }
  0xc7   :  { %4380 = vmatpush.bf16.msrb.mxu0 %v9106_v5  ;;  %v4029_v15 = vadd.f32 %v4028_v44, %v4009_v34  ;;  %v9546_v5 = vor.u32 %v11299_v38, %v9543_v40  ;;  %v9346_v34 = vor.u32 %v11249_v10, %v9343_v11  ;;  %v9026_v44 = vor.u32 %v11169_v16, %v9023_v21  ;;  %v9943_v11 = vld [vmem:[#allocation10 + $0xeec] sm:$0xf0] }
  0xc8   :  { %4399 = vmatpush.bf16.msrb.mxu1 %v9266_v1  ;;  %v9203_v1 = vld [vmem:[#allocation10 + $0x924] sm:$0xf0]  ;;  %v9486_v21 = vor.u32 %v11284_v55, %v9483_v63 }
  0xc9   :  { %4418 = vmatpush.bf16.msrb.mxu2 %v9426_v56  ;;  %v9226_v56 = vor.u32 %v11219_v31, %v9223_v36  ;;  %v11289_v31 = vld [vmem:[#allocation10 + $0xb6c] sm:$0xf]  ;;  %v11244_v36 = vld [vmem:[#allocation10 + $0xa04] sm:$0xf] }
  0xca   :  { %4437 = vmatpush.bf16.msrb.mxu3 %v9586_v9  ;;  %v11294_v9 = vld [vmem:[#allocation10 + $0xb94] sm:$0xf]  ;;  %v9506_v49 = vor.u32 %v11289_v31, %v9503_v32  ;;  %v10083_v32 = vld [vmem:[#allocation10 + $0x1004] sm:$0xf0] }
  0xcb   :  { %4381 = vmatpush.bf16.msrb.mxu0 %v9086_v57  ;;  %v4047_v12 = vpop.f32.mrf.mxu2  ;;  %v9526_v57 = vor.u32 %v11294_v9, %v9523_v62  ;;  %v11359_v9 = vld [vmem:[#allocation10 + $0xd9c] sm:$0xf]  ;;  %v9783_v62 = vld [vmem:[#allocation10 + $0xdac] sm:$0xf0]  ;;  %v11434_v31 = vld [vmem:[#allocation10 + $0xff4] sm:$0xf] }
  0xcc   :  { %4400 = vmatpush.bf16.msrb.mxu1 %v9246_v23  ;;  %v4048_v23 = vadd.f32 %v4047_v12, %v4029_v15  ;;  %v4031_v33 = vpop.f32.mrf.mxu1  ;;  %v9186_v15 = vor.u32 %v11209_v22, %v9183_v30  ;;  %v11479_v12 = vld [vmem:[#allocation10 + $0x115c] sm:$0xf]  ;;  %v9786_v30 = vor.u32 %v11359_v9, %v9783_v62  ;;  %v11349_v62 = vld [vmem:[#allocation10 + $0xd4c] sm:$0xf] }
  0xcd   :  { %4419 = vmatpush.bf16.msrb.mxu2 %v9406_v17  ;;  %v9206_v17 = vor.u32 %v11214_v0, %v9203_v1  ;;  %v11439_v0 = vld [vmem:[#allocation10 + $0x101c] sm:$0xf]  ;;  %v10103_v1 = vld [vmem:[#allocation10 + $0x102c] sm:$0xf0] }
  0xce   :  { %4438 = vmatpush.bf16.msrb.mxu3 %v9566_v28  ;;  %v4066_v28 = vpop.f32.mrf.mxu3  ;;  %v4012_v29 = vpop.f32.mrf.mxu0 }
  0xcf   :  { %4382 = vmatpush.bf16.msrb.mxu0 %v9066_v43  ;;  %v12046_v38 = vadd.f32 %v4066_v28, %v4048_v23  ;;  %v4032_v40 = vadd.f32 %v4031_v33, %v4012_v29  ;;  %v11164_v43 = vld [vmem:[#allocation10 + $0x784] sm:$0xf]  ;;  %4334 = vmatmul.bf16.gmra.mxu1 %v11934_v47  ;;  %v10106_v29 = vor.u32 %v11439_v0, %v10103_v1  ;;  %v11429_v0 = vld [vmem:[#allocation10 + $0xfcc] sm:$0xf]  ;;  %v10063_v1 = vld [vmem:[#allocation10 + $0xfdc] sm:$0xf0] }
  0xd0   :  { %4401 = vmatpush.bf16.msrb.mxu1 %v9226_v56  ;;  %v11204_v56 = vld [vmem:[#allocation10 + $0x8c4] sm:$0xf]  ;;  %4315 = vmatmul.bf16.gmra.mxu0 %v11932_v42  ;;  %v9006_v10 = vor.u32 %v11164_v43, %v9003_v48  ;;  %v11394_v43 = vld [vmem:[#allocation10 + $0xeb4] sm:$0xf] }
  0xd1   :  { %4420 = vmatpush.bf16.msrb.mxu2 %v9386_v45  ;;  %v9323_v45 = vld [vmem:[#allocation10 + $0xa14] sm:$0xf0]  ;;  %4372 = vmatmul.bf16.gmra.mxu3 %v11966_v61 }
  0xd2   :  { %4439 = vmatpush.bf16.msrb.mxu3 %v9546_v5  ;;  %v9163_v5 = vld [vmem:[#allocation10 + $0x8d4] sm:$0xf0]  ;;  %4353 = vmatmul.bf16.gmra.mxu2 %v11964_v60  ;;  %v11037_v60 = vld [vmem:[#allocation10 + $0x388] sm:$0xf0] }
  0xd3   :  { %4383 = vmatpush.bf16.msrb.mxu0 %v9046_v3  ;;  %v9326_v3 = vor.u32 %v11244_v36, %v9323_v45  ;;  %v9166_v16 = vor.u32 %v11204_v56, %v9163_v5  ;;  %v11354_v36 = vld [vmem:[#allocation10 + $0xd74] sm:$0xf]  ;;  %v9763_v45 = vld [vmem:[#allocation10 + $0xd84] sm:$0xf0]  ;;  %v10086_v56 = vor.u32 %v11434_v31, %v10083_v32  ;;  %v11344_v32 = vld [vmem:[#allocation10 + $0xd24] sm:$0xf] }
  0xd4   :  { %4402 = vmatpush.bf16.msrb.mxu1 %v9206_v17  ;;  %v10263_v17 = vld [vmem:[#allocation10 + $0x116c] sm:$0xf0]  ;;  %v4033_v33 = vpop.f32.mrf.mxu1  ;;  %v9766_v5 = vor.u32 %v11354_v36, %v9763_v45  ;;  %v11464_v36 = vld [vmem:[#allocation10 + $0x10e4] sm:$0xf]  ;;  %v10203_v45 = vld [vmem:[#allocation10 + $0x10f4] sm:$0xf0] }
  0xd5   :  { %4421 = vmatpush.bf16.msrb.mxu2 %v9366_v37  ;;  %v11399_v37 = vld [vmem:[#allocation10 + $0xedc] sm:$0xf] }
  0xd6   :  { %4440 = vmatpush.bf16.msrb.mxu3 %v9526_v57  ;;  %v4050_v57 = vpop.f32.mrf.mxu2  ;;  %v4069_v23 = vpop.f32.mrf.mxu3 }
  0xd7   :  { %4384 = vmatpush.bf16.msrb.mxu0 %v9026_v44  ;;  %v4051_v22 = vadd.f32 %v4050_v57, %v4032_v40  ;;  %v4014_v28 = vpop.f32.mrf.mxu0  ;;  %v10266_v44 = vor.u32 %v11479_v12, %v10263_v17  ;;  %v10243_v40 = vld [vmem:[#allocation10 + $0x1144] sm:$0xf0]  ;;  %v9903_v12 = vld [vmem:[#allocation10 + $0xe9c] sm:$0xf0]  ;;  %v11469_v17 = vld [vmem:[#allocation10 + $0x110c] sm:$0xf] }
  0xd8   :  { %4403 = vmatpush.bf16.msrb.mxu1 %v9186_v15  ;;  %v4034_v61 = vadd.f32 %v4033_v33, %v4014_v28  ;;  %v9923_v15 = vld [vmem:[#allocation10 + $0xec4] sm:$0xf0]  ;;  %v10223_v57 = vld [vmem:[#allocation10 + $0x111c] sm:$0xf0]  ;;  %v9723_v33 = vld [vmem:[#allocation10 + $0xd34] sm:$0xf0] }
  0xd9   :  { %4422 = vmatpush.bf16.msrb.mxu2 %v9346_v34  ;;  %v9946_v34 = vor.u32 %v11399_v37, %v9943_v11  ;;  %v12052_v48 = vadd.f32 %v4069_v23, %v4051_v22  ;;  %v9926_v55 = vor.u32 %v11394_v43, %v9923_v15  ;;  %v9743_v37 = vld [vmem:[#allocation10 + $0xd5c] sm:$0xf0]  ;;  %v10066_v23 = vor.u32 %v11429_v0, %v10063_v1  ;;  %v11379_v0 = vld [vmem:[#allocation10 + $0xe3c] sm:$0xf] }
  0xda   :  { %4441 = vmatpush.bf16.msrb.mxu3 %v9506_v49  ;;  %v11474_v49 = vld [vmem:[#allocation10 + $0x1134] sm:$0xf]  ;;  %v9746_v28 = vor.u32 %v11349_v62, %v9743_v37  ;;  %v9726_v15 = vor.u32 %v11344_v32, %v9723_v33  ;;  %v9863_v62 = vld [vmem:[#allocation10 + $0xe4c] sm:$0xf0]  ;;  %v11459_v37 = vld [vmem:[#allocation10 + $0x10bc] sm:$0xf] }
  0xdb   :  { %4385 = vmatpush.bf16.msrb.mxu0 %v9006_v10  ;;  %v10246_v63 = vor.u32 %v11474_v49, %v10243_v40  ;;  %v11419_v49 = vld [vmem:[#allocation10 + $0xf7c] sm:$0xf]  ;;  %v10023_v40 = vld [vmem:[#allocation10 + $0xf8c] sm:$0xf0]  ;;  %v9843_v32 = vld [vmem:[#allocation10 + $0xe24] sm:$0xf0] }
  0xdc   :  { %4404 = vmatpush.bf16.msrb.mxu1 %v9166_v16  ;;  %v11454_v33 = vld [vmem:[#allocation10 + $0x1094] sm:$0xf] }
  0xdd   :  { %4423 = vmatpush.bf16.msrb.mxu2 %v9326_v3  ;;  %v11389_v3 = vld [vmem:[#allocation10 + $0xe8c] sm:$0xf] }
  0xde   :  { %4442 = vmatpush.bf16.msrb.mxu3 %v9486_v21  ;;  %v4052_v9 = vpop.f32.mrf.mxu2  ;;  %v4071_v11 = vpop.f32.mrf.mxu3  ;;  %v9906_v31 = vor.u32 %v11389_v3, %v9903_v12  ;;  %v10183_v3 = vld [vmem:[#allocation10 + $0x10cc] sm:$0xf0]  ;;  %v10026_v12 = vor.u32 %v11419_v49, %v10023_v40  ;;  %v11329_v40 = vld [vmem:[#allocation10 + $0xcac] sm:$0xf] }
  0xdf   :  { %4454 = vmatpush.bf16.msra.mxu0 %v9786_v30  ;;  %v4053_v10 = vadd.f32 %v4052_v9, %v4034_v61  ;;  %v12054_v16 = vpop.f32.mrf.mxu0  ;;  %v12056_v21 = vpop.f32.mrf.mxu1  ;;  %v10043_v30 = vld [vmem:[#allocation10 + $0xfb4] sm:$0xf0]  ;;  %v10226_v61 = vor.u32 %v11469_v17, %v10223_v57  ;;  %4405 = vmatmul.bf16.vlgmr.msrb.gmra.mxu1 %v11953_v25  ;;  %v11414_v57 = vld [vmem:[#allocation10 + $0xf54] sm:$0xf] }
  0xe0   :  { %4473 = vmatpush.bf16.msra.mxu1 %v9946_v34  ;;  %v11384_v34 = vld [vmem:[#allocation10 + $0xe64] sm:$0xf]  ;;  %4386 = vmatmul.bf16.vlgmr.msrb.gmra.mxu0 %v11949_v24  ;;  %v10977_v24 = vld [vmem:[#allocation10 + $0x1a8] sm:$0xf0] }
  0xe1   :  { %4492 = vmatpush.bf16.msra.mxu2 %v10106_v29  ;;  %v12058_v22 = vadd.f32 %v4071_v11, %v4053_v10  ;;  %v11424_v29 = vld [vmem:[#allocation10 + $0xfa4] sm:$0xf]  ;;  %4443 = vmatmul.bf16.vlgmr.msrb.gmra.mxu3 %v11998_v53  ;;  %v10123_v53 = vld [vmem:[#allocation10 + $0x1054] sm:$0xf0] }
  0xe2   :  { %4511 = vmatpush.bf16.msra.mxu3 %v10266_v44  ;;  %v9883_v44 = vld [vmem:[#allocation10 + $0xe74] sm:$0xf0]  ;;  %4424 = vmatmul.bf16.vlgmr.msrb.gmra.mxu2 %v11996_v52  ;;  %v10046_v43 = vor.u32 %v11424_v29, %v10043_v30  ;;  %v10186_v29 = vor.u32 %v11459_v37, %v10183_v3  ;;  %v11334_v30 = vld [vmem:[#allocation10 + $0xcd4] sm:$0xf]  ;;  %v10143_v37 = vld [vmem:[#allocation10 + $0x107c] sm:$0xf0] }
  0xe3   :  { %4455 = vmatpush.bf16.msra.mxu0 %v9766_v5  ;;  %v10206_v5 = vor.u32 %v11464_v36, %v10203_v45  ;;  %v11409_v45 = vld [vmem:[#allocation10 + $0xf2c] sm:$0xf]  ;;  %v8509_v52 = vld [vmem:[#allocation10 + $0x3a0] sm:$0xf] }
  0xe4   :  { %4474 = vmatpush.bf16.msra.mxu1 %v9926_v55  ;;  %v11339_v55 = vld [vmem:[#allocation10 + $0xcfc] sm:$0xf] }
  0xe5   :  { %4493 = vmatpush.bf16.msra.mxu2 %v10086_v56  ;;  %v9886_v56 = vor.u32 %v11384_v34, %v9883_v44  ;;  %v10163_v34 = vld [vmem:[#allocation10 + $0x10a4] sm:$0xf0] }
  0xe6   :  { %4512 = vmatpush.bf16.msra.mxu3 %v10246_v63  ;;  %v9703_v63 = vld [vmem:[#allocation10 + $0xd0c] sm:$0xf0]  ;;  %v12064_v1 = vpop.f32.mrf.mxu2  ;;  %v12066_v9 = vpop.f32.mrf.mxu3  ;;  %v10166_v49 = vor.u32 %v11454_v33, %v10163_v34  ;;  %v9803_v33 = vld [vmem:[#allocation10 + $0xdd4] sm:$0xf0]  ;;  %v11444_v34 = vld [vmem:[#allocation10 + $0x1044] sm:$0xf] }
  0xe7   :  { %4456 = vmatpush.bf16.msra.mxu0 %v9746_v28  ;;  %v12068_v10 = vpop.f32.mrf.mxu0  ;;  %v12070_v11 = vpop.f32.mrf.mxu1  ;;  %v9706_v17 = vor.u32 %v11339_v55, %v9703_v63  ;;  %v9866_v28 = vor.u32 %v11379_v0, %v9863_v62  ;;  %v9823_v0 = vld [vmem:[#allocation10 + $0xdfc] sm:$0xf0]  ;;  %v11449_v62 = vld [vmem:[#allocation10 + $0x106c] sm:$0xf] }
  0xe8   :  { %4475 = vmatpush.bf16.msra.mxu1 %v9906_v31  ;;  %v9683_v31 = vld [vmem:[#allocation10 + $0xce4] sm:$0xf0] }
  0xe9   :  { %4494 = vmatpush.bf16.msra.mxu2 %v10066_v23  ;;  %v10003_v23 = vld [vmem:[#allocation10 + $0xf64] sm:$0xf0]  ;;  %v9686_v36 = vor.u32 %v11334_v30, %v9683_v31  ;;  %v9643_v30 = vld [vmem:[#allocation10 + $0xc94] sm:$0xf0] }
  0xea   :  { %4513 = vmatpush.bf16.msra.mxu3 %v10226_v61  ;;  %v11374_v61 = vld [vmem:[#allocation10 + $0xe14] sm:$0xf]  ;;  %v10006_v44 = vor.u32 %v11414_v57, %v10003_v23 }
  0xeb   :  { %4457 = vmatpush.bf16.msra.mxu0 %v9726_v15  ;;  %v9846_v15 = vor.u32 %v11374_v61, %v9843_v32  ;;  %v10146_v61 = vor.u32 %v11449_v62, %v10143_v37  ;;  %v11364_v32 = vld [vmem:[#allocation10 + $0xdc4] sm:$0xf]  ;;  %v10126_v62 = vor.u32 %v11444_v34, %v10123_v53  ;;  %v10997_v53 = vld [vmem:[#allocation10 + $0x248] sm:$0xf0] }
  0xec   :  { %4476 = vmatpush.bf16.msra.mxu1 %v9886_v56  ;;  %v9663_v56 = vld [vmem:[#allocation10 + $0xcbc] sm:$0xf0] }
  0xed   :  { %4495 = vmatpush.bf16.msra.mxu2 %v10046_v43  ;;  %v9983_v43 = vld [vmem:[#allocation10 + $0xf3c] sm:$0xf0]  ;;  %v9666_v23 = vor.u32 %v11329_v40, %v9663_v56  ;;  %v11002_v40 = vld [vmem:[#allocation10 + $0x270] sm:$0xf0] }
  0xee   :  { %4514 = vmatpush.bf16.msra.mxu3 %v10206_v5  ;;  %v11369_v5 = vld [vmem:[#allocation10 + $0xdec] sm:$0xf]  ;;  %v12072_v55 = vpop.f32.mrf.mxu2  ;;  %v12074_v63 = vpop.f32.mrf.mxu3  ;;  %v9986_v57 = vor.u32 %v11409_v45, %v9983_v43  ;;  %v10962_v45 = vld [vmem:[#allocation10 + $0x130] sm:$0xf0]  ;;  %v8349_v43 = vld [vmem:[#allocation10 + $0x260] sm:$0xf] }
  0xef   :  { %4458 = vmatpush.bf16.msra.mxu0 %v9706_v17  ;;  %v12076_v3 = vpop.f32.mrf.mxu0  ;;  %v11404_v17 = vld [vmem:[#allocation10 + $0xf04] sm:$0xf]  ;;  %v9826_v31 = vor.u32 %v11369_v5, %v9823_v0  ;;  %4410 = vmatmul.bf16.gmra.mxu1 %v11978_v4  ;;  %v8669_v56 = vld [vmem:[#allocation10 + $0x4e0] sm:$0xf]  ;;  %v11082_v5 = vld [vmem:[#allocation10 + $0x4f0] sm:$0xf0]  ;;  %v9806_v0 = vor.u32 %v11364_v32, %v9803_v33 }
  0xf0   :  { %4477 = vmatpush.bf16.msra.mxu1 %v9866_v28  ;;  %v9963_v28 = vld [vmem:[#allocation10 + $0xf14] sm:$0xf0]  ;;  %4391 = vmatmul.bf16.gmra.mxu0 %v11974_v2 }
  0xf1   :  { %4496 = vmatpush.bf16.msra.mxu2 %v10026_v12  ;;  %v12078_v12 = vpop.f32.mrf.mxu1  ;;  %4448 = vmatmul.bf16.gmra.mxu3 %v12010_v54  ;;  %v8489_v2 = vld [vmem:[#allocation10 + $0x378] sm:$0xf] }
  0xf2   :  { %4515 = vmatpush.bf16.msra.mxu3 %v10186_v29  ;;  %v11324_v29 = vld [vmem:[#allocation10 + $0xc84] sm:$0xf]  ;;  %4429 = vmatmul.bf16.gmra.mxu2 %v12008_v50 }
  0xf3   :  { %4459 = vmatpush.bf16.msra.mxu0 %v9686_v36  ;;  %v8189_v36 = vld [vmem:[#allocation10 + $0x120] sm:$0xf] }
  0xf4   :  { %4478 = vmatpush.bf16.msra.mxu1 %v9846_v15  ;;  %v9966_v15 = vor.u32 %v11404_v17, %v9963_v28  ;;  %v8190_v54 = vor.u32 %v10962_v45, %v8189_v36  ;;  %v8350_v17 = vor.u32 %v11002_v40, %v8349_v43  ;;  %v8169_v28 = vld [vmem:[#allocation10 + $0xf8] sm:$0xf]  ;;  %v11032_v36 = vld [vmem:[#allocation10 + $0x360] sm:$0xf0]  ;;  %v8149_v45 = vld [vmem:[#allocation10 + $0xd0] sm:$0xf] }
  0xf5   :  { %4497 = vmatpush.bf16.msra.mxu2 %v10006_v44  ;;  %v11042_v44 = vld [vmem:[#allocation10 + $0x3b0] sm:$0xf0]  ;;  %v10952_v43 = vld [vmem:[#allocation10 + $0xe0] sm:$0xf0]  ;;  %v8309_v40 = vld [vmem:[#allocation10 + $0x210] sm:$0xf] }
  0xf6   :  { %4516 = vmatpush.bf16.msra.mxu3 %v10166_v49  ;;  %v9646_v49 = vor.u32 %v11324_v29, %v9643_v30  ;;  %v12084_v37 = vpop.f32.mrf.mxu2  ;;  %v12086_v4 = vpop.f32.mrf.mxu3  ;;  %v8510_v50 = vor.u32 %v11042_v44, %v8509_v52  ;;  %v10957_v29 = vld [vmem:[#allocation10 + $0x108] sm:$0xf0]  ;;  %v8329_v30 = vld [vmem:[#allocation10 + $0x238] sm:$0xf]  ;;  %v8490_v52 = vor.u32 %v11037_v60, %v8489_v2  ;;  %v8469_v44 = vld [vmem:[#allocation10 + $0x350] sm:$0xf] }
  0xf7   :  { %4460 = vmatpush.bf16.msra.mxu0 %v9666_v23  ;;  %v12088_v25 = vpop.f32.mrf.mxu0  ;;  %v8670_v23 = vor.u32 %v11082_v5, %v8669_v56  ;;  %v8170_v32 = vor.u32 %v10957_v29, %v8169_v28  ;;  %v8330_v33 = vor.u32 %v10997_v53, %v8329_v30  ;;  %v10992_v56 = vld [vmem:[#allocation10 + $0x220] sm:$0xf0]  ;;  %v8470_v5 = vor.u32 %v11032_v36, %v8469_v44  ;;  %v8129_v29 = vld [vmem:[#allocation10 + $0xa8] sm:$0xf]  ;;  %v10947_v30 = vld [vmem:[#allocation10 + $0xb8] sm:$0xf0] }
  0xf8   :  { %4479 = vmatpush.bf16.msra.mxu1 %v9826_v31  ;;  %v8649_v31 = vld [vmem:[#allocation10 + $0x4b8] sm:$0xf]  ;;  %v8289_v53 = vld [vmem:[#allocation10 + $0x1e8] sm:$0xf]  ;;  %v11022_v44 = vld [vmem:[#allocation10 + $0x310] sm:$0xf0] }
  0xf9   :  { %4498 = vmatpush.bf16.msra.mxu2 %v9986_v57  ;;  %v12090_v57 = vpop.f32.mrf.mxu1 }
  0xfa   :  { %4517 = vmatpush.bf16.msra.mxu3 %v10146_v61  ;;  %v11077_v61 = vld [vmem:[#allocation10 + $0x4c8] sm:$0xf0] }
  0xfb   :  { %4461 = vmatpush.bf16.msra.mxu0 %v9646_v49  ;;  %v8650_v34 = vor.u32 %v11077_v61, %v8649_v31  ;;  %v10987_v31 = vld [vmem:[#allocation10 + $0x1f8] sm:$0xf0]  ;;  %v8609_v61 = vld [vmem:[#allocation10 + $0x468] sm:$0xf] }
  0xfc   :  { %4480 = vmatpush.bf16.msra.mxu1 %v9806_v0  ;;  %v8150_v0 = vor.u32 %v10952_v43, %v8149_v45  ;;  %v8290_v36 = vor.u32 %v10987_v31, %v8289_v53  ;;  %v8109_v43 = vld [vmem:[#allocation10 + $0x80] sm:$0xf] }
  0xfd   :  { %4499 = vmatpush.bf16.msra.mxu2 %v9966_v15 }
  0xfe   :  { %4518 = vmatpush.bf16.msra.mxu3 %v10126_v62  ;;  %v12092_v15 = vpop.f32.mrf.mxu2  ;;  %v12094_v49 = vpop.f32.mrf.mxu3  ;;  %v8449_v62 = vld [vmem:[#allocation10 + $0x328] sm:$0xf] }
  0xff   :  { %4530 = vmatpush.bf16.msrb.mxu0 %v8190_v54  ;;  %v11072_v54 = vld [vmem:[#allocation10 + $0x4a0] sm:$0xf0]  ;;  %v12096_v60 = vpop.f32.mrf.mxu0  ;;  %4481 = vmatmul.bf16.vlgmr.msra.gmra.mxu1 %v12002_v59  ;;  %v8589_v59 = vld [vmem:[#allocation10 + $0x440] sm:$0xf] }
 0x100   :  { %4549 = vmatpush.bf16.msrb.mxu1 %v8350_v17  ;;  %v11027_v17 = vld [vmem:[#allocation10 + $0x338] sm:$0xf0]  ;;  %4462 = vmatmul.bf16.vlgmr.msra.gmra.mxu0 %v12000_v58  ;;  %v8249_v58 = vld [vmem:[#allocation10 + $0x198] sm:$0xf] }
 0x101   :  { %4568 = vmatpush.bf16.msrb.mxu2 %v8510_v50  ;;  %v8629_v50 = vld [vmem:[#allocation10 + $0x490] sm:$0xf]  ;;  %v12098_v2 = vpop.f32.mrf.mxu1  ;;  %4519 = vmatmul.bf16.vlgmr.msra.gmra.mxu3 %v12024_v39  ;;  %v11062_v39 = vld [vmem:[#allocation10 + $0x450] sm:$0xf0] }
 0x102   :  { %4587 = vmatpush.bf16.msrb.mxu3 %v8670_v23  ;;  %v8310_v23 = vor.u32 %v10992_v56, %v8309_v40  ;;  %v8630_v28 = vor.u32 %v11072_v54, %v8629_v50  ;;  %4500 = vmatmul.bf16.vlgmr.msra.gmra.mxu2 %v12020_v51  ;;  %v10942_v40 = vld [vmem:[#allocation10 + $0x90] sm:$0xf0]  ;;  %v8269_v56 = vld [vmem:[#allocation10 + $0x1c0] sm:$0xf]  ;;  %v8590_v31 = vor.u32 %v11062_v39, %v8589_v59  ;;  %v8069_v39 = vld [vmem:[#allocation10 + $0x30] sm:$0xf] }
 0x103   :  { %4531 = vmatpush.bf16.msrb.mxu0 %v8170_v32  ;;  %v8450_v32 = vor.u32 %v11027_v17, %v8449_v62  ;;  %v10982_v51 = vld [vmem:[#allocation10 + $0x1d0] sm:$0xf0]  ;;  %v4084_v62 = vadd.f32 %v12054_v16, %v12044_v46  ;;  %v8250_v59 = vor.u32 %v10977_v24, %v8249_v58  ;;  %v8049_v24 = vld [vmem:[#allocation10 + $0x8] sm:$0xf] }
 0x104   :  { %4550 = vmatpush.bf16.msrb.mxu1 %v8330_v33  ;;  %v8130_v33 = vor.u32 %v10947_v30, %v8129_v29  ;;  %v11017_v29 = vld [vmem:[#allocation10 + $0x2e8] sm:$0xf0]  ;;  %v11831_v30 = vmov 0.0   ;;  %v8270_v53 = vor.u32 %v10982_v51, %v8269_v56  ;;  %v8570_v51 = vor.u32 %v11057_v19, %v8569_v20  ;;  %v8549_v56 = vld [vmem:[#allocation10 + $0x3f0] sm:$0xf] }
 0x105   :  { %4569 = vmatpush.bf16.msrb.mxu2 %v8490_v52  ;;  %v11067_v52 = vld [vmem:[#allocation10 + $0x478] sm:$0xf0]  ;;  %5328 = vst [vmem:[#allocation2 + $0x50] sm:$0xff] %v11831_v30  ;;  %v4103_v46 = vadd.f32 %v12056_v21, %v4084_v62  ;;  %v11052_v62 = vld [vmem:[#allocation10 + $0x400] sm:$0xf0] }
 0x106   :  { %4588 = vmatpush.bf16.msrb.mxu3 %v8650_v34  ;;  %v8429_v34 = vld [vmem:[#allocation10 + $0x300] sm:$0xf]  ;;  %v8610_v45 = vor.u32 %v11067_v52, %v8609_v61  ;;  %v12104_v50 = vpop.f32.mrf.mxu2  ;;  %v12106_v54 = vpop.f32.mrf.mxu3  ;;  %v8089_v61 = vld [vmem:[#allocation10 + $0x58] sm:$0xf]  ;;  %v10937_v52 = vld [vmem:[#allocation10 + $0x68] sm:$0xf0] }
 0x107   :  { %4532 = vmatpush.bf16.msrb.mxu0 %v8150_v0  ;;  %v8430_v17 = vor.u32 %v11022_v44, %v8429_v34  ;;  %5329 = vst [vmem:[#allocation2] sm:$0xff] %v11831_v30  ;;  %v11012_v34 = vld [vmem:[#allocation10 + $0x2c0] sm:$0xf0]  ;;  %v8369_v19 = vld [vmem:[#allocation10 + $0x288] sm:$0xf] }
 0x108   :  { %4551 = vmatpush.bf16.msrb.mxu1 %v8310_v23  ;;  %v8110_v23 = vor.u32 %v10942_v40, %v8109_v43  ;;  %5330 = vst [vmem:[#allocation2 + $0xb8] sm:$0xff] %v11831_v30  ;;  %v10932_v44 = vld [vmem:[#allocation10 + $0x40] sm:$0xf0]  ;;  %v11007_v20 = vld [vmem:[#allocation10 + $0x298] sm:$0xf0] }
 0x109   :  { %4570 = vmatpush.bf16.msrb.mxu2 %v8470_v5  ;;  %v12108_v5 = vpop.f32.mrf.mxu0  ;;  %v12110_v0 = vpop.f32.mrf.mxu1  ;;  %v10972_v40 = vld [vmem:[#allocation10 + $0x180] sm:$0xf0]  ;;  %5331 = vst [vmem:[#allocation2 + $0x18] sm:$0xff] %v11831_v30 }
 0x10a   :  { %4589 = vmatpush.bf16.msrb.mxu3 %v8630_v28  ;;  %v8409_v28 = vld [vmem:[#allocation10 + $0x2d8] sm:$0xf]  ;;  %5332 = vst [vmem:[#allocation2 + $0x70] sm:$0xff] %v11831_v30 }
 0x10b   :  { %4533 = vmatpush.bf16.msrb.mxu0 %v8130_v33  ;;  %v8410_v16 = vor.u32 %v11017_v29, %v8409_v28  ;;  %v8389_v33 = vld [vmem:[#allocation10 + $0x2b0] sm:$0xf]  ;;  %v10927_v29 = vld [vmem:[#allocation10 + $0x18] sm:$0xf0]  ;;  %5333 = vst [vmem:[#allocation2 + $0xe8] sm:$0xff] %v11831_v30 }
 0x10c   :  { %4552 = vmatpush.bf16.msrb.mxu1 %v8290_v36  ;;  %v8229_v36 = vld [vmem:[#allocation10 + $0x170] sm:$0xf]  ;;  %v8390_v58 = vor.u32 %v11012_v34, %v8389_v33  ;;  %v8829_v33 = vld [vmem:[#allocation10 + $0x620] sm:$0xf]  ;;  %5334 = vst [vmem:[#allocation2 + $0x90] sm:$0xff] %v11831_v30 }
 0x10d   :  { %4571 = vmatpush.bf16.msrb.mxu2 %v8450_v32  ;;  %v8090_v32 = vor.u32 %v10937_v52, %v8089_v61  ;;  %v8550_v61 = vor.u32 %v11052_v62, %v8549_v56  ;;  %v11047_v52 = vld [vmem:[#allocation10 + $0x3d8] sm:$0xf0]  ;;  %5335 = vst [vmem:[#allocation2 + $0x68] sm:$0xff] %v11831_v30 }
 0x10e   :  { %4590 = vmatpush.bf16.msrb.mxu3 %v8610_v45  ;;  %v4122_v45 = vadd.f32 %v12064_v1, %v4103_v46  ;;  %v12119_v43 = vpop.f32.mrf.mxu2  ;;  %v12121_v21 = vpop.f32.mrf.mxu3  ;;  %v8070_v1 = vor.u32 %v10932_v44, %v8069_v39  ;;  %v11162_v39 = vld [vmem:[#allocation10 + $0x770] sm:$0xf0]  ;;  %5336 = vst [vmem:[#allocation2 + $0x20] sm:$0xff] %v11831_v30 }
 0x10f   :  { %4534 = vmatpush.bf16.msrb.mxu0 %v8110_v23  ;;  %4486 = vmatmul.bf16.gmra.mxu1 %v12014_v7  ;;  %5337 = vst [vmem:[#allocation2 + $0x28] sm:$0xff] %v11831_v30 }
 0x110   :  { %4553 = vmatpush.bf16.msrb.mxu1 %v8270_v53  ;;  %v8209_v53 = vld [vmem:[#allocation10 + $0x148] sm:$0xf]  ;;  %v4141_v46 = vadd.f32 %v12066_v9, %v4122_v45  ;;  %4467 = vmatmul.bf16.gmra.mxu0 %v12012_v6  ;;  %v8370_v9 = vor.u32 %v11007_v20, %v8369_v19  ;;  %v9309_v45 = vld [vmem:[#allocation10 + $0x9e0] sm:$0xf]  ;;  %v8809_v19 = vld [vmem:[#allocation10 + $0x5f8] sm:$0xf] }
 0x111   :  { %4572 = vmatpush.bf16.msrb.mxu2 %v8430_v17  ;;  %v4086_v17 = vadd.f32 %v12068_v10, %v12046_v38  ;;  %v12125_v23 = vpop.f32.mrf.mxu0  ;;  %v12127_v28 = vpop.f32.mrf.mxu1  ;;  %v10967_v38 = vld [vmem:[#allocation10 + $0x158] sm:$0xf0]  ;;  %v8529_v10 = vld [vmem:[#allocation10 + $0x3c8] sm:$0xf]  ;;  %4524 = vmatmul.bf16.gmra.mxu3 %v12034_v27  ;;  %v11117_v20 = vld [vmem:[#allocation10 + $0x608] sm:$0xf0] }
 0x112   :  { %4591 = vmatpush.bf16.msrb.mxu3 %v8590_v31  ;;  %v8230_v31 = vor.u32 %v10972_v40, %v8229_v36  ;;  %4505 = vmatmul.bf16.gmra.mxu2 %v12030_v26  ;;  %v4160_v44 = vadd.f32 %v12096_v60, %v4141_v46  ;;  %v8050_v36 = vor.u32 %v10927_v29, %v8049_v24  ;;  %v11242_v40 = vld [vmem:[#allocation10 + $0x9f0] sm:$0xf0]  ;;  %v11237_v46 = vld [vmem:[#allocation10 + $0x9c8] sm:$0xf0] }
 0x113   :  { %4535 = vmatpush.bf16.msrb.mxu0 %v8090_v32  ;;  %v11202_v32 = vld [vmem:[#allocation10 + $0x8b0] sm:$0xf0]  ;;  %v4105_v34 = vadd.f32 %v12070_v11, %v4086_v17  ;;  %v8210_v11 = vor.u32 %v10967_v38, %v8209_v53  ;;  %v8530_v62 = vor.u32 %v11047_v52, %v8529_v10  ;;  %v9129_v17 = vld [vmem:[#allocation10 + $0x878] sm:$0xf]  ;;  %v4089_v24 = vadd.f32 %v12076_v3, %v12052_v48  ;;  %v11157_v38 = vld [vmem:[#allocation10 + $0x748] sm:$0xf0] }
 0x114   :  { %4554 = vmatpush.bf16.msrb.mxu1 %v8250_v59  ;;  %v11122_v59 = vld [vmem:[#allocation10 + $0x630] sm:$0xf0]  ;;  %v9310_v53 = vor.u32 %v11242_v40, %v9309_v45  ;;  %v4179_v10 = vadd.f32 %v12098_v2, %v4160_v44  ;;  %v9289_v52 = vld [vmem:[#allocation10 + $0x9b8] sm:$0xf]  ;;  %v11112_v44 = vld [vmem:[#allocation10 + $0x5e0] sm:$0xf0] }
 0x115   :  { %4573 = vmatpush.bf16.msrb.mxu2 %v8410_v16  ;;  %v9149_v16 = vld [vmem:[#allocation10 + $0x8a0] sm:$0xf]  ;;  %v4124_v56 = vadd.f32 %v12072_v55, %v4105_v34  ;;  %v9290_v34 = vor.u32 %v11237_v46, %v9289_v52  ;;  %v11152_v40 = vld [vmem:[#allocation10 + $0x720] sm:$0xf0]  ;;  %5338 = vst [vmem:[#allocation2 + $0xc8] sm:$0xff] %v11831_v30 }
 0x116   :  { %4592 = vmatpush.bf16.msrb.mxu3 %v8570_v51  ;;  %v8989_v51 = vld [vmem:[#allocation10 + $0x760] sm:$0xf]  ;;  %v12139_v27 = vpop.f32.mrf.mxu2  ;;  %v12141_v26 = vpop.f32.mrf.mxu3  ;;  %v9150_v60 = vor.u32 %v11202_v32, %v9149_v16  ;;  %v4198_v3 = vadd.f32 %v12104_v50, %v4179_v10  ;;  %v8810_v32 = vor.u32 %v11117_v20, %v8809_v19  ;;  %v11187_v19 = vld [vmem:[#allocation10 + $0x838] sm:$0xf0]  ;;  %v9249_v10 = vld [vmem:[#allocation10 + $0x968] sm:$0xf] }
 0x117   :  { %4536 = vmatpush.bf16.msrb.mxu0 %v8070_v1  ;;  %v11197_v1 = vld [vmem:[#allocation10 + $0x888] sm:$0xf0]  ;;  %v4143_v48 = vadd.f32 %v12074_v63, %v4124_v56  ;;  %v11192_v63 = vld [vmem:[#allocation10 + $0x860] sm:$0xf0]  ;;  %v9269_v56 = vld [vmem:[#allocation10 + $0x990] sm:$0xf] }
 0x118   :  { %4555 = vmatpush.bf16.msrb.mxu1 %v8230_v31  ;;  %v8990_v31 = vor.u32 %v11162_v39, %v8989_v51  ;;  %v9130_v16 = vor.u32 %v11197_v1, %v9129_v17  ;;  %v9109_v51 = vld [vmem:[#allocation10 + $0x850] sm:$0xf]  ;;  %v9089_v1 = vld [vmem:[#allocation10 + $0x828] sm:$0xf]  ;;  %v11227_v52 = vld [vmem:[#allocation10 + $0x978] sm:$0xf0] }
 0x119   :  { %4574 = vmatpush.bf16.msrb.mxu2 %v8390_v58  ;;  %v8830_v58 = vor.u32 %v11122_v59, %v8829_v33  ;;  %v12145_v29 = vpop.f32.mrf.mxu0  ;;  %v12147_v55 = vpop.f32.mrf.mxu1  ;;  %v4108_v33 = vadd.f32 %v12078_v12, %v4089_v24  ;;  %v4162_v59 = vadd.f32 %v12108_v5, %v4143_v48  ;;  %v8789_v39 = vld [vmem:[#allocation10 + $0x5d0] sm:$0xf]  ;;  %v11232_v5 = vld [vmem:[#allocation10 + $0x9a0] sm:$0xf0]  ;;  %5339 = vst [vmem:[#allocation2 + $0x58] sm:$0xff] %v11831_v30 }
 0x11a   :  { %4593 = vmatpush.bf16.msrb.mxu3 %v8550_v61  ;;  %v8969_v61 = vld [vmem:[#allocation10 + $0x738] sm:$0xf]  ;;  %5340 = vst [vmem:[#allocation2 + $0xe0] sm:$0xff] %v11831_v30 }
 0x11b   :  { %4537 = vmatpush.bf16.msrb.mxu0 %v8050_v36  ;;  %v8970_v2 = vor.u32 %v11157_v38, %v8969_v61  ;;  %v4127_v50 = vadd.f32 %v12084_v37, %v4108_v33  ;;  %v4217_v36 = vadd.f32 %v12106_v54, %v4198_v3  ;;  %v4181_v37 = vadd.f32 %v12110_v0, %v4162_v59  ;;  %v11147_v0 = vld [vmem:[#allocation10 + $0x6f8] sm:$0xf0]  ;;  %v8749_v33 = vld [vmem:[#allocation10 + $0x580] sm:$0xf] }
 0x11c   :  { %4556 = vmatpush.bf16.msrb.mxu1 %v8210_v11  ;;  %v4091_v11 = vadd.f32 %v12088_v25, %v12058_v22  ;;  %v8769_v25 = vld [vmem:[#allocation10 + $0x5a8] sm:$0xf]  ;;  %v11107_v22 = vld [vmem:[#allocation10 + $0x5b8] sm:$0xf0]  ;;  %v9090_v3 = vor.u32 %v11187_v19, %v9089_v1  ;;  %v8909_v59 = vld [vmem:[#allocation10 + $0x6c0] sm:$0xf] }
 0x11d   :  { %4575 = vmatpush.bf16.msrb.mxu2 %v8370_v9  ;;  %v8949_v9 = vld [vmem:[#allocation10 + $0x710] sm:$0xf]  ;;  %v4146_v20 = vadd.f32 %v12086_v4, %v4127_v50  ;;  %v4200_v61 = vadd.f32 %v12119_v43, %v4181_v37  ;;  %v9069_v4 = vld [vmem:[#allocation10 + $0x800] sm:$0xf]  ;;  %v11177_v37 = vld [vmem:[#allocation10 + $0x7e8] sm:$0xf0] }
 0x11e   :  { %4594 = vmatpush.bf16.msrb.mxu3 %v8530_v62  ;;  %v12160_v12 = vpop.f32.mrf.mxu2  ;;  %v12162_v45 = vpop.f32.mrf.mxu3  ;;  %v8950_v24 = vor.u32 %v11152_v40, %v8949_v9  ;;  %v4110_v46 = vadd.f32 %v12090_v57, %v4091_v11  ;;  %v11222_v9 = vld [vmem:[#allocation10 + $0x950] sm:$0xf0]  ;;  %5341 = vst [vmem:[#allocation2 + $0xd0] sm:$0xff] %v11831_v30  ;;  %v8889_v1 = vld [vmem:[#allocation10 + $0x698] sm:$0xf] }
 0x11f   :  { %4606 = vmatpush.bf16.msra.mxu0 %v8830_v58  ;;  %v8790_v58 = vor.u32 %v11112_v44, %v8789_v39  ;;  %4557 = vmatmul.bf16.vlgmr.msrb.gmra.mxu1 %v11913_v13  ;;  %v4165_v48 = vadd.f32 %v12125_v23, %v4146_v20  ;;  %v9229_v44 = vld [vmem:[#allocation10 + $0x940] sm:$0xf]  ;;  %5342 = vst [vmem:[#allocation2 + $0x8] sm:$0xff] %v11831_v30 }
 0x120   :  { %4625 = vmatpush.bf16.msra.mxu1 %v8990_v31  ;;  %v9270_v31 = vor.u32 %v11232_v5, %v9269_v56  ;;  %4538 = vmatmul.bf16.vlgmr.msrb.gmra.mxu0 %v11911_v8  ;;  %v4129_v57 = vadd.f32 %v12092_v15, %v4110_v46  ;;  %5343 = vst [vmem:[#allocation2 + $0xf8] sm:$0xff] %v11831_v30  ;;  %v11092_v46 = vld [vmem:[#allocation10 + $0x540] sm:$0xf0] }
 0x121   :  { %4644 = vmatpush.bf16.msra.mxu2 %v9150_v60  ;;  %v4235_v62 = vpop.f32.mrf.mxu0  ;;  %v4254_v17 = vpop.f32.mrf.mxu1  ;;  %v9110_v60 = vor.u32 %v11192_v63, %v9109_v51  ;;  %4595 = vmatmul.bf16.vlgmr.msrb.gmra.mxu3 %v11917_v18  ;;  %v11142_v51 = vld [vmem:[#allocation10 + $0x6d0] sm:$0xf0]  ;;  %v4219_v63 = vadd.f32 %v12121_v21, %v4200_v61 }
 0x122   :  { %4663 = vmatpush.bf16.msra.mxu3 %v9310_v53  ;;  %v4236_v54 = vadd.f32 %v4235_v62, %v4217_v36  ;;  %v8929_v53 = vld [vmem:[#allocation10 + $0x6e8] sm:$0xf]  ;;  %4576 = vmatmul.bf16.vlgmr.msrb.gmra.mxu2 %v11915_v14  ;;  %v4184_v36 = vadd.f32 %v12127_v28, %v4165_v48  ;;  %v4148_v21 = vadd.f32 %v12094_v49, %v4129_v57  ;;  %v8729_v28 = vld [vmem:[#allocation10 + $0x558] sm:$0xf]  ;;  %v8869_v48 = vld [vmem:[#allocation10 + $0x670] sm:$0xf] }
 0x123   :  { %4607 = vmatpush.bf16.msra.mxu0 %v8810_v32  ;;  %v11182_v32 = vld [vmem:[#allocation10 + $0x810] sm:$0xf0]  ;;  %v8930_v23 = vor.u32 %v11147_v0, %v8929_v53  ;;  %v9029_v53 = vld [vmem:[#allocation10 + $0x7b0] sm:$0xf]  ;;  %v11172_v0 = vld [vmem:[#allocation10 + $0x7c0] sm:$0xf0] }
 0x124   :  { %4626 = vmatpush.bf16.msra.mxu1 %v8970_v2  ;;  %v4255_v38 = vadd.f32 %v4254_v17, %v4236_v54  ;;  %v9250_v2 = vor.u32 %v11227_v52, %v9249_v10  ;;  %v9070_v11 = vor.u32 %v11182_v32, %v9069_v4  ;;  %v9049_v17 = vld [vmem:[#allocation10 + $0x7d8] sm:$0xf]  ;;  %v8910_v54 = vor.u32 %v11142_v51, %v8909_v59  ;;  %v8709_v10 = vld [vmem:[#allocation10 + $0x530] sm:$0xf]  ;;  %v11132_v4 = vld [vmem:[#allocation10 + $0x680] sm:$0xf0] }
 0x125   :  { %4645 = vmatpush.bf16.msra.mxu2 %v9130_v16  ;;  %v8770_v16 = vor.u32 %v11107_v22, %v8769_v25  ;;  %v4203_v19 = vadd.f32 %v12139_v27, %v4184_v36  ;;  %v11217_v25 = vld [vmem:[#allocation10 + $0x928] sm:$0xf0]  ;;  %v4167_v22 = vadd.f32 %v12145_v29, %v4148_v21  ;;  %v9050_v49 = vor.u32 %v11177_v37, %v9049_v17  ;;  %v11212_v32 = vld [vmem:[#allocation10 + $0x900] sm:$0xf0]  ;;  %v11127_v36 = vld [vmem:[#allocation10 + $0x658] sm:$0xf0] }
 0x126   :  { %4664 = vmatpush.bf16.msra.mxu3 %v9290_v34  ;;  %v5344_v43 = vmax.f32 %v4255_v38, 0.0  ;;  %v11102_v34 = vld [vmem:[#allocation10 + $0x590] sm:$0xf0]  ;;  %v4273_v50 = vpop.f32.mrf.mxu2  ;;  %v4292_v39 = vpop.f32.mrf.mxu3  ;;  %v9030_v51 = vor.u32 %v11172_v0, %v9029_v53  ;;  %v9469_v17 = vld [vmem:[#allocation10 + $0xb20] sm:$0xf] }
 0x127   :  { %4608 = vmatpush.bf16.msra.mxu0 %v8790_v58  ;;  %v12182_v40 = vadd.f32 %v4292_v39, %v4273_v50  ;;  %v8750_v62 = vor.u32 %v11102_v34, %v8749_v33  ;;  %v11097_v58 = vld [vmem:[#allocation10 + $0x568] sm:$0xf0]  ;;  %v4222_v29 = vadd.f32 %v12141_v26, %v4203_v19  ;;  %v4186_v33 = vadd.f32 %v12147_v55, %v4167_v22  ;;  %v11167_v34 = vld [vmem:[#allocation10 + $0x798] sm:$0xf0]  ;;  %v8689_v50 = vld [vmem:[#allocation10 + $0x508] sm:$0xf] }
 0x128   :  { %4627 = vmatpush.bf16.msra.mxu1 %v8950_v24  ;;  %5360 = vst [vmem:[#allocation2 + $0x98] sm:$0xff] %v5344_v43  ;;  %v11137_v24 = vld [vmem:[#allocation10 + $0x6a8] sm:$0xf0]  ;;  %v8730_v38 = vor.u32 %v11097_v58, %v8729_v28  ;;  %v11087_v26 = vld [vmem:[#allocation10 + $0x518] sm:$0xf0] }
 0x129   :  { %4646 = vmatpush.bf16.msra.mxu2 %v9110_v60  ;;  %v4237_v56 = vpop.f32.mrf.mxu0  ;;  %v4256_v15 = vpop.f32.mrf.mxu1  ;;  %v9230_v60 = vor.u32 %v11222_v9, %v9229_v44  ;;  %v8890_v27 = vor.u32 %v11137_v24, %v8889_v1  ;;  %v8849_v39 = vld [vmem:[#allocation10 + $0x648] sm:$0xf]  ;;  %v8870_v44 = vor.u32 %v11132_v4, %v8869_v48  ;;  %v11282_v37 = vld [vmem:[#allocation10 + $0xb30] sm:$0xf0]  ;;  %v9629_v21 = vld [vmem:[#allocation10 + $0xc60] sm:$0xf] }
 0x12a   :  { %4665 = vmatpush.bf16.msra.mxu3 %v9270_v31  ;;  %v4238_v5 = vadd.f32 %v4237_v56, %v4219_v63  ;;  %v9209_v31 = vld [vmem:[#allocation10 + $0x918] sm:$0xf]  ;;  %v8710_v63 = vor.u32 %v11092_v46, %v8709_v10  ;;  %v9169_v55 = vld [vmem:[#allocation10 + $0x8c8] sm:$0xf]  ;;  %v11207_v56 = vld [vmem:[#allocation10 + $0x8d8] sm:$0xf0]  ;;  %v8850_v19 = vor.u32 %v11127_v36, %v8849_v39  ;;  %v9470_v53 = vor.u32 %v11282_v37, %v9469_v17 }
 0x12b   :  { %4609 = vmatpush.bf16.msra.mxu0 %v8770_v16  ;;  %v9210_v52 = vor.u32 %v11217_v25, %v9209_v31  ;;  %v9189_v16 = vld [vmem:[#allocation10 + $0x8f0] sm:$0xf]  ;;  %v9949_v58 = vld [vmem:[#allocation10 + $0xee0] sm:$0xf]  ;;  %v11402_v1 = vld [vmem:[#allocation10 + $0xef0] sm:$0xf0] }
 0x12c   :  { %4628 = vmatpush.bf16.msra.mxu1 %v8930_v23  ;;  %v4257_v20 = vadd.f32 %v4256_v15, %v4238_v5  ;;  %v9190_v9 = vor.u32 %v11212_v32, %v9189_v16  ;;  %v4205_v15 = vadd.f32 %v12160_v12, %v4186_v33  ;;  %v8690_v12 = vor.u32 %v11087_v26, %v8689_v50  ;;  %v9449_v46 = vld [vmem:[#allocation10 + $0xaf8] sm:$0xf]  ;;  %v11277_v48 = vld [vmem:[#allocation10 + $0xb08] sm:$0xf0]  ;;  %v9589_v50 = vld [vmem:[#allocation10 + $0xc10] sm:$0xf] }
 0x12d   :  { %4647 = vmatpush.bf16.msra.mxu2 %v9090_v3  ;;  %v9609_v4 = vld [vmem:[#allocation10 + $0xc38] sm:$0xf]  ;;  %v9450_v33 = vor.u32 %v11277_v48, %v9449_v46  ;;  %v11312_v26 = vld [vmem:[#allocation10 + $0xc20] sm:$0xf0]  ;;  %v11347_v17 = vld [vmem:[#allocation10 + $0xd38] sm:$0xf0] }
 0x12e   :  { %4666 = vmatpush.bf16.msra.mxu3 %v9250_v2  ;;  %v5348_v61 = vmax.f32 %v4257_v20, 0.0  ;;  %v4275_v43 = vpop.f32.mrf.mxu2  ;;  %v4294_v3 = vpop.f32.mrf.mxu3  ;;  %v9009_v2 = vld [vmem:[#allocation10 + $0x788] sm:$0xf]  ;;  %v9170_v20 = vor.u32 %v11207_v56, %v9169_v55  ;;  %v4224_v24 = vadd.f32 %v12162_v45, %v4205_v15  ;;  %v11317_v45 = vld [vmem:[#allocation10 + $0xc48] sm:$0xf0]  ;;  %v9590_v37 = vor.u32 %v11312_v26, %v9589_v50 }
 0x12f   :  { %4610 = vmatpush.bf16.msra.mxu0 %v8750_v62  ;;  %v12192_v57 = vadd.f32 %v4294_v3, %v4275_v43  ;;  %4562 = vmatmul.bf16.gmra.mxu1 %v11930_v41  ;;  %v11362_v62 = vld [vmem:[#allocation10 + $0xdb0] sm:$0xf0]  ;;  %v9010_v28 = vor.u32 %v11167_v34, %v9009_v2  ;;  %v9929_v43 = vld [vmem:[#allocation10 + $0xeb8] sm:$0xf]  ;;  %v11397_v3 = vld [vmem:[#allocation10 + $0xec8] sm:$0xf0] }
 0x130   :  { %4629 = vmatpush.bf16.msra.mxu1 %v8910_v54  ;;  %5364 = vst [vmem:[#allocation2 + $0xc0] sm:$0xff] %v5348_v61  ;;  %4543 = vmatmul.bf16.gmra.mxu0 %v11928_v35  ;;  %v11322_v54 = vld [vmem:[#allocation10 + $0xc70] sm:$0xf0]  ;;  %v9769_v61 = vld [vmem:[#allocation10 + $0xd78] sm:$0xf] }
 0x131   :  { %4648 = vmatpush.bf16.msra.mxu2 %v9070_v11  ;;  %v4240_v23 = vpop.f32.mrf.mxu0  ;;  %v4259_v30 = vpop.f32.mrf.mxu1  ;;  %v9789_v11 = vld [vmem:[#allocation10 + $0xda0] sm:$0xf]  ;;  %4600 = vmatmul.bf16.gmra.mxu3 %v11934_v47  ;;  %v9749_v2 = vld [vmem:[#allocation10 + $0xd50] sm:$0xf]  ;;  %v11392_v36 = vld [vmem:[#allocation10 + $0xea0] sm:$0xf0] }
 0x132   :  { %4667 = vmatpush.bf16.msra.mxu3 %v9230_v60  ;;  %v4241_v59 = vadd.f32 %v4240_v23, %v4222_v29  ;;  %4581 = vmatmul.bf16.gmra.mxu2 %v11932_v42  ;;  %v9790_v22 = vor.u32 %v11362_v62, %v9789_v11  ;;  %v9610_v23 = vor.u32 %v11317_v45, %v9609_v4  ;;  %v9729_v62 = vld [vmem:[#allocation10 + $0xd28] sm:$0xf]  ;;  %v11302_v4 = vld [vmem:[#allocation10 + $0xbd0] sm:$0xf0]  ;;  %v9849_v50 = vld [vmem:[#allocation10 + $0xe18] sm:$0xf] }
 0x133   :  { %4611 = vmatpush.bf16.msra.mxu0 %v8730_v38  ;;  %v11382_v45 = vld [vmem:[#allocation10 + $0xe50] sm:$0xf0]  ;;  %v11377_v26 = vld [vmem:[#allocation10 + $0xe28] sm:$0xf0] }
 0x134   :  { %4630 = vmatpush.bf16.msra.mxu1 %v8890_v27  ;;  %v4260_v5 = vadd.f32 %v4259_v30, %v4241_v59  ;;  %v9630_v27 = vor.u32 %v11322_v54, %v9629_v21  ;;  %v9930_v30 = vor.u32 %v11397_v3, %v9929_v43  ;;  %v11352_v59 = vld [vmem:[#allocation10 + $0xd60] sm:$0xf0]  ;;  %v9409_v54 = vld [vmem:[#allocation10 + $0xaa8] sm:$0xf] }
 0x135   :  { %4649 = vmatpush.bf16.msra.mxu2 %v9050_v49  ;;  %v11357_v49 = vld [vmem:[#allocation10 + $0xd88] sm:$0xf0] }
 0x136   :  { %4668 = vmatpush.bf16.msra.mxu3 %v9210_v52  ;;  %v5352_v60 = vmax.f32 %v4260_v5, 0.0  ;;  %v4278_v31 = vpop.f32.mrf.mxu2  ;;  %v4297_v25 = vpop.f32.mrf.mxu3  ;;  %v9950_v52 = vor.u32 %v11402_v1, %v9949_v58  ;;  %v9770_v32 = vor.u32 %v11357_v49, %v9769_v61  ;;  %v9750_v5 = vor.u32 %v11352_v59, %v9749_v2  ;;  %v13443_v58 = vld [vmem:[#allocation20_spill] sm:$0xff]  ;;  %v11307_v1 = vld [vmem:[#allocation10 + $0xbf8] sm:$0xf0]  ;;  %v11342_v61 = vld [vmem:[#allocation10 + $0xd10] sm:$0xf0] }
 0x137   :  { %4612 = vmatpush.bf16.msra.mxu0 %v8710_v63  ;;  %v12200_v38 = vadd.f32 %v4297_v25, %v4278_v31  ;;  %v11272_v63 = vld [vmem:[#allocation10 + $0xae0] sm:$0xf0]  ;;  %v13445_v31 = vld [vmem:[#allocation22_spill] sm:$0xff]  ;;  %v9730_v25 = vor.u32 %v11347_v17, %v9729_v62  ;;  %v11257_v59 = vld [vmem:[#allocation10 + $0xa68] sm:$0xf0] }
 0x138   :  { %4631 = vmatpush.bf16.msra.mxu1 %v8870_v44  ;;  %5368 = vst [vmem:[#allocation2 + $0x48] sm:$0xff] %v5352_v60  ;;  %v11267_v60 = vld [vmem:[#allocation10 + $0xab8] sm:$0xf0]  ;;  %v9349_v62 = vld [vmem:[#allocation10 + $0xa30] sm:$0xf] }
 0x139   :  { %4650 = vmatpush.bf16.msra.mxu2 %v9030_v51  ;;  %v4242_v0 = vpop.f32.mrf.mxu0  ;;  %v4261_v10 = vpop.f32.mrf.mxu1  ;;  %v9429_v51 = vld [vmem:[#allocation10 + $0xad0] sm:$0xf]  ;;  %v11252_v17 = vld [vmem:[#allocation10 + $0xa40] sm:$0xf0] }
 0x13a   :  { %4669 = vmatpush.bf16.msra.mxu3 %v9190_v9  ;;  %v4243_v29 = vadd.f32 %v4242_v0, %v4224_v24  ;;  %v9909_v9 = vld [vmem:[#allocation10 + $0xe90] sm:$0xf]  ;;  %v9430_v11 = vor.u32 %v11272_v63, %v9429_v51  ;;  %v9529_v51 = vld [vmem:[#allocation10 + $0xb98] sm:$0xf]  ;;  %v11297_v63 = vld [vmem:[#allocation10 + $0xba8] sm:$0xf0] }
 0x13b   :  { %4613 = vmatpush.bf16.msra.mxu0 %v8690_v12  ;;  %v9910_v21 = vor.u32 %v11392_v36, %v9909_v9  ;;  %v13442_v12 = vld [vmem:[#allocation19_spill] sm:$0xff]  ;;  %v13444_v24 = vld [vmem:[#allocation21_spill] sm:$0xff] }
 0x13c   :  { %4632 = vmatpush.bf16.msra.mxu1 %v8850_v19  ;;  %v4262_v16 = vadd.f32 %v4261_v10, %v4243_v29  ;;  %v9889_v19 = vld [vmem:[#allocation10 + $0xe68] sm:$0xf]  ;;  %v9389_v10 = vld [vmem:[#allocation10 + $0xa80] sm:$0xf]  ;;  %v9669_v9 = vld [vmem:[#allocation10 + $0xcb0] sm:$0xf] }
 0x13d   :  { %4651 = vmatpush.bf16.msra.mxu2 %v9010_v28  ;;  %v9569_v28 = vld [vmem:[#allocation10 + $0xbe8] sm:$0xf]  ;;  %v9869_v29 = vld [vmem:[#allocation10 + $0xe40] sm:$0xf]  ;;  %v11332_v36 = vld [vmem:[#allocation10 + $0xcc0] sm:$0xf0] }
 0x13e   :  { %4670 = vmatpush.bf16.msra.mxu3 %v9170_v20  ;;  %v5356_v34 = vmax.f32 %v4262_v16, 0.0  ;;  %v4280_v39 = vpop.f32.mrf.mxu2  ;;  %v4299_v44 = vpop.f32.mrf.mxu3  ;;  %v11387_v20 = vld [vmem:[#allocation10 + $0xe78] sm:$0xf0]  ;;  %v9570_v49 = vor.u32 %v11307_v1, %v9569_v28  ;;  %v9870_v2 = vor.u32 %v11382_v45, %v9869_v29  ;;  %v9829_v28 = vld [vmem:[#allocation10 + $0xdf0] sm:$0xf]  ;;  %v13446_v45 = vld [vmem:[#allocation23_spill] sm:$0xff] }
 0x13f   :  { %4682 = vmatpush.bf16.msrb.mxu0 %v9470_v53  ;;  %v12202_v55 = vadd.f32 %v4299_v44, %v4280_v39  ;;  %4633 = vmatmul.bf16.vlgmr.msra.gmra.mxu1 %v13443_v58  ;;  %v9709_v53 = vld [vmem:[#allocation10 + $0xd00] sm:$0xf]  ;;  %v9890_v0 = vor.u32 %v11387_v20, %v9889_v19  ;;  %v11372_v1 = vld [vmem:[#allocation10 + $0xe00] sm:$0xf0]  ;;  %v9809_v29 = vld [vmem:[#allocation10 + $0xdc8] sm:$0xf] }
 0x140   :  { %4701 = vmatpush.bf16.msrb.mxu1 %v9630_v27  ;;  %5372 = vst [vmem:[#allocation2 + $0x40] sm:$0xff] %v5356_v34  ;;  %4614 = vmatmul.bf16.vlgmr.msra.gmra.mxu0 %v13442_v12  ;;  %v11262_v27 = vld [vmem:[#allocation10 + $0xa90] sm:$0xf0]  ;;  %v9710_v16 = vor.u32 %v11342_v61, %v9709_v53  ;;  %v9369_v34 = vld [vmem:[#allocation10 + $0xa58] sm:$0xf]  ;;  %v9350_v53 = vor.u32 %v11252_v17, %v9349_v62 }
 0x141   :  { %4720 = vmatpush.bf16.msrb.mxu2 %v9790_v22  ;;  %v12204_v56 = vpop.f32.mrf.mxu0  ;;  %v12206_v15 = vpop.f32.mrf.mxu1  ;;  %4671 = vmatmul.bf16.vlgmr.msra.gmra.mxu3 %v13445_v31  ;;  %v9410_v22 = vor.u32 %v11267_v60, %v9409_v54  ;;  %v9370_v44 = vor.u32 %v11257_v59, %v9369_v34  ;;  %v11292_v60 = vld [vmem:[#allocation10 + $0xb80] sm:$0xf0]  ;;  %v11327_v61 = vld [vmem:[#allocation10 + $0xc98] sm:$0xf0]  ;;  %v10109_v34 = vld [vmem:[#allocation10 + $0x1020] sm:$0xf] }
 0x142   :  { %4739 = vmatpush.bf16.msrb.mxu3 %v9950_v52  ;;  %4652 = vmatmul.bf16.vlgmr.msra.gmra.mxu2 %v13444_v24  ;;  %v9549_v52 = vld [vmem:[#allocation10 + $0xbc0] sm:$0xf]  ;;  %v11442_v59 = vld [vmem:[#allocation10 + $0x1030] sm:$0xf0]  ;;  %v11457_v31 = vld [vmem:[#allocation10 + $0x10a8] sm:$0xf0] }
 0x143   :  { %4683 = vmatpush.bf16.msrb.mxu0 %v9450_v33  ;;  %v9689_v33 = vld [vmem:[#allocation10 + $0xcd8] sm:$0xf]  ;;  %v10110_v17 = vor.u32 %v11442_v59, %v10109_v34  ;;  %v10069_v34 = vld [vmem:[#allocation10 + $0xfd0] sm:$0xf]  ;;  %v11432_v59 = vld [vmem:[#allocation10 + $0xfe0] sm:$0xf0] }
 0x144   :  { %4702 = vmatpush.bf16.msrb.mxu1 %v9610_v23  ;;  %v11337_v23 = vld [vmem:[#allocation10 + $0xce8] sm:$0xf0]  ;;  %v10975_v24 = vld [vmem:[#allocation10 + $0x19c] sm:$0xf] }
 0x145   :  { %4721 = vmatpush.bf16.msrb.mxu2 %v9770_v32  ;;  %v9390_v32 = vor.u32 %v11262_v27, %v9389_v10  ;;  %v9690_v39 = vor.u32 %v11337_v23, %v9689_v33  ;;  %v9830_v27 = vor.u32 %v11372_v1, %v9829_v28  ;;  %v10960_v33 = vld [vmem:[#allocation10 + $0x124] sm:$0xf]  ;;  %v8191_v23 = vld [vmem:[#allocation10 + $0x134] sm:$0xf0] }
 0x146   :  { %4740 = vmatpush.bf16.msrb.mxu3 %v9930_v30  ;;  %v12212_v46 = vpop.f32.mrf.mxu2  ;;  %v12214_v48 = vpop.f32.mrf.mxu3  ;;  %v9550_v30 = vor.u32 %v11302_v4, %v9549_v52  ;;  %v9489_v52 = vld [vmem:[#allocation10 + $0xb48] sm:$0xf]  ;;  %v11287_v4 = vld [vmem:[#allocation10 + $0xb58] sm:$0xf0]  ;;  %v8194_v62 = vor.u32 %v10960_v33, %v8191_v23  ;;  %v10950_v33 = vld [vmem:[#allocation10 + $0xd4] sm:$0xf] }
 0x147   :  { %4684 = vmatpush.bf16.msrb.mxu0 %v9430_v11  ;;  %v9850_v11 = vor.u32 %v11377_v26, %v9849_v50  ;;  %v11482_v26 = vld [vmem:[#allocation10 + $0x1170] sm:$0xf0]  ;;  %v8151_v23 = vld [vmem:[#allocation10 + $0xe4] sm:$0xf0] }
 0x148   :  { %4703 = vmatpush.bf16.msrb.mxu1 %v9590_v37  ;;  %v9509_v37 = vld [vmem:[#allocation10 + $0xb70] sm:$0xf] }
 0x149   :  { %4722 = vmatpush.bf16.msrb.mxu2 %v9750_v5  ;;  %v12216_v43 = vpop.f32.mrf.mxu0  ;;  %v12218_v3 = vpop.f32.mrf.mxu1  ;;  %v9530_v5 = vor.u32 %v11297_v63, %v9529_v51  ;;  %v9510_v10 = vor.u32 %v11292_v60, %v9509_v37  ;;  %v10269_v51 = vld [vmem:[#allocation10 + $0x1160] sm:$0xf]  ;;  %v10955_v37 = vld [vmem:[#allocation10 + $0xfc] sm:$0xf]  ;;  %v8171_v60 = vld [vmem:[#allocation10 + $0x10c] sm:$0xf0] }
 0x14a   :  { %4741 = vmatpush.bf16.msrb.mxu3 %v9910_v21 }
 0x14b   :  { %4685 = vmatpush.bf16.msrb.mxu0 %v9410_v22  ;;  %v9670_v22 = vor.u32 %v11332_v36, %v9669_v9  ;;  %v9490_v9 = vor.u32 %v11287_v4, %v9489_v52  ;;  %v8174_v52 = vor.u32 %v10955_v37, %v8171_v60  ;;  %v10945_v37 = vld [vmem:[#allocation10 + $0xac] sm:$0xf]  ;;  %v8131_v60 = vld [vmem:[#allocation10 + $0xbc] sm:$0xf0] }
 0x14c   :  { %4704 = vmatpush.bf16.msrb.mxu1 %v9570_v49  ;;  %v9329_v49 = vld [vmem:[#allocation10 + $0xa08] sm:$0xf] }
 0x14d   :  { %4723 = vmatpush.bf16.msrb.mxu2 %v9730_v25  ;;  %v9649_v25 = vld [vmem:[#allocation10 + $0xc88] sm:$0xf] }
 0x14e   :  { %4742 = vmatpush.bf16.msrb.mxu3 %v9890_v0  ;;  %v12220_v21 = vpop.f32.mrf.mxu2  ;;  %v12222_v54 = vpop.f32.mrf.mxu3  ;;  %v11247_v0 = vld [vmem:[#allocation10 + $0xa18] sm:$0xf0]  ;;  %v9650_v63 = vor.u32 %v11327_v61, %v9649_v25  ;;  %v10270_v25 = vor.u32 %v11482_v26, %v10269_v51  ;;  %v11437_v61 = vld [vmem:[#allocation10 + $0x1008] sm:$0xf0]  ;;  %v10229_v51 = vld [vmem:[#allocation10 + $0x1110] sm:$0xf] }
 0x14f   :  { %4686 = vmatpush.bf16.msrb.mxu0 %v9390_v32  ;;  %v11367_v32 = vld [vmem:[#allocation10 + $0xdd8] sm:$0xf0]  ;;  %v9330_v50 = vor.u32 %v11247_v0, %v9329_v49  ;;  %v10249_v49 = vld [vmem:[#allocation10 + $0x1138] sm:$0xf]  ;;  %v11477_v0 = vld [vmem:[#allocation10 + $0x1148] sm:$0xf0] }
 0x150   :  { %4705 = vmatpush.bf16.msrb.mxu1 %v9550_v30  ;;  %4619 = vmatmul.bf16.gmra.mxu0 %v13446_v45  ;;  %v13448_v30 = vld [vmem:[#allocation25_spill] sm:$0xff]  ;;  %v9810_v36 = vor.u32 %v11367_v32, %v9809_v29  ;;  %v10250_v29 = vor.u32 %v11477_v0, %v10249_v49  ;;  %v11472_v26 = vld [vmem:[#allocation10 + $0x1120] sm:$0xf0]  ;;  %v10209_v49 = vld [vmem:[#allocation10 + $0x10e8] sm:$0xf] }
 0x151   :  { %4724 = vmatpush.bf16.msrb.mxu2 %v9710_v16  ;;  %v12224_v19 = vpop.f32.mrf.mxu0  ;;  %v12226_v20 = vpop.f32.mrf.mxu1  ;;  %v13447_v16 = vld [vmem:[#allocation24_spill] sm:$0xff]  ;;  %v13450_v0 = vld [vmem:[#allocation27_spill] sm:$0xff] }
 0x152   :  { %4743 = vmatpush.bf16.msrb.mxu3 %v9870_v2  ;;  %4638 = vmatmul.bf16.gmra.mxu1 %v13447_v16  ;;  %v13449_v2 = vld [vmem:[#allocation26_spill] sm:$0xff]  ;;  %v8251_v16 = vld [vmem:[#allocation10 + $0x1ac] sm:$0xf0]  ;;  %v13455_v45 = vld [vmem:[#allocation32_spill] sm:$0xff] }
 0x153   :  { %4687 = vmatpush.bf16.msrb.mxu0 %v9370_v44  ;;  %4657 = vmatmul.bf16.gmra.mxu2 %v13448_v30  ;;  %v8351_v44 = vld [vmem:[#allocation10 + $0x274] sm:$0xf0] }
 0x154   :  { %4706 = vmatpush.bf16.msrb.mxu1 %v9530_v5  ;;  %4676 = vmatmul.bf16.gmra.mxu3 %v13449_v2  ;;  %v13452_v2 = vld [vmem:[#allocation29_spill] sm:$0xff] }
 0x155   :  { %4725 = vmatpush.bf16.msrb.mxu2 %v9690_v39  ;;  %v11000_v39 = vld [vmem:[#allocation10 + $0x264] sm:$0xf] }
 0x156   :  { %4744 = vmatpush.bf16.msrb.mxu3 %v9850_v11  ;;  %v12232_v5 = vpop.f32.mrf.mxu2  ;;  %v12234_v11 = vpop.f32.mrf.mxu3 }
 0x157   :  { %4688 = vmatpush.bf16.msrb.mxu0 %v9350_v53  ;;  %v10089_v53 = vld [vmem:[#allocation10 + $0xff8] sm:$0xf] }
 0x158   :  { %4707 = vmatpush.bf16.msrb.mxu1 %v9510_v10  ;;  %v10995_v10 = vld [vmem:[#allocation10 + $0x23c] sm:$0xf]  ;;  %v10090_v4 = vor.u32 %v11437_v61, %v10089_v53  ;;  %v10049_v53 = vld [vmem:[#allocation10 + $0xfa8] sm:$0xf] }
 0x159   :  { %4726 = vmatpush.bf16.msrb.mxu2 %v9670_v22  ;;  %v12236_v28 = vpop.f32.mrf.mxu0  ;;  %v12238_v1 = vpop.f32.mrf.mxu1  ;;  %v8354_v22 = vor.u32 %v11000_v39, %v8351_v44  ;;  %v10990_v39 = vld [vmem:[#allocation10 + $0x214] sm:$0xf]  ;;  %v8311_v44 = vld [vmem:[#allocation10 + $0x224] sm:$0xf0]  ;;  %v11427_v61 = vld [vmem:[#allocation10 + $0xfb8] sm:$0xf0] }
 0x15a   :  { %4745 = vmatpush.bf16.msrb.mxu3 %v9830_v27  ;;  %v8331_v27 = vld [vmem:[#allocation10 + $0x24c] sm:$0xf0] }
 0x15b   :  { %4689 = vmatpush.bf16.msrb.mxu0 %v9330_v50  ;;  %v8334_v32 = vor.u32 %v10995_v10, %v8331_v27  ;;  %v13451_v10 = vld [vmem:[#allocation28_spill] sm:$0xff]  ;;  %v11467_v27 = vld [vmem:[#allocation10 + $0x10f8] sm:$0xf0] }
 0x15c   :  { %4708 = vmatpush.bf16.msrb.mxu1 %v9490_v9 }
 0x15d   :  { %4727 = vmatpush.bf16.msrb.mxu2 %v9650_v63 }
 0x15e   :  { %4746 = vmatpush.bf16.msrb.mxu3 %v9810_v36  ;;  %v12240_v63 = vpop.f32.mrf.mxu2  ;;  %v12242_v50 = vpop.f32.mrf.mxu3 }
 0x15f   :  { %4758 = vmatpush.bf16.msra.mxu0 %v10110_v17  ;;  %v10070_v17 = vor.u32 %v11432_v59, %v10069_v34  ;;  %v8111_v34 = vld [vmem:[#allocation10 + $0x94] sm:$0xf0]  ;;  %v10210_v59 = vor.u32 %v11467_v27, %v10209_v49 }
 0x160   :  { %4777 = vmatpush.bf16.msra.mxu1 %v10270_v25  ;;  %v10230_v25 = vor.u32 %v11472_v26, %v10229_v51  ;;  %4690 = vmatmul.bf16.vlgmr.msrb.gmra.mxu0 %v13450_v0  ;;  %v10029_v26 = vld [vmem:[#allocation10 + $0xf80] sm:$0xf]  ;;  %v10980_v0 = vld [vmem:[#allocation10 + $0x1c4] sm:$0xf]  ;;  %v10009_v27 = vld [vmem:[#allocation10 + $0xf58] sm:$0xf] }
 0x161   :  { %4796 = vmatpush.bf16.msra.mxu2 %v8194_v62  ;;  %v12244_v9 = vpop.f32.mrf.mxu0  ;;  %v12246_v36 = vpop.f32.mrf.mxu1  ;;  %v8154_v62 = vor.u32 %v10950_v33, %v8151_v23  ;;  %v10050_v33 = vor.u32 %v11427_v61, %v10049_v53  ;;  %v10940_v23 = vld [vmem:[#allocation10 + $0x84] sm:$0xf]  ;;  %v4312_v53 = vadd.f32 %v12204_v56, %v12182_v40  ;;  %v8254_v56 = vor.u32 %v10975_v24, %v8251_v16  ;;  %v10925_v24 = vld [vmem:[#allocation10 + $0xc] sm:$0xf] }
 0x162   :  { %4815 = vmatpush.bf16.msra.mxu3 %v8354_v22  ;;  %v8314_v22 = vor.u32 %v10990_v39, %v8311_v44  ;;  %4709 = vmatmul.bf16.vlgmr.msrb.gmra.mxu1 %v13451_v10  ;;  %v11422_v39 = vld [vmem:[#allocation10 + $0xf90] sm:$0xf0]  ;;  %v10189_v44 = vld [vmem:[#allocation10 + $0x10c0] sm:$0xf] }
 0x163   :  { %4759 = vmatpush.bf16.msra.mxu0 %v10090_v4  ;;  %v8291_v4 = vld [vmem:[#allocation10 + $0x1fc] sm:$0xf0]  ;;  %4728 = vmatmul.bf16.vlgmr.msrb.gmra.mxu2 %v13452_v2  ;;  %v11462_v2 = vld [vmem:[#allocation10 + $0x10d0] sm:$0xf0] }
 0x164   :  { %4778 = vmatpush.bf16.msra.mxu1 %v10250_v29  ;;  %v13453_v29 = vld [vmem:[#allocation30_spill] sm:$0xff]  ;;  %v10190_v61 = vor.u32 %v11462_v2, %v10189_v44  ;;  %v9989_v2 = vld [vmem:[#allocation10 + $0xf30] sm:$0xf]  ;;  %v11452_v44 = vld [vmem:[#allocation10 + $0x1080] sm:$0xf0] }
 0x165   :  { %4797 = vmatpush.bf16.msra.mxu2 %v8174_v52  ;;  %v10985_v52 = vld [vmem:[#allocation10 + $0x1ec] sm:$0xf]  ;;  %4747 = vmatmul.bf16.vlgmr.msrb.gmra.mxu3 %v13453_v29  ;;  %v8271_v29 = vld [vmem:[#allocation10 + $0x1d4] sm:$0xf0] }
 0x166   :  { %4816 = vmatpush.bf16.msra.mxu3 %v8334_v32  ;;  %v8134_v32 = vor.u32 %v10945_v37, %v8131_v60  ;;  %v8294_v51 = vor.u32 %v10985_v52, %v8291_v4  ;;  %v12252_v30 = vpop.f32.mrf.mxu2  ;;  %v12254_v10 = vpop.f32.mrf.mxu3  ;;  %v8114_v37 = vor.u32 %v10940_v23, %v8111_v34  ;;  %v10030_v60 = vor.u32 %v11422_v39, %v10029_v26  ;;  %v11417_v52 = vld [vmem:[#allocation10 + $0xf68] sm:$0xf0]  ;;  %v10169_v4 = vld [vmem:[#allocation10 + $0x1098] sm:$0xf]  ;;  %v10930_v23 = vld [vmem:[#allocation10 + $0x34] sm:$0xf] }
 0x167   :  { %4760 = vmatpush.bf16.msra.mxu0 %v10070_v17  ;;  %v8274_v49 = vor.u32 %v10980_v0, %v8271_v29  ;;  %v8071_v34 = vld [vmem:[#allocation10 + $0x44] sm:$0xf0]  ;;  %v4331_v26 = vadd.f32 %v12206_v15, %v4312_v53  ;;  %v10170_v40 = vor.u32 %v11457_v31, %v10169_v4  ;;  %v11412_v0 = vld [vmem:[#allocation10 + $0xf40] sm:$0xf0]  ;;  %v10149_v29 = vld [vmem:[#allocation10 + $0x1070] sm:$0xf] }
 0x168   :  { %4779 = vmatpush.bf16.msra.mxu1 %v10230_v25  ;;  %v10935_v25 = vld [vmem:[#allocation10 + $0x5c] sm:$0xf]  ;;  %v8074_v31 = vor.u32 %v10930_v23, %v8071_v34  ;;  %v9990_v16 = vor.u32 %v11412_v0, %v9989_v2  ;;  %v8051_v53 = vld [vmem:[#allocation10 + $0x1c] sm:$0xf0]  ;;  %v10965_v4 = vld [vmem:[#allocation10 + $0x14c] sm:$0xf] }
 0x169   :  { %4798 = vmatpush.bf16.msra.mxu2 %v8154_v62  ;;  %v12256_v62 = vpop.f32.mrf.mxu0  ;;  %v12258_v17 = vpop.f32.mrf.mxu1  ;;  %v8831_v23 = vld [vmem:[#allocation10 + $0x634] sm:$0xf0]  ;;  %v11080_v2 = vld [vmem:[#allocation10 + $0x4e4] sm:$0xf] }
 0x16a   :  { %4817 = vmatpush.bf16.msra.mxu3 %v8314_v22  ;;  %v8091_v22 = vld [vmem:[#allocation10 + $0x6c] sm:$0xf0] }
 0x16b   :  { %4761 = vmatpush.bf16.msra.mxu0 %v10050_v33  ;;  %v10010_v33 = vor.u32 %v11417_v52, %v10009_v27  ;;  %v10129_v27 = vld [vmem:[#allocation10 + $0x1048] sm:$0xf]  ;;  %v11447_v52 = vld [vmem:[#allocation10 + $0x1058] sm:$0xf0] }
 0x16c   :  { %4780 = vmatpush.bf16.msra.mxu1 %v10210_v59  ;;  %v4314_v59 = vadd.f32 %v12216_v43, %v12192_v57  ;;  %v9969_v57 = vld [vmem:[#allocation10 + $0xf08] sm:$0xf]  ;;  %v11407_v43 = vld [vmem:[#allocation10 + $0xf18] sm:$0xf0] }
 0x16d   :  { %4799 = vmatpush.bf16.msra.mxu2 %v8134_v32  ;;  %v8094_v32 = vor.u32 %v10935_v25, %v8091_v22  ;;  %v4350_v25 = vadd.f32 %v12212_v46, %v4331_v26  ;;  %v13454_v26 = vld [vmem:[#allocation31_spill] sm:$0xff] }
 0x16e   :  { %4818 = vmatpush.bf16.msra.mxu3 %v8294_v51  ;;  %v12265_v51 = vpop.f32.mrf.mxu2  ;;  %v12267_v39 = vpop.f32.mrf.mxu3  ;;  %v4333_v46 = vadd.f32 %v12218_v3, %v4314_v59  ;;  %v8054_v3 = vor.u32 %v10925_v24, %v8051_v53  ;;  %v8671_v59 = vld [vmem:[#allocation10 + $0x4f4] sm:$0xf0]  ;;  %v11115_v24 = vld [vmem:[#allocation10 + $0x5fc] sm:$0xf] }
 0x16f   :  { %4762 = vmatpush.bf16.msra.mxu0 %v10030_v60  ;;  %v8231_v60 = vld [vmem:[#allocation10 + $0x184] sm:$0xf0]  ;;  %v4369_v34 = vadd.f32 %v12214_v48, %v4350_v25  ;;  %v10130_v48 = vor.u32 %v11447_v52, %v10129_v27  ;;  %v11075_v27 = vld [vmem:[#allocation10 + $0x4bc] sm:$0xf]  ;;  %v8971_v52 = vld [vmem:[#allocation10 + $0x74c] sm:$0xf0] }
 0x170   :  { %4781 = vmatpush.bf16.msra.mxu1 %v10190_v61  ;;  %v10150_v61 = vor.u32 %v11452_v44, %v10149_v29  ;;  %4695 = vmatmul.bf16.gmra.mxu0 %v13454_v26  ;;  %v4352_v0 = vadd.f32 %v12220_v21, %v4333_v46  ;;  %v9970_v29 = vor.u32 %v11407_v43, %v9969_v57  ;;  %v11160_v44 = vld [vmem:[#allocation10 + $0x764] sm:$0xf] }
 0x171   :  { %4800 = vmatpush.bf16.msra.mxu2 %v8114_v37  ;;  %v10970_v37 = vld [vmem:[#allocation10 + $0x174] sm:$0xf]  ;;  %v12270_v15 = vpop.f32.mrf.mxu0  ;;  %v12272_v22 = vpop.f32.mrf.mxu1 }
 0x172   :  { %4819 = vmatpush.bf16.msra.mxu3 %v8274_v49  ;;  %v8234_v49 = vor.u32 %v10970_v37, %v8231_v60  ;;  %4714 = vmatmul.bf16.gmra.mxu1 %v13455_v45  ;;  %v8991_v37 = vld [vmem:[#allocation10 + $0x774] sm:$0xf0]  ;;  %v4388_v60 = vadd.f32 %v12244_v9, %v4369_v34  ;;  %v8674_v9 = vor.u32 %v11080_v2, %v8671_v59 }
 0x173   :  { %4763 = vmatpush.bf16.msra.mxu0 %v10010_v33  ;;  %v11120_v33 = vld [vmem:[#allocation10 + $0x624] sm:$0xf]  ;;  %4733 = vmatmul.bf16.gmra.mxu2 %v12012_v6  ;;  %v8994_v43 = vor.u32 %v11160_v44, %v8991_v37  ;;  %v11150_v37 = vld [vmem:[#allocation10 + $0x714] sm:$0xf] }
 0x174   :  { %4782 = vmatpush.bf16.msra.mxu1 %v10170_v40  ;;  %v11040_v40 = vld [vmem:[#allocation10 + $0x3a4] sm:$0xf]  ;;  %v8834_v21 = vor.u32 %v11120_v33, %v8831_v23  ;;  %v4407_v46 = vadd.f32 %v12246_v36, %v4388_v60  ;;  %v11110_v36 = vld [vmem:[#allocation10 + $0x5d4] sm:$0xf]  ;;  %v8951_v60 = vld [vmem:[#allocation10 + $0x724] sm:$0xf0] }
 0x175   :  { %4801 = vmatpush.bf16.msra.mxu2 %v8094_v32  ;;  %v8211_v32 = vld [vmem:[#allocation10 + $0x15c] sm:$0xf0]  ;;  %4752 = vmatmul.bf16.gmra.mxu3 %v12014_v7  ;;  %v4317_v7 = vadd.f32 %v12224_v19, %v12200_v38  ;;  %v8651_v38 = vld [vmem:[#allocation10 + $0x4cc] sm:$0xf0]  ;;  %v11155_v19 = vld [vmem:[#allocation10 + $0x73c] sm:$0xf] }
 0x176   :  { %4820 = vmatpush.bf16.msra.mxu3 %v8254_v56  ;;  %v8511_v56 = vld [vmem:[#allocation10 + $0x3b4] sm:$0xf0]  ;;  %v8214_v25 = vor.u32 %v10965_v4, %v8211_v32  ;;  %v12284_v6 = vpop.f32.mrf.mxu2  ;;  %v12286_v45 = vpop.f32.mrf.mxu3  ;;  %v4371_v4 = vadd.f32 %v12222_v54, %v4352_v0  ;;  %v4426_v34 = vadd.f32 %v12252_v30, %v4407_v46  ;;  %v4319_v54 = vadd.f32 %v12236_v28, %v12202_v55  ;;  %v8791_v0 = vld [vmem:[#allocation10 + $0x5e4] sm:$0xf0] }
 0x177   :  { %4764 = vmatpush.bf16.msra.mxu0 %v9990_v16  ;;  %v8811_v16 = vld [vmem:[#allocation10 + $0x60c] sm:$0xf0]  ;;  %v4336_v32 = vadd.f32 %v12226_v20, %v4317_v7  ;;  %v11030_v7 = vld [vmem:[#allocation10 + $0x354] sm:$0xf]  ;;  %v8471_v20 = vld [vmem:[#allocation10 + $0x364] sm:$0xf0] }
 0x178   :  { %4783 = vmatpush.bf16.msra.mxu1 %v10150_v61  ;;  %v11035_v61 = vld [vmem:[#allocation10 + $0x37c] sm:$0xf]  ;;  %v8814_v33 = vor.u32 %v11115_v24, %v8811_v16  ;;  %v8631_v30 = vld [vmem:[#allocation10 + $0x4a4] sm:$0xf0]  ;;  %v8771_v24 = vld [vmem:[#allocation10 + $0x5bc] sm:$0xf0] }
 0x179   :  { %4802 = vmatpush.bf16.msra.mxu2 %v8074_v31  ;;  %v8514_v31 = vor.u32 %v11040_v40, %v8511_v56  ;;  %v12288_v53 = vpop.f32.mrf.mxu0  ;;  %v12290_v57 = vpop.f32.mrf.mxu1  ;;  %v8654_v40 = vor.u32 %v11075_v27, %v8651_v38  ;;  %v8974_v56 = vor.u32 %v11155_v19, %v8971_v52  ;;  %v4355_v2 = vadd.f32 %v12232_v5, %v4336_v32  ;;  %v8451_v27 = vld [vmem:[#allocation10 + $0x33c] sm:$0xf0]  ;;  %v13457_v19 = vld [vmem:[#allocation36_spill] sm:$0xff] }
 0x17a   :  { %4821 = vmatpush.bf16.msra.mxu3 %v8234_v49  ;;  %v8491_v49 = vld [vmem:[#allocation10 + $0x38c] sm:$0xf0]  ;;  %v4445_v5 = vadd.f32 %v12254_v10, %v4426_v34  ;;  %v11065_v10 = vld [vmem:[#allocation10 + $0x46c] sm:$0xf]  ;;  %v13456_v38 = vld [vmem:[#allocation35_spill] sm:$0xff] }
 0x17b   :  { %4765 = vmatpush.bf16.msra.mxu0 %v9970_v29  ;;  %v8494_v23 = vor.u32 %v11035_v61, %v8491_v49  ;;  %v11070_v29 = vld [vmem:[#allocation10 + $0x494] sm:$0xf]  ;;  %v4374_v28 = vadd.f32 %v12234_v11, %v4355_v2  ;;  %v8954_v61 = vor.u32 %v11150_v37, %v8951_v60  ;;  %v11025_v49 = vld [vmem:[#allocation10 + $0x32c] sm:$0xf]  ;;  %v8611_v52 = vld [vmem:[#allocation10 + $0x47c] sm:$0xf0] }
 0x17c   :  { %4784 = vmatpush.bf16.msra.mxu1 %v10130_v48  ;;  %v11145_v11 = vld [vmem:[#allocation10 + $0x6ec] sm:$0xf]  ;;  %v8751_v34 = vld [vmem:[#allocation10 + $0x594] sm:$0xf0]  ;;  %v8614_v2 = vor.u32 %v11065_v10, %v8611_v52  ;;  %v11090_v10 = vld [vmem:[#allocation10 + $0x534] sm:$0xf] }
 0x17d   :  { %4803 = vmatpush.bf16.msra.mxu2 %v8054_v3  ;;  %v4390_v3 = vadd.f32 %v12256_v62, %v4371_v4  ;;  %v4338_v62 = vadd.f32 %v12238_v1, %v4319_v54  ;;  %v8931_v4 = vld [vmem:[#allocation10 + $0x6fc] sm:$0xf0]  ;;  %v4393_v32 = vadd.f32 %v12270_v15, %v4374_v28  ;;  %v8431_v54 = vld [vmem:[#allocation10 + $0x314] sm:$0xf0] }
 0x17e   :  { %4822 = vmatpush.bf16.msra.mxu3 %v8214_v25  ;;  %v12300_v59 = vpop.f32.mrf.mxu2  ;;  %v12302_v44 = vpop.f32.mrf.mxu3  ;;  %v8794_v25 = vor.u32 %v11110_v36, %v8791_v0  ;;  %v8591_v36 = vld [vmem:[#allocation10 + $0x454] sm:$0xf0] }
 0x17f   :  { %4834 = vmatpush.bf16.msrb.mxu0 %v8514_v31  ;;  %v11105_v31 = vld [vmem:[#allocation10 + $0x5ac] sm:$0xf]  ;;  %v4409_v16 = vadd.f32 %v12258_v17, %v4390_v3  ;;  %v4357_v1 = vadd.f32 %v12240_v63, %v4338_v62  ;;  %v8934_v63 = vor.u32 %v11145_v11, %v8931_v4  ;;  %v11140_v3 = vld [vmem:[#allocation10 + $0x6c4] sm:$0xf]  ;;  %v11095_v62 = vld [vmem:[#allocation10 + $0x55c] sm:$0xf] }
 0x180   :  { %4853 = vmatpush.bf16.msrb.mxu1 %v8674_v9  ;;  %4766 = vmatmul.bf16.vlgmr.msra.gmra.mxu0 %v13456_v38  ;;  %v8774_v17 = vor.u32 %v11105_v31, %v8771_v24  ;;  %v8711_v4 = vld [vmem:[#allocation10 + $0x544] sm:$0xf0] }
 0x181   :  { %4872 = vmatpush.bf16.msrb.mxu2 %v8834_v21  ;;  %v4463_v48 = vpop.f32.mrf.mxu0  ;;  %v4482_v55 = vpop.f32.mrf.mxu1  ;;  %v8474_v21 = vor.u32 %v11030_v7, %v8471_v20  ;;  %v4428_v46 = vadd.f32 %v12265_v51, %v4409_v16  ;;  %v11060_v51 = vld [vmem:[#allocation10 + $0x444] sm:$0xf]  ;;  %v8911_v7 = vld [vmem:[#allocation10 + $0x6d4] sm:$0xf0]  ;;  %v4376_v20 = vadd.f32 %v12242_v50, %v4357_v1  ;;  %v11015_v50 = vld [vmem:[#allocation10 + $0x2dc] sm:$0xf] }
 0x182   :  { %4891 = vmatpush.bf16.msrb.mxu3 %v8994_v43  ;;  %v4464_v9 = vadd.f32 %v4463_v48, %v4445_v5  ;;  %v8634_v43 = vor.u32 %v11070_v29, %v8631_v30  ;;  %4785 = vmatmul.bf16.vlgmr.msra.gmra.mxu1 %v13457_v19  ;;  %v4412_v30 = vadd.f32 %v12272_v22, %v4393_v32  ;;  %v8411_v16 = vld [vmem:[#allocation10 + $0x2ec] sm:$0xf0]  ;;  %v11135_v22 = vld [vmem:[#allocation10 + $0x69c] sm:$0xf]  ;;  %v11010_v1 = vld [vmem:[#allocation10 + $0x2b4] sm:$0xf] }
 0x183   :  { %4835 = vmatpush.bf16.msrb.mxu0 %v8494_v23  ;;  %4804 = vmatmul.bf16.vlgmr.msra.gmra.mxu2 %v11911_v8  ;;  %v11100_v23 = vld [vmem:[#allocation10 + $0x584] sm:$0xf]  ;;  %v4447_v29 = vadd.f32 %v12267_v39, %v4428_v46  ;;  %v8594_v28 = vor.u32 %v11060_v51, %v8591_v36  ;;  %v8914_v24 = vor.u32 %v11140_v3, %v8911_v7  ;;  %v11055_v39 = vld [vmem:[#allocation10 + $0x41c] sm:$0xf]  ;;  %v8391_v46 = vld [vmem:[#allocation10 + $0x2c4] sm:$0xf0] }
 0x184   :  { %4854 = vmatpush.bf16.msrb.mxu1 %v8654_v40  ;;  %v11020_v40 = vld [vmem:[#allocation10 + $0x304] sm:$0xf]  ;;  %v8754_v48 = vor.u32 %v11100_v23, %v8751_v34  ;;  %v8414_v11 = vor.u32 %v11015_v50, %v8411_v16  ;;  %v11050_v23 = vld [vmem:[#allocation10 + $0x3f4] sm:$0xf]  ;;  %v8551_v34 = vld [vmem:[#allocation10 + $0x404] sm:$0xf0]  ;;  %v8714_v3 = vor.u32 %v11090_v10, %v8711_v4  ;;  %v8394_v7 = vor.u32 %v11010_v1, %v8391_v46 }
 0x185   :  { %4873 = vmatpush.bf16.msrb.mxu2 %v8814_v33  ;;  %4823 = vmatmul.bf16.vlgmr.msra.gmra.mxu3 %v11913_v13  ;;  %v8454_v33 = vor.u32 %v11025_v49, %v8451_v27  ;;  %v4395_v49 = vadd.f32 %v12288_v53, %v4376_v20  ;;  %v11130_v53 = vld [vmem:[#allocation10 + $0x674] sm:$0xf]  ;;  %v8554_v20 = vor.u32 %v11050_v23, %v8551_v34  ;;  %v9151_v16 = vld [vmem:[#allocation10 + $0x8b4] sm:$0xf0]  ;;  %v11275_v46 = vld [vmem:[#allocation10 + $0xafc] sm:$0xf] }
 0x186   :  { %4892 = vmatpush.bf16.msrb.mxu3 %v8974_v56  ;;  %v4483_v56 = vadd.f32 %v4482_v55, %v4464_v9  ;;  %v4501_v15 = vpop.f32.mrf.mxu2  ;;  %v4520_v0 = vpop.f32.mrf.mxu3  ;;  %v8434_v55 = vor.u32 %v11020_v40, %v8431_v54  ;;  %v8571_v9 = vld [vmem:[#allocation10 + $0x42c] sm:$0xf0] }
 0x187   :  { %4836 = vmatpush.bf16.msrb.mxu0 %v8474_v21 }
 0x188   :  { %4855 = vmatpush.bf16.msrb.mxu1 %v8634_v43  ;;  %v4502_v37 = vadd.f32 %v4501_v15, %v4483_v56  ;;  %v8891_v43 = vld [vmem:[#allocation10 + $0x6ac] sm:$0xf0]  ;;  %v8871_v56 = vld [vmem:[#allocation10 + $0x684] sm:$0xf0]  ;;  %v11085_v15 = vld [vmem:[#allocation10 + $0x50c] sm:$0xf] }
 0x189   :  { %4874 = vmatpush.bf16.msrb.mxu2 %v8794_v25  ;;  %v4465_v60 = vpop.f32.mrf.mxu0  ;;  %v4484_v5 = vpop.f32.mrf.mxu1  ;;  %v8731_v25 = vld [vmem:[#allocation10 + $0x56c] sm:$0xf0] }
 0x18a   :  { %4893 = vmatpush.bf16.msrb.mxu3 %v8954_v61  ;;  %v4521_v21 = vadd.f32 %v4520_v0, %v4502_v37  ;;  %v4466_v31 = vadd.f32 %v4465_v60, %v4447_v29  ;;  %v4431_v61 = vadd.f32 %v12284_v6, %v4412_v30  ;;  %v8734_v52 = vor.u32 %v11095_v62, %v8731_v25  ;;  %v8691_v0 = vld [vmem:[#allocation10 + $0x51c] sm:$0xf0]  ;;  %v11005_v29 = vld [vmem:[#allocation10 + $0x28c] sm:$0xf]  ;;  %v13459_v62 = vld [vmem:[#allocation38_spill] sm:$0xff] }
 0x18b   :  { %4837 = vmatpush.bf16.msrb.mxu0 %v8454_v33  ;;  %v8894_v33 = vor.u32 %v11135_v22, %v8891_v43  ;;  %v8371_v30 = vld [vmem:[#allocation10 + $0x29c] sm:$0xf0]  ;;  %v11045_v37 = vld [vmem:[#allocation10 + $0x3cc] sm:$0xf]  ;;  %v11280_v25 = vld [vmem:[#allocation10 + $0xb24] sm:$0xf] }
 0x18c   :  { %4856 = vmatpush.bf16.msrb.mxu1 %v8614_v2  ;;  %v5345_v27 = vmax.f32 %v4521_v21, 0.0  ;;  %v4485_v32 = vadd.f32 %v4484_v5, %v4466_v31  ;;  %v4450_v2 = vadd.f32 %v12286_v45, %v4431_v61  ;;  %v8874_v45 = vor.u32 %v11130_v53, %v8871_v56  ;;  %v9471_v21 = vld [vmem:[#allocation10 + $0xb34] sm:$0xf0]  ;;  %v11200_v31 = vld [vmem:[#allocation10 + $0x8a4] sm:$0xf] }
 0x18d   :  { %4875 = vmatpush.bf16.msrb.mxu2 %v8774_v17  ;;  %v8574_v17 = vor.u32 %v11055_v39, %v8571_v9  ;;  %v11240_v39 = vld [vmem:[#allocation10 + $0x9e4] sm:$0xf]  ;;  %v8694_v9 = vor.u32 %v11085_v15, %v8691_v0  ;;  %v8374_v22 = vor.u32 %v11005_v29, %v8371_v30  ;;  %v9311_v43 = vld [vmem:[#allocation10 + $0x9f4] sm:$0xf0]  ;;  %v9474_v4 = vor.u32 %v11280_v25, %v9471_v21  ;;  %v11195_v53 = vld [vmem:[#allocation10 + $0x87c] sm:$0xf] }
 0x18e   :  { %4894 = vmatpush.bf16.msrb.mxu3 %v8934_v63  ;;  %5361 = vst [vmem:[#allocation2 + $0x78] sm:$0xff] %v5345_v27  ;;  %v4503_v6 = vpop.f32.mrf.mxu2  ;;  %v4522_v40 = vpop.f32.mrf.mxu3  ;;  %v4414_v63 = vadd.f32 %v12290_v57, %v4395_v49  ;;  %v11125_v57 = vld [vmem:[#allocation10 + $0x64c] sm:$0xf]  ;;  %v11320_v61 = vld [vmem:[#allocation10 + $0xc64] sm:$0xf]  ;;  %v9154_v1 = vor.u32 %v11200_v31, %v9151_v16 }
 0x18f   :  { %4838 = vmatpush.bf16.msrb.mxu0 %v8434_v55  ;;  %v4504_v54 = vadd.f32 %v4503_v6, %v4485_v32  ;;  %v8851_v55 = vld [vmem:[#allocation10 + $0x65c] sm:$0xf0]  ;;  %v9631_v49 = vld [vmem:[#allocation10 + $0xc74] sm:$0xf0]  ;;  %v9451_v32 = vld [vmem:[#allocation10 + $0xb0c] sm:$0xf0]  ;;  %v9314_v6 = vor.u32 %v11240_v39, %v9311_v43 }
 0x190   :  { %4857 = vmatpush.bf16.msrb.mxu1 %v8594_v28  ;;  %v13458_v28 = vld [vmem:[#allocation37_spill] sm:$0xff]  ;;  %v9431_v30 = vld [vmem:[#allocation10 + $0xae4] sm:$0xf0]  ;;  %v9411_v43 = vld [vmem:[#allocation10 + $0xabc] sm:$0xf0] }
 0x191   :  { %4876 = vmatpush.bf16.msrb.mxu2 %v8754_v48  ;;  %v4468_v51 = vpop.f32.mrf.mxu0  ;;  %v4487_v36 = vpop.f32.mrf.mxu1  ;;  %v4523_v60 = vadd.f32 %v4522_v40, %v4504_v54  ;;  %v8531_v48 = vld [vmem:[#allocation10 + $0x3dc] sm:$0xf0]  ;;  %4771 = vmatmul.bf16.gmra.mxu0 %v13458_v28  ;;  %v9634_v40 = vor.u32 %v11320_v61, %v9631_v49  ;;  %v9131_v56 = vld [vmem:[#allocation10 + $0x88c] sm:$0xf0]  ;;  %v11315_v54 = vld [vmem:[#allocation10 + $0xc3c] sm:$0xf] }
 0x192   :  { %4895 = vmatpush.bf16.msrb.mxu3 %v8914_v24  ;;  %v4469_v5 = vadd.f32 %v4468_v51, %v4450_v2  ;;  %4790 = vmatmul.bf16.gmra.mxu1 %v13459_v62  ;;  %v4433_v24 = vadd.f32 %v12300_v59, %v4414_v63  ;;  %v8534_v10 = vor.u32 %v11045_v37, %v8531_v48  ;;  %v11235_v2 = vld [vmem:[#allocation10 + $0x9bc] sm:$0xf]  ;;  %v9291_v63 = vld [vmem:[#allocation10 + $0x9cc] sm:$0xf0]  ;;  %v11270_v29 = vld [vmem:[#allocation10 + $0xad4] sm:$0xf] }
 0x193   :  { %4839 = vmatpush.bf16.msrb.mxu0 %v8414_v11  ;;  %v5349_v50 = vmax.f32 %v4523_v60, 0.0  ;;  %4809 = vmatmul.bf16.gmra.mxu2 %v11928_v35  ;;  %v8854_v59 = vor.u32 %v11125_v57, %v8851_v55  ;;  %v9611_v51 = vld [vmem:[#allocation10 + $0xc4c] sm:$0xf0]  ;;  %v9134_v0 = vor.u32 %v11195_v53, %v9131_v56  ;;  %v11190_v37 = vld [vmem:[#allocation10 + $0x854] sm:$0xf]  ;;  %v9434_v39 = vor.u32 %v11270_v29, %v9431_v30 }
 0x194   :  { %4858 = vmatpush.bf16.msrb.mxu1 %v8574_v17  ;;  %v4488_v27 = vadd.f32 %v4487_v36, %v4469_v5  ;;  %v4452_v17 = vadd.f32 %v12302_v44, %v4433_v24  ;;  %v9454_v44 = vor.u32 %v11275_v46, %v9451_v32  ;;  %v9111_v5 = vld [vmem:[#allocation10 + $0x864] sm:$0xf0]  ;;  %v11310_v25 = vld [vmem:[#allocation10 + $0xc14] sm:$0xf]  ;;  %v9071_v53 = vld [vmem:[#allocation10 + $0x814] sm:$0xf0] }
 0x195   :  { %4877 = vmatpush.bf16.msrb.mxu2 %v8734_v52  ;;  %4828 = vmatmul.bf16.gmra.mxu3 %v11930_v41  ;;  %5365 = vst [vmem:[#allocation2 + $0x30] sm:$0xff] %v5349_v50  ;;  %v9271_v55 = vld [vmem:[#allocation10 + $0x9a4] sm:$0xf0]  ;;  %v11220_v56 = vld [vmem:[#allocation10 + $0x944] sm:$0xf] }
 0x196   :  { %4896 = vmatpush.bf16.msrb.mxu3 %v8894_v33  ;;  %v4506_v52 = vpop.f32.mrf.mxu2  ;;  %v4525_v11 = vpop.f32.mrf.mxu3  ;;  %v9591_v21 = vld [vmem:[#allocation10 + $0xc24] sm:$0xf0]  ;;  %v11255_v29 = vld [vmem:[#allocation10 + $0xa5c] sm:$0xf]  ;;  %v9371_v30 = vld [vmem:[#allocation10 + $0xa6c] sm:$0xf0] }
 0x197   :  { %4840 = vmatpush.bf16.msrb.mxu0 %v8394_v7  ;;  %v4507_v33 = vadd.f32 %v4506_v52, %v4488_v27  ;;  %v9294_v7 = vor.u32 %v11235_v2, %v9291_v63  ;;  %v9594_v27 = vor.u32 %v11310_v25, %v9591_v21  ;;  %v11225_v52 = vld [vmem:[#allocation10 + $0x96c] sm:$0xf]  ;;  %v11295_v25 = vld [vmem:[#allocation10 + $0xb9c] sm:$0xf]  ;;  %v9531_v21 = vld [vmem:[#allocation10 + $0xbac] sm:$0xf0] }
 0x198   :  { %4859 = vmatpush.bf16.msrb.mxu1 %v8554_v20  ;;  %v9614_v20 = vor.u32 %v11315_v54, %v9611_v51  ;;  %v9231_v54 = vld [vmem:[#allocation10 + $0x954] sm:$0xf0]  ;;  %v11300_v51 = vld [vmem:[#allocation10 + $0xbc4] sm:$0xf] }
 0x199   :  { %4878 = vmatpush.bf16.msrb.mxu2 %v8714_v3  ;;  %v4470_v23 = vpop.f32.mrf.mxu0  ;;  %v4489_v34 = vpop.f32.mrf.mxu1  ;;  %v4526_v36 = vadd.f32 %v4525_v11, %v4507_v33  ;;  %v9251_v11 = vld [vmem:[#allocation10 + $0x97c] sm:$0xf0]  ;;  %v11260_v33 = vld [vmem:[#allocation10 + $0xa84] sm:$0xf] }
 0x19a   :  { %4897 = vmatpush.bf16.msrb.mxu3 %v8874_v45  ;;  %v4471_v15 = vadd.f32 %v4470_v23, %v4452_v17  ;;  %v11230_v45 = vld [vmem:[#allocation10 + $0x994] sm:$0xf]  ;;  %v9391_v23 = vld [vmem:[#allocation10 + $0xa94] sm:$0xf0] }
 0x19b   :  { %4841 = vmatpush.bf16.msrb.mxu0 %v8374_v22  ;;  %v5353_v3 = vmax.f32 %v4526_v36, 0.0  ;;  %v11265_v22 = vld [vmem:[#allocation10 + $0xaac] sm:$0xf]  ;;  %v9274_v49 = vor.u32 %v11230_v45, %v9271_v55  ;;  %v9551_v36 = vld [vmem:[#allocation10 + $0xbd4] sm:$0xf0] }
 0x19c   :  { %4860 = vmatpush.bf16.msrb.mxu1 %v8534_v10  ;;  %v4490_v60 = vadd.f32 %v4489_v34, %v4471_v15  ;;  %v11185_v10 = vld [vmem:[#allocation10 + $0x82c] sm:$0xf]  ;;  %v9414_v32 = vor.u32 %v11265_v22, %v9411_v43  ;;  %v11180_v34 = vld [vmem:[#allocation10 + $0x804] sm:$0xf]  ;;  %v11175_v45 = vld [vmem:[#allocation10 + $0x7dc] sm:$0xf] }
 0x19d   :  { %4879 = vmatpush.bf16.msrb.mxu2 %v8694_v9  ;;  %5369 = vst [vmem:[#allocation2 + $0xb0] sm:$0xff] %v5353_v3  ;;  %v9114_v9 = vor.u32 %v11190_v37, %v9111_v5  ;;  %v9554_v5 = vor.u32 %v11300_v51, %v9551_v36  ;;  %v9211_v55 = vld [vmem:[#allocation10 + $0x92c] sm:$0xf0]  ;;  %v11170_v22 = vld [vmem:[#allocation10 + $0x7b4] sm:$0xf] }
 0x19e   :  { %4898 = vmatpush.bf16.msrb.mxu3 %v8854_v59  ;;  %v4508_v48 = vpop.f32.mrf.mxu2  ;;  %v4527_v57 = vpop.f32.mrf.mxu3  ;;  %v9091_v59 = vld [vmem:[#allocation10 + $0x83c] sm:$0xf0]  ;;  %v9031_v43 = vld [vmem:[#allocation10 + $0x7c4] sm:$0xf0]  ;;  %v11440_v36 = vld [vmem:[#allocation10 + $0x1024] sm:$0xf] }
 0x19f   :  { %4910 = vmatpush.bf16.msra.mxu0 %v9154_v1  ;;  %v4509_v31 = vadd.f32 %v4508_v48, %v4490_v60  ;;  %v9571_v1 = vld [vmem:[#allocation10 + $0xbfc] sm:$0xf0]  ;;  %v9094_v17 = vor.u32 %v11185_v10, %v9091_v59  ;;  %v9234_v60 = vor.u32 %v11220_v56, %v9231_v54  ;;  %v9051_v48 = vld [vmem:[#allocation10 + $0x7ec] sm:$0xf0]  ;;  %v9191_v10 = vld [vmem:[#allocation10 + $0x904] sm:$0xf0] }
 0x1a0   :  { %4929 = vmatpush.bf16.msra.mxu1 %v9314_v6  ;;  %v9254_v6 = vor.u32 %v11225_v52, %v9251_v11  ;;  %v11290_v59 = vld [vmem:[#allocation10 + $0xb74] sm:$0xf]  ;;  %v9511_v52 = vld [vmem:[#allocation10 + $0xb84] sm:$0xf0]  ;;  %v11285_v54 = vld [vmem:[#allocation10 + $0xb4c] sm:$0xf] }
 0x1a1   :  { %4948 = vmatpush.bf16.msra.mxu2 %v9474_v4  ;;  %v4539_v24 = vpop.f32.mrf.mxu0  ;;  %v4558_v50 = vpop.f32.mrf.mxu1  ;;  %v4528_v61 = vadd.f32 %v4527_v57, %v4509_v31  ;;  %4842 = vmatmul.bf16.vlgmr.msrb.gmra.mxu0 %v11915_v14  ;;  %v11305_v4 = vld [vmem:[#allocation10 + $0xbec] sm:$0xf]  ;;  %v11215_v57 = vld [vmem:[#allocation10 + $0x91c] sm:$0xf]  ;;  %v9374_v31 = vor.u32 %v11255_v29, %v9371_v30  ;;  %v9514_v56 = vor.u32 %v11290_v59, %v9511_v52  ;;  %v9491_v51 = vld [vmem:[#allocation10 + $0xb5c] sm:$0xf0] }
 0x1a2   :  { %4967 = vmatpush.bf16.msra.mxu3 %v9634_v40  ;;  %v4559_v16 = vadd.f32 %v4558_v50, %v4539_v24  ;;  %4861 = vmatmul.bf16.vlgmr.msrb.gmra.mxu1 %v11917_v18  ;;  %v9574_v40 = vor.u32 %v11305_v4, %v9571_v1  ;;  %v9054_v24 = vor.u32 %v11175_v45, %v9051_v48  ;;  %v11250_v50 = vld [vmem:[#allocation10 + $0xa34] sm:$0xf]  ;;  %v10271_v45 = vld [vmem:[#allocation10 + $0x1174] sm:$0xf0]  ;;  %v9931_v59 = vld [vmem:[#allocation10 + $0xecc] sm:$0xf0] }
 0x1a3   :  { %4911 = vmatpush.bf16.msra.mxu0 %v9134_v0  ;;  %v5357_v46 = vmax.f32 %v4528_v61, 0.0  ;;  %4880 = vmatmul.bf16.vlgmr.msrb.gmra.mxu2 %v13442_v12  ;;  %v11210_v61 = vld [vmem:[#allocation10 + $0x8f4] sm:$0xf]  ;;  %v11475_v52 = vld [vmem:[#allocation10 + $0x113c] sm:$0xf] }
 0x1a4   :  { %4930 = vmatpush.bf16.msra.mxu1 %v9294_v7  ;;  %v9394_v7 = vor.u32 %v11260_v33, %v9391_v23  ;;  %v9034_v33 = vor.u32 %v11170_v22, %v9031_v43  ;;  %v9331_v23 = vld [vmem:[#allocation10 + $0xa1c] sm:$0xf0] }
 0x1a5   :  { %4949 = vmatpush.bf16.msra.mxu2 %v9454_v44  ;;  %4899 = vmatmul.bf16.vlgmr.msrb.gmra.mxu3 %v13443_v58  ;;  %5373 = vst [vmem:[#allocation2 + $0xd8] sm:$0xff] %v5357_v46  ;;  %v11245_v46 = vld [vmem:[#allocation10 + $0xa0c] sm:$0xf] }
 0x1a6   :  { %4968 = vmatpush.bf16.msra.mxu3 %v9614_v20  ;;  %v4577_v2 = vpop.f32.mrf.mxu2  ;;  %v4596_v63 = vpop.f32.mrf.mxu3  ;;  %v9074_v20 = vor.u32 %v11180_v34, %v9071_v53  ;;  %v11165_v34 = vld [vmem:[#allocation10 + $0x78c] sm:$0xf]  ;;  %v9194_v53 = vor.u32 %v11210_v61, %v9191_v10  ;;  %v9334_v29 = vor.u32 %v11245_v46, %v9331_v23  ;;  %v11355_v61 = vld [vmem:[#allocation10 + $0xd7c] sm:$0xf]  ;;  %v10071_v23 = vld [vmem:[#allocation10 + $0xfe4] sm:$0xf0] }
 0x1a7   :  { %4912 = vmatpush.bf16.msra.mxu0 %v9114_v9  ;;  %v4578_v15 = vadd.f32 %v4577_v2, %v4559_v16  ;;  %v9351_v16 = vld [vmem:[#allocation10 + $0xa44] sm:$0xf0]  ;;  %v9534_v9 = vor.u32 %v11295_v25, %v9531_v21  ;;  %v11205_v2 = vld [vmem:[#allocation10 + $0x8cc] sm:$0xf] }
 0x1a8   :  { %4931 = vmatpush.bf16.msra.mxu1 %v9274_v49 }
 0x1a9   :  { %4950 = vmatpush.bf16.msra.mxu2 %v9434_v39  ;;  %v4541_v44 = vpop.f32.mrf.mxu0  ;;  %v4560_v0 = vpop.f32.mrf.mxu1  ;;  %v12332_v37 = vadd.f32 %v4596_v63, %v4578_v15  ;;  %v9214_v39 = vor.u32 %v11215_v57, %v9211_v55  ;;  %v9171_v63 = vld [vmem:[#allocation10 + $0x8dc] sm:$0xf0]  ;;  %v10111_v15 = vld [vmem:[#allocation10 + $0x1034] sm:$0xf0]  ;;  %v9494_v57 = vor.u32 %v11285_v54, %v9491_v51  ;;  %v11470_v54 = vld [vmem:[#allocation10 + $0x1114] sm:$0xf] }
 0x1aa   :  { %4969 = vmatpush.bf16.msra.mxu3 %v9594_v27  ;;  %v4561_v3 = vadd.f32 %v4560_v0, %v4541_v44  ;;  %v13460_v44 = vld [vmem:[#allocation23_spill] sm:$0xff]  ;;  %v13461_v0 = vld [vmem:[#allocation24_spill] sm:$0xff]  ;;  %v9174_v48 = vor.u32 %v11205_v2, %v9171_v63  ;;  %v10114_v21 = vor.u32 %v11440_v36, %v10111_v15 }
 0x1ab   :  { %4913 = vmatpush.bf16.msra.mxu0 %v9094_v17  ;;  %v9354_v17 = vor.u32 %v11250_v50, %v9351_v16  ;;  %v10091_v50 = vld [vmem:[#allocation10 + $0x100c] sm:$0xf0]  ;;  %v9911_v63 = vld [vmem:[#allocation10 + $0xea4] sm:$0xf0] }
 0x1ac   :  { %4932 = vmatpush.bf16.msra.mxu1 %v9254_v6  ;;  %v9011_v6 = vld [vmem:[#allocation10 + $0x79c] sm:$0xf0]  ;;  %v10231_v51 = vld [vmem:[#allocation10 + $0x1124] sm:$0xf0] }
 0x1ad   :  { %4951 = vmatpush.bf16.msra.mxu2 %v9414_v32  ;;  %v9014_v30 = vor.u32 %v11165_v34, %v9011_v6  ;;  %v11350_v34 = vld [vmem:[#allocation10 + $0xd54] sm:$0xf]  ;;  %v9751_v6 = vld [vmem:[#allocation10 + $0xd64] sm:$0xf0] }
 0x1ae   :  { %4970 = vmatpush.bf16.msra.mxu3 %v9574_v40  ;;  %v4579_v49 = vpop.f32.mrf.mxu2  ;;  %v4598_v27 = vpop.f32.mrf.mxu3 }
 0x1af   :  { %4914 = vmatpush.bf16.msra.mxu0 %v9074_v20  ;;  %v4580_v11 = vadd.f32 %v4579_v49, %v4561_v3  ;;  %v11360_v3 = vld [vmem:[#allocation10 + $0xda4] sm:$0xf]  ;;  %v9771_v49 = vld [vmem:[#allocation10 + $0xd8c] sm:$0xf0] }
 0x1b0   :  { %4933 = vmatpush.bf16.msra.mxu1 %v9234_v60  ;;  %v11400_v20 = vld [vmem:[#allocation10 + $0xee4] sm:$0xf]  ;;  %v9951_v60 = vld [vmem:[#allocation10 + $0xef4] sm:$0xf0]  ;;  %v9774_v46 = vor.u32 %v11355_v61, %v9771_v49 }
 0x1b1   :  { %4952 = vmatpush.bf16.msra.mxu2 %v9394_v7  ;;  %v4544_v4 = vpop.f32.mrf.mxu0  ;;  %v4563_v1 = vpop.f32.mrf.mxu1  ;;  %v12334_v40 = vadd.f32 %v4598_v27, %v4580_v11  ;;  %4847 = vmatmul.bf16.gmra.mxu0 %v11932_v42  ;;  %v9791_v7 = vld [vmem:[#allocation10 + $0xdb4] sm:$0xf0]  ;;  %v9954_v22 = vor.u32 %v11400_v20, %v9951_v60  ;;  %v11395_v27 = vld [vmem:[#allocation10 + $0xebc] sm:$0xf]  ;;  %v10251_v11 = vld [vmem:[#allocation10 + $0x114c] sm:$0xf0]  ;;  %v9754_v20 = vor.u32 %v11350_v34, %v9751_v6 }
 0x1b2   :  { %4971 = vmatpush.bf16.msra.mxu3 %v9554_v5  ;;  %v4564_v32 = vadd.f32 %v4563_v1, %v4544_v4  ;;  %4866 = vmatmul.bf16.gmra.mxu1 %v11934_v47  ;;  %v11480_v5 = vld [vmem:[#allocation10 + $0x1164] sm:$0xf]  ;;  %v10031_v61 = vld [vmem:[#allocation10 + $0xf94] sm:$0xf0] }
 0x1b3   :  { %4915 = vmatpush.bf16.msra.mxu0 %v9054_v24  ;;  %4885 = vmatmul.bf16.gmra.mxu2 %v13460_v44  ;;  %v11435_v24 = vld [vmem:[#allocation10 + $0xffc] sm:$0xf]  ;;  %v10274_v43 = vor.u32 %v11480_v5, %v10271_v45  ;;  %v10234_v45 = vor.u32 %v11470_v54, %v10231_v51  ;;  %v9691_v51 = vld [vmem:[#allocation10 + $0xcec] sm:$0xf0]  ;;  %v8577_v44 = vld [vmem:[#allocation10 + $0x420] sm:$0xf] }
 0x1b4   :  { %4934 = vmatpush.bf16.msra.mxu1 %v9214_v39  ;;  %v10094_v1 = vor.u32 %v11435_v24, %v10091_v50  ;;  %v11465_v24 = vld [vmem:[#allocation10 + $0x10ec] sm:$0xf]  ;;  %v10211_v50 = vld [vmem:[#allocation10 + $0x10fc] sm:$0xf0]  ;;  %v11335_v54 = vld [vmem:[#allocation10 + $0xcdc] sm:$0xf] }
 0x1b5   :  { %4953 = vmatpush.bf16.msra.mxu2 %v9374_v31  ;;  %4904 = vmatmul.bf16.gmra.mxu3 %v13461_v0  ;;  %v9794_v31 = vor.u32 %v11360_v3, %v9791_v7  ;;  %v10978_v0 = vld [vmem:[#allocation10 + $0x1b0] sm:$0xf0] }
 0x1b6   :  { %4972 = vmatpush.bf16.msra.mxu3 %v9534_v9  ;;  %v4582_v55 = vpop.f32.mrf.mxu2  ;;  %v4601_v25 = vpop.f32.mrf.mxu3 }
 0x1b7   :  { %4916 = vmatpush.bf16.msra.mxu0 %v9034_v33  ;;  %v4583_v16 = vadd.f32 %v4582_v55, %v4564_v32  ;;  %v9934_v32 = vor.u32 %v11395_v27, %v9931_v59  ;;  %v11430_v33 = vld [vmem:[#allocation10 + $0xfd4] sm:$0xf]  ;;  %v11385_v55 = vld [vmem:[#allocation10 + $0xe6c] sm:$0xf]  ;;  %v10214_v27 = vor.u32 %v11465_v24, %v10211_v50  ;;  %v9711_v59 = vld [vmem:[#allocation10 + $0xd14] sm:$0xf0] }
 0x1b8   :  { %4935 = vmatpush.bf16.msra.mxu1 %v9194_v53  ;;  %v11390_v53 = vld [vmem:[#allocation10 + $0xe94] sm:$0xf]  ;;  %v10074_v7 = vor.u32 %v11430_v33, %v10071_v23  ;;  %v9671_v24 = vld [vmem:[#allocation10 + $0xcc4] sm:$0xf0] }
 0x1b9   :  { %4954 = vmatpush.bf16.msra.mxu2 %v9354_v17  ;;  %v4546_v39 = vpop.f32.mrf.mxu0  ;;  %v4565_v9 = vpop.f32.mrf.mxu1  ;;  %v12340_v4 = vadd.f32 %v4601_v25, %v4583_v16  ;;  %v10254_v17 = vor.u32 %v11475_v52, %v10251_v11  ;;  %v9914_v5 = vor.u32 %v11390_v53, %v9911_v63  ;;  %v13462_v25 = vld [vmem:[#allocation21_spill] sm:$0xff]  ;;  %v13464_v16 = vld [vmem:[#allocation27_spill] sm:$0xff]  ;;  %v11415_v53 = vld [vmem:[#allocation10 + $0xf5c] sm:$0xf] }
 0x1ba   :  { %4973 = vmatpush.bf16.msra.mxu3 %v9514_v56  ;;  %v4566_v10 = vadd.f32 %v4565_v9, %v4546_v39  ;;  %v13465_v39 = vld [vmem:[#allocation28_spill] sm:$0xff]  ;;  %v11380_v52 = vld [vmem:[#allocation10 + $0xe44] sm:$0xf]  ;;  %v11370_v50 = vld [vmem:[#allocation10 + $0xdf4] sm:$0xf] }
 0x1bb   :  { %4917 = vmatpush.bf16.msra.mxu0 %v9014_v30  ;;  %v10051_v30 = vld [vmem:[#allocation10 + $0xfbc] sm:$0xf0] }
 0x1bc   :  { %4936 = vmatpush.bf16.msra.mxu1 %v9174_v48  ;;  %v11345_v48 = vld [vmem:[#allocation10 + $0xd2c] sm:$0xf] }
 0x1bd   :  { %4955 = vmatpush.bf16.msra.mxu2 %v9334_v29  ;;  %v11425_v29 = vld [vmem:[#allocation10 + $0xfac] sm:$0xf] }
 0x1be   :  { %4974 = vmatpush.bf16.msra.mxu3 %v9494_v57  ;;  %v4584_v56 = vpop.f32.mrf.mxu2  ;;  %v4603_v2 = vpop.f32.mrf.mxu3  ;;  %v9731_v57 = vld [vmem:[#allocation10 + $0xd3c] sm:$0xf0]  ;;  %v10054_v9 = vor.u32 %v11425_v29, %v10051_v30  ;;  %v10171_v29 = vld [vmem:[#allocation10 + $0x10ac] sm:$0xf0] }
 0x1bf   :  { %4986 = vmatpush.bf16.msrb.mxu0 %v9794_v31  ;;  %v4585_v36 = vadd.f32 %v4584_v56, %v4566_v10  ;;  %v9891_v31 = vld [vmem:[#allocation10 + $0xe7c] sm:$0xf0]  ;;  %v11340_v10 = vld [vmem:[#allocation10 + $0xd04] sm:$0xf]  ;;  %v10011_v56 = vld [vmem:[#allocation10 + $0xf6c] sm:$0xf0] }
 0x1c0   :  { %5005 = vmatpush.bf16.msrb.mxu1 %v9954_v22  ;;  %v9734_v22 = vor.u32 %v11345_v48, %v9731_v57  ;;  %v9894_v49 = vor.u32 %v11385_v55, %v9891_v31  ;;  %v9714_v6 = vor.u32 %v11340_v10, %v9711_v59  ;;  %v10014_v30 = vor.u32 %v11415_v53, %v10011_v56  ;;  %v9991_v48 = vld [vmem:[#allocation10 + $0xf44] sm:$0xf0]  ;;  %v11330_v31 = vld [vmem:[#allocation10 + $0xcb4] sm:$0xf]  ;;  %v11405_v59 = vld [vmem:[#allocation10 + $0xf0c] sm:$0xf] }
 0x1c1   :  { %5024 = vmatpush.bf16.msrb.mxu2 %v10114_v21  ;;  %v12342_v15 = vpop.f32.mrf.mxu0  ;;  %v12344_v3 = vpop.f32.mrf.mxu1  ;;  %v12346_v60 = vadd.f32 %v4603_v2, %v4585_v36  ;;  %4918 = vmatmul.bf16.vlgmr.msra.gmra.mxu0 %v13462_v25  ;;  %v13463_v21 = vld [vmem:[#allocation22_spill] sm:$0xff]  ;;  %v11365_v56 = vld [vmem:[#allocation10 + $0xdcc] sm:$0xf] }
 0x1c2   :  { %5043 = vmatpush.bf16.msrb.mxu3 %v10274_v43  ;;  %4937 = vmatmul.bf16.vlgmr.msra.gmra.mxu1 %v13463_v21  ;;  %v11420_v43 = vld [vmem:[#allocation10 + $0xf84] sm:$0xf]  ;;  %v11375_v36 = vld [vmem:[#allocation10 + $0xe1c] sm:$0xf]  ;;  %v11058_v21 = vld [vmem:[#allocation10 + $0x430] sm:$0xf0] }
 0x1c3   :  { %4987 = vmatpush.bf16.msrb.mxu0 %v9774_v46  ;;  %4956 = vmatmul.bf16.vlgmr.msra.gmra.mxu2 %v13464_v16  ;;  %v9871_v46 = vld [vmem:[#allocation10 + $0xe54] sm:$0xf0]  ;;  %v10034_v34 = vor.u32 %v11420_v43, %v10031_v61  ;;  %v9831_v43 = vld [vmem:[#allocation10 + $0xe04] sm:$0xf0]  ;;  %v11450_v61 = vld [vmem:[#allocation10 + $0x1074] sm:$0xf] }
 0x1c4   :  { %5006 = vmatpush.bf16.msrb.mxu1 %v9934_v32  ;;  %v11460_v32 = vld [vmem:[#allocation10 + $0x10c4] sm:$0xf]  ;;  %v9874_v2 = vor.u32 %v11380_v52, %v9871_v46  ;;  %v9674_v46 = vor.u32 %v11330_v31, %v9671_v24  ;;  %v8677_v31 = vld [vmem:[#allocation10 + $0x4e8] sm:$0xf]  ;;  %v11083_v24 = vld [vmem:[#allocation10 + $0x4f8] sm:$0xf0] }
 0x1c5   :  { %5025 = vmatpush.bf16.msrb.mxu2 %v10094_v1  ;;  %4975 = vmatmul.bf16.vlgmr.msra.gmra.mxu3 %v13465_v39  ;;  %v8497_v39 = vld [vmem:[#allocation10 + $0x380] sm:$0xf]  ;;  %v11038_v16 = vld [vmem:[#allocation10 + $0x390] sm:$0xf0] }
 0x1c6   :  { %5044 = vmatpush.bf16.msrb.mxu3 %v10254_v17  ;;  %v12352_v11 = vpop.f32.mrf.mxu2  ;;  %v12354_v1 = vpop.f32.mrf.mxu3  ;;  %v10191_v17 = vld [vmem:[#allocation10 + $0x10d4] sm:$0xf0] }
 0x1c7   :  { %4988 = vmatpush.bf16.msrb.mxu0 %v9754_v20  ;;  %v10194_v63 = vor.u32 %v11460_v32, %v10191_v17  ;;  %v11455_v20 = vld [vmem:[#allocation10 + $0x109c] sm:$0xf]  ;;  %v9971_v32 = vld [vmem:[#allocation10 + $0xf1c] sm:$0xf0]  ;;  %v11325_v17 = vld [vmem:[#allocation10 + $0xc8c] sm:$0xf] }
 0x1c8   :  { %5007 = vmatpush.bf16.msrb.mxu1 %v9914_v5  ;;  %v9694_v5 = vor.u32 %v11335_v54, %v9691_v51  ;;  %v10174_v55 = vor.u32 %v11455_v20, %v10171_v29  ;;  %v13466_v54 = vld [vmem:[#allocation25_spill] sm:$0xff]  ;;  %v13467_v51 = vld [vmem:[#allocation26_spill] sm:$0xff]  ;;  %v13468_v29 = vld [vmem:[#allocation32_spill] sm:$0xff] }
 0x1c9   :  { %5026 = vmatpush.bf16.msrb.mxu2 %v10074_v7  ;;  %v12356_v33 = vpop.f32.mrf.mxu0  ;;  %v12358_v23 = vpop.f32.mrf.mxu1  ;;  %v9851_v7 = vld [vmem:[#allocation10 + $0xe2c] sm:$0xf0]  ;;  %v11043_v20 = vld [vmem:[#allocation10 + $0x3b8] sm:$0xf0] }
 0x1ca   :  { %5045 = vmatpush.bf16.msrb.mxu3 %v10234_v45  ;;  %v11410_v45 = vld [vmem:[#allocation10 + $0xf34] sm:$0xf]  ;;  %v9854_v57 = vor.u32 %v11375_v36, %v9851_v7  ;;  %v10131_v36 = vld [vmem:[#allocation10 + $0x105c] sm:$0xf0]  ;;  %v8517_v7 = vld [vmem:[#allocation10 + $0x3a8] sm:$0xf] }
 0x1cb   :  { %4989 = vmatpush.bf16.msrb.mxu0 %v9734_v22  ;;  %v9994_v52 = vor.u32 %v11410_v45, %v9991_v48  ;;  %v8357_v45 = vld [vmem:[#allocation10 + $0x268] sm:$0xf]  ;;  %v9974_v48 = vor.u32 %v11405_v59, %v9971_v32  ;;  %v8177_v32 = vld [vmem:[#allocation10 + $0x100] sm:$0xf] }
 0x1cc   :  { %5008 = vmatpush.bf16.msrb.mxu1 %v9894_v49  ;;  %v10151_v49 = vld [vmem:[#allocation10 + $0x1084] sm:$0xf0] }
 0x1cd   :  { %5027 = vmatpush.bf16.msrb.mxu2 %v10054_v9  ;;  %v10154_v53 = vor.u32 %v11450_v61, %v10151_v49 }
 0x1ce   :  { %5046 = vmatpush.bf16.msrb.mxu3 %v10214_v27  ;;  %v12360_v9 = vpop.f32.mrf.mxu2  ;;  %v12362_v22 = vpop.f32.mrf.mxu3 }
 0x1cf   :  { %4990 = vmatpush.bf16.msrb.mxu0 %v9714_v6  ;;  %v9834_v6 = vor.u32 %v11370_v50, %v9831_v43 }
 0x1d0   :  { %5009 = vmatpush.bf16.msrb.mxu1 %v9874_v2  ;;  %v9811_v2 = vld [vmem:[#allocation10 + $0xddc] sm:$0xf0] }
 0x1d1   :  { %5028 = vmatpush.bf16.msrb.mxu2 %v10034_v34  ;;  %v12364_v27 = vpop.f32.mrf.mxu0  ;;  %v12366_v10 = vpop.f32.mrf.mxu1  ;;  %v9651_v34 = vld [vmem:[#allocation10 + $0xc9c] sm:$0xf0]  ;;  %4923 = vmatmul.bf16.gmra.mxu0 %v13466_v54  ;;  %v9814_v50 = vor.u32 %v11365_v56, %v9811_v2  ;;  %v11078_v56 = vld [vmem:[#allocation10 + $0x4d0] sm:$0xf0]  ;;  %v8498_v2 = vor.u32 %v11038_v16, %v8497_v39  ;;  %v11068_v54 = vld [vmem:[#allocation10 + $0x480] sm:$0xf0] }
 0x1d2   :  { %5047 = vmatpush.bf16.msrb.mxu3 %v10194_v63  ;;  %v11445_v63 = vld [vmem:[#allocation10 + $0x104c] sm:$0xf]  ;;  %4942 = vmatmul.bf16.gmra.mxu1 %v13467_v51 }
 0x1d3   :  { %4991 = vmatpush.bf16.msrb.mxu0 %v9694_v5  ;;  %4961 = vmatmul.bf16.gmra.mxu2 %v13454_v26  ;;  %v10963_v5 = vld [vmem:[#allocation10 + $0x138] sm:$0xf0]  ;;  %v10134_v43 = vor.u32 %v11445_v63, %v10131_v36  ;;  %v8518_v26 = vor.u32 %v11043_v20, %v8517_v7  ;;  %v8477_v20 = vld [vmem:[#allocation10 + $0x358] sm:$0xf] }
 0x1d4   :  { %5010 = vmatpush.bf16.msrb.mxu1 %v9854_v57  ;;  %v9654_v57 = vor.u32 %v11325_v17, %v9651_v34  ;;  %v10958_v17 = vld [vmem:[#allocation10 + $0x110] sm:$0xf0]  ;;  %v8337_v34 = vld [vmem:[#allocation10 + $0x240] sm:$0xf] }
 0x1d5   :  { %5029 = vmatpush.bf16.msrb.mxu2 %v10014_v30  ;;  %4980 = vmatmul.bf16.gmra.mxu3 %v13468_v29  ;;  %v8197_v30 = vld [vmem:[#allocation10 + $0x128] sm:$0xf]  ;;  %v8178_v63 = vor.u32 %v10958_v17, %v8177_v32  ;;  %v8137_v17 = vld [vmem:[#allocation10 + $0xb0] sm:$0xf] }
 0x1d6   :  { %5048 = vmatpush.bf16.msrb.mxu3 %v10174_v55  ;;  %v11003_v55 = vld [vmem:[#allocation10 + $0x278] sm:$0xf0]  ;;  %v12372_v61 = vpop.f32.mrf.mxu2  ;;  %v8198_v29 = vor.u32 %v10963_v5, %v8197_v30  ;;  %v11033_v30 = vld [vmem:[#allocation10 + $0x368] sm:$0xf0]  ;;  %v8157_v5 = vld [vmem:[#allocation10 + $0xd8] sm:$0xf] }
 0x1d7   :  { %4992 = vmatpush.bf16.msrb.mxu0 %v9674_v46  ;;  %v12374_v49 = vpop.f32.mrf.mxu3  ;;  %v8358_v59 = vor.u32 %v11003_v55, %v8357_v45  ;;  %v8678_v46 = vor.u32 %v11083_v24, %v8677_v31  ;;  %v10953_v45 = vld [vmem:[#allocation10 + $0xe8] sm:$0xf0]  ;;  %v8317_v55 = vld [vmem:[#allocation10 + $0x218] sm:$0xf]  ;;  %v8478_v24 = vor.u32 %v11033_v30, %v8477_v20  ;;  %v8437_v20 = vld [vmem:[#allocation10 + $0x308] sm:$0xf] }
 0x1d8   :  { %5011 = vmatpush.bf16.msrb.mxu1 %v9834_v6  ;;  %v10998_v6 = vld [vmem:[#allocation10 + $0x250] sm:$0xf0]  ;;  %v10993_v31 = vld [vmem:[#allocation10 + $0x228] sm:$0xf0]  ;;  %v11023_v30 = vld [vmem:[#allocation10 + $0x318] sm:$0xf0] }
 0x1d9   :  { %5030 = vmatpush.bf16.msrb.mxu2 %v9994_v52  ;;  %v12376_v51 = vpop.f32.mrf.mxu0  ;;  %v12378_v52 = vpop.f32.mrf.mxu1  ;;  %v8338_v36 = vor.u32 %v10998_v6, %v8337_v34  ;;  %v10948_v34 = vld [vmem:[#allocation10 + $0xc0] sm:$0xf0]  ;;  %v8297_v6 = vld [vmem:[#allocation10 + $0x1f0] sm:$0xf] }
 0x1da   :  { %5049 = vmatpush.bf16.msrb.mxu3 %v10154_v53  ;;  %v8657_v53 = vld [vmem:[#allocation10 + $0x4c0] sm:$0xf] }
 0x1db   :  { %4993 = vmatpush.bf16.msrb.mxu0 %v9654_v57  ;;  %v8658_v7 = vor.u32 %v11078_v56, %v8657_v53  ;;  %v13469_v53 = vld [vmem:[#allocation29_spill] sm:$0xff]  ;;  %v13470_v56 = vld [vmem:[#allocation30_spill] sm:$0xff] }
 0x1dc   :  { %5012 = vmatpush.bf16.msrb.mxu1 %v9814_v50  ;;  %v8158_v50 = vor.u32 %v10953_v45, %v8157_v5 }
 0x1dd   :  { %5031 = vmatpush.bf16.msrb.mxu2 %v9974_v48 }
 0x1de   :  { %5050 = vmatpush.bf16.msrb.mxu3 %v10134_v43  ;;  %v12380_v48 = vpop.f32.mrf.mxu2  ;;  %v8457_v43 = vld [vmem:[#allocation10 + $0x330] sm:$0xf] }
 0x1df   :  { %5062 = vmatpush.bf16.msra.mxu0 %v8198_v29  ;;  %v12382_v57 = vpop.f32.mrf.mxu3  ;;  %v11073_v29 = vld [vmem:[#allocation10 + $0x4a8] sm:$0xf0] }
 0x1e0   :  { %5081 = vmatpush.bf16.msra.mxu1 %v8358_v59  ;;  %v11028_v59 = vld [vmem:[#allocation10 + $0x340] sm:$0xf0] }
 0x1e1   :  { %5100 = vmatpush.bf16.msra.mxu2 %v8518_v26  ;;  %v8637_v26 = vld [vmem:[#allocation10 + $0x498] sm:$0xf]  ;;  %v12384_v16 = vpop.f32.mrf.mxu0  ;;  %v12386_v39 = vpop.f32.mrf.mxu1  ;;  %4994 = vmatmul.bf16.vlgmr.msrb.gmra.mxu0 %v13469_v53  ;;  %v8597_v53 = vld [vmem:[#allocation10 + $0x448] sm:$0xf] }
 0x1e2   :  { %5119 = vmatpush.bf16.msra.mxu3 %v8678_v46  ;;  %v8318_v46 = vor.u32 %v10993_v31, %v8317_v55  ;;  %v8638_v32 = vor.u32 %v11073_v29, %v8637_v26  ;;  %5013 = vmatmul.bf16.vlgmr.msrb.gmra.mxu1 %v13470_v56  ;;  %v8117_v55 = vld [vmem:[#allocation10 + $0x88] sm:$0xf]  ;;  %v10943_v31 = vld [vmem:[#allocation10 + $0x98] sm:$0xf0] }
 0x1e3   :  { %5063 = vmatpush.bf16.msra.mxu0 %v8178_v63  ;;  %v8617_v63 = vld [vmem:[#allocation10 + $0x470] sm:$0xf]  ;;  %5032 = vmatmul.bf16.vlgmr.msrb.gmra.mxu2 %v13456_v38  ;;  %v8277_v26 = vld [vmem:[#allocation10 + $0x1c8] sm:$0xf]  ;;  %v10983_v38 = vld [vmem:[#allocation10 + $0x1d8] sm:$0xf0] }
 0x1e4   :  { %5082 = vmatpush.bf16.msra.mxu1 %v8338_v36  ;;  %v8458_v36 = vor.u32 %v11028_v59, %v8457_v43  ;;  %v8618_v45 = vor.u32 %v11068_v54, %v8617_v63  ;;  %v4616_v43 = vadd.f32 %v12342_v15, %v12332_v37  ;;  %v8438_v54 = vor.u32 %v11023_v30, %v8437_v20  ;;  %v8257_v63 = vld [vmem:[#allocation10 + $0x1a0] sm:$0xf] }
 0x1e5   :  { %5101 = vmatpush.bf16.msra.mxu2 %v8498_v2  ;;  %v10988_v2 = vld [vmem:[#allocation10 + $0x200] sm:$0xf0]  ;;  %5051 = vmatmul.bf16.vlgmr.msrb.gmra.mxu3 %v13457_v19  ;;  %v11063_v19 = vld [vmem:[#allocation10 + $0x458] sm:$0xf0]  ;;  %v8118_v59 = vor.u32 %v10943_v31, %v8117_v55  ;;  %v8258_v20 = vor.u32 %v10978_v0, %v8257_v63  ;;  %v8578_v30 = vor.u32 %v11058_v21, %v8577_v44  ;;  %v8557_v31 = vld [vmem:[#allocation10 + $0x3f8] sm:$0xf] }
 0x1e6   :  { %5120 = vmatpush.bf16.msra.mxu3 %v8658_v7  ;;  %v8138_v7 = vor.u32 %v10948_v34, %v8137_v17  ;;  %v8298_v5 = vor.u32 %v10988_v2, %v8297_v6  ;;  %v12392_v29 = vpop.f32.mrf.mxu2  ;;  %v8278_v17 = vor.u32 %v10983_v38, %v8277_v26  ;;  %v8598_v34 = vor.u32 %v11063_v19, %v8597_v53  ;;  %v8097_v6 = vld [vmem:[#allocation10 + $0x60] sm:$0xf]  ;;  %v10938_v2 = vld [vmem:[#allocation10 + $0x70] sm:$0xf0]  ;;  %v8077_v38 = vld [vmem:[#allocation10 + $0x38] sm:$0xf] }
 0x1e7   :  { %5064 = vmatpush.bf16.msra.mxu0 %v8158_v50  ;;  %v4635_v25 = vadd.f32 %v12344_v3, %v4616_v43  ;;  %v8098_v15 = vor.u32 %v10938_v2, %v8097_v6  ;;  %v10933_v19 = vld [vmem:[#allocation10 + $0x48] sm:$0xf0]  ;;  %v8237_v53 = vld [vmem:[#allocation10 + $0x178] sm:$0xf]  ;;  %v4618_v43 = vadd.f32 %v12356_v33, %v12334_v40  ;;  %v8377_v44 = vld [vmem:[#allocation10 + $0x290] sm:$0xf] }
 0x1e8   :  { %5083 = vmatpush.bf16.msra.mxu1 %v8318_v46  ;;  %v12394_v56 = vpop.f32.mrf.mxu3  ;;  %v8417_v46 = vld [vmem:[#allocation10 + $0x2e0] sm:$0xf]  ;;  %v10973_v3 = vld [vmem:[#allocation10 + $0x188] sm:$0xf0]  ;;  %v8078_v21 = vor.u32 %v10933_v19, %v8077_v38  ;;  %v10968_v6 = vld [vmem:[#allocation10 + $0x160] sm:$0xf0] }
 0x1e9   :  { %5102 = vmatpush.bf16.msra.mxu2 %v8478_v24  ;;  %v12396_v24 = vpop.f32.mrf.mxu0  ;;  %v12398_v50 = vpop.f32.mrf.mxu1  ;;  %v11053_v26 = vld [vmem:[#allocation10 + $0x408] sm:$0xf0]  ;;  %v8537_v2 = vld [vmem:[#allocation10 + $0x3d0] sm:$0xf]  ;;  %v13472_v63 = vld [vmem:[#allocation34_spill] sm:$0xff] }
 0x1ea   :  { %5121 = vmatpush.bf16.msra.mxu3 %v8638_v32  ;;  %v11018_v32 = vld [vmem:[#allocation10 + $0x2f0] sm:$0xf0]  ;;  %v8997_v38 = vld [vmem:[#allocation10 + $0x768] sm:$0xf] }
 0x1eb   :  { %5065 = vmatpush.bf16.msra.mxu0 %v8138_v7  ;;  %v8418_v37 = vor.u32 %v11018_v32, %v8417_v46  ;;  %v11013_v7 = vld [vmem:[#allocation10 + $0x2c8] sm:$0xf0]  ;;  %v10928_v46 = vld [vmem:[#allocation10 + $0x20] sm:$0xf0]  ;;  %v8238_v32 = vor.u32 %v10973_v3, %v8237_v53  ;;  %v13471_v33 = vld [vmem:[#allocation33_spill] sm:$0xff] }
 0x1ec   :  { %5084 = vmatpush.bf16.msra.mxu1 %v8298_v5  ;;  %v4654_v5 = vadd.f32 %v12352_v11, %v4635_v25  ;;  %v11008_v25 = vld [vmem:[#allocation10 + $0x2a0] sm:$0xf0]  ;;  %v8057_v11 = vld [vmem:[#allocation10 + $0x10] sm:$0xf]  ;;  %v9317_v3 = vld [vmem:[#allocation10 + $0x9e8] sm:$0xf] }
 0x1ed   :  { %5103 = vmatpush.bf16.msra.mxu2 %v8458_v36  ;;  %v8397_v36 = vld [vmem:[#allocation10 + $0x2b8] sm:$0xf]  ;;  %v8058_v53 = vor.u32 %v10928_v46, %v8057_v11  ;;  %v8817_v46 = vld [vmem:[#allocation10 + $0x600] sm:$0xf] }
 0x1ee   :  { %5122 = vmatpush.bf16.msra.mxu3 %v8618_v45  ;;  %v12404_v45 = vpop.f32.mrf.mxu2  ;;  %v8398_v0 = vor.u32 %v11013_v7, %v8397_v36  ;;  %v4673_v40 = vadd.f32 %v12354_v1, %v4654_v5  ;;  %v11203_v36 = vld [vmem:[#allocation10 + $0x8b8] sm:$0xf0]  ;;  %v4637_v7 = vadd.f32 %v12358_v23, %v4618_v43  ;;  %v8378_v1 = vor.u32 %v11008_v25, %v8377_v44 }
 0x1ef   :  { %5066 = vmatpush.bf16.msra.mxu0 %v8118_v59  ;;  %v11163_v5 = vld [vmem:[#allocation10 + $0x778] sm:$0xf0]  ;;  %v4621_v44 = vadd.f32 %v12364_v27, %v12340_v4 }
 0x1f0   :  { %5085 = vmatpush.bf16.msra.mxu1 %v8278_v17  ;;  %v12406_v55 = vpop.f32.mrf.mxu3  ;;  %v8558_v17 = vor.u32 %v11053_v26, %v8557_v31  ;;  %v4692_v19 = vadd.f32 %v12384_v16, %v4673_v40  ;;  %v11243_v31 = vld [vmem:[#allocation10 + $0x9f8] sm:$0xf0]  ;;  %v4656_v26 = vadd.f32 %v12360_v9, %v4637_v7  ;;  %v9137_v16 = vld [vmem:[#allocation10 + $0x880] sm:$0xf]  ;;  %v8998_v9 = vor.u32 %v11163_v5, %v8997_v38  ;;  %v11238_v40 = vld [vmem:[#allocation10 + $0x9d0] sm:$0xf0] }
 0x1f1   :  { %5104 = vmatpush.bf16.msra.mxu2 %v8438_v54  ;;  %v12410_v54 = vpop.f32.mrf.mxu0  ;;  %v12412_v59 = vpop.f32.mrf.mxu1  ;;  %4999 = vmatmul.bf16.gmra.mxu0 %v13471_v33  ;;  %v9318_v11 = vor.u32 %v11243_v31, %v9317_v3  ;;  %v11193_v38 = vld [vmem:[#allocation10 + $0x868] sm:$0xf0]  ;;  %v9277_v5 = vld [vmem:[#allocation10 + $0x998] sm:$0xf] }
 0x1f2   :  { %5123 = vmatpush.bf16.msra.mxu3 %v8598_v34  ;;  %v8217_v34 = vld [vmem:[#allocation10 + $0x150] sm:$0xf]  ;;  %5018 = vmatmul.bf16.gmra.mxu1 %v13472_v63  ;;  %v11233_v3 = vld [vmem:[#allocation10 + $0x9a8] sm:$0xf0] }
 0x1f3   :  { %5067 = vmatpush.bf16.msra.mxu0 %v8098_v15  ;;  %v9157_v15 = vld [vmem:[#allocation10 + $0x8a8] sm:$0xf]  ;;  %5037 = vmatmul.bf16.gmra.mxu2 %v13458_v28  ;;  %v8218_v23 = vor.u32 %v10968_v6, %v8217_v34  ;;  %v4711_v34 = vadd.f32 %v12386_v39, %v4692_v19  ;;  %v11158_v6 = vld [vmem:[#allocation10 + $0x750] sm:$0xf0]  ;;  %v8797_v19 = vld [vmem:[#allocation10 + $0x5d8] sm:$0xf] }
 0x1f4   :  { %5086 = vmatpush.bf16.msra.mxu1 %v8258_v20  ;;  %v8837_v20 = vld [vmem:[#allocation10 + $0x628] sm:$0xf]  ;;  %v9158_v63 = vor.u32 %v11203_v36, %v9157_v15  ;;  %v4640_v36 = vadd.f32 %v12366_v10, %v4621_v44  ;;  %v11153_v10 = vld [vmem:[#allocation10 + $0x728] sm:$0xf0] }
 0x1f5   :  { %5105 = vmatpush.bf16.msra.mxu2 %v8418_v37  ;;  %v11048_v37 = vld [vmem:[#allocation10 + $0x3e0] sm:$0xf0]  ;;  %5056 = vmatmul.bf16.gmra.mxu3 %v13459_v62  ;;  %v4730_v4 = vadd.f32 %v12392_v29, %v4711_v34  ;;  %v9257_v34 = vld [vmem:[#allocation10 + $0x970] sm:$0xf] }
 0x1f6   :  { %5124 = vmatpush.bf16.msra.mxu3 %v8578_v30  ;;  %v11123_v30 = vld [vmem:[#allocation10 + $0x638] sm:$0xf0]  ;;  %v8538_v43 = vor.u32 %v11048_v37, %v8537_v2  ;;  %v12422_v28 = vpop.f32.mrf.mxu2  ;;  %v9297_v2 = vld [vmem:[#allocation10 + $0x9c0] sm:$0xf]  ;;  %v4675_v37 = vadd.f32 %v12362_v22, %v4656_v26  ;;  %v4659_v22 = vadd.f32 %v12372_v61, %v4640_v36 }
 0x1f7   :  { %5068 = vmatpush.bf16.msra.mxu0 %v8078_v21  ;;  %v8838_v33 = vor.u32 %v11123_v30, %v8837_v20  ;;  %v9298_v7 = vor.u32 %v11238_v40, %v9297_v2  ;;  %v9117_v30 = vld [vmem:[#allocation10 + $0x858] sm:$0xf]  ;;  %v4749_v29 = vadd.f32 %v12394_v56, %v4730_v4  ;;  %v11103_v36 = vld [vmem:[#allocation10 + $0x598] sm:$0xf0] }
 0x1f8   :  { %5087 = vmatpush.bf16.msra.mxu1 %v8238_v32  ;;  %v12424_v62 = vpop.f32.mrf.mxu3  ;;  %v11118_v32 = vld [vmem:[#allocation10 + $0x610] sm:$0xf0]  ;;  %v4694_v20 = vadd.f32 %v12396_v24, %v4675_v37  ;;  %v4623_v24 = vadd.f32 %v12376_v51, %v12346_v60  ;;  %v9118_v56 = vor.u32 %v11193_v38, %v9117_v30  ;;  %v4678_v44 = vadd.f32 %v12374_v49, %v4659_v22  ;;  %v9077_v49 = vld [vmem:[#allocation10 + $0x808] sm:$0xf]  ;;  %v11223_v30 = vld [vmem:[#allocation10 + $0x958] sm:$0xf0] }
 0x1f9   :  { %5106 = vmatpush.bf16.msra.mxu2 %v8398_v0  ;;  %v11198_v0 = vld [vmem:[#allocation10 + $0x890] sm:$0xf0]  ;;  %v12428_v21 = vpop.f32.mrf.mxu0  ;;  %v12430_v25 = vpop.f32.mrf.mxu1  ;;  %v8818_v15 = vor.u32 %v11118_v32, %v8817_v46  ;;  %v8777_v46 = vld [vmem:[#allocation10 + $0x5b0] sm:$0xf]  ;;  %v11108_v32 = vld [vmem:[#allocation10 + $0x5c0] sm:$0xf0] }
 0x1fa   :  { %5125 = vmatpush.bf16.msra.mxu3 %v8558_v17  ;;  %v8977_v17 = vld [vmem:[#allocation10 + $0x740] sm:$0xf]  ;;  %v9138_v27 = vor.u32 %v11198_v0, %v9137_v16  ;;  %v4713_v61 = vadd.f32 %v12398_v50, %v4694_v20  ;;  %v9097_v16 = vld [vmem:[#allocation10 + $0x830] sm:$0xf]  ;;  %v11188_v0 = vld [vmem:[#allocation10 + $0x840] sm:$0xf0]  ;;  %v4642_v2 = vadd.f32 %v12378_v52, %v4623_v24  ;;  %v4697_v40 = vadd.f32 %v12410_v54, %v4678_v44 }
 0x1fb   :  { %5069 = vmatpush.bf16.msra.mxu0 %v8058_v53  ;;  %v8978_v39 = vor.u32 %v11158_v6, %v8977_v17  ;;  %v8957_v53 = vld [vmem:[#allocation10 + $0x718] sm:$0xf]  ;;  %v8937_v17 = vld [vmem:[#allocation10 + $0x6f0] sm:$0xf]  ;;  %v11148_v50 = vld [vmem:[#allocation10 + $0x700] sm:$0xf0]  ;;  %v8778_v4 = vor.u32 %v11108_v32, %v8777_v46 }
 0x1fc   :  { %5088 = vmatpush.bf16.msra.mxu1 %v8218_v23  ;;  %v4732_v60 = vadd.f32 %v12404_v45, %v4713_v61  ;;  %v11228_v6 = vld [vmem:[#allocation10 + $0x980] sm:$0xf0]  ;;  %v9098_v45 = vor.u32 %v11188_v0, %v9097_v16  ;;  %v8917_v54 = vld [vmem:[#allocation10 + $0x6c8] sm:$0xf]  ;;  %v4716_v38 = vadd.f32 %v12412_v59, %v4697_v40  ;;  %v8897_v59 = vld [vmem:[#allocation10 + $0x6a0] sm:$0xf] }
 0x1fd   :  { %5107 = vmatpush.bf16.msra.mxu2 %v8378_v1  ;;  %v11113_v1 = vld [vmem:[#allocation10 + $0x5e8] sm:$0xf0]  ;;  %v9258_v52 = vor.u32 %v11228_v6, %v9257_v34  ;;  %v9237_v20 = vld [vmem:[#allocation10 + $0x948] sm:$0xf]  ;;  %v11218_v16 = vld [vmem:[#allocation10 + $0x930] sm:$0xf0] }
 0x1fe   :  { %5126 = vmatpush.bf16.msra.mxu3 %v8538_v43  ;;  %v8798_v43 = vor.u32 %v11113_v1, %v8797_v19  ;;  %v9238_v24 = vor.u32 %v11223_v30, %v9237_v20  ;;  %v4735_v61 = vadd.f32 %v12422_v28, %v4716_v38  ;;  %v9037_v44 = vld [vmem:[#allocation10 + $0x7b8] sm:$0xf]  ;;  %v11173_v46 = vld [vmem:[#allocation10 + $0x7c8] sm:$0xf0]  ;;  %v9797_v38 = vld [vmem:[#allocation10 + $0xda8] sm:$0xf] }
 0x1ff   :  { %5138 = vmatpush.bf16.msrb.mxu0 %v8838_v33  ;;  %v12439_v33 = vpop.f32.mrf.mxu2  ;;  %v8717_v32 = vld [vmem:[#allocation10 + $0x538] sm:$0xf]  ;;  %v11213_v40 = vld [vmem:[#allocation10 + $0x908] sm:$0xf0] }
 0x200   :  { %5157 = vmatpush.bf16.msrb.mxu1 %v8998_v9  ;;  %v8958_v9 = vor.u32 %v11153_v10, %v8957_v53  ;;  %v9057_v10 = vld [vmem:[#allocation10 + $0x7e0] sm:$0xf]  ;;  %v8877_v28 = vld [vmem:[#allocation10 + $0x678] sm:$0xf]  ;;  %v4754_v34 = vadd.f32 %v12424_v62, %v4735_v61  ;;  %v11088_v62 = vld [vmem:[#allocation10 + $0x520] sm:$0xf0] }
 0x201   :  { %5176 = vmatpush.bf16.msrb.mxu2 %v9158_v63  ;;  %v12441_v63 = vpop.f32.mrf.mxu3  ;;  %v4767_v31 = vpop.f32.mrf.mxu0  ;;  %5070 = vmatmul.bf16.vlgmr.msra.gmra.mxu0 %v11911_v8  ;;  %v11183_v8 = vld [vmem:[#allocation10 + $0x818] sm:$0xf0]  ;;  %v11358_v61 = vld [vmem:[#allocation10 + $0xd90] sm:$0xf0] }
 0x202   :  { %5195 = vmatpush.bf16.msrb.mxu3 %v9318_v11  ;;  %v4786_v26 = vpop.f32.mrf.mxu1  ;;  %v4768_v23 = vadd.f32 %v4767_v31, %v4749_v29  ;;  %v9278_v11 = vor.u32 %v11233_v3, %v9277_v5  ;;  %5089 = vmatmul.bf16.vlgmr.msra.gmra.mxu1 %v11913_v13  ;;  %v4661_v13 = vadd.f32 %v12380_v48, %v4642_v2  ;;  %v11178_v5 = vld [vmem:[#allocation10 + $0x7f0] sm:$0xf0]  ;;  %v8737_v31 = vld [vmem:[#allocation10 + $0x560] sm:$0xf]  ;;  %v9197_v2 = vld [vmem:[#allocation10 + $0x8f8] sm:$0xf] }
 0x203   :  { %5139 = vmatpush.bf16.msrb.mxu0 %v8818_v15  ;;  %5108 = vmatmul.bf16.vlgmr.msra.gmra.mxu2 %v11915_v14  ;;  %v8938_v15 = vor.u32 %v11148_v50, %v8937_v17  ;;  %v4751_v14 = vadd.f32 %v12406_v55, %v4732_v60  ;;  %v9078_v53 = vor.u32 %v11183_v8, %v9077_v49  ;;  %v11133_v50 = vld [vmem:[#allocation10 + $0x688] sm:$0xf0]  ;;  %v9017_v8 = vld [vmem:[#allocation10 + $0x790] sm:$0xf] }
 0x204   :  { %5158 = vmatpush.bf16.msrb.mxu1 %v8978_v39  ;;  %v4787_v51 = vadd.f32 %v4786_v26, %v4768_v23  ;;  %v11143_v39 = vld [vmem:[#allocation10 + $0x6d8] sm:$0xf0]  ;;  %v4680_v55 = vadd.f32 %v12382_v57, %v4661_v13  ;;  %v11098_v26 = vld [vmem:[#allocation10 + $0x570] sm:$0xf0]  ;;  %v9058_v57 = vor.u32 %v11178_v5, %v9057_v10 }
 0x205   :  { %5177 = vmatpush.bf16.msrb.mxu2 %v9138_v27  ;;  %5127 = vmatmul.bf16.vlgmr.msra.gmra.mxu3 %v11917_v18  ;;  %v8757_v27 = vld [vmem:[#allocation10 + $0x588] sm:$0xf]  ;;  %v8918_v3 = vor.u32 %v11143_v39, %v8917_v54  ;;  %v8857_v54 = vld [vmem:[#allocation10 + $0x650] sm:$0xf]  ;;  %v8878_v39 = vor.u32 %v11133_v50, %v8877_v28 }
 0x206   :  { %5196 = vmatpush.bf16.msrb.mxu3 %v9298_v7  ;;  %v5346_v37 = vmax.f32 %v4787_v51, 0.0  ;;  %v8758_v29 = vor.u32 %v11103_v36, %v8757_v27  ;;  %v4699_v0 = vadd.f32 %v12428_v21, %v4680_v55  ;;  %v11093_v51 = vld [vmem:[#allocation10 + $0x548] sm:$0xf0]  ;;  %v11168_v27 = vld [vmem:[#allocation10 + $0x7a0] sm:$0xf0] }
 0x207   :  { %5140 = vmatpush.bf16.msrb.mxu0 %v8798_v43  ;;  %v4805_v18 = vpop.f32.mrf.mxu2  ;;  %v9217_v43 = vld [vmem:[#allocation10 + $0x920] sm:$0xf]  ;;  %v8697_v36 = vld [vmem:[#allocation10 + $0x510] sm:$0xf]  ;;  %v9018_v5 = vor.u32 %v11168_v27, %v9017_v8  ;;  %v9957_v55 = vld [vmem:[#allocation10 + $0xee8] sm:$0xf] }
 0x208   :  { %5159 = vmatpush.bf16.msrb.mxu1 %v8958_v9  ;;  %5362 = vst [vmem:[#allocation2 + $0x60] sm:$0xff] %v5346_v37  ;;  %v9218_v60 = vor.u32 %v11218_v16, %v9217_v43  ;;  %v4718_v49 = vadd.f32 %v12430_v25, %v4699_v0  ;;  %v9177_v25 = vld [vmem:[#allocation10 + $0x8d0] sm:$0xf]  ;;  %v9917_v27 = vld [vmem:[#allocation10 + $0xe98] sm:$0xf] }
 0x209   :  { %5178 = vmatpush.bf16.msrb.mxu2 %v9118_v56  ;;  %v4824_v7 = vpop.f32.mrf.mxu3  ;;  %v4769_v19 = vpop.f32.mrf.mxu0  ;;  %v11138_v56 = vld [vmem:[#allocation10 + $0x6b0] sm:$0xf0] }
 0x20a   :  { %5197 = vmatpush.bf16.msrb.mxu3 %v9278_v11  ;;  %v12457_v22 = vadd.f32 %v4824_v7, %v4805_v18  ;;  %v4788_v48 = vpop.f32.mrf.mxu1  ;;  %v4770_v1 = vadd.f32 %v4769_v19, %v4751_v14  ;;  %v8738_v11 = vor.u32 %v11098_v26, %v8737_v31  ;;  %v8898_v17 = vor.u32 %v11138_v56, %v8897_v59  ;;  %v11128_v18 = vld [vmem:[#allocation10 + $0x660] sm:$0xf0]  ;;  %v11363_v19 = vld [vmem:[#allocation10 + $0xdb8] sm:$0xf0]  ;;  %v9777_v59 = vld [vmem:[#allocation10 + $0xd80] sm:$0xf] }
 0x20b   :  { %5141 = vmatpush.bf16.msrb.mxu0 %v8778_v4  ;;  %v9198_v14 = vor.u32 %v11213_v40, %v9197_v2  ;;  %v11208_v7 = vld [vmem:[#allocation10 + $0x8e0] sm:$0xf0]  ;;  %v4737_v20 = vadd.f32 %v12439_v33, %v4718_v49  ;;  %v8698_v33 = vor.u32 %v11088_v62, %v8697_v36  ;;  %v9437_v2 = vld [vmem:[#allocation10 + $0xad8] sm:$0xf]  ;;  %v11273_v40 = vld [vmem:[#allocation10 + $0xae8] sm:$0xf0] }
 0x20c   :  { %5160 = vmatpush.bf16.msrb.mxu1 %v8938_v15  ;;  %v4789_v23 = vadd.f32 %v4788_v48, %v4770_v1  ;;  %v9038_v15 = vor.u32 %v11173_v46, %v9037_v44  ;;  %v9477_v48 = vld [vmem:[#allocation10 + $0xb28] sm:$0xf]  ;;  %v11283_v1 = vld [vmem:[#allocation10 + $0xb38] sm:$0xf0]  ;;  %v9457_v44 = vld [vmem:[#allocation10 + $0xb00] sm:$0xf] }
 0x20d   :  { %5179 = vmatpush.bf16.msrb.mxu2 %v9098_v45  ;;  %v9478_v26 = vor.u32 %v11283_v1, %v9477_v48  ;;  %v9937_v46 = vld [vmem:[#allocation10 + $0xec0] sm:$0xf]  ;;  %v9597_v49 = vld [vmem:[#allocation10 + $0xc18] sm:$0xf]  ;;  %v11388_v48 = vld [vmem:[#allocation10 + $0xe80] sm:$0xf0] }
 0x20e   :  { %5198 = vmatpush.bf16.msrb.mxu3 %v9258_v52  ;;  %v5350_v9 = vmax.f32 %v4789_v23, 0.0  ;;  %v8718_v52 = vor.u32 %v11093_v51, %v8717_v32  ;;  %v11398_v32 = vld [vmem:[#allocation10 + $0xed0] sm:$0xf0] }
 0x20f   :  { %5142 = vmatpush.bf16.msrb.mxu0 %v8758_v29  ;;  %v4807_v6 = vpop.f32.mrf.mxu2  ;;  %v11323_v29 = vld [vmem:[#allocation10 + $0xc78] sm:$0xf0]  ;;  %v9938_v50 = vor.u32 %v11398_v32, %v9937_v46  ;;  %v13473_v1 = vld [vmem:[#allocation21_spill] sm:$0xff]  ;;  %v9857_v46 = vld [vmem:[#allocation10 + $0xe20] sm:$0xf] }
 0x210   :  { %5161 = vmatpush.bf16.msrb.mxu1 %v8918_v3  ;;  %5366 = vst [vmem:[#allocation2 + $0xf0] sm:$0xff] %v5350_v9  ;;  %v11403_v3 = vld [vmem:[#allocation10 + $0xef8] sm:$0xf0]  ;;  %v11278_v9 = vld [vmem:[#allocation10 + $0xb10] sm:$0xf0] }
 0x211   :  { %5180 = vmatpush.bf16.msrb.mxu2 %v9078_v53  ;;  %v4826_v21 = vpop.f32.mrf.mxu3  ;;  %v4772_v45 = vpop.f32.mrf.mxu0  ;;  %5075 = vmatmul.bf16.gmra.mxu0 %v11928_v35  ;;  %v9637_v53 = vld [vmem:[#allocation10 + $0xc68] sm:$0xf]  ;;  %v8858_v35 = vor.u32 %v11128_v18, %v8857_v54  ;;  %v9958_v0 = vor.u32 %v11403_v3, %v9957_v55  ;;  %v9458_v51 = vor.u32 %v11278_v9, %v9457_v44  ;;  %v9377_v9 = vld [vmem:[#allocation10 + $0xa60] sm:$0xf]  ;;  %v11378_v32 = vld [vmem:[#allocation10 + $0xe30] sm:$0xf0] }
 0x212   :  { %5199 = vmatpush.bf16.msrb.mxu3 %v9238_v24  ;;  %v12464_v37 = vadd.f32 %v4826_v21, %v4807_v6  ;;  %v4791_v4 = vpop.f32.mrf.mxu1  ;;  %v4773_v13 = vadd.f32 %v4772_v45, %v4754_v34  ;;  %5094 = vmatmul.bf16.gmra.mxu1 %v11930_v41  ;;  %v9178_v41 = vor.u32 %v11208_v7, %v9177_v25  ;;  %v9757_v34 = vld [vmem:[#allocation10 + $0xd58] sm:$0xf]  ;;  %v11353_v21 = vld [vmem:[#allocation10 + $0xd68] sm:$0xf0]  ;;  %v9417_v7 = vld [vmem:[#allocation10 + $0xab0] sm:$0xf] }
 0x213   :  { %5143 = vmatpush.bf16.msrb.mxu0 %v8738_v11  ;;  %5113 = vmatmul.bf16.gmra.mxu2 %v11932_v42  ;;  %v4756_v24 = vadd.f32 %v12441_v63, %v4737_v20  ;;  %v9638_v16 = vor.u32 %v11323_v29, %v9637_v53  ;;  %v11318_v63 = vld [vmem:[#allocation10 + $0xc50] sm:$0xf0]  ;;  %v11313_v45 = vld [vmem:[#allocation10 + $0xc28] sm:$0xf0]  ;;  %v9758_v62 = vor.u32 %v11353_v21, %v9757_v34  ;;  %v11268_v20 = vld [vmem:[#allocation10 + $0xac0] sm:$0xf0] }
 0x214   :  { %5162 = vmatpush.bf16.msrb.mxu1 %v8898_v17  ;;  %v4792_v30 = vadd.f32 %v4791_v4, %v4773_v13  ;;  %v11393_v13 = vld [vmem:[#allocation10 + $0xea8] sm:$0xf0]  ;;  %v9438_v54 = vor.u32 %v11273_v40, %v9437_v2  ;;  %v9598_v18 = vor.u32 %v11313_v45, %v9597_v49  ;;  %v13474_v53 = vld [vmem:[#allocation22_spill] sm:$0xff]  ;;  %v9858_v34 = vor.u32 %v11378_v32, %v9857_v46  ;;  %v11490_v46 = vld [vmem:[#allocation11 + $0x30] sm:$0xff] }
 0x215   :  { %5181 = vmatpush.bf16.msrb.mxu2 %v9058_v57  ;;  %5132 = vmatmul.bf16.gmra.mxu3 %v11934_v47  ;;  %v9798_v47 = vor.u32 %v11363_v19, %v9797_v38  ;;  %v9617_v57 = vld [vmem:[#allocation10 + $0xc40] sm:$0xf]  ;;  %v9918_v25 = vor.u32 %v11393_v13, %v9917_v27  ;;  %v11308_v38 = vld [vmem:[#allocation10 + $0xc00] sm:$0xf0]  ;;  %v9897_v19 = vld [vmem:[#allocation10 + $0xe70] sm:$0xf] }
 0x216   :  { %5200 = vmatpush.bf16.msrb.mxu3 %v9218_v60  ;;  %v5354_v10 = vmax.f32 %v4792_v30, 0.0  ;;  %v9778_v60 = vor.u32 %v11358_v61, %v9777_v59  ;;  %v9618_v28 = vor.u32 %v11318_v63, %v9617_v57  ;;  %v9577_v30 = vld [vmem:[#allocation10 + $0xbf0] sm:$0xf]  ;;  %v9898_v3 = vor.u32 %v11388_v48, %v9897_v19  ;;  %v11258_v57 = vld [vmem:[#allocation10 + $0xa70] sm:$0xf0]  ;;  %v13476_v19 = vld [vmem:[#allocation24_spill] sm:$0xff] }
 0x217   :  { %5144 = vmatpush.bf16.msrb.mxu0 %v8718_v52  ;;  %v4810_v42 = vpop.f32.mrf.mxu2  ;;  %v9578_v55 = vor.u32 %v11308_v38, %v9577_v30  ;;  %v11298_v63 = vld [vmem:[#allocation10 + $0xbb0] sm:$0xf0]  ;;  %v11253_v21 = vld [vmem:[#allocation10 + $0xa48] sm:$0xf0]  ;;  %v9517_v2 = vld [vmem:[#allocation10 + $0xb78] sm:$0xf] }
 0x218   :  { %5163 = vmatpush.bf16.msrb.mxu1 %v8878_v39  ;;  %5370 = vst [vmem:[#allocation2 + $0x10] sm:$0xff] %v5354_v10  ;;  %v9737_v39 = vld [vmem:[#allocation10 + $0xd30] sm:$0xf]  ;;  %v9418_v10 = vor.u32 %v11268_v20, %v9417_v7  ;;  %v11293_v45 = vld [vmem:[#allocation10 + $0xb88] sm:$0xf0]  ;;  %v13475_v38 = vld [vmem:[#allocation23_spill] sm:$0xff] }
 0x219   :  { %5182 = vmatpush.bf16.msrb.mxu2 %v9038_v15  ;;  %v4829_v31 = vpop.f32.mrf.mxu3  ;;  %v4774_v56 = vpop.f32.mrf.mxu0  ;;  %v9337_v7 = vld [vmem:[#allocation10 + $0xa10] sm:$0xf]  ;;  %v11248_v20 = vld [vmem:[#allocation10 + $0xa20] sm:$0xf0] }
 0x21a   :  { %5201 = vmatpush.bf16.msrb.mxu3 %v9198_v14  ;;  %v12472_v23 = vadd.f32 %v4829_v31, %v4810_v42  ;;  %v4793_v43 = vpop.f32.mrf.mxu1  ;;  %v4775_v11 = vadd.f32 %v4774_v56, %v4756_v24  ;;  %v11348_v14 = vld [vmem:[#allocation10 + $0xd40] sm:$0xf0]  ;;  %v11303_v42 = vld [vmem:[#allocation10 + $0xbd8] sm:$0xf0]  ;;  %v9877_v31 = vld [vmem:[#allocation10 + $0xe48] sm:$0xf] }
 0x21b   :  { %5145 = vmatpush.bf16.msrb.mxu0 %v8698_v33  ;;  %v9738_v29 = vor.u32 %v11348_v14, %v9737_v39  ;;  %v11343_v33 = vld [vmem:[#allocation10 + $0xd18] sm:$0xf0]  ;;  %v9657_v39 = vld [vmem:[#allocation10 + $0xc90] sm:$0xf]  ;;  %v11328_v14 = vld [vmem:[#allocation10 + $0xca0] sm:$0xf0] }
 0x21c   :  { %5164 = vmatpush.bf16.msrb.mxu1 %v8858_v35  ;;  %v4794_v17 = vadd.f32 %v4793_v43, %v4775_v11  ;;  %v11263_v35 = vld [vmem:[#allocation10 + $0xa98] sm:$0xf0]  ;;  %v9697_v43 = vld [vmem:[#allocation10 + $0xce0] sm:$0xf]  ;;  %v9497_v30 = vld [vmem:[#allocation10 + $0xb50] sm:$0xf] }
 0x21d   :  { %5183 = vmatpush.bf16.msrb.mxu2 %v9018_v5  ;;  %v9717_v5 = vld [vmem:[#allocation10 + $0xd08] sm:$0xf]  ;;  %v9537_v11 = vld [vmem:[#allocation10 + $0xba0] sm:$0xf]  ;;  %v11288_v48 = vld [vmem:[#allocation10 + $0xb60] sm:$0xf0] }
 0x21e   :  { %5202 = vmatpush.bf16.msrb.mxu3 %v9178_v41  ;;  %v5358_v6 = vmax.f32 %v4794_v17, 0.0  ;;  %v9718_v61 = vor.u32 %v11343_v33, %v9717_v5  ;;  %v10117_v5 = vld [vmem:[#allocation10 + $0x1028] sm:$0xf]  ;;  %v11443_v33 = vld [vmem:[#allocation10 + $0x1038] sm:$0xf0] }
 0x21f   :  { %5214 = vmatpush.bf16.msra.mxu0 %v9478_v26  ;;  %v4812_v4 = vpop.f32.mrf.mxu2 }
 0x220   :  { %5233 = vmatpush.bf16.msra.mxu1 %v9638_v16  ;;  %5374 = vst [vmem:[#allocation2 + $0x80] sm:$0xff] %v5358_v6  ;;  %v11338_v16 = vld [vmem:[#allocation10 + $0xcf0] sm:$0xf0]  ;;  %v9357_v6 = vld [vmem:[#allocation10 + $0xa38] sm:$0xf] }
 0x221   :  { %5252 = vmatpush.bf16.msra.mxu2 %v9798_v47  ;;  %v4831_v8 = vpop.f32.mrf.mxu3  ;;  %v12476_v52 = vpop.f32.mrf.mxu0  ;;  %5146 = vmatmul.bf16.vlgmr.msrb.gmra.mxu0 %v13442_v12  ;;  %v9397_v12 = vld [vmem:[#allocation10 + $0xa88] sm:$0xf]  ;;  %v11383_v47 = vld [vmem:[#allocation10 + $0xe58] sm:$0xf0]  ;;  %v9698_v17 = vor.u32 %v11338_v16, %v9697_v43 }
 0x222   :  { %5271 = vmatpush.bf16.msra.mxu3 %v9958_v0  ;;  %v12474_v15 = vadd.f32 %v4831_v8, %v4812_v4  ;;  %v12478_v36 = vpop.f32.mrf.mxu1  ;;  %5165 = vmatmul.bf16.vlgmr.msrb.gmra.mxu1 %v13443_v58  ;;  %v9557_v58 = vld [vmem:[#allocation10 + $0xbc8] sm:$0xf]  ;;  %v9398_v56 = vor.u32 %v11263_v35, %v9397_v12  ;;  %v9878_v44 = vor.u32 %v11383_v47, %v9877_v31  ;;  %v9837_v4 = vld [vmem:[#allocation10 + $0xdf8] sm:$0xf]  ;;  %v11373_v8 = vld [vmem:[#allocation10 + $0xe08] sm:$0xf0] }
 0x223   :  { %5215 = vmatpush.bf16.msra.mxu0 %v9458_v51  ;;  %5184 = vmatmul.bf16.vlgmr.msrb.gmra.mxu2 %v13473_v1  ;;  %v9558_v0 = vor.u32 %v11303_v42, %v9557_v58  ;;  %v9677_v51 = vld [vmem:[#allocation10 + $0xcb8] sm:$0xf]  ;;  %v9817_v1 = vld [vmem:[#allocation10 + $0xdd0] sm:$0xf]  ;;  %v10277_v12 = vld [vmem:[#allocation10 + $0x1168] sm:$0xf]  ;;  %v9498_v58 = vor.u32 %v11288_v48, %v9497_v30 }
 0x224   :  { %5234 = vmatpush.bf16.msra.mxu1 %v9618_v28  ;;  %v11333_v28 = vld [vmem:[#allocation10 + $0xcc8] sm:$0xf0]  ;;  %v11483_v35 = vld [vmem:[#allocation10 + $0x1178] sm:$0xf0]  ;;  %v13481_v30 = vld [vmem:[#allocation29_spill] sm:$0xff] }
 0x225   :  { %5253 = vmatpush.bf16.msra.mxu2 %v9778_v60  ;;  %5203 = vmatmul.bf16.vlgmr.msrb.gmra.mxu3 %v13474_v53  ;;  %v9378_v60 = vor.u32 %v11258_v57, %v9377_v9  ;;  %v11368_v53 = vld [vmem:[#allocation10 + $0xde0] sm:$0xf0]  ;;  %v10097_v9 = vld [vmem:[#allocation10 + $0x1000] sm:$0xf]  ;;  %v11438_v57 = vld [vmem:[#allocation10 + $0x1010] sm:$0xf0] }
 0x226   :  { %5272 = vmatpush.bf16.msra.mxu3 %v9938_v50  ;;  %v9538_v50 = vor.u32 %v11298_v63, %v9537_v11  ;;  %v9818_v42 = vor.u32 %v11368_v53, %v9817_v1  ;;  %v10257_v11 = vld [vmem:[#allocation10 + $0x1140] sm:$0xf]  ;;  %v11478_v63 = vld [vmem:[#allocation10 + $0x1150] sm:$0xf0]  ;;  %v10098_v32 = vor.u32 %v11438_v57, %v10097_v9 }
 0x227   :  { %5216 = vmatpush.bf16.msra.mxu0 %v9438_v54  ;;  %v12484_v41 = vpop.f32.mrf.mxu2  ;;  %v9358_v54 = vor.u32 %v11253_v21, %v9357_v6  ;;  %v10237_v6 = vld [vmem:[#allocation10 + $0x1118] sm:$0xf]  ;;  %v11473_v21 = vld [vmem:[#allocation10 + $0x1128] sm:$0xf0]  ;;  %v11496_v53 = vld [vmem:[#allocation11 + $0x60] sm:$0xff] }
 0x228   :  { %5235 = vmatpush.bf16.msra.mxu1 %v9598_v18  ;;  %v9518_v18 = vor.u32 %v11293_v45, %v9517_v2  ;;  %v11418_v9 = vld [vmem:[#allocation10 + $0xf70] sm:$0xf0]  ;;  %v10177_v57 = vld [vmem:[#allocation10 + $0x10a0] sm:$0xf] }
 0x229   :  { %5254 = vmatpush.bf16.msra.mxu2 %v9758_v62  ;;  %v12486_v24 = vpop.f32.mrf.mxu3  ;;  %v12488_v26 = vpop.f32.mrf.mxu0  ;;  %v9678_v62 = vor.u32 %v11333_v28, %v9677_v51  ;;  %v10077_v51 = vld [vmem:[#allocation10 + $0xfd8] sm:$0xf]  ;;  %v11433_v28 = vld [vmem:[#allocation10 + $0xfe8] sm:$0xf0] }
 0x22a   :  { %5273 = vmatpush.bf16.msra.mxu3 %v9918_v25  ;;  %v12490_v59 = vpop.f32.mrf.mxu1  ;;  %v9838_v25 = vor.u32 %v11373_v8, %v9837_v4  ;;  %v11489_v4 = vld [vmem:[#allocation11 + $0x28] sm:$0xff]  ;;  %v10078_v8 = vor.u32 %v11433_v28, %v10077_v51  ;;  %v11494_v51 = vld [vmem:[#allocation11 + $0x50] sm:$0xff] }
 0x22b   :  { %5217 = vmatpush.bf16.msra.mxu0 %v9418_v10  ;;  %v13478_v10 = vld [vmem:[#allocation26_spill] sm:$0xff] }
 0x22c   :  { %5236 = vmatpush.bf16.msra.mxu1 %v9578_v55  ;;  %v9658_v55 = vor.u32 %v11328_v14, %v9657_v39  ;;  %v10057_v39 = vld [vmem:[#allocation10 + $0xfb0] sm:$0xf]  ;;  %v11428_v14 = vld [vmem:[#allocation10 + $0xfc0] sm:$0xf0] }
 0x22d   :  { %5255 = vmatpush.bf16.msra.mxu2 %v9738_v29  ;;  %v13477_v29 = vld [vmem:[#allocation25_spill] sm:$0xff]  ;;  %v10058_v48 = vor.u32 %v11428_v14, %v10057_v39  ;;  %v11485_v14 = vld [vmem:[#allocation11 + $0x8] sm:$0xff] }
 0x22e   :  { %5274 = vmatpush.bf16.msra.mxu3 %v9898_v3  ;;  %v9338_v3 = vor.u32 %v11248_v20, %v9337_v7  ;;  %v10217_v7 = vld [vmem:[#allocation10 + $0x10f0] sm:$0xf]  ;;  %v11468_v20 = vld [vmem:[#allocation10 + $0x1100] sm:$0xf0]  ;;  %v5376_v39 = vld [vmem:[#allocation2 + $0x50] sm:$0xc0] }
 0x22f   :  { %5218 = vmatpush.bf16.msra.mxu0 %v9398_v56  ;;  %v12492_v40 = vpop.f32.mrf.mxu2  ;;  %v10118_v56 = vor.u32 %v11443_v33, %v10117_v5  ;;  %v10218_v1 = vor.u32 %v11468_v20, %v10217_v7  ;;  %v5384_v7 = vld [vmem:[#allocation2 + $0xc0] sm:$0x3f] }
 0x230   :  { %5237 = vmatpush.bf16.msra.mxu1 %v9558_v0  ;;  %v10278_v0 = vor.u32 %v11483_v35, %v10277_v12 }
 0x231   :  { %5256 = vmatpush.bf16.msra.mxu2 %v9718_v61  ;;  %v12494_v49 = vpop.f32.mrf.mxu3  ;;  %v12496_v27 = vpop.f32.mrf.mxu0  ;;  %5151 = vmatmul.bf16.gmra.mxu0 %v13475_v38  ;;  %v11491_v61 = vld [vmem:[#allocation11 + $0x38] sm:$0xff] }
 0x232   :  { %5275 = vmatpush.bf16.msra.mxu3 %v9878_v44  ;;  %v12498_v13 = vpop.f32.mrf.mxu1  ;;  %5170 = vmatmul.bf16.gmra.mxu1 %v13476_v19  ;;  %v11499_v44 = vld [vmem:[#allocation11 + $0x78] sm:$0xff]  ;;  %v11488_v19 = vld [vmem:[#allocation11 + $0x20] sm:$0xff] }
 0x233   :  { %5219 = vmatpush.bf16.msra.mxu0 %v9378_v60  ;;  %5189 = vmatmul.bf16.gmra.mxu2 %v13477_v29  ;;  %v11498_v60 = vld [vmem:[#allocation11 + $0x70] sm:$0xff]  ;;  %v13482_v38 = vld [vmem:[#allocation30_spill] sm:$0xff]  ;;  %v10037_v29 = vld [vmem:[#allocation10 + $0xf88] sm:$0xf] }
 0x234   :  { %5238 = vmatpush.bf16.msra.mxu1 %v9538_v50 }
 0x235   :  { %5257 = vmatpush.bf16.msra.mxu2 %v9698_v17  ;;  %5208 = vmatmul.bf16.gmra.mxu3 %v13478_v10  ;;  %v10258_v17 = vor.u32 %v11478_v63, %v10257_v11  ;;  %v11423_v10 = vld [vmem:[#allocation10 + $0xf98] sm:$0xf0]  ;;  %v11458_v11 = vld [vmem:[#allocation10 + $0x10b0] sm:$0xf0] }
 0x236   :  { %5276 = vmatpush.bf16.msra.mxu3 %v9858_v34  ;;  %v11486_v63 = vld [vmem:[#allocation11 + $0x10] sm:$0xff] }
 0x237   :  { %5220 = vmatpush.bf16.msra.mxu0 %v9358_v54  ;;  %v12504_v31 = vpop.f32.mrf.mxu2  ;;  %v11497_v54 = vld [vmem:[#allocation11 + $0x68] sm:$0xff] }
 0x238   :  { %5239 = vmatpush.bf16.msra.mxu1 %v9518_v18  ;;  %v13479_v18 = vld [vmem:[#allocation27_spill] sm:$0xff] }
 0x239   :  { %5258 = vmatpush.bf16.msra.mxu2 %v9678_v62  ;;  %v12506_v47 = vpop.f32.mrf.mxu3  ;;  %v12508_v43 = vpop.f32.mrf.mxu0  ;;  %v10238_v62 = vor.u32 %v11473_v21, %v10237_v6  ;;  %v10157_v21 = vld [vmem:[#allocation10 + $0x1078] sm:$0xf] }
 0x23a   :  { %5277 = vmatpush.bf16.msra.mxu3 %v9838_v25  ;;  %v12510_v16 = vpop.f32.mrf.mxu1  ;;  %v13480_v25 = vld [vmem:[#allocation28_spill] sm:$0xff] }
 0x23b   :  { %5221 = vmatpush.bf16.msra.mxu0 %v9338_v3  ;;  %v11463_v3 = vld [vmem:[#allocation10 + $0x10d8] sm:$0xf0] }
 0x23c   :  { %5240 = vmatpush.bf16.msra.mxu1 %v9498_v58  ;;  %v11487_v58 = vld [vmem:[#allocation11 + $0x18] sm:$0xff] }
 0x23d   :  { %5259 = vmatpush.bf16.msra.mxu2 %v9658_v55  ;;  %v10197_v55 = vld [vmem:[#allocation10 + $0x10c8] sm:$0xf] }
 0x23e   :  { %5278 = vmatpush.bf16.msra.mxu3 %v9818_v42  ;;  %v10038_v42 = vor.u32 %v11423_v10, %v10037_v29  ;;  %v10137_v29 = vld [vmem:[#allocation10 + $0x1050] sm:$0xf]  ;;  %v11448_v10 = vld [vmem:[#allocation10 + $0x1060] sm:$0xf0] }
 0x23f   :  { %5290 = vmatpush.bf16.msrb.mxu0 %v10118_v56  ;;  %v12512_v50 = vpop.f32.mrf.mxu2  ;;  %v10198_v56 = vor.u32 %v11463_v3, %v10197_v55  ;;  %v12550_v55 = vld [vmem:[#allocation2 + $0x98] sm:$0xff] }
 0x240   :  { %5309 = vmatpush.bf16.msrb.mxu1 %v10278_v0  ;;  %v11495_v0 = vld [vmem:[#allocation11 + $0x58] sm:$0xff] }
 0x241   :  { %7292 = vmatpush.bf16.msrb.mxu2 %v11491_v61  ;;  %v12514_v34 = vpop.f32.mrf.mxu3  ;;  %v12516_v2 = vpop.f32.mrf.mxu0  ;;  %5222 = vmatmul.bf16.vlgmr.msra.gmra.mxu0 %v13479_v18  ;;  %v4844_v61 = vadd.f32 %v12476_v52, %v12457_v22  ;;  %v9997_v22 = vld [vmem:[#allocation10 + $0xf38] sm:$0xf]  ;;  %v11413_v52 = vld [vmem:[#allocation10 + $0xf48] sm:$0xf0] }
 0x242   :  { %7311 = vmatpush.bf16.msrb.mxu3 %v11499_v44  ;;  %v12518_v45 = vpop.f32.mrf.mxu1  ;;  %5241 = vmatmul.bf16.vlgmr.msra.gmra.mxu1 %v13480_v25  ;;  %v10017_v44 = vld [vmem:[#allocation10 + $0xf60] sm:$0xf]  ;;  %v9998_v18 = vor.u32 %v11413_v52, %v9997_v22  ;;  %v5377_v25 = vld [vmem:[#allocation2] sm:$0xc0] }
 0x243   :  { %5291 = vmatpush.bf16.msrb.mxu0 %v10098_v32  ;;  %5260 = vmatmul.bf16.vlgmr.msra.gmra.mxu2 %v13481_v30  ;;  %v5385_v32 = vld [vmem:[#allocation2 + $0x30] sm:$0x3f]  ;;  %v4846_v30 = vadd.f32 %v12488_v26, %v12464_v37  ;;  %v13486_v37 = vld [vmem:[#allocation34_spill] sm:$0xff]  ;;  %v5428_v26 = vrot.slane %v5377_v25, 6 }
 0x244   :  { %5310 = vmatpush.bf16.msrb.mxu1 %v10258_v17  ;;  %v4863_v17 = vadd.f32 %v12478_v36, %v4844_v61  ;;  %v12544_v36 = vld [vmem:[#allocation2 + $0x78] sm:$0xff]  ;;  %v5439_v20 = vrot.slane %v5385_v32, 6  ;;  %v5437_v61 = vrot.slane %v5384_v7, 6  ;;  %v11522_v7 = vld [vmem:[#allocation11 + $0x130] sm:$0xff] }
 0x245   :  { %7293 = vmatpush.bf16.msrb.mxu2 %v11490_v46  ;;  %5279 = vmatmul.bf16.vlgmr.msra.gmra.mxu3 %v13482_v38  ;;  %v10018_v46 = vor.u32 %v11418_v9, %v10017_v44  ;;  %v11493_v38 = vld [vmem:[#allocation11 + $0x48] sm:$0xff]  ;;  %v5429_v3 = vrot.slane %v12544_v36, 6  ;;  %v5425_v44 = vrot.slane %v5376_v39, 6 }
 0x246   :  { %7312 = vmatpush.bf16.msrb.mxu3 %v11498_v60  ;;  %v10178_v60 = vor.u32 %v11458_v11, %v10177_v57  ;;  %v4865_v57 = vadd.f32 %v12490_v59, %v4846_v30 }
 0x247   :  { %5292 = vmatpush.bf16.msrb.mxu0 %v10078_v8  ;;  %v12524_v5 = vpop.f32.mrf.mxu2  ;;  %v4882_v8 = vadd.f32 %v12484_v41, %v4863_v17  ;;  %v5440_v9 = vsel %vm5424_vm0, %v5429_v3, %v5439_v20  ;;  %v5430_v59 = vsel %vm5424_vm0, %v5428_v26, %v5429_v3  ;;  %v11530_v20 = vld [vmem:[#allocation11 + $0x170] sm:$0xff] }
 0x248   :  { %5311 = vmatpush.bf16.msrb.mxu1 %v10238_v62  ;;  %v4884_v22 = vadd.f32 %v12492_v40, %v4865_v57 }
 0x249   :  { %7294 = vmatpush.bf16.msrb.mxu2 %v11489_v4  ;;  %v12526_v33 = vpop.f32.mrf.mxu3  ;;  %v12528_v12 = vpop.f32.mrf.mxu0  ;;  %v11453_v4 = vld [vmem:[#allocation10 + $0x1088] sm:$0xf0] }
 0x24a   :  { %7313 = vmatpush.bf16.msrb.mxu3 %v11497_v54  ;;  %v12530_v35 = vpop.f32.mrf.mxu1  ;;  %v10158_v41 = vor.u32 %v11453_v4, %v10157_v21  ;;  %v11507_v4 = vld [vmem:[#allocation11 + $0xb8] sm:$0xff]  ;;  %v4903_v30 = vadd.f32 %v12494_v49, %v4884_v22 }
 0x24b   :  { %5293 = vmatpush.bf16.msrb.mxu0 %v10058_v48  ;;  %v11408_v48 = vld [vmem:[#allocation10 + $0xf20] sm:$0xf0] }
 0x24c   :  { %5312 = vmatpush.bf16.msrb.mxu1 %v10218_v1  ;;  %v13483_v1 = vld [vmem:[#allocation31_spill] sm:$0xff] }
 0x24d   :  { %7295 = vmatpush.bf16.msrb.mxu2 %v11488_v19  ;;  %v9977_v19 = vld [vmem:[#allocation10 + $0xf10] sm:$0xf] }
 0x24e   :  { %7314 = vmatpush.bf16.msrb.mxu3 %v11496_v53  ;;  %v13484_v53 = vld [vmem:[#allocation32_spill] sm:$0xff] }
 0x24f   :  { %5294 = vmatpush.bf16.msrb.mxu0 %v10038_v42  ;;  %v12535_v28 = vpop.f32.mrf.mxu2  ;;  %v13485_v42 = vld [vmem:[#allocation33_spill] sm:$0xff] }
 0x250   :  { %5313 = vmatpush.bf16.msrb.mxu1 %v10198_v56  ;;  %v11484_v56 = vld [vmem:[#allocation11] sm:$0xff] }
 0x251   :  { %7296 = vmatpush.bf16.msrb.mxu2 %v11487_v58  ;;  %v12537_v6 = vpop.f32.mrf.mxu3  ;;  %v12540_v62 = vpop.f32.mrf.mxu0  ;;  %5227 = vmatmul.bf16.gmra.mxu0 %v13483_v1  ;;  %v4901_v58 = vadd.f32 %v12486_v24, %v4882_v8  ;;  %v10138_v24 = vor.u32 %v11448_v10, %v10137_v29  ;;  %v11515_v8 = vld [vmem:[#allocation11 + $0xf8] sm:$0xff] }
 0x252   :  { %7315 = vmatpush.bf16.msrb.mxu3 %v11495_v0  ;;  %v12542_v54 = vpop.f32.mrf.mxu1  ;;  %5246 = vmatmul.bf16.gmra.mxu1 %v13484_v53  ;;  %v9978_v0 = vor.u32 %v11408_v48, %v9977_v19  ;;  %v11514_v19 = vld [vmem:[#allocation11 + $0xf0] sm:$0xff]  ;;  %v5397_v1 = vld [vmem:[#allocation2 + $0xd8] sm:$0x3f] }
 0x253   :  { %5295 = vmatpush.bf16.msrb.mxu0 %v10018_v46  ;;  %5265 = vmatmul.bf16.gmra.mxu2 %v13485_v42  ;;  %v4920_v11 = vadd.f32 %v12516_v2, %v4901_v58  ;;  %v5426_v46 = vrot.slane %v12550_v55, 6 }
 0x254   :  { %5314 = vmatpush.bf16.msrb.mxu1 %v10178_v60  ;;  %v11523_v60 = vld [vmem:[#allocation11 + $0x138] sm:$0xff] }
 0x255   :  { %7297 = vmatpush.bf16.msrb.mxu2 %v11486_v63  ;;  %5284 = vmatmul.bf16.gmra.mxu3 %v13486_v37  ;;  %v11492_v63 = vld [vmem:[#allocation11 + $0x40] sm:$0xff]  ;;  %v5438_v2 = vsel %vm5424_vm0, %v5426_v46, %v5437_v61  ;;  %v5427_v40 = vsel %vm5424_vm0, %v5425_v44, %v5426_v46  ;;  %v11521_v61 = vld [vmem:[#allocation11 + $0x128] sm:$0xff]  ;;  %v5459_v44 = vrot.slane %v5397_v1, 6 }
 0x256   :  { %7316 = vmatpush.bf16.msrb.mxu3 %v11494_v51  ;;  %v11531_v51 = vld [vmem:[#allocation11 + $0x178] sm:$0xff]  ;;  %v5483_v39 = vpack.c.bf16 %v5440_v9, %v5438_v2  ;;  %v5481_v25 = vpack.c.bf16 %v5430_v59, %v5427_v40  ;;  %v5396_v37 = vld [vmem:[#allocation2 + $0x40] sm:$0x3f]  ;;  %v4851_v9 = vadd.f32 %v12508_v43, %v12474_v15 }
 0x257   :  { %5296 = vmatpush.bf16.msrb.mxu0 %v9998_v18  ;;  %v12560_v32 = vpop.f32.mrf.mxu2  ;;  %v4939_v18 = vadd.f32 %v12518_v45, %v4920_v11  ;;  %v4922_v45 = vadd.f32 %v12528_v12, %v4903_v30  ;;  %v12585_v12 = vld [vmem:[#allocation2 + $0xb0] sm:$0xff]  ;;  %v11505_v11 = vld [vmem:[#allocation11 + $0xa8] sm:$0xff]  ;;  %v13487_v46 = vld [vmem:[#allocation35_spill] sm:$0xff]  ;;  %v5457_v22 = vrot.slane %v5396_v37, 6 }
 0x258   :  { %5315 = vmatpush.bf16.msrb.mxu1 %v10158_v41  ;;  %v5825_v48 = vunpack.c.h.b16 %v5483_v39  ;;  %v5820_v10 = vunpack.c.l.b16 %v5481_v25  ;;  %v5821_v42 = vunpack.c.h.b16 %v5481_v25  ;;  %v11520_v43 = vld [vmem:[#allocation11 + $0x120] sm:$0xff] }
 0x259   :  { %7298 = vmatpush.bf16.msrb.mxu2 %v11485_v14  ;;  %v12562_v17 = vpop.f32.mrf.mxu3  ;;  %v12565_v52 = vpop.f32.mrf.mxu0  ;;  %v4849_v14 = vadd.f32 %v12496_v27, %v12472_v23  ;;  %v4958_v41 = vadd.f32 %v12524_v5, %v4939_v18  ;;  %v5824_v23 = vunpack.c.l.b16 %v5483_v39 }
 0x25a   :  { %7317 = vmatpush.bf16.msrb.mxu3 %v11493_v38  ;;  %v12567_v21 = vpop.f32.mrf.mxu1  ;;  %v11506_v38 = vld [vmem:[#allocation11 + $0xb0] sm:$0xff]  ;;  %v5837_v57 = vpack.c.b16 %v5825_v48, %v5821_v42  ;;  %v11527_v48 = vld [vmem:[#allocation11 + $0x158] sm:$0xff] }
 0x25b   :  { %5297 = vmatpush.bf16.msrb.mxu0 %v9978_v0  ;;  %v4868_v27 = vadd.f32 %v12498_v13, %v4849_v14  ;;  %v4977_v5 = vadd.f32 %v12526_v33, %v4958_v41  ;;  %v5388_v13 = vld [vmem:[#allocation2 + $0x70] sm:$0xc0]  ;;  %v5836_v26 = vpack.c.b16 %v5824_v23, %v5820_v10  ;;  %v5389_v0 = vld [vmem:[#allocation2 + $0xe8] sm:$0xc0]  ;;  %v4870_v14 = vadd.f32 %v12510_v16, %v4851_v9 }
 0x25c   :  { %5316 = vmatpush.bf16.msrb.mxu1 %v10138_v24  ;;  %v11513_v24 = vld [vmem:[#allocation11 + $0xe8] sm:$0xff]  ;;  %v5448_v15 = vrot.slane %v5389_v0, 6  ;;  %v11502_v0 = vld [vmem:[#allocation11 + $0x90] sm:$0xff] }
 0x25d   :  { %7299 = vmatpush.bf16.msrb.mxu2 %v11484_v56  ;;  %v4887_v49 = vadd.f32 %v12504_v31, %v4868_v27  ;;  %v11529_v56 = vld [vmem:[#allocation11 + $0x168] sm:$0xff]  ;;  %v4941_v31 = vadd.f32 %v12530_v35, %v4922_v45  ;;  %v11528_v35 = vld [vmem:[#allocation11 + $0x160] sm:$0xff]  ;;  %v4889_v30 = vadd.f32 %v12512_v50, %v4870_v14  ;;  %v11519_v45 = vld [vmem:[#allocation11 + $0x118] sm:$0xff] }
 0x25e   :  { %7318 = vmatpush.bf16.msrb.mxu3 %v11492_v63  ;;  %v12590_v63 = vld [vmem:[#allocation2 + $0x48] sm:$0xff]  ;;  %v11503_v50 = vld [vmem:[#allocation11 + $0x98] sm:$0xff]  ;;  %v13489_v14 = vld [vmem:[#allocation37_spill] sm:$0xff] }
 0x25f   :  { %7330 = vmatpush.bf16.msra.mxu0 %v11507_v4  ;;  %v12579_v53 = vpop.f32.mrf.mxu2  ;;  %v4906_v59 = vadd.f32 %v12506_v47, %v4887_v49  ;;  %v4960_v2 = vadd.f32 %v12535_v28, %v4941_v31  ;;  %v5445_v4 = vrot.slane %v5388_v13, 6  ;;  %v11504_v47 = vld [vmem:[#allocation11 + $0xa0] sm:$0xff] }
 0x260   :  { %7349 = vmatpush.bf16.msra.mxu1 %v11515_v8  ;;  %v5446_v8 = vrot.slane %v12590_v63, 6  ;;  %v11512_v28 = vld [vmem:[#allocation11 + $0xe0] sm:$0xff] }
 0x261   :  { %7368 = vmatpush.bf16.msra.mxu2 %v11523_v60  ;;  %v12581_v29 = vpop.f32.mrf.mxu3  ;;  %v4995_v3 = vpop.f32.mrf.mxu0  ;;  %5298 = vmatmul.bf16.vlgmr.msrb.gmra.mxu0 %v13487_v46  ;;  %v13488_v60 = vld [vmem:[#allocation36_spill] sm:$0xff]  ;;  %v4925_v18 = vadd.f32 %v12540_v62, %v4906_v59  ;;  %v4979_v41 = vadd.f32 %v12537_v6, %v4960_v2  ;;  %v11511_v6 = vld [vmem:[#allocation11 + $0xd8] sm:$0xff] }
 0x262   :  { %7387 = vmatpush.bf16.msra.mxu3 %v11531_v51  ;;  %v5014_v58 = vpop.f32.mrf.mxu1  ;;  %v4996_v33 = vadd.f32 %v4995_v3, %v4977_v5  ;;  %5317 = vmatmul.bf16.vlgmr.msrb.gmra.mxu1 %v13488_v60  ;;  %v5449_v51 = vrot.slane %v12585_v12, 6  ;;  %v5447_v62 = vsel %vm5424_vm0, %v5445_v4, %v5446_v8  ;;  %v4908_v3 = vadd.f32 %v12514_v34, %v4889_v30  ;;  %v5490_v60 = vld [vmem:[#allocation2] sm:$0x80]  ;;  %v11517_v59 = vld [vmem:[#allocation11 + $0x108] sm:$0xff] }
 0x263   :  { %7331 = vmatpush.bf16.msra.mxu0 %v11506_v38  ;;  %7300 = vmatmul.bf16.vlgmr.msrb.gmra.mxu2 %v5836_v26  ;;  %v4944_v1 = vadd.f32 %v12542_v54, %v4925_v18  ;;  %v11518_v26 = vld [vmem:[#allocation11 + $0x110] sm:$0xff]  ;;  %v11525_v2 = vld [vmem:[#allocation11 + $0x148] sm:$0xff]  ;;  %v13490_v18 = vld [vmem:[#allocation38_spill] sm:$0xff] }
 0x264   :  { %7350 = vmatpush.bf16.msra.mxu1 %v11514_v19  ;;  %v5460_v39 = vsel %vm5424_vm0, %v5449_v51, %v5459_v44  ;;  %v5015_v40 = vadd.f32 %v5014_v58, %v4996_v33  ;;  %v5450_v16 = vsel %vm5424_vm0, %v5448_v15, %v5449_v51  ;;  %v4927_v54 = vadd.f32 %v12565_v52, %v4908_v3  ;;  %v11510_v44 = vld [vmem:[#allocation11 + $0xd0] sm:$0xff]  ;;  %v5493_v51 = vld [vmem:[#allocation2 + $0xc0] sm:$0x7f]  ;;  %v11501_v4 = vld [vmem:[#allocation11 + $0x88] sm:$0xff] }
 0x265   :  { %7369 = vmatpush.bf16.msra.mxu2 %v11522_v7  ;;  %7319 = vmatmul.bf16.vlgmr.msrb.gmra.mxu3 %v5837_v57  ;;  %v5485_v5 = vpack.c.bf16 %v5450_v16, %v5447_v62  ;;  %v4963_v58 = vadd.f32 %v12560_v32, %v4944_v1  ;;  %v5494_v33 = vld [vmem:[#allocation2 + $0x30] sm:$0x7f]  ;;  %v11508_v16 = vld [vmem:[#allocation11 + $0xc0] sm:$0xff]  ;;  %v5378_v62 = vld [vmem:[#allocation2 + $0xb8] sm:$0xc0] }
 0x266   :  { %7388 = vmatpush.bf16.msra.mxu3 %v11530_v20  ;;  %v5458_v20 = vsel %vm5424_vm0, %v5446_v8, %v5457_v22  ;;  %v4946_v15 = vadd.f32 %v12567_v21, %v4927_v54  ;;  %v11509_v8 = vld [vmem:[#allocation11 + $0xc8] sm:$0xff]  ;;  %v11516_v21 = vld [vmem:[#allocation11 + $0x100] sm:$0xff] }
 0x267   :  { %7332 = vmatpush.bf16.msra.mxu0 %v11505_v11  ;;  %v5033_v25 = vpop.f32.mrf.mxu2  ;;  %v5487_v27 = vpack.c.bf16 %v5460_v39, %v5458_v20  ;;  %v5828_v32 = vunpack.c.l.b16 %v5485_v5  ;;  %v5829_v31 = vunpack.c.h.b16 %v5485_v5  ;;  %v4982_v57 = vadd.f32 %v12562_v17, %v4963_v58  ;;  %v5489_v17 = vld [vmem:[#allocation2 + $0x50] sm:$0x80]  ;;  %v11524_v20 = vld [vmem:[#allocation11 + $0x140] sm:$0xff] }
 0x268   :  { %7351 = vmatpush.bf16.msra.mxu1 %v11513_v24  ;;  %v5034_v38 = vadd.f32 %v5033_v25, %v5015_v40  ;;  %v5536_v39 = vrot.slane %v5494_v33, 7  ;;  %v5525_v40 = vrot.slane %v5490_v60, 7  ;;  %v4965_v25 = vadd.f32 %v12579_v53, %v4946_v15  ;;  %v11562_v33 = vld [vmem:[#allocation11 + $0x270] sm:$0xff] }
 0x269   :  { %7370 = vmatpush.bf16.msra.mxu2 %v11521_v61  ;;  %v5052_v7 = vpop.f32.mrf.mxu3  ;;  %v4997_v19 = vpop.f32.mrf.mxu0  ;;  %v5832_v13 = vunpack.c.l.b16 %v5487_v27  ;;  %v5833_v37 = vunpack.c.h.b16 %v5487_v27  ;;  %v11526_v61 = vld [vmem:[#allocation11 + $0x150] sm:$0xff]  ;;  %v5522_v30 = vrot.slane %v5489_v17, 7  ;;  %v11553_v17 = vld [vmem:[#allocation11 + $0x228] sm:$0xff] }
 0x26a   :  { %7389 = vmatpush.bf16.msra.mxu3 %v11529_v56  ;;  %v5016_v23 = vpop.f32.mrf.mxu1  ;;  %v5053_v10 = vadd.f32 %v5052_v7, %v5034_v38  ;;  %v4998_v49 = vadd.f32 %v4997_v19, %v4979_v41  ;;  %v5523_v41 = vrot.slane %v12550_v55, 7  ;;  %v5379_v38 = vld [vmem:[#allocation2 + $0x18] sm:$0xc0]  ;;  %v11546_v60 = vld [vmem:[#allocation11 + $0x1f0] sm:$0xff] }
 0x26b   :  { %7333 = vmatpush.bf16.msra.mxu0 %v11504_v47  ;;  %v5840_v52 = vpack.c.b16 %v5832_v13, %v5828_v32  ;;  %v5841_v22 = vpack.c.b16 %v5833_v37, %v5829_v31  ;;  %v5526_v47 = vrot.slane %v12544_v36, 7  ;;  %v5434_v13 = vrot.slane %v5379_v38, 6  ;;  %v11554_v31 = vld [vmem:[#allocation11 + $0x230] sm:$0xff]  ;;  %v11545_v38 = vld [vmem:[#allocation11 + $0x1e8] sm:$0xff] }
 0x26c   :  { %7352 = vmatpush.bf16.msra.mxu1 %v11512_v28  ;;  %v12609_v42 = vmax.f32 %v5053_v10, 0.0  ;;  %v5017_v56 = vadd.f32 %v5016_v23, %v4998_v49  ;;  %v5534_v28 = vrot.slane %v5493_v51, 7  ;;  %v11500_v23 = vld [vmem:[#allocation11 + $0x80] sm:$0xff]  ;;  %v11555_v10 = vld [vmem:[#allocation11 + $0x238] sm:$0xff]  ;;  %v5524_v54 = vsel %vm5521_vm1, %v5522_v30, %v5523_v41 }
 0x26d   :  { %7371 = vmatpush.bf16.msra.mxu2 %v11520_v43  ;;  %v5537_v53 = vsel %vm5521_vm1, %v5526_v47, %v5536_v39  ;;  %v11563_v49 = vld [vmem:[#allocation11 + $0x278] sm:$0xff]  ;;  %v11561_v39 = vld [vmem:[#allocation11 + $0x268] sm:$0xff] }
 0x26e   :  { %7390 = vmatpush.bf16.msra.mxu3 %v11528_v35  ;;  %5363 = vst [vmem:[#allocation2 + $0xa8] sm:$0xff] %v12609_v42  ;;  %v5535_v1 = vsel %vm5521_vm1, %v5523_v41, %v5534_v28  ;;  %v5435_v37 = vrot.slane %v12609_v42, 6  ;;  %v11537_v41 = vld [vmem:[#allocation11 + $0x1a8] sm:$0xff] }
 0x26f   :  { %7334 = vmatpush.bf16.msra.mxu0 %v11503_v50  ;;  %v5035_v34 = vpop.f32.mrf.mxu2  ;;  %v12623_v50 = vld [vmem:[#allocation2 + $0x60] sm:$0xff] }
 0x270   :  { %7353 = vmatpush.bf16.msra.mxu1 %v11511_v6  ;;  %v5036_v11 = vadd.f32 %v5035_v34, %v5017_v56  ;;  %v4984_v6 = vadd.f32 %v12581_v29, %v4965_v25  ;;  %v5580_v56 = vpack.c.bf16 %v5537_v53, %v5535_v1  ;;  %v5432_v29 = vrot.slane %v12623_v50, 6 }
 0x271   :  { %7372 = vmatpush.bf16.msra.mxu2 %v11519_v45  ;;  %v5054_v9 = vpop.f32.mrf.mxu3  ;;  %v5000_v24 = vpop.f32.mrf.mxu0  ;;  %5303 = vmatmul.bf16.gmra.mxu0 %v13489_v14  ;;  %v5502_v14 = vld [vmem:[#allocation2 + $0xd8] sm:$0x7f] }
 0x272   :  { %7391 = vmatpush.bf16.msra.mxu3 %v11527_v48  ;;  %v5019_v46 = vpop.f32.mrf.mxu1  ;;  %v5055_v43 = vadd.f32 %v5054_v9, %v5036_v11  ;;  %v5001_v35 = vadd.f32 %v5000_v24, %v4982_v57  ;;  %5322 = vmatmul.bf16.gmra.mxu1 %v13490_v18  ;;  %v5527_v48 = vsel %vm5521_vm1, %v5525_v40, %v5526_v47  ;;  %v5431_v9 = vrot.slane %v5378_v62, 6  ;;  %v5501_v62 = vld [vmem:[#allocation2 + $0x40] sm:$0x7f] }
 0x273   :  { %7335 = vmatpush.bf16.msra.mxu0 %v11502_v0  ;;  %7305 = vmatmul.bf16.gmra.mxu2 %v5840_v52  ;;  %v5386_v0 = vld [vmem:[#allocation2 + $0xf0] sm:$0x3f]  ;;  %v5578_v32 = vpack.c.bf16 %v5527_v48, %v5524_v54  ;;  %v5436_v11 = vsel %vm5424_vm0, %v5434_v13, %v5435_v37  ;;  %v5864_v51 = vunpack.c.l.b16 %v5580_v56  ;;  %v5546_v13 = vrot.slane %v12585_v12, 7 }
 0x274   :  { %7354 = vmatpush.bf16.msra.mxu1 %v11510_v44  ;;  %v5351_v7 = vmax.f32 %v5055_v43, 0.0  ;;  %v5020_v19 = vadd.f32 %v5019_v46, %v5001_v35  ;;  %v5441_v24 = vrot.slane %v5386_v0, 6  ;;  %v11538_v46 = vld [vmem:[#allocation11 + $0x1b0] sm:$0xff]  ;;  %v5554_v54 = vrot.slane %v5501_v62, 7  ;;  %v11544_v0 = vld [vmem:[#allocation11 + $0x1e0] sm:$0xff] }
 0x275   :  { %7373 = vmatpush.bf16.msra.mxu2 %v11518_v26  ;;  %7324 = vmatmul.bf16.gmra.mxu3 %v5841_v22  ;;  %v11539_v26 = vld [vmem:[#allocation11 + $0x1b8] sm:$0xff]  ;;  %v5861_v28 = vunpack.c.h.b16 %v5578_v32 }
 0x276   :  { %7392 = vmatpush.bf16.msra.mxu3 %v11526_v61  ;;  %5367 = vst [vmem:[#allocation2 + $0xa0] sm:$0xff] %v5351_v7  ;;  %v11547_v61 = vld [vmem:[#allocation11 + $0x1f8] sm:$0xff]  ;;  %v5442_v25 = vsel %vm5424_vm0, %v5432_v29, %v5441_v24 }
 0x277   :  { %7336 = vmatpush.bf16.msra.mxu0 %v11501_v4  ;;  %v5038_v27 = vpop.f32.mrf.mxu2  ;;  %v5860_v4 = vunpack.c.l.b16 %v5578_v32  ;;  %v5390_v32 = vld [vmem:[#allocation2 + $0x90] sm:$0xc0] }
 0x278   :  { %7355 = vmatpush.bf16.msra.mxu1 %v11509_v8  ;;  %v5039_v5 = vadd.f32 %v5038_v27, %v5020_v19  ;;  %v5498_v19 = vld [vmem:[#allocation2 + $0xe8] sm:$0x80]  ;;  %v5556_v27 = vrot.slane %v5502_v14, 7 }
 0x279   :  { %7374 = vmatpush.bf16.msra.mxu2 %v11517_v59  ;;  %v5057_v45 = vpop.f32.mrf.mxu3  ;;  %v5002_v3 = vpop.f32.mrf.mxu0  ;;  %v5865_v59 = vunpack.c.h.b16 %v5580_v56  ;;  %v11536_v56 = vld [vmem:[#allocation11 + $0x1a0] sm:$0xff] }
 0x27a   :  { %7393 = vmatpush.bf16.msra.mxu3 %v11525_v2  ;;  %v5021_v58 = vpop.f32.mrf.mxu1  ;;  %v5058_v44 = vadd.f32 %v5057_v45, %v5039_v5  ;;  %v5003_v34 = vadd.f32 %v5002_v3, %v4984_v6  ;;  %v5433_v2 = vsel %vm5424_vm0, %v5431_v9, %v5432_v29  ;;  %v11552_v6 = vld [vmem:[#allocation11 + $0x220] sm:$0xff]  ;;  %v5557_v29 = vsel %vm5521_vm1, %v5546_v13, %v5556_v27 }
 0x27b   :  { %7337 = vmatpush.bf16.msra.mxu0 %v11500_v23  ;;  %v5482_v8 = vpack.c.bf16 %v5436_v11, %v5433_v2  ;;  %v5877_v53 = vpack.c.b16 %v5865_v59, %v5861_v28  ;;  %v11560_v5 = vld [vmem:[#allocation11 + $0x260] sm:$0xff]  ;;  %v11550_v28 = vld [vmem:[#allocation11 + $0x210] sm:$0xff] }
 0x27c   :  { %7356 = vmatpush.bf16.msra.mxu1 %v11508_v16  ;;  %v12629_v57 = vmax.f32 %v5058_v44, 0.0  ;;  %v5022_v22 = vadd.f32 %v5021_v58, %v5003_v34  ;;  %v5876_v16 = vpack.c.b16 %v5864_v51, %v5860_v4  ;;  %v5545_v58 = vrot.slane %v5498_v19, 7  ;;  %v5391_v44 = vld [vmem:[#allocation2 + $0x68] sm:$0xc0]  ;;  %v11559_v51 = vld [vmem:[#allocation11 + $0x258] sm:$0xff] }
 0x27d   :  { %7375 = vmatpush.bf16.msra.mxu2 %v11516_v21  ;;  %v5387_v52 = vld [vmem:[#allocation2 + $0xa0] sm:$0x3f]  ;;  %v5497_v21 = vld [vmem:[#allocation2 + $0x70] sm:$0x80]  ;;  %v5822_v45 = vunpack.c.l.b16 %v5482_v8  ;;  %v5823_v1 = vunpack.c.h.b16 %v5482_v8  ;;  %v11543_v4 = vld [vmem:[#allocation11 + $0x1d8] sm:$0xff] }
 0x27e   :  { %7394 = vmatpush.bf16.msra.mxu3 %v11524_v20  ;;  %5371 = vst [vmem:[#allocation2 + $0x88] sm:$0xff] %v12629_v57  ;;  %v5443_v15 = vrot.slane %v5387_v52, 6  ;;  %v5542_v3 = vrot.slane %v5497_v21, 7  ;;  %v5454_v52 = vrot.slane %v5391_v44, 6  ;;  %v11534_v21 = vld [vmem:[#allocation11 + $0x190] sm:$0xff] }
 0x27f   :  { %7406 = vmatpush.bf16.msrb.mxu0 %v11539_v26  ;;  %v5040_v43 = vpop.f32.mrf.mxu2 }
 0x280   :  { %7425 = vmatpush.bf16.msrb.mxu1 %v11547_v61  ;;  %v5041_v18 = vadd.f32 %v5040_v43, %v5022_v22  ;;  %v5444_v7 = vsel %vm5424_vm0, %v5435_v37, %v5443_v15  ;;  %v5543_v61 = vrot.slane %v12590_v63, 7  ;;  %v5455_v22 = vrot.slane %v12629_v57, 6  ;;  %v5398_v43 = vld [vmem:[#allocation2 + $0x80] sm:$0x3f] }
 0x281   :  { %7444 = vmatpush.bf16.msrb.mxu2 %v11555_v10  ;;  %v5059_v35 = vpop.f32.mrf.mxu3  ;;  %v5071_v40 = vpop.f32.mrf.mxu0  ;;  %v5484_v30 = vpack.c.bf16 %v5444_v7, %v5442_v25  ;;  %v11558_v25 = vld [vmem:[#allocation11 + $0x250] sm:$0xff] }
 0x282   :  { %7463 = vmatpush.bf16.msrb.mxu3 %v11563_v49  ;;  %v5090_v47 = vpop.f32.mrf.mxu1  ;;  %v5060_v23 = vadd.f32 %v5059_v35, %v5041_v18  ;;  %v5544_v2 = vsel %vm5521_vm1, %v5542_v3, %v5543_v61  ;;  %v5555_v15 = vsel %vm5521_vm1, %v5543_v61, %v5554_v54  ;;  %v11535_v35 = vld [vmem:[#allocation11 + $0x198] sm:$0xff]  ;;  %v11549_v3 = vld [vmem:[#allocation11 + $0x208] sm:$0xff] }
 0x283   :  { %7407 = vmatpush.bf16.msrb.mxu0 %v11538_v46  ;;  %v5091_v20 = vadd.f32 %v5090_v47, %v5071_v40  ;;  %v5826_v48 = vunpack.c.l.b16 %v5484_v30  ;;  %v5827_v10 = vunpack.c.h.b16 %v5484_v30  ;;  %7376 = vmatmul.bf16.vlgmr.msra.gmra.mxu2 %v5876_v16  ;;  %v5547_v46 = vsel %vm5521_vm1, %v5545_v58, %v5546_v13  ;;  %v11557_v58 = vld [vmem:[#allocation11 + $0x248] sm:$0xff] }
 0x284   :  { %7426 = vmatpush.bf16.msrb.mxu1 %v11546_v60  ;;  %v5359_v49 = vmax.f32 %v5060_v23, 0.0  ;;  %v11551_v60 = vld [vmem:[#allocation11 + $0x218] sm:$0xff]  ;;  %v5582_v18 = vpack.c.bf16 %v5547_v46, %v5544_v2  ;;  %v5456_v40 = vsel %vm5424_vm0, %v5454_v52, %v5455_v22  ;;  %v5461_v47 = vrot.slane %v5398_v43, 6  ;;  %v11533_v61 = vld [vmem:[#allocation11 + $0x188] sm:$0xff]  ;;  %v12654_v52 = vld [vmem:[#allocation2 + $0x30] sm:$0xff] }
 0x285   :  { %7445 = vmatpush.bf16.msrb.mxu2 %v11554_v31  ;;  %7395 = vmatmul.bf16.vlgmr.msra.gmra.mxu3 %v5877_v53  ;;  %v5838_v37 = vpack.c.b16 %v5826_v48, %v5822_v45  ;;  %v5839_v26 = vpack.c.b16 %v5827_v10, %v5823_v1  ;;  %v12639_v31 = vld [vmem:[#allocation2 + $0x10] sm:$0xff]  ;;  %v11541_v54 = vld [vmem:[#allocation11 + $0x1c8] sm:$0xff]  ;;  %v5492_v46 = vld [vmem:[#allocation2 + $0x18] sm:$0x80] }
 0x286   :  { %7464 = vmatpush.bf16.msrb.mxu3 %v11562_v33  ;;  %5375 = vst [vmem:[#allocation2 + $0x38] sm:$0xff] %v5359_v49  ;;  %v5452_v14 = vrot.slane %v12639_v31, 6  ;;  %v5868_v53 = vunpack.c.l.b16 %v5582_v18  ;;  %v5869_v1 = vunpack.c.h.b16 %v5582_v18  ;;  %v11595_v43 = vld [vmem:[#allocation11 + $0x378] sm:$0xff]  ;;  %v5531_v18 = vrot.slane %v5492_v46, 7 }
 0x287   :  { %7408 = vmatpush.bf16.msrb.mxu0 %v11537_v41  ;;  %v5109_v34 = vpop.f32.mrf.mxu2  ;;  %7357 = vmatmul.bf16.vlgmr.msra.gmra.mxu1 %v5839_v26 }
 0x288   :  { %7427 = vmatpush.bf16.msrb.mxu1 %v11545_v38  ;;  %7338 = vmatmul.bf16.vlgmr.msra.gmra.mxu0 %v5838_v37  ;;  %v5110_v33 = vadd.f32 %v5109_v34, %v5091_v20  ;;  %v11542_v20 = vld [vmem:[#allocation11 + $0x1d0] sm:$0xff]  ;;  %v5462_v10 = vsel %vm5424_vm0, %v5452_v14, %v5461_v47 }
 0x289   :  { %7446 = vmatpush.bf16.msrb.mxu2 %v11553_v17  ;;  %v5128_v9 = vpop.f32.mrf.mxu3  ;;  %v5073_v11 = vpop.f32.mrf.mxu0  ;;  %v5584_v17 = vpack.c.bf16 %v5557_v29, %v5555_v15  ;;  %v5495_v29 = vld [vmem:[#allocation2 + $0xf0] sm:$0x7f]  ;;  %v11587_v15 = vld [vmem:[#allocation11 + $0x338] sm:$0xff] }
 0x28a   :  { %7465 = vmatpush.bf16.msrb.mxu3 %v11561_v39  ;;  %v5092_v24 = vpop.f32.mrf.mxu1  ;;  %v12645_v8 = vadd.f32 %v5128_v9, %v5110_v33  ;;  %v5451_v39 = vrot.slane %v5390_v32, 6  ;;  %v5496_v9 = vld [vmem:[#allocation2 + $0xa0] sm:$0x7f]  ;;  %v5538_v47 = vrot.slane %v5495_v29, 7  ;;  %v11569_v29 = vld [vmem:[#allocation11 + $0x2a8] sm:$0xff] }
 0x28b   :  { %v5093_v59 = vadd.f32 %v5092_v24, %v5073_v11  ;;  %7409 = vmatpush.bf16.msrb.mxu0 %v11536_v56  ;;  %v5872_v30 = vunpack.c.l.b16 %v5584_v17  ;;  %v5873_v41 = vunpack.c.h.b16 %v5584_v17  ;;  %v11548_v11 = vld [vmem:[#allocation11 + $0x200] sm:$0xff] }
 0x28c   :  { %7428 = vmatpush.bf16.msrb.mxu1 %v11544_v0  ;;  %v5453_v38 = vsel %vm5424_vm0, %v5451_v39, %v5452_v14  ;;  %v11556_v24 = vld [vmem:[#allocation11 + $0x240] sm:$0xff] }
 0x28d   :  { %7447 = vmatpush.bf16.msrb.mxu2 %v11552_v6  ;;  %v5399_v7 = vld [vmem:[#allocation2 + $0x38] sm:$0x3f]  ;;  %v5486_v62 = vpack.c.bf16 %v5456_v40, %v5453_v38  ;;  %v5880_v37 = vpack.c.b16 %v5872_v30, %v5868_v53  ;;  %v5881_v26 = vpack.c.b16 %v5873_v41, %v5869_v1  ;;  %v12656_v14 = vld [vmem:[#allocation2 + $0xc0] sm:$0xff]  ;;  %v5532_v40 = vrot.slane %v12609_v42, 7 }
 0x28e   :  { %7466 = vmatpush.bf16.msrb.mxu3 %v11560_v5  ;;  %v5463_v19 = vrot.slane %v5399_v7, 6  ;;  %v5529_v41 = vrot.slane %v12623_v50, 7  ;;  %v13411_v1 = vlaneseq }
 0x28f   :  { %7410 = vmatpush.bf16.msrb.mxu0 %v11535_v35  ;;  %v5111_v23 = vpop.f32.mrf.mxu2  ;;  %v5830_v56 = vunpack.c.l.b16 %v5486_v62  ;;  %v5831_v44 = vunpack.c.h.b16 %v5486_v62  ;;  %v5491_v35 = vld [vmem:[#allocation2 + $0xb8] sm:$0x80]  ;;  %v5533_v53 = vsel %vm5521_vm1, %v5531_v18, %v5532_v40 }
 0x290   :  { %7429 = vmatpush.bf16.msrb.mxu1 %v11543_v4  ;;  %v5112_v27 = vadd.f32 %v5111_v23, %v5093_v59  ;;  %v5464_v49 = vsel %vm5424_vm0, %v5455_v22, %v5463_v19  ;;  %v5540_v22 = vrot.slane %v5496_v9, 7  ;;  %v5528_v30 = vrot.slane %v5491_v35, 7  ;;  %v11586_v19 = vld [vmem:[#allocation11 + $0x330] sm:$0xff] }
 0x291   :  { %7448 = vmatpush.bf16.msrb.mxu2 %v11551_v60  ;;  %v5130_v16 = vpop.f32.mrf.mxu3  ;;  %v5076_v45 = vpop.f32.mrf.mxu0  ;;  %v5488_v5 = vpack.c.bf16 %v5464_v49, %v5462_v10  ;;  %v11532_v60 = vld [vmem:[#allocation11 + $0x180] sm:$0xff]  ;;  %v11594_v23 = vld [vmem:[#allocation11 + $0x370] sm:$0xff]  ;;  %v5539_v62 = vsel %vm5521_vm1, %v5529_v41, %v5538_v47 }
 0x292   :  { %7467 = vmatpush.bf16.msrb.mxu3 %v11559_v51  ;;  %v5095_v48 = vpop.f32.mrf.mxu1  ;;  %v12652_v13 = vadd.f32 %v5130_v16, %v5112_v27  ;;  %v11540_v51 = vld [vmem:[#allocation11 + $0x1c0] sm:$0xff]  ;;  %v5541_v38 = vsel %vm5521_vm1, %v5532_v40, %v5540_v22  ;;  %v5594_v16 = vpack.c.bf16 %v12544_v36, %v12550_v55  ;;  %v11570_v27 = vld [vmem:[#allocation11 + $0x2b0] sm:$0xff]  ;;  %v11585_v36 = vld [vmem:[#allocation11 + $0x328] sm:$0xff] }
 0x293   :  { %v5096_v6 = vadd.f32 %v5095_v48, %v5076_v45  ;;  %7411 = vmatpush.bf16.msrb.mxu0 %v11534_v21  ;;  %v5834_v0 = vunpack.c.l.b16 %v5488_v5  ;;  %v5835_v34 = vunpack.c.h.b16 %v5488_v5  ;;  %7381 = vmatmul.bf16.gmra.mxu2 %v5880_v37  ;;  %v5596_v21 = vpack.c.bf16 %v12654_v52, %v12656_v14  ;;  %v11578_v45 = vld [vmem:[#allocation11 + $0x2f0] sm:$0xff]  ;;  %v11593_v55 = vld [vmem:[#allocation11 + $0x368] sm:$0xff] }
 0x294   :  { %7430 = vmatpush.bf16.msrb.mxu1 %v11542_v20  ;;  %v5581_v48 = vpack.c.bf16 %v5541_v38, %v5539_v62  ;;  %v12671_v37 = vshrl.u32 %v13411_v1, 7  ;;  %v12681_v22 = vld [vmem:[#allocation7 + $0x4] sm:$0xff] }
 0x295   :  { %7449 = vmatpush.bf16.msrb.mxu2 %v11550_v28  ;;  %7400 = vmatmul.bf16.gmra.mxu3 %v5881_v26  ;;  %v5842_v32 = vpack.c.b16 %v5834_v0, %v5830_v56  ;;  %v5843_v33 = vpack.c.b16 %v5835_v34, %v5831_v44  ;;  %v11571_v28 = vld [vmem:[#allocation11 + $0x2b8] sm:$0xff]  ;;  %v5904_v10 = vunpack.c.l.b16 %v5596_v21  ;;  %v5905_v49 = vunpack.c.h.b16 %v5596_v21 }
 0x296   :  { %7468 = vmatpush.bf16.msrb.mxu3 %v11558_v25  ;;  %v11579_v25 = vld [vmem:[#allocation11 + $0x2f8] sm:$0xff]  ;;  %v5900_v56 = vunpack.c.l.b16 %v5594_v16  ;;  %v5901_v0 = vunpack.c.h.b16 %v5594_v16  ;;  %v5866_v34 = vunpack.c.l.b16 %v5581_v48  ;;  %v5867_v9 = vunpack.c.h.b16 %v5581_v48 }
 0x297   :  { %7412 = vmatpush.bf16.msrb.mxu0 %v11533_v61  ;;  %v5114_v59 = vpop.f32.mrf.mxu2  ;;  %7362 = vmatmul.bf16.gmra.mxu1 %v5843_v33  ;;  %v7687_v33 = vand.u32 15, %v12671_v37  ;;  %v12693_v21 = vld [vmem:[#allocation2 + $0xd8] sm:$0xff]  ;;  %v5552_v16 = vrot.slane %v12629_v57, 7 }
 0x298   :  { %7431 = vmatpush.bf16.msrb.mxu1 %v11541_v54  ;;  %7343 = vmatmul.bf16.gmra.mxu0 %v5842_v32  ;;  %v5115_v4 = vadd.f32 %v5114_v59, %v5096_v6  ;;  %v5530_v6 = vsel %vm5521_vm1, %v5528_v30, %v5529_v41  ;;  %v11577_v32 = vld [vmem:[#allocation11 + $0x2e8] sm:$0xff]  ;;  %v5917_v46 = vpack.c.b16 %v5905_v49, %v5901_v0  ;;  %v5499_v30 = vld [vmem:[#allocation2 + $0x90] sm:$0x80]  ;;  %v11583_v49 = vld [vmem:[#allocation11 + $0x318] sm:$0xff] }
 0x299   :  { %7450 = vmatpush.bf16.msrb.mxu2 %v11549_v3  ;;  %v5133_v2 = vpop.f32.mrf.mxu3  ;;  %v5078_v17 = vpop.f32.mrf.mxu0  ;;  %vm12683_vm2 = vcmp.eq.s32.totalorder %v7687_v33, 0  ;;  %v12716_v0 = vld [vmem:[#allocation7 + $0x23] sm:$0xff] }
 0x29a   :  { %7469 = vmatpush.bf16.msrb.mxu3 %v11557_v58  ;;  %v5097_v39 = vpop.f32.mrf.mxu1  ;;  %v12661_v20 = vadd.f32 %v5133_v2, %v5115_v4  ;;  %v5579_v58 = vpack.c.bf16 %v5533_v53, %v5530_v6  ;;  %v11584_v4 = vld [vmem:[#allocation11 + $0x320] sm:$0xff]  ;;  %v11591_v6 = vld [vmem:[#allocation11 + $0x358] sm:$0xff] }
 0x29b   :  { %v5098_v7 = vadd.f32 %v5097_v39, %v5078_v17  ;;  %7413 = vmatpush.bf16.msrb.mxu0 %v11532_v60  ;;  %v12677_v60 = vld [vmem:[#allocation2 + $0x80] sm:$0x7f] }
 0x29c   :  { %7432 = vmatpush.bf16.msrb.mxu1 %v11540_v51  ;;  %v12679_v51 = vld [vmem:[#allocation7 + $0x3] sm:$0xff]  ;;  %v5862_v2 = vunpack.c.l.b16 %v5579_v58  ;;  %v5558_v53 = vrot.slane %v12677_v60, 7  ;;  %v12729_v60 = vld [vmem:[#allocation7 + $0xc] sm:$0xff] }
 0x29d   :  { %7451 = vmatpush.bf16.msrb.mxu2 %v11548_v11  ;;  %v11592_v17 = vld [vmem:[#allocation11 + $0x360] sm:$0xff]  ;;  %v7763_v18 = vsel %vm12683_vm2, -1e+30, %v12679_v51 }
 0x29e   :  { %7470 = vmatpush.bf16.msrb.mxu3 %v11556_v24  ;;  %v5916_v24 = vpack.c.b16 %v5904_v10, %v5900_v56  ;;  %v12687_v39 = vld [vmem:[#allocation7 + $0x5] sm:$0xff]  ;;  %v5878_v40 = vpack.c.b16 %v5866_v34, %v5862_v2  ;;  %v7680_v34 = vadd.s32 8, %v12671_v37 }
 0x29f   :  { %7482 = vmatpush.bf16.msra.mxu0 %v11571_v28  ;;  %v5116_v5 = vpop.f32.mrf.mxu2  ;;  %v11568_v28 = vld [vmem:[#allocation11 + $0x2a0] sm:$0xff]  ;;  %v12713_v56 = vld [vmem:[#allocation2 + $0x28] sm:$0x1] }
 0x2a0   :  { %7501 = vmatpush.bf16.msra.mxu1 %v11579_v25  ;;  %v5117_v26 = vadd.f32 %v5116_v5, %v5098_v7  ;;  %v11576_v25 = vld [vmem:[#allocation11 + $0x2e0] sm:$0xff]  ;;  %v7767_v7 = vmax.f32 %v12681_v22, %v7763_v18  ;;  %v11566_v18 = vld [vmem:[#allocation11 + $0x290] sm:$0xff] }
 0x2a1   :  { %7520 = vmatpush.bf16.msra.mxu2 %v11587_v15  ;;  %v5135_v3 = vpop.f32.mrf.mxu3  ;;  %v5147_v61 = vpop.f32.mrf.mxu0  ;;  %v5863_v15 = vunpack.c.h.b16 %v5579_v58  ;;  %v12700_v10 = vld [vmem:[#allocation2 + $0x40] sm:$0xff]  ;;  %v5548_v58 = vrot.slane %v5499_v30, 7 }
 0x2a2   :  { %7539 = vmatpush.bf16.msra.mxu3 %v11595_v43  ;;  %v5166_v54 = vpop.f32.mrf.mxu1  ;;  %v5148_v44 = vadd.f32 %v5147_v61, %v12645_v8  ;;  %v12675_v11 = vadd.f32 %v5135_v3, %v5117_v26  ;;  %v5500_v8 = vld [vmem:[#allocation2 + $0x68] sm:$0x80]  ;;  %v5504_v43 = vld [vmem:[#allocation2 + $0x38] sm:$0x7f]  ;;  %v12698_v62 = vmax.f32 %v7767_v7, %v12687_v39  ;;  %v12705_v3 = vpack.c.bf16 %v12693_v21, %v12700_v10 }
 0x2a3   :  { %7483 = vmatpush.bf16.msra.mxu0 %v11570_v27  ;;  %7452 = vmatmul.bf16.vlgmr.msrb.gmra.mxu2 %v5916_v24  ;;  %v5879_v47 = vpack.c.b16 %v5867_v9, %v5863_v15  ;;  %v5560_v41 = vrot.slane %v5504_v43, 7  ;;  %v11575_v26 = vld [vmem:[#allocation11 + $0x2d8] sm:$0xff]  ;;  %v11582_v24 = vld [vmem:[#allocation11 + $0x310] sm:$0xff]  ;;  %v12731_v15 = vld [vmem:[#allocation7 + $0x25] sm:$0xff]  ;;  %v7694_v43 = vand.u32 15, %v7680_v34  ;;  %v5655_v34 = vrot.slane %v12654_v52, 1 }
 0x2a4   :  { %7502 = vmatpush.bf16.msra.mxu1 %v11578_v45  ;;  %v5167_v59 = vadd.f32 %v5166_v54, %v5148_v44  ;;  %7783 = vrot.lane.b32.xlu0 %v12698_v62, %s11822_s27  ;;  %v12718_v44 = vld [vmem:[#allocation7 + $0x24] sm:$0xff] }
 0x2a5   :  { %7521 = vmatpush.bf16.msra.mxu2 %v11586_v19  ;;  %7471 = vmatmul.bf16.vlgmr.msrb.gmra.mxu3 %v5917_v46  ;;  %v5561_v54 = vsel %vm5521_vm1, %v5552_v16, %v5560_v41  ;;  %v12727_v46 = vld [vmem:[#allocation7 + $0xb] sm:$0xff]  ;;  %vm12747_vm4 = vcmp.eq.s32.totalorder %v7694_v43, 15  ;;  %v5602_v43 = vld [vmem:[#allocation2 + $0x98] sm:$0xfe] }
 0x2a6   :  { %7540 = vmatpush.bf16.msra.mxu3 %v11594_v23  ;;  %v5551_v23 = vrot.slane %v5500_v8, 7  ;;  %7799 = vrot.lane.b32.xlu2 %v12698_v62, %s11832_s4  ;;  %v7770_v8 = vmax.f32 %v12718_v44, %v12716_v0 }
 0x2a7   :  { %7484 = vmatpush.bf16.msra.mxu0 %v11569_v29  ;;  %v5185_v38 = vpop.f32.mrf.mxu2  ;;  %7433 = vmatmul.bf16.vlgmr.msrb.gmra.mxu1 %v5879_v47  ;;  %v5598_v29 = vpack.c.bf16 %v12585_v12, %v12590_v63  ;;  %v12735_v12 = vld [vmem:[#allocation7 + $0xd] sm:$0xff]  ;;  %v7768_v63 = vmax.f32 %v12729_v60, %v12727_v46  ;;  %v5665_v47 = vrot.slane %v12713_v56, 1 }
 0x2a8   :  { %7503 = vmatpush.bf16.msra.mxu1 %v11577_v32  ;;  %7414 = vmatmul.bf16.vlgmr.msrb.gmra.mxu0 %v5878_v40  ;;  %v5186_v27 = vadd.f32 %v5185_v38, %v5167_v59  ;;  %v5553_v32 = vsel %vm5521_vm1, %v5551_v23, %v5552_v16  ;;  %v11590_v59 = vld [vmem:[#allocation11 + $0x350] sm:$0xff] }
 0x2a9   :  { %7522 = vmatpush.bf16.msra.mxu2 %v11585_v36  ;;  %v5204_v19 = vpop.f32.mrf.mxu3  ;;  %v5149_v45 = vpop.f32.mrf.mxu0  ;;  %v5549_v36 = vrot.slane %v12639_v31, 7  ;;  %v11574_v40 = vld [vmem:[#allocation11 + $0x2d0] sm:$0xff] }
 0x2aa   :  { %7541 = vmatpush.bf16.msra.mxu3 %v11593_v55  ;;  %v5168_v48 = vpop.f32.mrf.mxu1  ;;  %v5150_v5 = vadd.f32 %v5149_v45, %v12652_v13  ;;  %v11567_v55 = vld [vmem:[#allocation11 + $0x298] sm:$0xff]  ;;  %v12708_v61 = vadd.f32 %v5204_v19, %v5186_v27  ;;  %v7682_v13 = vadd.s32 24, %v12671_v37  ;;  %v5908_v19 = vunpack.c.l.b16 %v5598_v29 }
 0x2ab   :  { %7485 = vmatpush.bf16.msra.mxu0 %v11568_v28  ;;  %v5559_v33 = vsel %vm5521_vm1, %v5549_v36, %v5558_v53  ;;  %v5913_v28 = vunpack.c.h.b16 %v12705_v3  ;;  %v7776_v53 = vsel %vm12747_vm4, -1e+30, %v12735_v12 }
 0x2ac   :  { %7504 = vmatpush.bf16.msra.mxu1 %v11576_v25  ;;  %v5169_v9 = vadd.f32 %v5168_v48, %v5150_v5  ;;  %v7708_v2 = vand.u32 15, %v7682_v13  ;;  %v5550_v25 = vsel %vm5521_vm1, %v5548_v58, %v5549_v36  ;;  %v5603_v13 = vld [vmem:[#allocation2 + $0x78] sm:$0xfe] }
 0x2ad   :  { %7523 = vmatpush.bf16.msra.mxu2 %v11584_v4  ;;  %v5912_v4 = vunpack.c.l.b16 %v12705_v3  ;;  %v5583_v23 = vpack.c.bf16 %v5553_v32, %v5550_v25  ;;  %v12759_v3 = vmax.f32 %v7768_v63, %v7776_v53  ;;  %v5652_v63 = vrot.slane %v12656_v14, 1 }
 0x2ae   :  { %7542 = vmatpush.bf16.msra.mxu3 %v11592_v17  ;;  %v5585_v17 = vpack.c.bf16 %v5561_v54, %v5559_v33  ;;  %vm12743_vm3 = vcmp.eq.s32.totalorder %v7708_v2, 15  ;;  %v11589_v54 = vld [vmem:[#allocation11 + $0x348] sm:$0xff] }
 0x2af   :  { %7486 = vmatpush.bf16.msra.mxu0 %v11567_v55  ;;  %v5187_v41 = vpop.f32.mrf.mxu2  ;;  %v7778_v16 = vsel %vm12743_vm3, -1e+30, %v12731_v15  ;;  %v11565_v33 = vld [vmem:[#allocation11 + $0x288] sm:$0xff]  ;;  %7785 = vrot.lane.b32.xlu0 %v12759_v3, %s11822_s27  ;;  %v5870_v2 = vunpack.c.l.b16 %v5583_v23 }
 0x2b0   :  { %7505 = vmatpush.bf16.msra.mxu1 %v11575_v26  ;;  %v5188_v27 = vadd.f32 %v5187_v41, %v5169_v9  ;;  %v12757_v5 = vmax.f32 %v7770_v8, %v7778_v16  ;;  %v5874_v36 = vunpack.c.l.b16 %v5585_v17  ;;  %v5875_v55 = vunpack.c.h.b16 %v5585_v17  ;;  %v11581_v26 = vld [vmem:[#allocation11 + $0x308] sm:$0xff]  ;;  %7801 = vrot.lane.b32.xlu2 %v12759_v3, %s11832_s4  ;;  %v11588_v41 = vld [vmem:[#allocation11 + $0x340] sm:$0xff] }
 0x2b1   :  { %7524 = vmatpush.bf16.msra.mxu2 %v11583_v49  ;;  %v5206_v38 = vpop.f32.mrf.mxu3  ;;  %v5152_v45 = vpop.f32.mrf.mxu0  ;;  %v5909_v49 = vunpack.c.h.b16 %v5598_v29  ;;  %v5920_v29 = vpack.c.b16 %v5912_v4, %v5908_v19  ;;  %v5871_v8 = vunpack.c.h.b16 %v5583_v23  ;;  %v5654_v4 = vrot.slane %v5603_v13, 1  ;;  %v11564_v19 = vld [vmem:[#allocation11 + $0x280] sm:$0xff] }
 0x2b2   :  { %7543 = vmatpush.bf16.msra.mxu3 %v11591_v6  ;;  %v5171_v48 = vpop.f32.mrf.mxu1  ;;  %v5610_v6 = vld [vmem:[#allocation2 + $0x20] sm:$0x1]  ;;  %v5153_v58 = vadd.f32 %v5152_v45, %v12661_v20  ;;  %v12763_v9 = vadd.f32 %v5206_v38, %v5188_v27  ;;  %7789 = vrot.lane.b32.xlu1 %v12757_v5, %s11822_s27  ;;  %v7681_v20 = vadd.s32 16, %v12671_v37  ;;  %v5651_v16 = vrot.slane %v5602_v43, 1 }
 0x2b3   :  { %7487 = vmatpush.bf16.msra.mxu0 %v11566_v18  ;;  %v5921_v32 = vpack.c.b16 %v5913_v28, %v5909_v49  ;;  %7457 = vmatmul.bf16.gmra.mxu2 %v5920_v29  ;;  %v5663_v17 = vrot.slane %v5610_v6, 1  ;;  %v5882_v28 = vpack.c.b16 %v5874_v36, %v5870_v2  ;;  %v5883_v25 = vpack.c.b16 %v5875_v55, %v5871_v8  ;;  %v11580_v37 = vld [vmem:[#allocation11 + $0x300] sm:$0xff]  ;;  %v11619_v6 = vld [vmem:[#allocation11 + $0x438] sm:$0xff] }
 0x2b4   :  { %7506 = vmatpush.bf16.msra.mxu1 %v11574_v40  ;;  %v7701_v18 = vand.u32 15, %v7681_v20  ;;  %v12773_v40 = vld [vmem:[#allocation7 + $0x1b] sm:$0xff]  ;;  %v5656_v53 = vsel %vm5650_vm5, %v5654_v4, %v5655_v34  ;;  %v5666_v27 = vsel %vm5650_vm5, %v5655_v34, %v5665_v47  ;;  %v5653_v47 = vsel %vm5650_vm5, %v5651_v16, %v5652_v63  ;;  %v11626_v4 = vld [vmem:[#allocation11 + $0x470] sm:$0xff] }
 0x2b5   :  { %7525 = vmatpush.bf16.msra.mxu2 %v11582_v24  ;;  %v11573_v24 = vld [vmem:[#allocation11 + $0x2c8] sm:$0xff]  ;;  %7476 = vmatmul.bf16.gmra.mxu3 %v5921_v32  ;;  %v12775_v38 = vld [vmem:[#allocation7 + $0x1c] sm:$0xff]  ;;  %v5664_v13 = vsel %vm5650_vm5, %v5652_v63, %v5663_v17  ;;  %v11618_v63 = vld [vmem:[#allocation11 + $0x430] sm:$0xff] }
 0x2b6   :  { %7544 = vmatpush.bf16.msra.mxu3 %v11590_v59  ;;  %v5172_v59 = vadd.f32 %v5171_v48, %v5153_v58  ;;  %v11572_v23 = vld [vmem:[#allocation11 + $0x2c0] sm:$0xff]  ;;  %vm12781_vm6 = vcmp.eq.s32.totalorder %v7701_v18, 0  ;;  %v11627_v58 = vld [vmem:[#allocation11 + $0x478] sm:$0xff]  ;;  %v5709_v20 = vpack.c.bf16 %v5666_v27, %v5664_v13  ;;  %v12801_v17 = vld [vmem:[#allocation2 + $0xf0] sm:$0xff]  ;;  %v5595_v27 = vpack.c.bf16 %v12609_v42, %v12623_v50 }
 0x2b7   :  { %7488 = vmatpush.bf16.msra.mxu0 %v11565_v33  ;;  %v5190_v48 = vpop.f32.mrf.mxu2  ;;  %7438 = vmatmul.bf16.gmra.mxu1 %v5883_v25  ;;  %v12785_v36 = vld [vmem:[#allocation7 + $0x1d] sm:$0xff]  ;;  %v7765_v55 = vsel %vm12781_vm6, -1e+30, %v12773_v40  ;;  %v11610_v18 = vld [vmem:[#allocation11 + $0x3f0] sm:$0xff]  ;;  %v11609_v13 = vld [vmem:[#allocation11 + $0x3e8] sm:$0xff] }
 0x2b8   :  { %7507 = vmatpush.bf16.msra.mxu1 %v11573_v24  ;;  %7419 = vmatmul.bf16.gmra.mxu0 %v5882_v28  ;;  %v11603_v34 = vld [vmem:[#allocation11 + $0x3b8] sm:$0xff]  ;;  %v7769_v32 = vmax.f32 %v12775_v38, %v7765_v55  ;;  %v5707_v24 = vpack.c.bf16 %v5656_v53, %v5653_v47  ;;  %v5944_v25 = vunpack.c.l.b16 %v5709_v20  ;;  %v5615_v50 = vld [vmem:[#allocation2 + $0xb0] sm:$0xfe] }
 0x2b9   :  { %7526 = vmatpush.bf16.msra.mxu2 %v11581_v26  ;;  %v5209_v49 = vpop.f32.mrf.mxu3  ;;  %v5191_v26 = vadd.f32 %v5190_v48, %v5172_v59  ;;  %v5154_v56 = vpop.f32.mrf.mxu0  ;;  %v11611_v29 = vld [vmem:[#allocation11 + $0x3f8] sm:$0xff]  ;;  %v12796_v59 = vld [vmem:[#allocation2 + $0xa0] sm:$0xff]  ;;  %v11617_v48 = vld [vmem:[#allocation11 + $0x428] sm:$0xff] }
 0x2ba   :  { %7545 = vmatpush.bf16.msra.mxu3 %v11589_v54  ;;  %v5173_v54 = vpop.f32.mrf.mxu1  ;;  %v5155_v33 = vadd.f32 %v5154_v56, %v12675_v11  ;;  %v12799_v8 = vmax.f32 %v7769_v32, %v12785_v36  ;;  %v11602_v11 = vld [vmem:[#allocation11 + $0x3b0] sm:$0xff]  ;;  %v5940_v28 = vunpack.c.l.b16 %v5707_v24  ;;  %v5675_v32 = vrot.slane %v12693_v21, 1 }
 0x2bb   :  { %v12794_v2 = vadd.f32 %v5209_v49, %v5191_v26  ;;  %7489 = vmatpush.bf16.msra.mxu0 %v11564_v19  ;;  %v5945_v19 = vunpack.c.h.b16 %v5709_v20  ;;  %v11625_v49 = vld [vmem:[#allocation11 + $0x468] sm:$0xff]  ;;  %v5623_v26 = vld [vmem:[#allocation2 + $0xd0] sm:$0x1]  ;;  %v5902_v20 = vunpack.c.l.b16 %v5595_v27 }
 0x2bc   :  { %7508 = vmatpush.bf16.msra.mxu1 %v11572_v23  ;;  %v5174_v43 = vadd.f32 %v5173_v54, %v5155_v33  ;;  %7787 = vrot.lane.b32.xlu1 %v12799_v8, %s11822_s27  ;;  %v7826_v23 = vadd.f32 %v12729_v60, %v12727_v46  ;;  %v5956_v54 = vpack.c.b16 %v5944_v25, %v5940_v28  ;;  %v11601_v60 = vld [vmem:[#allocation11 + $0x3a8] sm:$0xff] }
 0x2bd   :  { %7527 = vmatpush.bf16.msra.mxu2 %v11580_v37  ;;  %v5597_v37 = vpack.c.bf16 %v12796_v59, %v12801_v17  ;;  %7803 = vrot.lane.b32.xlu0 %v12799_v8, %s11832_s4  ;;  %v7825_v28 = vadd.f32 %v12681_v22, %v12679_v51 }
 0x2be   :  { %7546 = vmatpush.bf16.msra.mxu3 %v11588_v41  ;;  %v5941_v41 = vunpack.c.h.b16 %v5707_v24  ;;  %v12818_v33 = vadd.f32 %v7826_v23, %v12735_v12  ;;  %v5672_v12 = vrot.slane %v12700_v10, 1  ;;  %v11608_v23 = vld [vmem:[#allocation11 + $0x3e0] sm:$0xff] }
 0x2bf   :  { %7558 = vmatpush.bf16.msrb.mxu0 %v11603_v34  ;;  %v5192_v16 = vpop.f32.mrf.mxu2  ;;  %v5906_v47 = vunpack.c.l.b16 %v5597_v37  ;;  %v5907_v46 = vunpack.c.h.b16 %v5597_v37  ;;  %v5622_v34 = vld [vmem:[#allocation2 + $0xe0] sm:$0x1] }
 0x2c0   :  { %7577 = vmatpush.bf16.msrb.mxu1 %v11611_v29  ;;  %v5957_v42 = vpack.c.b16 %v5945_v19, %v5941_v41  ;;  %v5674_v41 = vrot.slane %v5615_v50, 1  ;;  %v11600_v19 = vld [vmem:[#allocation11 + $0x3a0] sm:$0xff] }
 0x2c1   :  { %7596 = vmatpush.bf16.msrb.mxu2 %v11619_v6  ;;  %v5211_v53 = vpop.f32.mrf.mxu3  ;;  %v5193_v6 = vadd.f32 %v5192_v16, %v5174_v43  ;;  %v5903_v43 = vunpack.c.h.b16 %v5595_v27  ;;  %v5918_v25 = vpack.c.b16 %v5906_v47, %v5902_v20  ;;  %v7827_v16 = vadd.f32 %v12775_v38, %v12773_v40  ;;  %v11599_v47 = vld [vmem:[#allocation11 + $0x398] sm:$0xff]  ;;  %v11622_v20 = vld [vmem:[#allocation11 + $0x450] sm:$0xff] }
 0x2c2   :  { %7615 = vmatpush.bf16.msrb.mxu3 %v11627_v58  ;;  %v5223_v58 = vpop.f32.mrf.mxu0  ;;  %v5242_v55 = vpop.f32.mrf.mxu1  ;;  %v5676_v27 = vsel %vm5650_vm5, %v5674_v41, %v5675_v32 }
 0x2c3   :  { %7559 = vmatpush.bf16.msrb.mxu0 %v11602_v11  ;;  %v5224_v56 = vadd.f32 %v5223_v58, %v12708_v61  ;;  %v12814_v29 = vadd.f32 %v5211_v53, %v5193_v6  ;;  %v5685_v61 = vrot.slane %v5623_v26, 1  ;;  %7528 = vmatmul.bf16.vlgmr.msra.gmra.mxu2 %v5956_v54  ;;  %v5614_v11 = vld [vmem:[#allocation2 + $0x48] sm:$0xfe]  ;;  %v5919_v37 = vpack.c.b16 %v5907_v46, %v5903_v43  ;;  %v11623_v26 = vld [vmem:[#allocation11 + $0x458] sm:$0xff] }
 0x2c4   :  { %7578 = vmatpush.bf16.msrb.mxu1 %v11610_v18  ;;  %v5683_v18 = vrot.slane %v5622_v34, 1  ;;  %7805 = vrot.lane.b32.xlu1 %v12757_v5, %s11832_s4  ;;  %v5671_v22 = vrot.slane %v5614_v11, 1  ;;  %v11607_v46 = vld [vmem:[#allocation11 + $0x3d8] sm:$0xff]  ;;  %v12842_v50 = vadd.f32 %v7827_v16, %v12785_v36  ;;  %v7828_v43 = vadd.f32 %v12718_v44, %v12716_v0  ;;  %v11598_v36 = vld [vmem:[#allocation11 + $0x390] sm:$0xff] }
 0x2c5   :  { %7597 = vmatpush.bf16.msrb.mxu2 %v11618_v63  ;;  %v5243_v24 = vadd.f32 %v5242_v55, %v5224_v56  ;;  %7547 = vmatmul.bf16.vlgmr.msra.gmra.mxu3 %v5957_v42  ;;  %v11616_v63 = vld [vmem:[#allocation11 + $0x420] sm:$0xff]  ;;  %v11615_v55 = vld [vmem:[#allocation11 + $0x418] sm:$0xff]  ;;  %v12832_v56 = vadd.f32 %v7825_v28, %v12687_v39  ;;  %v5599_v44 = vpack.c.bf16 %v12629_v57, %v12639_v31  ;;  %v11613_v31 = vld [vmem:[#allocation11 + $0x408] sm:$0xff] }
 0x2c6   :  { %7616 = vmatpush.bf16.msrb.mxu3 %v11626_v4  ;;  %v11624_v4 = vld [vmem:[#allocation11 + $0x460] sm:$0xff]  ;;  %7835 = vrot.lane.b32.xlu0 %v12818_v33, %s11822_s27  ;;  %v5673_v38 = vsel %vm5650_vm5, %v5671_v22, %v5672_v12  ;;  %v5684_v54 = vsel %vm5650_vm5, %v5672_v12, %v5683_v18  ;;  %v12839_v42 = vld [vmem:[#allocation2 + $0x38] sm:$0xff] }
 0x2c7   :  { %7560 = vmatpush.bf16.msrb.mxu0 %v11601_v60  ;;  %v5261_v53 = vpop.f32.mrf.mxu2  ;;  %7509 = vmatmul.bf16.vlgmr.msra.gmra.mxu1 %v5919_v37  ;;  %v5716_v12 = vld [vmem:[#allocation2 + $0x78] sm:$0xfc] }
 0x2c8   :  { %7579 = vmatpush.bf16.msrb.mxu1 %v11609_v13  ;;  %7490 = vmatmul.bf16.vlgmr.msra.gmra.mxu0 %v5918_v25  ;;  %v5711_v13 = vpack.c.bf16 %v5676_v27, %v5673_v38  ;;  %v12863_v27 = vadd.f32 %v7828_v43, %v12731_v15  ;;  %v5613_v15 = vld [vmem:[#allocation2 + $0x58] sm:$0x1]  ;;  %v5604_v43 = vld [vmem:[#allocation2 + $0x60] sm:$0xfe] }
 0x2c9   :  { %7598 = vmatpush.bf16.msrb.mxu2 %v11617_v48  ;;  %v5280_v51 = vpop.f32.mrf.mxu3  ;;  %v5686_v48 = vsel %vm5650_vm5, %v5675_v32, %v5685_v61  ;;  %7833 = vrot.lane.b32.xlu2 %v12832_v56, %s11822_s27  ;;  %v12848_v32 = vld [vmem:[#allocation2 + $0x80] sm:$0xff] }
 0x2ca   :  { %7617 = vmatpush.bf16.msrb.mxu3 %v11625_v49  ;;  %v5262_v49 = vadd.f32 %v5261_v53, %v5243_v24  ;;  %v5225_v6 = vpop.f32.mrf.mxu0  ;;  %v5244_v58 = vpop.f32.mrf.mxu1  ;;  %v5713_v34 = vpack.c.bf16 %v5686_v48, %v5684_v54  ;;  %v11614_v24 = vld [vmem:[#allocation11 + $0x410] sm:$0xff]  ;;  %v5601_v61 = vpack.c.bf16 %v12839_v42, %v12848_v32  ;;  %v5948_v11 = vunpack.c.l.b16 %v5711_v13  ;;  %v5719_v53 = vld [vmem:[#allocation2 + $0x20] sm:$0x3]  ;;  %v11605_v54 = vld [vmem:[#allocation11 + $0x3c8] sm:$0xff] }
 0x2cb   :  { %v5226_v40 = vadd.f32 %v5225_v6, %v12763_v9  ;;  %7561 = vmatpush.bf16.msrb.mxu0 %v11600_v19  ;;  %v12846_v9 = vld [vmem:[#allocation2 + $0x98] sm:$0xfc]  ;;  %v5949_v28 = vunpack.c.h.b16 %v5711_v13  ;;  %v11621_v6 = vld [vmem:[#allocation11 + $0x448] sm:$0xff]  ;;  %v5911_v13 = vunpack.c.h.b16 %v5599_v44 }
 0x2cc   :  { %7580 = vmatpush.bf16.msrb.mxu1 %v11608_v23  ;;  %v12837_v60 = vadd.f32 %v5280_v51, %v5262_v49  ;;  %v5952_v18 = vunpack.c.l.b16 %v5713_v34  ;;  %v5953_v25 = vunpack.c.h.b16 %v5713_v34  ;;  %7837 = vrot.lane.b32.xlu1 %v12842_v50, %s11822_s27  ;;  %v5748_v41 = vrot.slane %v12846_v9, 2  ;;  %v12873_v9 = vld [vmem:[#allocation7 + $0x4b] sm:$0xff] }
 0x2cd   :  { %7599 = vmatpush.bf16.msrb.mxu2 %v11616_v63  ;;  %v5245_v39 = vadd.f32 %v5244_v58, %v5226_v40  ;;  %v11606_v63 = vld [vmem:[#allocation11 + $0x3d0] sm:$0xff]  ;;  %v5752_v51 = vrot.slane %v12654_v52, 2  ;;  %v5914_v49 = vunpack.c.l.b16 %v5601_v61  ;;  %v5915_v57 = vunpack.c.h.b16 %v5601_v61  ;;  %v11597_v52 = vld [vmem:[#allocation11 + $0x388] sm:$0xff] }
 0x2ce   :  { %7618 = vmatpush.bf16.msrb.mxu3 %v11624_v4  ;;  %v5720_v4 = vld [vmem:[#allocation2 + $0x28] sm:$0x3]  ;;  %7849 = vrot.lane.b32.xlu0 %v12832_v56, %s11832_s4  ;;  %v5749_v58 = vrot.slane %v12656_v14, 2  ;;  %v5960_v40 = vpack.c.b16 %v5952_v18, %v5948_v11  ;;  %v5961_v38 = vpack.c.b16 %v5953_v25, %v5949_v28  ;;  %v5760_v34 = vrot.slane %v5719_v53, 2  ;;  %v11612_v14 = vld [vmem:[#allocation11 + $0x400] sm:$0xff] }
 0x2cf   :  { %7562 = vmatpush.bf16.msrb.mxu0 %v11599_v47  ;;  %v5263_v37 = vpop.f32.mrf.mxu2  ;;  %v5762_v22 = vrot.slane %v5720_v4, 2  ;;  %v5751_v47 = vrot.slane %v5716_v12, 2  ;;  %v5612_v61 = vld [vmem:[#allocation2 + $0xc8] sm:$0x1]  ;;  %v5923_v4 = vpack.c.b16 %v5915_v57, %v5911_v13  ;;  %v11620_v11 = vld [vmem:[#allocation11 + $0x440] sm:$0xff]  ;;  %v11634_v13 = vld [vmem:[#allocation11 + $0x4b0] sm:$0xff] }
 0x2d0   :  { %7581 = vmatpush.bf16.msrb.mxu1 %v11607_v46  ;;  %v5264_v19 = vadd.f32 %v5263_v37, %v5245_v39  ;;  %v5910_v46 = vunpack.c.l.b16 %v5599_v44  ;;  %v12871_v39 = vld [vmem:[#allocation7 + $0x33] sm:$0xff]  ;;  %v11596_v18 = vld [vmem:[#allocation11 + $0x380] sm:$0xff]  ;;  %v5669_v37 = vrot.slane %v5613_v15, 1 }
 0x2d1   :  { %7600 = vmatpush.bf16.msrb.mxu2 %v11615_v55  ;;  %v5282_v0 = vpop.f32.mrf.mxu3  ;;  %v5605_v55 = vld [vmem:[#allocation2 + $0xa8] sm:$0xfe]  ;;  %7839 = vrot.lane.b32.xlu2 %v12863_v27, %s11822_s27  ;;  %v11604_v28 = vld [vmem:[#allocation11 + $0x3c0] sm:$0xff]  ;;  %v12879_v44 = vld [vmem:[#allocation7 + $0x34] sm:$0xff]  ;;  %v7901_v12 = vsel %vm12683_vm2, -1e+30, %v12871_v39 }
 0x2d2   :  { %7619 = vmatpush.bf16.msrb.mxu3 %v11623_v26  ;;  %v5228_v23 = vpop.f32.mrf.mxu0  ;;  %v5247_v16 = vpop.f32.mrf.mxu1  ;;  %v12867_v26 = vadd.f32 %v5282_v0, %v5264_v19  ;;  %v5660_v25 = vrot.slane %v5605_v55, 1  ;;  %v5750_v0 = vsel %vm5747_vm7, %v5748_v41, %v5749_v58  ;;  %v12884_v19 = vld [vmem:[#allocation7 + $0x4c] sm:$0xff]  ;;  %v11635_v41 = vld [vmem:[#allocation11 + $0x4b8] sm:$0xff]  ;;  %v5667_v55 = vrot.slane %v5612_v61, 1 }
 0x2d3   :  { %v5229_v48 = vadd.f32 %v5228_v23, %v12794_v2  ;;  %7563 = vmatpush.bf16.msrb.mxu0 %v11598_v36  ;;  %7533 = vmatmul.bf16.gmra.mxu2 %v5960_v40  ;;  %v5661_v36 = vrot.slane %v12796_v59, 1  ;;  %v7903_v23 = vsel %vm12781_vm6, -1e+30, %v12873_v9  ;;  %v5657_v40 = vrot.slane %v5604_v43, 1  ;;  %v12906_v15 = vld [vmem:[#allocation7 + $0x35] sm:$0xff] }
 0x2d4   :  { %7582 = vmatpush.bf16.msrb.mxu1 %v11606_v63  ;;  %v5922_v63 = vpack.c.b16 %v5914_v49, %v5910_v46  ;;  %v5658_v49 = vrot.slane %v12801_v17, 1  ;;  %7851 = vrot.lane.b32.xlu1 %v12818_v33, %s11832_s4 }
 0x2d5   :  { %7601 = vmatpush.bf16.msrb.mxu2 %v11614_v24  ;;  %v5248_v2 = vadd.f32 %v5247_v16, %v5229_v48  ;;  %7552 = vmatmul.bf16.gmra.mxu3 %v5961_v38  ;;  %v5753_v24 = vsel %vm5747_vm7, %v5751_v47, %v5752_v51  ;;  %v11643_v48 = vld [vmem:[#allocation11 + $0x4f8] sm:$0xff]  ;;  %v5662_v45 = vsel %vm5650_vm5, %v5660_v25, %v5661_v36 }
 0x2d6   :  { %7620 = vmatpush.bf16.msrb.mxu3 %v11622_v20  ;;  %v5763_v20 = vsel %vm5747_vm7, %v5752_v51, %v5762_v22  ;;  %v5761_v51 = vsel %vm5747_vm7, %v5749_v58, %v5760_v34  ;;  %v12890_v22 = vpack.c.bf16 %v5753_v24, %v5750_v0  ;;  %7855 = vrot.lane.b32.xlu0 %v12863_v27, %s11832_s4  ;;  %v11642_v34 = vld [vmem:[#allocation11 + $0x4f0] sm:$0xff] }
 0x2d7   :  { %7564 = vmatpush.bf16.msrb.mxu0 %v11597_v52  ;;  %v5266_v16 = vpop.f32.mrf.mxu2  ;;  %7514 = vmatmul.bf16.gmra.mxu1 %v5923_v4  ;;  %v7905_v38 = vmax.f32 %v12879_v44, %v7901_v12  ;;  %v7907_v52 = vmax.f32 %v12884_v19, %v7903_v23  ;;  %v5670_v47 = vsel %vm5650_vm5, %v5661_v36, %v5669_v37  ;;  %v12924_v25 = vld [vmem:[#allocation7 + $0x53] sm:$0xff]  ;;  %v5769_v12 = vrot.slane %v12700_v10, 2 }
 0x2d8   :  { %7583 = vmatpush.bf16.msrb.mxu1 %v11605_v54  ;;  %7495 = vmatmul.bf16.gmra.mxu0 %v5922_v63  ;;  %v5267_v35 = vadd.f32 %v5266_v16, %v5248_v2  ;;  %v12908_v2 = vld [vmem:[#allocation7 + $0x4d] sm:$0xff]  ;;  %v5981_v4 = vunpack.c.h.b16 %v12890_v22  ;;  %v12929_v16 = vld [vmem:[#allocation7 + $0x3b] sm:$0xff]  ;;  %v7961_v10 = vadd.f32 %v12884_v19, %v12873_v9 }
 0x2d9   :  { %7602 = vmatpush.bf16.msrb.mxu2 %v11613_v31  ;;  %v5285_v53 = vpop.f32.mrf.mxu3  ;;  %v12915_v36 = vmax.f32 %v7905_v38, %v12906_v15  ;;  %v12918_v63 = vmax.f32 %v7907_v52, %v12908_v2  ;;  %7853 = vrot.lane.b32.xlu2 %v12842_v50, %s11832_s4  ;;  %v12927_v23 = vld [vmem:[#allocation7 + $0x54] sm:$0xff]  ;;  %v5727_v38 = vld [vmem:[#allocation2 + $0xe0] sm:$0x3] }
 0x2da   :  { %7621 = vmatpush.bf16.msrb.mxu3 %v11621_v6  ;;  %v5230_v57 = vpop.f32.mrf.mxu0  ;;  %v5249_v31 = vpop.f32.mrf.mxu1  ;;  %v12893_v6 = vpack.c.bf16 %v5763_v20, %v5761_v51  ;;  %v12903_v54 = vadd.f32 %v5285_v53, %v5267_v35  ;;  %v5668_v20 = vsel %vm5650_vm5, %v5658_v49, %v5667_v55  ;;  %13501 = vst [vmem:[#allocation21_spill] sm:$0xff] %v12927_v23  ;;  %v12931_v53 = vld [vmem:[#allocation7 + $0x3c] sm:$0xff]  ;;  %v5728_v35 = vld [vmem:[#allocation2 + $0xd0] sm:$0x3] }
 0x2db   :  { %v5231_v58 = vadd.f32 %v5230_v57, %v12814_v29  ;;  %7565 = vmatpush.bf16.msrb.mxu0 %v11596_v18  ;;  %v5659_v29 = vsel %vm5650_vm5, %v5657_v40, %v5658_v49  ;;  %v5710_v61 = vpack.c.bf16 %v5670_v47, %v5668_v20  ;;  %13499 = vst [vmem:[#allocation19_spill] sm:$0xff] %v12915_v36  ;;  %v11633_v18 = vld [vmem:[#allocation11 + $0x4a8] sm:$0xff]  ;;  %v5772_v57 = vrot.slane %v12693_v21, 2  ;;  %v5724_v40 = vld [vmem:[#allocation2 + $0xb0] sm:$0xfc]  ;;  %v11632_v20 = vld [vmem:[#allocation11 + $0x4a0] sm:$0xff] }
 0x2dc   :  { %7584 = vmatpush.bf16.msrb.mxu1 %v11604_v28  ;;  %v5984_v24 = vunpack.c.l.b16 %v12893_v6  ;;  %v5708_v43 = vpack.c.bf16 %v5662_v45, %v5659_v29  ;;  %13500 = vst [vmem:[#allocation20_spill] sm:$0xff] %v12918_v63  ;;  %v11641_v28 = vld [vmem:[#allocation11 + $0x4e8] sm:$0xff]  ;;  %7917 = vrot.lane.b32.xlu1 %v12915_v36, %s11822_s27  ;;  %v7908_v21 = vmax.f32 %v12927_v23, %v12924_v25 }
 0x2dd   :  { %7603 = vmatpush.bf16.msrb.mxu2 %v11612_v14  ;;  %v5250_v46 = vadd.f32 %v5249_v31, %v5231_v58  ;;  %v5980_v14 = vunpack.c.l.b16 %v12890_v22  ;;  %v12934_v31 = vld [vmem:[#allocation7 + $0x55] sm:$0xff]  ;;  %v5946_v45 = vunpack.c.l.b16 %v5710_v61  ;;  %v5947_v58 = vunpack.c.h.b16 %v5710_v61 }
 0x2de   :  { %7622 = vmatpush.bf16.msrb.mxu3 %v11620_v11  ;;  %v5985_v11 = vunpack.c.h.b16 %v12893_v6  ;;  %v5942_v49 = vunpack.c.l.b16 %v5708_v43  ;;  %v5943_v55 = vunpack.c.h.b16 %v5708_v43  ;;  %7921 = vrot.lane.b32.xlu0 %v12918_v63, %s11822_s27  ;;  %v11640_v43 = vld [vmem:[#allocation11 + $0x4e0] sm:$0xff]  ;;  %v5771_v61 = vrot.slane %v5724_v40, 2 }
 0x2df   :  { %7634 = vmatpush.bf16.msra.mxu0 %v11635_v41  ;;  %v5268_v37 = vpop.f32.mrf.mxu2 }
 0x2e0   :  { %7653 = vmatpush.bf16.msra.mxu1 %v11643_v48  ;;  %v5269_v51 = vadd.f32 %v5268_v37, %v5250_v46  ;;  %v5997_v47 = vpack.c.b16 %v5985_v11, %v5981_v4  ;;  %v5723_v46 = vld [vmem:[#allocation2 + $0x48] sm:$0xfc]  ;;  %v5780_v4 = vrot.slane %v5727_v38, 2  ;;  %v5958_v37 = vpack.c.b16 %v5946_v45, %v5942_v49 }
 0x2e1   :  { %11644 = vmatpush.bf16.msra.mxu2 %v11635_v41  ;;  %v5287_v0 = vpop.f32.mrf.mxu3  ;;  %v5617_v11 = vld [vmem:[#allocation2 + $0x88] sm:$0xfe]  ;;  %v5773_v7 = vsel %vm5747_vm7, %v5771_v61, %v5772_v57 }
 0x2e2   :  { %11652 = vmatpush.bf16.msra.mxu3 %v11643_v48  ;;  %v5299_v22 = vpop.f32.mrf.mxu0  ;;  %v5318_v41 = vpop.f32.mrf.mxu1  ;;  %v5996_v48 = vpack.c.b16 %v5984_v24, %v5980_v14  ;;  %v12941_v52 = vadd.f32 %v5287_v0, %v5269_v51  ;;  %v7912_v14 = vsel %vm12743_vm3, -1e+30, %v12934_v31  ;;  %v12952_v24 = vld [vmem:[#allocation7 + $0x3d] sm:$0xff]  ;;  %v5959_v0 = vpack.c.b16 %v5947_v58, %v5943_v55 }
 0x2e3   :  { %7635 = vmatpush.bf16.msra.mxu0 %v11634_v13  ;;  %v5300_v6 = vadd.f32 %v5299_v22, %v12837_v60  ;;  %v7960_v60 = vadd.f32 %v12931_v53, %v12929_v16  ;;  %v5768_v51 = vrot.slane %v5723_v46, 2  ;;  %v5624_v22 = vld [vmem:[#allocation2 + $0x8] sm:$0x1]  ;;  %v12956_v1 = vmax.f32 %v7908_v21, %v7912_v14  ;;  %v11631_v21 = vld [vmem:[#allocation11 + $0x498] sm:$0xff] }
 0x2e4   :  { %7654 = vmatpush.bf16.msra.mxu1 %v11642_v34  ;;  %7604 = vmatmul.bf16.vlgmr.msrb.gmra.mxu2 %v5996_v48  ;;  %v5680_v49 = vrot.slane %v5617_v11, 1  ;;  %v5781_v46 = vsel %vm5747_vm7, %v5769_v12, %v5780_v4 }
 0x2e5   :  { %11645 = vmatpush.bf16.msra.mxu2 %v11634_v13  ;;  %v12947_v29 = vadd.f32 %v5318_v41, %v5300_v6  ;;  %v5782_v13 = vrot.slane %v5728_v35, 2  ;;  %7623 = vmatmul.bf16.vlgmr.msrb.gmra.mxu3 %v5997_v47  ;;  %v5681_v41 = vrot.slane %v12839_v42, 1  ;;  %v5616_v35 = vld [vmem:[#allocation2 + $0x10] sm:$0xfe]  ;;  %13503 = vst [vmem:[#allocation23_spill] sm:$0xff] %v12956_v1  ;;  %v12959_v48 = vadd.f32 %v7960_v60, %v12952_v24  ;;  %v11639_v60 = vld [vmem:[#allocation11 + $0x4d8] sm:$0xff] }
 0x2e6   :  { %11653 = vmatpush.bf16.msra.mxu3 %v11642_v34  ;;  %v5625_v34 = vld [vmem:[#allocation2 + $0xf8] sm:$0x1]  ;;  %v5770_v47 = vsel %vm5747_vm7, %v5768_v51, %v5769_v12  ;;  %v5677_v14 = vrot.slane %v5616_v35, 1  ;;  %7923 = vrot.lane.b32.xlu1 %v12956_v1, %s11822_s27  ;;  %v11630_v51 = vld [vmem:[#allocation11 + $0x490] sm:$0xff] }
 0x2e7   :  { %13502 = vst [vmem:[#allocation22_spill] sm:$0xff] %v12947_v29  ;;  %7636 = vmatpush.bf16.msra.mxu0 %v11633_v18  ;;  %v5689_v6 = vrot.slane %v5625_v34, 1  ;;  %v7301_v40 = vpop.f32.mrf.mxu2  ;;  %7585 = vmatmul.bf16.vlgmr.msrb.gmra.mxu1 %v5959_v0  ;;  %v5808_v34 = vpack.c.bf16 %v5773_v7, %v5770_v47  ;;  %v5682_v61 = vsel %vm5650_vm5, %v5680_v49, %v5681_v41 }
 0x2e8   :  { %7655 = vmatpush.bf16.msra.mxu1 %v11641_v28  ;;  %13504 = vst [vmem:[#allocation24_spill] sm:$0xff] %v12959_v48  ;;  %7566 = vmatmul.bf16.vlgmr.msrb.gmra.mxu0 %v5958_v37 }
 0x2e9   :  { %11646 = vmatpush.bf16.msra.mxu2 %v11633_v18  ;;  %v7320_v38 = vpop.f32.mrf.mxu3  ;;  %v5783_v18 = vsel %vm5747_vm7, %v5772_v57, %v5782_v13  ;;  %v5687_v57 = vrot.slane %v5624_v22, 1  ;;  %v5690_v37 = vsel %vm5650_vm5, %v5681_v41, %v5689_v6  ;;  %7969 = vrot.lane.b32.xlu0 %v12959_v48, %s11822_s27  ;;  %v11638_v22 = vld [vmem:[#allocation11 + $0x4d0] sm:$0xff]  ;;  %v5988_v41 = vunpack.c.l.b16 %v5808_v34 }
 0x2ea   :  { %11654 = vmatpush.bf16.msra.mxu3 %v11641_v28  ;;  %v5678_v28 = vrot.slane %v12848_v32, 1  ;;  %v12963_v45 = vadd.f32 %v7320_v38, %v7301_v40  ;;  %v5301_v55 = vpop.f32.mrf.mxu0  ;;  %v5320_v58 = vpop.f32.mrf.mxu1  ;;  %v5810_v11 = vpack.c.bf16 %v5783_v18, %v5781_v46  ;;  %v5989_v6 = vunpack.c.h.b16 %v5808_v34 }
 0x2eb   :  { %v5302_v13 = vadd.f32 %v5301_v55, %v12867_v26  ;;  %7637 = vmatpush.bf16.msra.mxu0 %v11632_v20  ;;  %v12992_v40 = vadd.f32 %v7961_v10, %v12908_v2  ;;  %v5730_v55 = vld [vmem:[#allocation2 + $0xf8] sm:$0x3]  ;;  %v11629_v2 = vld [vmem:[#allocation11 + $0x488] sm:$0xff] }
 0x2ec   :  { %7656 = vmatpush.bf16.msra.mxu1 %v11640_v43  ;;  %v5679_v26 = vsel %vm5650_vm5, %v5677_v14, %v5678_v28  ;;  %v5688_v4 = vsel %vm5650_vm5, %v5678_v28, %v5687_v57  ;;  %v5992_v35 = vunpack.c.l.b16 %v5810_v11  ;;  %v5729_v57 = vld [vmem:[#allocation2 + $0x8] sm:$0x3]  ;;  %v5726_v14 = vld [vmem:[#allocation2 + $0x88] sm:$0xfc]  ;;  %v5722_v10 = vld [vmem:[#allocation2 + $0x58] sm:$0x3] }
 0x2ed   :  { %11647 = vmatpush.bf16.msra.mxu2 %v11632_v20  ;;  %v12980_v12 = vadd.f32 %v5320_v58, %v5302_v13  ;;  %v7906_v20 = vmax.f32 %v12931_v53, %v12929_v16  ;;  %v5712_v0 = vpack.c.bf16 %v5682_v61, %v5679_v26  ;;  %v5714_v9 = vpack.c.bf16 %v5690_v37, %v5688_v4  ;;  %v5718_v4 = vld [vmem:[#allocation2 + $0xa8] sm:$0xfc] }
 0x2ee   :  { %11655 = vmatpush.bf16.msra.mxu3 %v11640_v43  ;;  %v7910_v43 = vsel %vm12747_vm4, -1e+30, %v12952_v24  ;;  %v5993_v16 = vunpack.c.h.b16 %v5810_v11  ;;  %13507 = vst [vmem:[#allocation27_spill] sm:$0xff] %v12992_v40  ;;  %v6000_v13 = vpack.c.b16 %v5992_v35, %v5988_v41  ;;  %7971 = vrot.lane.b32.xlu1 %v12992_v40, %s11822_s27  ;;  %v5725_v11 = vld [vmem:[#allocation2 + $0x10] sm:$0xfc]  ;;  %v5786_v37 = vrot.slane %v5730_v55, 2 }
 0x2ef   :  { %13505 = vst [vmem:[#allocation25_spill] sm:$0xff] %v12980_v12  ;;  %7638 = vmatpush.bf16.msra.mxu0 %v11631_v21  ;;  %v12989_v7 = vmax.f32 %v7906_v20, %v7910_v43  ;;  %v7303_v30 = vpop.f32.mrf.mxu2  ;;  %v5950_v49 = vunpack.c.l.b16 %v5712_v0  ;;  %v5954_v47 = vunpack.c.l.b16 %v5714_v9  ;;  %v5951_v46 = vunpack.c.h.b16 %v5712_v0  ;;  %v11628_v41 = vld [vmem:[#allocation11 + $0x480] sm:$0xff]  ;;  %v5721_v35 = vld [vmem:[#allocation2 + $0xc8] sm:$0x3] }
 0x2f0   :  { %7657 = vmatpush.bf16.msra.mxu1 %v11639_v60  ;;  %v6001_v34 = vpack.c.b16 %v5993_v16, %v5989_v6  ;;  %v7959_v26 = vadd.f32 %v12879_v44, %v12871_v39  ;;  %v5775_v20 = vrot.slane %v12848_v32, 2  ;;  %v5784_v43 = vrot.slane %v5729_v57, 2 }
 0x2f1   :  { %11648 = vmatpush.bf16.msra.mxu2 %v11631_v21  ;;  %13506 = vst [vmem:[#allocation26_spill] sm:$0xff] %v12989_v7  ;;  %v7322_v24 = vpop.f32.mrf.mxu3  ;;  %7919 = vrot.lane.b32.xlu2 %v12989_v7, %s11822_s27  ;;  %v5955_v21 = vunpack.c.h.b16 %v5714_v9  ;;  %v5758_v0 = vrot.slane %v12796_v59, 2  ;;  %v5777_v9 = vrot.slane %v5726_v14, 2  ;;  %v5774_v39 = vrot.slane %v5725_v11, 2 }
 0x2f2   :  { %11656 = vmatpush.bf16.msra.mxu3 %v11639_v60  ;;  %v12996_v38 = vadd.f32 %v7322_v24, %v7303_v30  ;;  %v5304_v18 = vpop.f32.mrf.mxu0  ;;  %v5323_v28 = vpop.f32.mrf.mxu1  ;;  %v11637_v60 = vld [vmem:[#allocation11 + $0x4c8] sm:$0xff]  ;;  %7933 = vrot.lane.b32.xlu0 %v12915_v36, %s11832_s4  ;;  %v13011_v6 = vadd.f32 %v7959_v26, %v12906_v15  ;;  %v5766_v16 = vrot.slane %v5722_v10, 2 }
 0x2f3   :  { %v5305_v58 = vadd.f32 %v5304_v18, %v12903_v54  ;;  %7639 = vmatpush.bf16.msra.mxu0 %v11630_v51  ;;  %v5778_v54 = vrot.slane %v12839_v42, 2  ;;  %v11636_v42 = vld [vmem:[#allocation11 + $0x4c0] sm:$0xff]  ;;  %v5776_v15 = vsel %vm5747_vm7, %v5774_v39, %v5775_v20 }
 0x2f4   :  { %7658 = vmatpush.bf16.msra.mxu1 %v11638_v22  ;;  %7609 = vmatmul.bf16.gmra.mxu2 %v6000_v13  ;;  %13509 = vst [vmem:[#allocation29_spill] sm:$0xff] %v13011_v6  ;;  %v5717_v18 = vld [vmem:[#allocation2 + $0x60] sm:$0xfc] }
 0x2f5   :  { %11649 = vmatpush.bf16.msra.mxu2 %v11630_v51  ;;  %v13003_v61 = vadd.f32 %v5323_v28, %v5305_v58  ;;  %7628 = vmatmul.bf16.gmra.mxu3 %v6001_v34  ;;  %v5962_v51 = vpack.c.b16 %v5954_v47, %v5950_v49  ;;  %v5779_v59 = vsel %vm5747_vm7, %v5777_v9, %v5778_v54  ;;  %v5757_v28 = vrot.slane %v5718_v4, 2 }
 0x2f6   :  { %11657 = vmatpush.bf16.msra.mxu3 %v11638_v22  ;;  %v5963_v22 = vpack.c.b16 %v5955_v21, %v5951_v46  ;;  %v5787_v24 = vsel %vm5747_vm7, %v5778_v54, %v5786_v37  ;;  %v5755_v58 = vrot.slane %v12801_v17, 2  ;;  %v5764_v47 = vrot.slane %v5721_v35, 2  ;;  %7935 = vrot.lane.b32.xlu1 %v12989_v7, %s11832_s4 }
 0x2f7   :  { %13508 = vst [vmem:[#allocation28_spill] sm:$0xff] %v13003_v61  ;;  %7640 = vmatpush.bf16.msra.mxu0 %v11629_v2  ;;  %v7306_v32 = vpop.f32.mrf.mxu2  ;;  %v5785_v21 = vsel %vm5747_vm7, %v5775_v20, %v5784_v43  ;;  %v5809_v57 = vpack.c.bf16 %v5779_v59, %v5776_v15  ;;  %v5754_v34 = vrot.slane %v5717_v18, 2  ;;  %v5767_v17 = vsel %vm5747_vm7, %v5758_v0, %v5766_v16 }
 0x2f8   :  { %7659 = vmatpush.bf16.msra.mxu1 %v11637_v60  ;;  %7571 = vmatmul.bf16.gmra.mxu0 %v5962_v51  ;;  %v5811_v13 = vpack.c.bf16 %v5787_v24, %v5785_v21  ;;  %v5765_v11 = vsel %vm5747_vm7, %v5755_v58, %v5764_v47 }
 0x2f9   :  { %11650 = vmatpush.bf16.msra.mxu2 %v11629_v2  ;;  %v7325_v30 = vpop.f32.mrf.mxu3  ;;  %7590 = vmatmul.bf16.gmra.mxu1 %v5963_v22  ;;  %v5759_v2 = vsel %vm5747_vm7, %v5757_v28, %v5758_v0  ;;  %v5756_v54 = vsel %vm5747_vm7, %v5754_v34, %v5755_v58  ;;  %v5807_v10 = vpack.c.bf16 %v5767_v17, %v5765_v11  ;;  %v5990_v20 = vunpack.c.l.b16 %v5809_v57 }
 0x2fa   :  { %11658 = vmatpush.bf16.msra.mxu3 %v11637_v60  ;;  %v13015_v49 = vadd.f32 %v7325_v30, %v7306_v32  ;;  %v5306_v55 = vpop.f32.mrf.mxu0  ;;  %7967 = vrot.lane.b32.xlu2 %v13011_v6, %s11822_s27  ;;  %v5325_v60 = vpop.f32.mrf.mxu1  ;;  %v5805_v37 = vpack.c.bf16 %v5759_v2, %v5756_v54  ;;  %v5994_v43 = vunpack.c.l.b16 %v5811_v13  ;;  %v5991_v4 = vunpack.c.h.b16 %v5809_v57 }
 0x2fb   :  { %v5307_v46 = vadd.f32 %v5306_v55, %v12941_v52  ;;  %7641 = vmatpush.bf16.msra.mxu0 %v11628_v41  ;;  %7939 = vrot.lane.b32.xlu0 %v12956_v1, %s11832_s4  ;;  %v7962_v52 = vadd.f32 %v12927_v23, %v12924_v25  ;;  %v5995_v0 = vunpack.c.h.b16 %v5811_v13  ;;  %v5987_v35 = vunpack.c.h.b16 %v5807_v10 }
 0x2fc   :  { %7660 = vmatpush.bf16.msra.mxu1 %v11636_v42  ;;  %v5982_v25 = vunpack.c.l.b16 %v5805_v37  ;;  %v5983_v9 = vunpack.c.h.b16 %v5805_v37  ;;  %v6002_v39 = vpack.c.b16 %v5994_v43, %v5990_v20  ;;  %v13512_v54 = vlaneseq }
 0x2fd   :  { %11651 = vmatpush.bf16.msra.mxu2 %v11628_v41  ;;  %v13025_v14 = vadd.f32 %v5325_v60, %v5307_v46  ;;  %v13036_v26 = vadd.f32 %v7962_v52, %v12934_v31  ;;  %v6003_v16 = vpack.c.b16 %v5995_v0, %v5991_v4 }
 0x2fe   :  { %11659 = vmatpush.bf16.msra.mxu3 %v11636_v42  ;;  %v5986_v42 = vunpack.c.l.b16 %v5807_v10  ;;  %7983 = vrot.lane.b32.xlu1 %v13011_v6, %s11832_s4  ;;  %v5999_v24 = vpack.c.b16 %v5987_v35, %v5983_v9  ;;  %v13054_v11 = vand.u32 127, %v13512_v54 }
 0x2ff   :  { %13510 = vst [vmem:[#allocation30_spill] sm:$0xff] %v13025_v14  ;;  %v7308_v51 = vpop.f32.mrf.mxu2 }
 0x300   :  { %13511 = vst [vmem:[#allocation31_spill] sm:$0xff] %v13036_v26  ;;  %v5998_v59 = vpack.c.b16 %v5986_v42, %v5982_v25  ;;  %vm7731_vm8 = vcmp.ge.s32.totalorder %v13054_v11, 8  ;;  %v7800_v4 = vpop.permute.xlu2 %7799  ;;  %vm7732_vm9 = vcmp.lt.s32.totalorder %v13054_v11, 120 }
 0x301   :  { %v7327_v22 = vpop.f32.mrf.mxu3  ;;  %v7807_v42 = vsel %vm7732_vm9, %v7800_v4, -1e+30 }
 0x302   :  { %v7328_v41 = vadd.f32 %v7327_v22, %v7308_v51  ;;  %7973 = vrot.lane.b32.xlu2 %v13036_v26, %s11822_s27 }
 0x303   :  { %7987 = vrot.lane.b32.xlu0 %v12992_v40, %s11832_s4 }
 0x304   :  { %v7358_v32 = vpop.f32.mrf.mxu1  ;;  %7647 = vmatmul.bf16.vlgmr.msra.gmra.mxu2 %v6002_v39 }
 0x305   :  { %v7339_v31 = vpop.f32.mrf.mxu0  ;;  %7666 = vmatmul.bf16.vlgmr.msra.gmra.mxu3 %v6003_v16 }
 0x306   :  { %v7340_v30 = vadd.f32 %v7339_v31, %v12963_v45  ;;  %7989 = vrot.lane.b32.xlu1 %v13036_v26, %s11832_s4 }
 0x307   :  { %v7377_v28 = vpop.f32.mrf.mxu2 }
 0x308   :  { %v7359_v18 = vadd.f32 %v7358_v32, %v7340_v30  ;;  %7642 = vmatmul.bf16.vlgmr.msra.gmra.mxu0 %v5998_v59 }
 0x309   :  { %v7396_v55 = vpop.f32.mrf.mxu3  ;;  %7661 = vmatmul.bf16.vlgmr.msra.gmra.mxu1 %v5999_v24 }
 0x30a   :  { %7937 = vrot.lane.b32.xlu2 %v12918_v63, %s11832_s4  ;;  %v7378_v15 = vadd.f32 %v7377_v28, %v7359_v18  ;;  %v7802_v59 = vpop.permute.xlu2 %7801 }
 0x30c   :  { %v7397_v58 = vadd.f32 %v7396_v55, %v7378_v15  ;;  %v7360_v46 = vpop.f32.mrf.mxu1 }
 0x30d   :  { %v7341_v47 = vpop.f32.mrf.mxu0 }
 0x30e   :  { %v7342_v21 = vadd.f32 %v7341_v47, %v12996_v38 }
 0x30f   :  { %v7379_v2 = vpop.f32.mrf.mxu2 }
 0x310   :  { %v7361_v45 = vadd.f32 %v7360_v46, %v7342_v21 }
 0x311   :  { %v7398_v60 = vpop.f32.mrf.mxu3 }
 0x312   :  { %7985 = vrot.lane.b32.xlu2 %v12959_v48, %s11832_s4  ;;  %v7380_v57 = vadd.f32 %v7379_v2, %v7361_v45 }
 0x314   :  { %v7399_v13 = vadd.f32 %v7398_v60, %v7380_v57  ;;  %v7363_v17 = vpop.f32.mrf.mxu1 }
 0x315   :  { %v7344_v34 = vpop.f32.mrf.mxu0 }
 0x316   :  { %v7345_v52 = vadd.f32 %v7344_v34, %v13015_v49  ;;  %v7784_v25 = vpop.permute.xlu0 %7783 }
 0x317   :  { %v7382_v10 = vpop.f32.mrf.mxu2  ;;  %v7791_v49 = vsel %vm7731_vm8, %v7784_v25, -1e+30 }
 0x318   :  { %v7364_v37 = vadd.f32 %v7363_v17, %v7345_v52  ;;  %v7795_v16 = vmax.f32 %v12698_v62, %v7791_v49  ;;  %v7808_v62 = vsel %vm7732_vm9, %v7802_v59, -1e+30 }
 0x319   :  { %v7401_v20 = vpop.f32.mrf.mxu3 }
 0x31a   :  { %v7383_v43 = vadd.f32 %v7382_v10, %v7364_v37  ;;  %v13065_v32 = vmax.f32 %v7795_v16, %v7807_v42 }
 0x31c   :  { %v13056_v38 = vadd.f32 %v7401_v20, %v7383_v43  ;;  %v7365_v51 = vpop.f32.mrf.mxu1 }
 0x31d   :  { %v7346_v0 = vpop.f32.mrf.mxu0 }
 0x31e   :  { %v7347_v22 = vadd.f32 %v7346_v0, %v7328_v41 }
 0x31f   :  { %v7384_v35 = vpop.f32.mrf.mxu2 }
 0x320   :  { %v7366_v9 = vadd.f32 %v7365_v51, %v7347_v22 }
 0x321   :  { %v7403_v39 = vpop.f32.mrf.mxu3  ;;  %v7786_v55 = vpop.permute.xlu0 %7785 }
 0x322   :  { %v7385_v31 = vadd.f32 %v7384_v35, %v7366_v9  ;;  %v7792_v47 = vsel %vm7731_vm8, %v7786_v55, -1e+30 }
 0x323   :  { %v7796_v2 = vmax.f32 %v12759_v3, %v7792_v47 }
 0x324   :  { %v13067_v30 = vadd.f32 %v7403_v39, %v7385_v31  ;;  %v7434_v41 = vpop.f32.mrf.mxu1  ;;  %v7790_v28 = vpop.permute.xlu1 %7789 }
 0x325   :  { %v7415_v24 = vpop.f32.mrf.mxu0  ;;  %v7794_v15 = vsel %vm7731_vm8, %v7790_v28, -1e+30  ;;  %v13076_v57 = vmax.f32 %v7796_v2, %v7808_v62 }
 0x326   :  { %v7416_v18 = vadd.f32 %v7415_v24, %v7397_v58  ;;  %v7798_v3 = vmax.f32 %v12757_v5, %v7794_v15  ;;  %v7834_v24 = vpop.permute.xlu2 %7833 }
 0x327   :  { %v7453_v21 = vpop.f32.mrf.mxu2 }
 0x328   :  { %v7435_v46 = vadd.f32 %v7434_v41, %v7416_v18 }
 0x329   :  { %v7472_v45 = vpop.f32.mrf.mxu3 }
 0x32a   :  { %v7454_v60 = vadd.f32 %v7453_v21, %v7435_v46 }
 0x32c   :  { %v7473_v58 = vadd.f32 %v7472_v45, %v7454_v60  ;;  %v7436_v17 = vpop.f32.mrf.mxu1 }
 0x32d   :  { %v7417_v34 = vpop.f32.mrf.mxu0 }
 0x32e   :  { %v7418_v52 = vadd.f32 %v7417_v34, %v7399_v13  ;;  %v13078_v20 = vpop.permute.xlu1 %7787  ;;  %v13093_v47 = vpop.permute.xlu2 %7839 }
 0x32f   :  { %v7455_v37 = vpop.f32.mrf.mxu2  ;;  %v13082_v0 = vpop.permute.xlu0 %7803 }
 0x330   :  { %v7437_v54 = vadd.f32 %v7436_v17, %v7418_v52 }
 0x331   :  { %v7474_v10 = vpop.f32.mrf.mxu3 }
 0x332   :  { %v7456_v43 = vadd.f32 %v7455_v37, %v7437_v54 }
 0x334   :  { %v13080_v4 = vadd.f32 %v7474_v10, %v7456_v43  ;;  %v7439_v22 = vpop.f32.mrf.mxu1 }
 0x335   :  { %v7420_v51 = vpop.f32.mrf.mxu0 }
 0x336   :  { %v7806_v42 = vpop.permute.xlu1 %7805  ;;  %v7854_v52 = vpop.permute.xlu2 %7853 }
 0x337   :  { %v7458_v25 = vpop.f32.mrf.mxu2  ;;  %v7810_v13 = vsel %vm7732_vm9, %v7806_v42, -1e+30  ;;  %v7421_v42 = vadd.f32 %v7420_v51, %v13056_v38 }
 0x338   :  { %v13087_v9 = vmax.f32 %v7798_v3, %v7810_v13  ;;  %v13089_v16 = vpop.permute.xlu0 %7835 }
 0x339   :  { %v7477_v49 = vpop.f32.mrf.mxu3  ;;  %v7440_v12 = vadd.f32 %v7439_v22, %v7421_v42 }
 0x33b   :  { %v7459_v40 = vadd.f32 %v7458_v25, %v7440_v12 }
 0x33c   :  { %v7441_v39 = vpop.f32.mrf.mxu1 }
 0x33d   :  { %v7422_v35 = vpop.f32.mrf.mxu0  ;;  %v7478_v6 = vadd.f32 %v7477_v49, %v7459_v40  ;;  %v7841_v40 = vsel %vm7731_vm8, %v7834_v24, 0.0 }
 0x33e   :  { %v7838_v28 = vpop.permute.xlu1 %7837  ;;  %v7423_v29 = vadd.f32 %v7422_v35, %v13067_v30  ;;  %v7845_v24 = vadd.f32 %v7841_v40, %v12832_v56  ;;  %v7859_v56 = vsel %vm7732_vm9, %v7854_v52, 0.0  ;;  %v13192_v40 = vld [vmem:[#allocation8 + $0x8] sm:$0xff] }
 0x33f   :  { %v7460_v31 = vpop.f32.mrf.mxu2  ;;  %v7843_v49 = vsel %vm7731_vm8, %v7838_v28, 0.0 }
 0x340   :  { %v13091_v15 = vpop.permute.xlu0 %7849 }
 0x341   :  { %v7479_v59 = vpop.f32.mrf.mxu3 }
 0x344   :  { %v7510_v18 = vpop.f32.mrf.mxu1 }
 0x345   :  { %v7491_v41 = vpop.f32.mrf.mxu0 }
 0x346   :  { %v13099_v2 = vpop.permute.xlu1 %7851  ;;  %v7492_v38 = vadd.f32 %v7491_v41, %v7473_v58 }
 0x347   :  { %v7529_v55 = vpop.f32.mrf.mxu2 }
 0x348   :  { %v13101_v60 = vpop.permute.xlu0 %7855  ;;  %v7511_v12 = vadd.f32 %v7510_v18, %v7492_v38 }
 0x349   :  { %v7548_v5 = vpop.f32.mrf.mxu3 }
 0x34b   :  { %v13112_v1 = vpop.permute.xlu2 %7919 }
 0x34c   :  { %v7512_v46 = vpop.f32.mrf.mxu1 }
 0x34d   :  { %v7493_v62 = vpop.f32.mrf.mxu0 }
 0x34e   :  { %v13103_v10 = vpop.permute.xlu1 %7917  ;;  %v7494_v58 = vadd.f32 %v7493_v62, %v13080_v4  ;;  %v7842_v4 = vsel %vm7731_vm8, %v13089_v16, 0.0 }
 0x34f   :  { %v13095_v21 = vpop.f32.mrf.mxu2  ;;  %13513 = vst [vmem:[#allocation32_spill] sm:$0xff] %v13103_v10 }
 0x350   :  { %v13106_v13 = vpop.permute.xlu0 %7921 }
 0x351   :  { %v13097_v45 = vpop.f32.mrf.mxu3  ;;  %13514 = vst [vmem:[#allocation33_spill] sm:$0xff] %v13106_v13  ;;  %v7442_v13 = vadd.f32 %v7441_v39, %v7423_v29 }
 0x353   :  { %v7461_v30 = vadd.f32 %v7460_v31, %v7442_v13 }
 0x354   :  { %v7515_v17 = vpop.f32.mrf.mxu1  ;;  %v13123_v10 = vpop.permute.xlu2 %7967 }
 0x355   :  { %v7496_v34 = vpop.f32.mrf.mxu0  ;;  %v7480_v29 = vadd.f32 %v7479_v59, %v7461_v30  ;;  %v7793_v59 = vsel %vm7731_vm8, %v13078_v20, -1e+30 }
 0x356   :  { %v7497_v7 = vadd.f32 %v7496_v34, %v7478_v6 }
 0x357   :  { %v7534_v54 = vpop.f32.mrf.mxu2 }
 0x358   :  { %v13115_v26 = vpop.permute.xlu1 %7923 }
 0x359   :  { %v7553_v37 = vpop.f32.mrf.mxu3  ;;  %13515 = vst [vmem:[#allocation34_spill] sm:$0xff] %v13115_v26  ;;  %v7516_v26 = vadd.f32 %v7515_v17, %v7497_v7 }
 0x35b   :  { %v13121_v51 = vpop.permute.xlu0 %7969  ;;  %v7535_v39 = vadd.f32 %v7534_v54, %v7516_v26  ;;  %v7847_v26 = vadd.f32 %v7843_v49, %v12842_v50  ;;  %v7797_v54 = vmax.f32 %v12799_v8, %v7793_v59  ;;  %v7816_v49 = vstv %s13145_s20 }
 0x35c   :  { %v7517_v3 = vpop.f32.mrf.mxu1  ;;  %v13151_v62 = vpop.permute.xlu2 %7973 }
 0x35d   :  { %v7498_v43 = vpop.f32.mrf.mxu0  ;;  %v7554_v17 = vadd.f32 %v7553_v37, %v7535_v39  ;;  %v7863_v8 = vadd.f32 %v7859_v56, %v7847_v26  ;;  %v13222_v26 = vmul.f32 %v7816_v49, %v13065_v32 }
 0x35e   :  { %v7499_v31 = vadd.f32 %v7498_v43, %v7480_v29  ;;  %v7844_v43 = vsel %vm7731_vm8, %v13093_v47, 0.0 }
 0x35f   :  { %v13108_v23 = vpop.f32.mrf.mxu2  ;;  %v7848_v47 = vadd.f32 %v7844_v43, %v12863_v27  ;;  %v7860_v27 = vsel %vm7732_vm9, %v13101_v60, 0.0 }
 0x360   :  { %v13134_v41 = vpop.permute.xlu1 %7971  ;;  %v7518_v20 = vadd.f32 %v7517_v3, %v7499_v31  ;;  %v13177_v3 = vld [vmem:[#allocation8] sm:$0xff] }
 0x361   :  { %v13110_v14 = vpop.f32.mrf.mxu3 }
 0x364   :  { %v7586_v48 = vpop.f32.mrf.mxu1  ;;  %v13138_v6 = vpop.permute.xlu0 %7933 }
 0x365   :  { %v7567_v61 = vpop.f32.mrf.mxu0 }
 0x367   :  { %v13117_v63 = vpop.f32.mrf.mxu2 }
 0x368   :  { %v13179_v13 = vpop.permute.xlu1 %7935 }
 0x369   :  { %v13119_v36 = vpop.f32.mrf.mxu3 }
 0x36a   :  { %13516 = vst [vmem:[#allocation35_spill] sm:$0xff] %v13119_v36  ;;  %v7530_v36 = vadd.f32 %v7529_v55, %v7511_v12  ;;  %v7513_v55 = vadd.f32 %v7512_v46, %v7494_v58  ;;  %v7846_v46 = vadd.f32 %v7842_v4, %v12818_v33  ;;  %v7809_v33 = vsel %vm7732_vm9, %v13082_v0, -1e+30  ;;  %v13182_v12 = vld [vmem:[#allocation8 + $0x10] sm:$0xff] }
 0x36c   :  { %v13127_v42 = vpop.f32.mrf.mxu1  ;;  %v7549_v7 = vadd.f32 %v7548_v5, %v7530_v36  ;;  %v7857_v36 = vsel %vm7732_vm9, %v13091_v15, 0.0  ;;  %v7532_v50 = vadd.f32 %v13095_v21, %v7513_v55  ;;  %v13172_v15 = vstv %s10921_s19 }
 0x36d   :  { %v13125_v22 = vpop.f32.mrf.mxu0  ;;  %v7861_v52 = vadd.f32 %v7857_v36, %v7845_v24  ;;  %v13189_v0 = vmul.f32 %v13172_v15, %v12879_v44  ;;  %v13205_v31 = vpop.permute.xlu0 %7939  ;;  %v13225_v36 = vmul.f32 %v7816_v49, %v13076_v57 }
 0x36e   :  { %v7568_v16 = vadd.f32 %v7567_v61, %v7549_v7  ;;  %v7858_v61 = vsel %vm7732_vm9, %v13099_v2, 0.0  ;;  %v7537_v2 = vadd.f32 %v13108_v23, %v7518_v20  ;;  %v7551_v29 = vadd.f32 %v13097_v45, %v7532_v50 }
 0x36f   :  { %v13129_v25 = vpop.f32.mrf.mxu2  ;;  %v7862_v38 = vadd.f32 %v7858_v61, %v7846_v46  ;;  %v13201_v23 = vmul.f32 %v13172_v15, %v12884_v19  ;;  %v7865_v39 = vmul.f32 %v7861_v52, %v13177_v3  ;;  %v7867_v45 = vmul.f32 %v7863_v8, %v13182_v12 }
 0x370   :  { %v7587_v21 = vadd.f32 %v7586_v48, %v7568_v16  ;;  %v7813_v48 = vmax.f32 %v7797_v54, %v7809_v33  ;;  %v7570_v60 = vadd.f32 %v13125_v22, %v7551_v29  ;;  %v13217_v19 = vmul.f32 %v13172_v15, %v12931_v53  ;;  %v13229_v22 = vld [vmem:[#allocation8 + $0x18] sm:$0xff]  ;;  %v7938_v16 = vpop.permute.xlu2 %7937 }
 0x371   :  { %v13131_v35 = vpop.f32.mrf.mxu3  ;;  %v7866_v59 = vmul.f32 %v7862_v38, %v13192_v40  ;;  %v7556_v24 = vadd.f32 %v13110_v14, %v7537_v2  ;;  %v13234_v53 = vsel %vm7731_vm8, %v13112_v1, -1e+30  ;;  %v13237_v46 = vmul.f32 %v7816_v49, %v13087_v9  ;;  %v13517_v56 = vld [vmem:[#allocation35_spill] sm:$0xff]  ;;  %v13521_v2 = vld [vmem:[#allocation29_spill] sm:$0xff] }
 0x372   :  { %v7606_v7 = vadd.f32 %v13117_v63, %v7587_v21  ;;  %v13227_v63 = vmul.f32 %v7816_v49, %v7813_v48  ;;  %v7975_v1 = vsel %vm7731_vm8, %v13123_v10, 0.0  ;;  %v7589_v54 = vadd.f32 %v13127_v42, %v7570_v60  ;;  %v13520_v10 = vld [vmem:[#allocation33_spill] sm:$0xff] }
 0x373   :  { %v13259_v52 = vstv %s13185_s22  ;;  %v7927_v42 = vsel %vm7731_vm8, %v13520_v10, -1e+30  ;;  %v13268_v21 = vstv %s13197_s23  ;;  %v7978_v48 = vsel %vm7731_vm8, %v13151_v62, 0.0  ;;  %v11675_v10 = vld [vmem:[#allocation7 + $0x1c] sm:$0xff] }
 0x374   :  { %v7625_v20 = vadd.f32 %v13517_v56, %v7606_v7  ;;  %v7608_v49 = vadd.f32 %v13129_v25, %v7589_v54  ;;  %v13523_v56 = vld [vmem:[#allocation20_spill] sm:$0xff]  ;;  %v7976_v25 = vsel %vm7731_vm8, %v13121_v51, 0.0 }
 0x375   :  { %v7572_v18 = vpop.f32.mrf.mxu0 }
 0x376   :  { %v7591_v34 = vpop.f32.mrf.mxu1  ;;  %v7573_v37 = vadd.f32 %v7572_v18, %v7554_v17  ;;  %v13208_v18 = vstv %s13154_s21 }
 0x377   :  { %v7610_v28 = vpop.f32.mrf.mxu2  ;;  %v13240_v14 = vmul.f32 %v13208_v18, %v7865_v39  ;;  %v13243_v17 = vmul.f32 %v13208_v18, %v7867_v45  ;;  %v13251_v9 = vmul.f32 %v13208_v18, %v7866_v59  ;;  %v7977_v39 = vsel %vm7731_vm8, %v13134_v41, 0.0  ;;  %v11674_v45 = vld [vmem:[#allocation7 + $0x4] sm:$0xff] }
 0x378   :  { %v7592_v44 = vadd.f32 %v7591_v34, %v7573_v37  ;;  %v7864_v34 = vadd.f32 %v7860_v27, %v7848_v47  ;;  %v13519_v37 = vld [vmem:[#allocation32_spill] sm:$0xff]  ;;  %v7984_v47 = vpop.permute.xlu1 %7983  ;;  %v7751_v7 = vmul.f32 %v11674_v45, %v13259_v52  ;;  %v13524_v41 = vld [vmem:[#allocation31_spill] sm:$0xff]  ;;  %v7986_v51 = vpop.permute.xlu2 %7985 }
 0x379   :  { %v13159_v5 = vpop.f32.mrf.mxu3  ;;  %v7925_v8 = vsel %vm7731_vm8, %v13519_v37, -1e+30  ;;  %v7991_v62 = vsel %vm7732_vm9, %v7984_v47, 0.0  ;;  %v7627_v47 = vadd.f32 %v13131_v35, %v7608_v49  ;;  %v13307_v35 = vstv %s13270_s24 }
 0x37a   :  { %v7611_v32 = vadd.f32 %v7610_v28, %v7592_v44  ;;  %v13254_v50 = vmul.f32 %v7864_v34, %v13229_v22  ;;  %v13518_v28 = vld [vmem:[#allocation26_spill] sm:$0xff]  ;;  %v13522_v34 = vld [vmem:[#allocation19_spill] sm:$0xff] }
 0x37b   :  { %v7930_v43 = vmax.f32 %v13518_v28, %v13234_v53 }
 0x37c   :  { %v7630_v29 = vadd.f32 %v13159_v5, %v7611_v32  ;;  %v7988_v5 = vpop.permute.xlu0 %7987  ;;  %v7982_v32 = vadd.f32 %v7978_v48, %v13524_v41  ;;  %v11676_v41 = vld [vmem:[#allocation7 + $0xc] sm:$0xff]  ;;  %v7874_v11 = vmul.f32 %v13208_v18, %v13254_v50 }
 0x37d   :  { %v7574_v30 = vpop.f32.mrf.mxu0 }
 0x37e   :  { %v7593_v58 = vpop.f32.mrf.mxu1  ;;  %v7575_v57 = vadd.f32 %v7574_v30, %v7556_v24  ;;  %v7979_v30 = vadd.f32 %v7975_v1, %v13521_v2  ;;  %v7929_v24 = vmax.f32 %v13522_v34, %v7925_v8  ;;  %v13525_v1 = vld [vmem:[#allocation22_spill] sm:$0xff]  ;;  %v7993_v2 = vsel %vm7732_vm9, %v7988_v5, 0.0 }
 0x37f   :  { %v7612_v4 = vpop.f32.mrf.mxu2  ;;  %v7992_v34 = vsel %vm7732_vm9, %v7986_v51, 0.0 }
 0x380   :  { %v7594_v27 = vadd.f32 %v7593_v58, %v7575_v57  ;;  %v7941_v57 = vsel %vm7732_vm9, %v13138_v6, -1e+30 }
 0x381   :  { %v13213_v55 = vpop.f32.mrf.mxu3  ;;  %v7945_v45 = vmax.f32 %v7929_v24, %v7941_v57 }
 0x382   :  { %v7613_v37 = vadd.f32 %v7612_v4, %v7594_v27  ;;  %v13529_v4 = vld [vmem:[#allocation28_spill] sm:$0xff] }
 0x385   :  { %v7643_v61 = vpop.f32.mrf.mxu0 }
 0x386   :  { %v7662_v33 = vpop.f32.mrf.mxu1  ;;  %v7644_v38 = vadd.f32 %v7643_v61, %v7625_v20  ;;  %v7931_v20 = vmax.f32 %v13523_v56, %v7927_v42  ;;  %v13526_v61 = vld [vmem:[#allocation27_spill] sm:$0xff]  ;;  %v7753_v42 = vmul.f32 %v11675_v10, %v13259_v52 }
 0x387   :  { %v7648_v60 = vpop.f32.mrf.mxu2 }
 0x388   :  { %v7663_v44 = vadd.f32 %v7662_v33, %v7644_v38  ;;  %v7649_v58 = vadd.f32 %v7648_v60, %v7630_v29  ;;  %v7981_v33 = vadd.f32 %v7977_v39, %v13526_v61  ;;  %v7995_v38 = vadd.f32 %v7991_v62, %v7979_v30  ;;  %v13527_v29 = vld [vmem:[#allocation34_spill] sm:$0xff] }
 0x389   :  { %v7667_v59 = vpop.f32.mrf.mxu3  ;;  %v7928_v6 = vsel %vm7731_vm8, %v13527_v29, -1e+30  ;;  %v13531_v29 = vld [vmem:[#allocation23_spill] sm:$0xff] }
 0x38a   :  { %v7672_v54 = vadd.f32 %v7663_v44, %v13525_v1  ;;  %v7668_v8 = vadd.f32 %v7667_v59, %v7649_v58  ;;  %v13528_v44 = vld [vmem:[#allocation24_spill] sm:$0xff]  ;;  %v7943_v59 = vsel %vm7732_vm9, %v7938_v16, -1e+30  ;;  %v7997_v56 = vadd.f32 %v7993_v2, %v7981_v33 }
 0x38b   :  { %v7980_v39 = vadd.f32 %v7976_v25, %v13528_v44  ;;  %v7999_v24 = vmul.f32 %v7995_v38, %v13177_v3  ;;  %v7752_v16 = vmul.f32 %v11676_v41, %v13259_v52  ;;  %v7947_v1 = vmax.f32 %v7931_v20, %v7943_v59  ;;  %v11677_v20 = vld [vmem:[#allocation7 + $0x24] sm:$0xff] }
 0x38c   :  { %v7755_v48 = vadd.f32 %v7751_v7, %v7672_v54  ;;  %v7674_v27 = vadd.f32 %v7668_v8, %v13529_v4  ;;  %v7632_v7 = vadd.f32 %v13213_v55, %v7613_v37  ;;  %v7990_v54 = vpop.permute.xlu1 %7989  ;;  %v7942_v33 = vsel %vm7732_vm9, %v13179_v13, -1e+30 }
 0x38d   :  { %v7645_v60 = vpop.f32.mrf.mxu0  ;;  %v7996_v37 = vadd.f32 %v7992_v34, %v7980_v39  ;;  %v8005_v51 = vmul.f32 %v13307_v35, %v7999_v24  ;;  %v7994_v2 = vsel %vm7732_vm9, %v7990_v54, 0.0  ;;  %v7953_v44 = vmul.f32 %v13268_v21, %v7947_v1 }
 0x38e   :  { %v7821_v30 = vadd.f32 %v13222_v26, %v7755_v48  ;;  %v7646_v49 = vadd.f32 %v7645_v60, %v7627_v47  ;;  %v7757_v62 = vadd.f32 %v7753_v42, %v7674_v27  ;;  %v7664_v5 = vpop.f32.mrf.mxu1  ;;  %v7951_v26 = vmul.f32 %v13268_v21, %v7945_v45 }
 0x38f   :  { %v7650_v57 = vpop.f32.mrf.mxu2  ;;  %v8001_v42 = vmul.f32 %v7997_v56, %v13182_v12  ;;  %v13532_v12 = vld [vmem:[#allocation30_spill] sm:$0xff] }
 0x390   :  { %v7875_v58 = vadd.f32 %v13240_v14, %v7821_v30  ;;  %v7665_v25 = vadd.f32 %v7664_v5, %v7646_v49  ;;  %v7823_v55 = vadd.f32 %v13227_v63, %v7757_v62  ;;  %v7651_v61 = vadd.f32 %v7650_v57, %v7632_v7  ;;  %v13530_v14 = vld [vmem:[#allocation25_spill] sm:$0xff] }
 0x391   :  { %v7669_v10 = vpop.f32.mrf.mxu3  ;;  %v7754_v63 = vmul.f32 %v11677_v20, %v13259_v52  ;;  %v7944_v52 = vsel %vm7732_vm9, %v13205_v31, -1e+30  ;;  %v8007_v60 = vmul.f32 %v13307_v35, %v8001_v42  ;;  %v13533_v49 = vld [vmem:[#allocation21_spill] sm:$0xff]  ;;  %v8000_v7 = vmul.f32 %v7996_v37, %v13192_v40 }
 0x392   :  { %v7897_v3 = vadd.f32 %v13189_v0, %v7875_v58  ;;  %v7673_v8 = vadd.f32 %v7665_v25, %v13530_v14  ;;  %v7877_v47 = vadd.f32 %v13243_v17, %v7823_v55  ;;  %v7670_v38 = vadd.f32 %v7669_v10, %v7651_v61 }
 0x393   :  { %v7932_v0 = vmax.f32 %v13531_v29, %v7928_v6  ;;  %v7946_v17 = vmax.f32 %v7930_v43, %v7942_v33  ;;  %v7998_v6 = vadd.f32 %v7994_v2, %v7982_v32 }
 0x394   :  { %v7756_v13 = vadd.f32 %v7752_v16, %v7673_v8  ;;  %v7955_v48 = vadd.f32 %v7951_v26, %v7897_v3  ;;  %v7899_v39 = vadd.f32 %v13201_v23, %v7877_v47  ;;  %v7675_v45 = vadd.f32 %v7670_v38, %v13532_v12 }
 0x395   :  { %v7896_v23 = vmul.f32 %v13172_v15, %v13533_v49  ;;  %v7948_v31 = vmax.f32 %v7932_v0, %v7944_v52  ;;  %v7952_v43 = vmul.f32 %v13268_v21, %v7946_v17  ;;  %v8002_v34 = vmul.f32 %v7998_v6, %v13229_v22 }
 0x396   :  { %v7822_v4 = vadd.f32 %v13225_v36, %v7756_v13  ;;  %v8009_v27 = vadd.f32 %v8005_v51, %v7955_v48  ;;  %v7758_v59 = vadd.f32 %v7754_v63, %v7675_v45  ;;  %v7957_v30 = vadd.f32 %v7953_v44, %v7899_v39 }
 0x397   :  { %v8006_v15 = vmul.f32 %v13307_v35, %v8000_v7  ;;  %v8008_v18 = vmul.f32 %v13307_v35, %v8002_v34 }
 0x398   :  { %v7876_v53 = vadd.f32 %v13251_v9, %v7822_v4  ;;  %8013 = vst [vmem:[#allocation13] sm:$0xff] %v8009_v27  ;;  %v7824_v36 = vadd.f32 %v13237_v46, %v7758_v59  ;;  %v8011_v28 = vadd.f32 %v8007_v60, %v7957_v30  ;;  %v7954_v9 = vmul.f32 %v13268_v21, %v7948_v31 }
 0x39a   :  { %v7898_v32 = vadd.f32 %v13217_v19, %v7876_v53  ;;  %v7878_v56 = vadd.f32 %v7874_v11, %v7824_v36  ;;  %8015 = vst [vmem:[#allocation13 + $0x10] sm:$0xff] %v8011_v28 }
 0x39c   :  { %v7956_v40 = vadd.f32 %v7952_v43, %v7898_v32  ;;  %v7900_v62 = vadd.f32 %v7896_v23, %v7878_v56 }
 0x39e   :  { %v8010_v5 = vadd.f32 %v8006_v15, %v7956_v40  ;;  %v7958_v19 = vadd.f32 %v7954_v9, %v7900_v62 }
 0x3a0   :  { %8014 = vst [vmem:[#allocation13 + $0x8] sm:$0xff] %v8010_v5  ;;  %v8012_v22 = vadd.f32 %v8008_v18, %v7958_v19 }
 0x3a2   :  { %8016 = vst [vmem:[#allocation13 + $0x18] sm:$0xff] %v8012_v22 }
 0x3a3   :  { %8029 = dma.vmem_to_hbm [thread:$0]  %s8022_s28, 512, %s8024_s2, [#allocation5], %s11821_s26, %s11821_s26, %s11822_s27  }
 0x3a4   :  { %11818 = dma.done.wait [#allocation5], 512  }
 0x3a5   :  { %11819 = vsyncadd [#allocation5], 4294966784 }
 0x3a6   :  { %8034 = vsyncpa [#allocation4], 1 }
 0x3a7   :  { %8035 = vsyncpa [#allocation9], 1 }
 0x3a8   :  { %8036 = vsyncpa [#allocation12], 1 }
 0x3a9   :  { %8037 = vsyncpa [#allocation5], 1 }
 0x3aa   :  { %8038 = vsyncpa [#allocation6], 1 }

</bundles_post_ra>
